<compile_context>
chip_gen: v7x
topology: tpu7x:2x2x1
jax: 0.10.0
libtpu: 0.0.40
codegen_flags: <defaults>
</compile_context>

<pallas_src>
import numpy as np

import jax
import jax.numpy as jnp
from jax.experimental import pallas as pl
from jax.experimental.pallas import tpu as pltpu

MEAN = 0.1307
STANDARD_DEVIATION = 0.3081


# ----------------------------------------------------------------------------
# Fused Pallas kernel: entire LeNet forward, everything resident in VMEM.
# ----------------------------------------------------------------------------
def _lenet_fused_kernel(x_ref, pleft_ref, qright_ref, m1_ref, b1_ref, p12_ref,
                        m2_hbm, b2_ref, wf1_hbm, bf1_ref, wf2_ref, bf2_ref,
                        out_ref, m2_buf, wf1_buf, dma_sem):
    f32 = jnp.float32
    bf16 = jnp.bfloat16
    scale = 1.0 / (100.0 * 255.0 * STANDARD_DEVIATION)

    # Kick off DMAs for weights not needed until conv2 / fc1 so the ~1.2MB transfer
    # overlaps preprocess + conv1 compute (grid=(1,) otherwise serializes all input DMA).
    copy_m2 = pltpu.make_async_copy(m2_hbm, m2_buf, dma_sem.at[0])
    copy_wf1 = pltpu.make_async_copy(wf1_hbm, wf1_buf, dma_sem.at[1])
    copy_m2.start()
    copy_wf1.start()

    # ---- preprocess: alpha select + 10x10 avg pool + /255 + normalize (bf16 MXU) ------
    xb = x_ref[...].astype(bf16)
    t = jnp.dot(pleft_ref[...], xb, preferred_element_type=f32)                # (28, 1120)
    h = jnp.dot(t.astype(bf16), qright_ref[...], preferred_element_type=f32)   # (28, 28)
    # pleft/qright are 0/1 matrices; apply scale + mean shift in f32 here.
    h = (h * scale - (MEAN / STANDARD_DEVIATION)).astype(bf16)                 # rows parity-major

    # ---- conv1 (1->32, k=5) fused with 2x2 maxpool + ReLU -----------------------------
    # h rows are stored parity-major ((y%2)*14 + y//2), so each (row-parity rp, kh) tap is
    # a static contiguous 12-row slice; the 5 kh taps stack along lanes -> K=140.
    m1 = m1_ref[...]                                                            # (140, 384) bf16
    z1 = None
    for rp in range(2):
        parts = []
        for kh in range(5):
            c = rp + kh
            start = (c % 2) * 14 + c // 2
            parts.append(jax.lax.slice(h, (start, 0), (start + 12, 28)))        # (12, 28)
        lhs = jnp.concatenate(parts, axis=1)                                     # (12, 140)
        # Column-parity-1 variant = LHS shifted left by one lane (wrap lanes hit zero
        # rows of m1, so the wrap is a don't-care).
        lhs_s = jnp.concatenate([lhs[:, 1:], lhs[:, :1]], axis=1)
        v = jnp.maximum(jnp.dot(lhs, m1, preferred_element_type=f32),
                        jnp.dot(lhs_s, m1, preferred_element_type=f32))          # (12, 384)
        z1 = v if z1 is None else jnp.maximum(z1, v)
    z1 = jnp.maximum(z1 + b1_ref[...], 0.0)                                      # (12, 384)

    # ---- permute z1 rows to parity-major so conv2's row taps are contiguous slices ----
    z1p = jnp.dot(p12_ref[...], z1.astype(bf16),
                  preferred_element_type=f32).astype(bf16)                       # (12, 384)

    # ---- conv2 (32->64, k=5) fused with 2x2 maxpool + ReLU ----------------------------
    copy_m2.wait()
    m2 = m2_buf[...]                                                             # (1920, 256) bf16
    z2 = None
    for rp in range(2):
        parts = []
        for kh in range(5):
            c = rp + kh
            start = (c % 2) * 6 + c // 2
            parts.append(jax.lax.slice(z1p, (start, 0), (start + 4, 384)))       # (4, 384)
        lhs = jnp.concatenate(parts, axis=1)                                     # (4, 1920)
        # Column-parity-1 variant = LHS shifted left by 32 lanes (one input-x block);
        # the wrapped lanes multiply m2's all-zero xin=11 rows.
        lhs_s = jnp.concatenate([lhs[:, 32:], lhs[:, :32]], axis=1)
        v = jnp.maximum(jnp.dot(lhs, m2, preferred_element_type=f32),
                        jnp.dot(lhs_s, m2, preferred_element_type=f32))          # (4, 256)
        z2 = v if z2 is None else jnp.maximum(z2, v)
    z2 = jnp.maximum(z2 + b2_ref[...], 0.0)                                      # (4, 256)

    # ---- fc1 (1024 -> 128) + ReLU; NCHW flatten folded into wf1's layout --------------
    copy_wf1.wait()
    z2b = z2.astype(bf16)
    f1 = bf1_ref[...]                                                            # (1, 128)
    for yp in range(4):
        f1 = f1 + jnp.dot(z2b[yp:yp + 1, :], wf1_buf[yp],
                          preferred_element_type=f32)
    f1 = jnp.maximum(f1, 0.0)
    # F.dropout(x, training=False) is identity at inference.

    # ---- fc2 (128 -> 10) + softmax -----------------------------------------------------
    logits = jnp.dot(f1, wf2_ref[...], preferred_element_type=f32) + bf2_ref[...]   # (1, 10)
    logits = logits - jnp.max(logits, axis=-1, keepdims=True)
    e = jnp.exp(logits)
    out_ref[...] = (e / jnp.sum(e, axis=-1, keepdims=True)).astype(out_ref.dtype)


# ----------------------------------------------------------------------------
# One-time host-side weight folding (NOT inside the traced forward).
# ----------------------------------------------------------------------------
def prepare_inputs(params):
    # Row pooling matrix (0/1), rows stored parity-major: pos = (y%2)*14 + y//2.
    pleft = np.zeros((28, 280), np.float32)
    for y in range(28):
        r = (y % 2) * 14 + y // 2
        pleft[r, 10 * y:10 * y + 10] = 1.0

    # Column pooling + channel-3 (alpha) selection, 0/1.
    qright = np.zeros((1120, 28), np.float32)
    cols = np.arange(280)
    qright[4 * cols + 3, cols // 10] = 1.0

    # conv1 banded RHS with kh taps stacked along K; cols = (x_pooled, cout).
    w1 = np.asarray(params["conv1_w"], np.float32)[:, 0]       # (32, 5, 5)  [co, kh, kw]
    w1 = np.transpose(w1, (1, 2, 0))                           # (5, 5, 32)  [kh, kw, co]
    m1s = np.zeros((5 * 28, 12 * 32), np.float32)              # row 27 of each kh block stays 0
    for kh in range(5):
        for xp in range(12):
            for kw in range(5):
                m1s[kh * 28 + 2 * xp + kw, xp * 32:(xp + 1) * 32] = w1[kh, kw]
    b1 = np.tile(np.asarray(params["conv1_b"], np.float32), 12)[None, :]         # (1, 384)

    # 12x12 permutation: natural row order -> parity-major.
    order1 = [0, 2, 4, 6, 8, 10, 1, 3, 5, 7, 9, 11]
    p12 = np.zeros((12, 12), np.float32)
    p12[np.arange(12), order1] = 1.0

    # conv2 banded RHS with kh taps stacked; rows = (kh, x_in, cin), cols = (x_pooled, cout).
    w2 = np.asarray(params["conv2_w"], np.float32)              # (64, 32, 5, 5) [co, ci, kh, kw]
    w2 = np.transpose(w2, (2, 3, 1, 0))                         # (5, 5, 32, 64) [kh, kw, ci, co]
    m2s = np.zeros((5 * 384, 4 * 64), np.float32)               # xin=11 block of each kh stays 0
    for kh in range(5):
        for xp in range(4):
            for kw in range(5):
                xin = 2 * xp + kw
                m2s[kh * 384 + xin * 32:kh * 384 + (xin + 1) * 32,
                    xp * 64:(xp + 1) * 64] = w2[kh, kw]
    b2 = np.tile(np.asarray(params["conv2_b"], np.float32), 4)[None, :]          # (1, 256)

    # fc1: absorb torch's NCHW x.view(-1, 1024) flatten into the weight layout.
    wf1 = np.asarray(params["fc1_w"], np.float32)               # (128, 1024), cols = co*16+y*4+x
    wf1 = wf1.reshape(128, 64, 4, 4).transpose(2, 3, 1, 0).reshape(4, 4 * 64, 128)
    bf1 = np.asarray(params["fc1_b"], np.float32)[None, :]      # (1, 128)
    wf2 = np.asarray(params["fc2_w"], np.float32).T             # (128, 10)
    bf2 = np.asarray(params["fc2_b"], np.float32)[None, :]      # (1, 10)

    bf16 = jnp.bfloat16
    return {
        "pleft": jnp.asarray(pleft, bf16), "qright": jnp.asarray(qright, bf16),
        "m1s": jnp.asarray(m1s, bf16), "b1": jnp.asarray(b1),
        "p12": jnp.asarray(p12, bf16),
        "m2s": jnp.asarray(m2s, bf16), "b2": jnp.asarray(b2),
        "wf1": jnp.asarray(wf1, bf16), "bf1": jnp.asarray(bf1),
        "wf2": jnp.asarray(wf2), "bf2": jnp.asarray(bf2),
    }


# ----------------------------------------------------------------------------
# Forward pass: one pallas_call; m2s/wf1 streamed manually to overlap compute.
# ----------------------------------------------------------------------------
def lenet_forward(x, prep):
    # Contiguous reshape (no copy): column index becomes 4*col + channel.
    x2d = x.reshape(280, 1120)

    def _full(arr):
        nd = arr.ndim
        return pl.BlockSpec(arr.shape, lambda i, _n=nd: (0,) * _n)

    inputs = (x2d, prep["pleft"], prep["qright"], prep["m1s"], prep["b1"],
              prep["p12"], prep["m2s"], prep["b2"], prep["wf1"], prep["bf1"],
              prep["wf2"], prep["bf2"])
    in_specs = [
        _full(x2d), _full(prep["pleft"]), _full(prep["qright"]),
        _full(prep["m1s"]), _full(prep["b1"]), _full(prep["p12"]),
        pl.BlockSpec(memory_space=pl.ANY),          # m2s: manual overlapped DMA
        _full(prep["b2"]),
        pl.BlockSpec(memory_space=pl.ANY),          # wf1: manual overlapped DMA
        _full(prep["bf1"]), _full(prep["wf2"]), _full(prep["bf2"]),
    ]

    grid_spec = pltpu.PrefetchScalarGridSpec(
        num_scalar_prefetch=0,
        grid=(1,),
        in_specs=in_specs,
        out_specs=pl.BlockSpec((1, 10), lambda i: (0, 0)),
        scratch_shapes=[
            pltpu.VMEM((5 * 384, 4 * 64), jnp.bfloat16),    # conv2 banded weights
            pltpu.VMEM((4, 256, 128), jnp.bfloat16),        # fc1 weights
            pltpu.SemaphoreType.DMA((2,)),
        ],
    )
    probs = pl.pallas_call(
        _lenet_fused_kernel,
        out_shape=jax.ShapeDtypeStruct((1, 10), jnp.float32),
        grid_spec=grid_spec,
        compiler_params=pltpu.CompilerParams(dimension_semantics=("arbitrary",)),
    )(*inputs)
    return probs[None]                                  # torch.unsqueeze -> (1, 1, 10)


# ----------------------------------------------------------------------------
# Pure-JAX reference (mirrors the PyTorch module) for validation.
# ----------------------------------------------------------------------------
def lenet_reference(x, params):
    xr = x.reshape(280, 280, 4)
    alpha = xr[:, :, 3]
    h = alpha.reshape(28, 10, 28, 10).mean(axis=(1, 3)) / 255.0
    h = (h - MEAN) / STANDARD_DEVIATION
    img = h[None, None]                                                        # (1,1,28,28)
    dn = ("NCHW", "OIHW", "NCHW")
    c1 = jax.lax.conv_general_dilated(img, params["conv1_w"], (1, 1), "VALID",
                                      dimension_numbers=dn)
    c1 = c1 + params["conv1_b"][None, :, None, None]
    p1 = jnp.maximum(c1.reshape(1, 32, 12, 2, 12, 2).max(axis=(3, 5)), 0.0)
    c2 = jax.lax.conv_general_dilated(p1, params["conv2_w"], (1, 1), "VALID",
                                      dimension_numbers=dn)
    c2 = c2 + params["conv2_b"][None, :, None, None]
    p2 = jnp.maximum(c2.reshape(1, 64, 4, 2, 4, 2).max(axis=(3, 5)), 0.0)
    flat = p2.reshape(1, 1024)
    f1 = jnp.maximum(flat @ params["fc1_w"].T + params["fc1_b"], 0.0)
    logits = f1 @ params["fc2_w"].T + params["fc2_b"]
    return jax.nn.softmax(logits, axis=1)[None]


# ----------------------------------------------------------------------------
# Deterministic parameter init + driver
# ----------------------------------------------------------------------------
def make_params(key):
    ks = jax.random.split(key, 8)

    def n(k, shape, s):
        return (jax.random.normal(k, shape, jnp.float32) * s).astype(jnp.float32)

    return {
        "conv1_w": n(ks[0], (32, 1, 5, 5), 0.2),    # torch Conv2d weight layout
        "conv1_b": n(ks[1], (32,), 0.1),
        "conv2_w": n(ks[2], (64, 32, 5, 5), 0.05),
        "conv2_b": n(ks[3], (64,), 0.1),
        "fc1_w":   n(ks[4], (128, 1024), 0.03),     # torch Linear: (out, in)
        "fc1_b":   n(ks[5], (128,), 0.1),
        "fc2_w":   n(ks[6], (10, 128), 0.1),
        "fc2_b":   n(ks[7], (10,), 0.1),
    }


if __name__ == "__main__":
    root = jax.random.PRNGKey(0)
    k_in, k_par = jax.random.split(root)
    # Input: RGBA-like 280x280x4 image with pixel values in [0, 255].
    x = jax.random.uniform(k_in, (280, 280, 4), jnp.float32, 0.0, 255.0)
    params = make_params(k_par)
    prep = prepare_inputs(params)            # one-time host-side weight folding

    fwd = jax.jit(lenet_forward)
    out = jax.block_until_ready(fwd(x, prep))

    assert out.shape == (1, 1, 10), out.shape
    assert bool(jnp.isfinite(out).all())
    assert bool(jnp.allclose(jnp.sum(out, axis=-1), 1.0, atol=1e-5))

    ref = lenet_reference(x, params)
    err = float(jnp.max(jnp.abs(out - ref)))
    # bf16 weights + bf16 activations give ~1e-2-level agreement on softmax outputs.
    assert err < 3e-2, f"max abs diff vs reference: {err}"
    print("KERNEL_OK")
</pallas_src>

<mosaic_0001>
module attributes {stable_mosaic.version = 11 : i64} {
  func.func @_lenet_fused_kernel(%arg0: i32, %arg1: memref<280x1120xf32, #tpu.memory_space<vmem>>, %arg2: memref<28x280xbf16, #tpu.memory_space<vmem>>, %arg3: memref<1120x28xbf16, #tpu.memory_space<vmem>>, %arg4: memref<140x384xbf16, #tpu.memory_space<vmem>>, %arg5: memref<1x384xf32, #tpu.memory_space<vmem>>, %arg6: memref<12x12xbf16, #tpu.memory_space<vmem>>, %arg7: memref<1920x256xbf16, #tpu.memory_space<any>>, %arg8: memref<1x256xf32, #tpu.memory_space<vmem>>, %arg9: memref<4x256x128xbf16, #tpu.memory_space<any>>, %arg10: memref<1x128xf32, #tpu.memory_space<vmem>>, %arg11: memref<128x10xf32, #tpu.memory_space<vmem>>, %arg12: memref<1x10xf32, #tpu.memory_space<vmem>>, %arg13: memref<1x10xf32, #tpu.memory_space<vmem>>, %arg14: memref<1920x256xbf16, #tpu.memory_space<vmem>>, %arg15: memref<4x256x128xbf16, #tpu.memory_space<vmem>>, %arg16: memref<2x!tpu.dma_semaphore, #tpu.memory_space<semaphore_mem>>) attributes {dimension_semantics = [#tpu.dimension_semantics<arbitrary>], iteration_bounds = array<i64: 1>, scalar_prefetch = 0 : i64, scratch_operands = 3 : i64, tpu.core_type = #tpu.core_type<tc>, window_params = [{pipeline_mode = #tpu.pipeline_mode<synchronous>, transform_indices = @transform_0, window_bounds = array<i64: 280, 1120>}, {pipeline_mode = #tpu.pipeline_mode<synchronous>, transform_indices = @transform_1, window_bounds = array<i64: 28, 280>}, {pipeline_mode = #tpu.pipeline_mode<synchronous>, transform_indices = @transform_2, window_bounds = array<i64: 1120, 28>}, {pipeline_mode = #tpu.pipeline_mode<synchronous>, transform_indices = @transform_3, window_bounds = array<i64: 140, 384>}, {pipeline_mode = #tpu.pipeline_mode<synchronous>, transform_indices = @transform_4, window_bounds = array<i64: 1, 384>}, {pipeline_mode = #tpu.pipeline_mode<synchronous>, transform_indices = @transform_5, window_bounds = array<i64: 12, 12>}, {}, {pipeline_mode = #tpu.pipeline_mode<synchronous>, transform_indices = @transform_7, window_bounds = array<i64: 1, 256>}, {}, {pipeline_mode = #tpu.pipeline_mode<synchronous>, transform_indices = @transform_9, window_bounds = array<i64: 1, 128>}, {pipeline_mode = #tpu.pipeline_mode<synchronous>, transform_indices = @transform_10, window_bounds = array<i64: 128, 10>}, {pipeline_mode = #tpu.pipeline_mode<synchronous>, transform_indices = @transform_11, window_bounds = array<i64: 1, 10>}, {pipeline_mode = #tpu.pipeline_mode<synchronous>, transform_indices = @transform_12, window_bounds = array<i64: 1, 10>}]} {
    %c0_i32 = arith.constant 0 : i32
    %0 = tpu.memref_slice %arg16[%c0_i32] : memref<2x!tpu.dma_semaphore, #tpu.memory_space<semaphore_mem>> -> memref<1x!tpu.dma_semaphore, #tpu.memory_space<semaphore_mem>>
    %1 = tpu.memref_squeeze %0 : memref<1x!tpu.dma_semaphore, #tpu.memory_space<semaphore_mem>> -> memref<!tpu.dma_semaphore, #tpu.memory_space<semaphore_mem>>
    tpu.enqueue_dma source(%arg7 : memref<1920x256xbf16, #tpu.memory_space<any>>) target(%arg14 : memref<1920x256xbf16, #tpu.memory_space<vmem>>) target_semaphore(%1 : memref<!tpu.dma_semaphore, #tpu.memory_space<semaphore_mem>>)
    %c1_i32 = arith.constant 1 : i32
    %2 = tpu.memref_slice %arg16[%c1_i32] : memref<2x!tpu.dma_semaphore, #tpu.memory_space<semaphore_mem>> -> memref<1x!tpu.dma_semaphore, #tpu.memory_space<semaphore_mem>>
    %3 = tpu.memref_squeeze %2 : memref<1x!tpu.dma_semaphore, #tpu.memory_space<semaphore_mem>> -> memref<!tpu.dma_semaphore, #tpu.memory_space<semaphore_mem>>
    tpu.enqueue_dma source(%arg9 : memref<4x256x128xbf16, #tpu.memory_space<any>>) target(%arg15 : memref<4x256x128xbf16, #tpu.memory_space<vmem>>) target_semaphore(%3 : memref<!tpu.dma_semaphore, #tpu.memory_space<semaphore_mem>>)
    %c0 = arith.constant 0 : index
    %c0_0 = arith.constant 0 : index
    %4 = vector.load %arg1[%c0, %c0_0] : memref<280x1120xf32, #tpu.memory_space<vmem>>, vector<280x1120xf32>
    %5 = arith.truncf %4 : vector<280x1120xf32> to vector<280x1120xbf16>
    %c0_1 = arith.constant 0 : index
    %c0_2 = arith.constant 0 : index
    %6 = vector.load %arg2[%c0_1, %c0_2] : memref<28x280xbf16, #tpu.memory_space<vmem>>, vector<28x280xbf16>
    %cst = arith.constant dense<0.000000e+00> : vector<28x1120xf32>
    %7 = tpu.matmul %6, %5, %cst {dimension_numbers = #tpu.dot_dimension_numbers<[1], [0], [0], [1], [0, 0, 1, 1], [], []>} : vector<28x280xbf16>, vector<280x1120xbf16>, vector<28x1120xf32> -> vector<28x1120xf32>
    %8 = arith.truncf %7 : vector<28x1120xf32> to vector<28x1120xbf16>
    %c0_3 = arith.constant 0 : index
    %c0_4 = arith.constant 0 : index
    %9 = vector.load %arg3[%c0_3, %c0_4] : memref<1120x28xbf16, #tpu.memory_space<vmem>>, vector<1120x28xbf16>
    %cst_5 = arith.constant dense<0.000000e+00> : vector<28x28xf32>
    %10 = tpu.matmul %8, %9, %cst_5 {dimension_numbers = #tpu.dot_dimension_numbers<[1], [0], [0], [1], [0, 0, 1, 1], [], []>} : vector<28x1120xbf16>, vector<1120x28xbf16>, vector<28x28xf32> -> vector<28x28xf32>
    %cst_6 = arith.constant 1.27282328E-4 : f32
    %11 = vector.broadcast %cst_6 : f32 to vector<28x28xf32>
    %12 = arith.mulf %10, %11 : vector<28x28xf32>
    %cst_7 = arith.constant 0.424212933 : f32
    %13 = vector.broadcast %cst_7 : f32 to vector<28x28xf32>
    %14 = arith.subf %12, %13 : vector<28x28xf32>
    %15 = arith.truncf %14 : vector<28x28xf32> to vector<28x28xbf16>
    %c0_8 = arith.constant 0 : index
    %c0_9 = arith.constant 0 : index
    %16 = vector.load %arg4[%c0_8, %c0_9] : memref<140x384xbf16, #tpu.memory_space<vmem>>, vector<140x384xbf16>
    %17 = vector.extract_strided_slice %15 {offsets = [0, 0], sizes = [12, 28], strides = [1, 1]} : vector<28x28xbf16> to vector<12x28xbf16>
    %18 = vector.extract_strided_slice %15 {offsets = [14, 0], sizes = [12, 28], strides = [1, 1]} : vector<28x28xbf16> to vector<12x28xbf16>
    %19 = vector.extract_strided_slice %15 {offsets = [1, 0], sizes = [12, 28], strides = [1, 1]} : vector<28x28xbf16> to vector<12x28xbf16>
    %20 = vector.extract_strided_slice %15 {offsets = [15, 0], sizes = [12, 28], strides = [1, 1]} : vector<28x28xbf16> to vector<12x28xbf16>
    %21 = vector.extract_strided_slice %15 {offsets = [2, 0], sizes = [12, 28], strides = [1, 1]} : vector<28x28xbf16> to vector<12x28xbf16>
    %22 = tpu.concatenate %17, %18, %19, %20, %21 in 1 : vector<12x28xbf16>, vector<12x28xbf16>, vector<12x28xbf16>, vector<12x28xbf16>, vector<12x28xbf16> -> vector<12x140xbf16>
    %23 = vector.extract_strided_slice %22 {offsets = [0, 1], sizes = [12, 139], strides = [1, 1]} : vector<12x140xbf16> to vector<12x139xbf16>
    %24 = vector.extract_strided_slice %22 {offsets = [0, 0], sizes = [12, 1], strides = [1, 1]} : vector<12x140xbf16> to vector<12x1xbf16>
    %25 = tpu.concatenate %23, %24 in 1 : vector<12x139xbf16>, vector<12x1xbf16> -> vector<12x140xbf16>
    %cst_10 = arith.constant dense<0.000000e+00> : vector<12x384xf32>
    %26 = tpu.matmul %22, %16, %cst_10 {dimension_numbers = #tpu.dot_dimension_numbers<[1], [0], [0], [1], [0, 0, 1, 1], [], []>} : vector<12x140xbf16>, vector<140x384xbf16>, vector<12x384xf32> -> vector<12x384xf32>
    %cst_11 = arith.constant dense<0.000000e+00> : vector<12x384xf32>
    %27 = tpu.matmul %25, %16, %cst_11 {dimension_numbers = #tpu.dot_dimension_numbers<[1], [0], [0], [1], [0, 0, 1, 1], [], []>} : vector<12x140xbf16>, vector<140x384xbf16>, vector<12x384xf32> -> vector<12x384xf32>
    %28 = arith.maximumf %26, %27 : vector<12x384xf32>
    %29 = vector.extract_strided_slice %15 {offsets = [14, 0], sizes = [12, 28], strides = [1, 1]} : vector<28x28xbf16> to vector<12x28xbf16>
    %30 = vector.extract_strided_slice %15 {offsets = [1, 0], sizes = [12, 28], strides = [1, 1]} : vector<28x28xbf16> to vector<12x28xbf16>
    %31 = vector.extract_strided_slice %15 {offsets = [15, 0], sizes = [12, 28], strides = [1, 1]} : vector<28x28xbf16> to vector<12x28xbf16>
    %32 = vector.extract_strided_slice %15 {offsets = [2, 0], sizes = [12, 28], strides = [1, 1]} : vector<28x28xbf16> to vector<12x28xbf16>
    %33 = vector.extract_strided_slice %15 {offsets = [16, 0], sizes = [12, 28], strides = [1, 1]} : vector<28x28xbf16> to vector<12x28xbf16>
    %34 = tpu.concatenate %29, %30, %31, %32, %33 in 1 : vector<12x28xbf16>, vector<12x28xbf16>, vector<12x28xbf16>, vector<12x28xbf16>, vector<12x28xbf16> -> vector<12x140xbf16>
    %35 = vector.extract_strided_slice %34 {offsets = [0, 1], sizes = [12, 139], strides = [1, 1]} : vector<12x140xbf16> to vector<12x139xbf16>
    %36 = vector.extract_strided_slice %34 {offsets = [0, 0], sizes = [12, 1], strides = [1, 1]} : vector<12x140xbf16> to vector<12x1xbf16>
    %37 = tpu.concatenate %35, %36 in 1 : vector<12x139xbf16>, vector<12x1xbf16> -> vector<12x140xbf16>
    %cst_12 = arith.constant dense<0.000000e+00> : vector<12x384xf32>
    %38 = tpu.matmul %34, %16, %cst_12 {dimension_numbers = #tpu.dot_dimension_numbers<[1], [0], [0], [1], [0, 0, 1, 1], [], []>} : vector<12x140xbf16>, vector<140x384xbf16>, vector<12x384xf32> -> vector<12x384xf32>
    %cst_13 = arith.constant dense<0.000000e+00> : vector<12x384xf32>
    %39 = tpu.matmul %37, %16, %cst_13 {dimension_numbers = #tpu.dot_dimension_numbers<[1], [0], [0], [1], [0, 0, 1, 1], [], []>} : vector<12x140xbf16>, vector<140x384xbf16>, vector<12x384xf32> -> vector<12x384xf32>
    %40 = arith.maximumf %38, %39 : vector<12x384xf32>
    %41 = arith.maximumf %28, %40 : vector<12x384xf32>
    %c0_14 = arith.constant 0 : index
    %c0_15 = arith.constant 0 : index
    %42 = vector.load %arg5[%c0_14, %c0_15] : memref<1x384xf32, #tpu.memory_space<vmem>>, vector<1x384xf32>
    %43 = vector.broadcast %42 : vector<1x384xf32> to vector<12x384xf32>
    %44 = arith.addf %41, %43 : vector<12x384xf32>
    %cst_16 = arith.constant 0.000000e+00 : f32
    %45 = vector.broadcast %cst_16 : f32 to vector<12x384xf32>
    %46 = arith.maximumf %44, %45 : vector<12x384xf32>
    %c0_17 = arith.constant 0 : index
    %c0_18 = arith.constant 0 : index
    %47 = vector.load %arg6[%c0_17, %c0_18] : memref<12x12xbf16, #tpu.memory_space<vmem>>, vector<12x12xbf16>
    %48 = arith.truncf %46 : vector<12x384xf32> to vector<12x384xbf16>
    %cst_19 = arith.constant dense<0.000000e+00> : vector<12x384xf32>
    %49 = tpu.matmul %47, %48, %cst_19 {dimension_numbers = #tpu.dot_dimension_numbers<[1], [0], [0], [1], [0, 0, 1, 1], [], []>} : vector<12x12xbf16>, vector<12x384xbf16>, vector<12x384xf32> -> vector<12x384xf32>
    %50 = arith.truncf %49 : vector<12x384xf32> to vector<12x384xbf16>
    %c0_i32_20 = arith.constant 0 : i32
    %51 = tpu.memref_slice %arg16[%c0_i32_20] : memref<2x!tpu.dma_semaphore, #tpu.memory_space<semaphore_mem>> -> memref<1x!tpu.dma_semaphore, #tpu.memory_space<semaphore_mem>>
    %52 = tpu.memref_squeeze %51 : memref<1x!tpu.dma_semaphore, #tpu.memory_space<semaphore_mem>> -> memref<!tpu.dma_semaphore, #tpu.memory_space<semaphore_mem>>
    tpu.wait_dma2 semaphore(%52 : memref<!tpu.dma_semaphore, #tpu.memory_space<semaphore_mem>>) src(%arg7 : memref<1920x256xbf16, #tpu.memory_space<any>>) dst(%arg14 : memref<1920x256xbf16, #tpu.memory_space<vmem>>)
    %c0_21 = arith.constant 0 : index
    %c0_22 = arith.constant 0 : index
    %53 = vector.load %arg14[%c0_21, %c0_22] : memref<1920x256xbf16, #tpu.memory_space<vmem>>, vector<1920x256xbf16>
    %54 = vector.extract_strided_slice %50 {offsets = [0, 0], sizes = [4, 384], strides = [1, 1]} : vector<12x384xbf16> to vector<4x384xbf16>
    %55 = vector.extract_strided_slice %50 {offsets = [6, 0], sizes = [4, 384], strides = [1, 1]} : vector<12x384xbf16> to vector<4x384xbf16>
    %56 = vector.extract_strided_slice %50 {offsets = [1, 0], sizes = [4, 384], strides = [1, 1]} : vector<12x384xbf16> to vector<4x384xbf16>
    %57 = vector.extract_strided_slice %50 {offsets = [7, 0], sizes = [4, 384], strides = [1, 1]} : vector<12x384xbf16> to vector<4x384xbf16>
    %58 = vector.extract_strided_slice %50 {offsets = [2, 0], sizes = [4, 384], strides = [1, 1]} : vector<12x384xbf16> to vector<4x384xbf16>
    %59 = tpu.concatenate %54, %55, %56, %57, %58 in 1 : vector<4x384xbf16>, vector<4x384xbf16>, vector<4x384xbf16>, vector<4x384xbf16>, vector<4x384xbf16> -> vector<4x1920xbf16>
    %60 = vector.extract_strided_slice %59 {offsets = [0, 32], sizes = [4, 1888], strides = [1, 1]} : vector<4x1920xbf16> to vector<4x1888xbf16>
    %61 = vector.extract_strided_slice %59 {offsets = [0, 0], sizes = [4, 32], strides = [1, 1]} : vector<4x1920xbf16> to vector<4x32xbf16>
    %62 = tpu.concatenate %60, %61 in 1 : vector<4x1888xbf16>, vector<4x32xbf16> -> vector<4x1920xbf16>
    %cst_23 = arith.constant dense<0.000000e+00> : vector<4x256xf32>
    %63 = tpu.matmul %59, %53, %cst_23 {dimension_numbers = #tpu.dot_dimension_numbers<[1], [0], [0], [1], [0, 0, 1, 1], [], []>} : vector<4x1920xbf16>, vector<1920x256xbf16>, vector<4x256xf32> -> vector<4x256xf32>
    %cst_24 = arith.constant dense<0.000000e+00> : vector<4x256xf32>
    %64 = tpu.matmul %62, %53, %cst_24 {dimension_numbers = #tpu.dot_dimension_numbers<[1], [0], [0], [1], [0, 0, 1, 1], [], []>} : vector<4x1920xbf16>, vector<1920x256xbf16>, vector<4x256xf32> -> vector<4x256xf32>
    %65 = arith.maximumf %63, %64 : vector<4x256xf32>
    %66 = vector.extract_strided_slice %50 {offsets = [6, 0], sizes = [4, 384], strides = [1, 1]} : vector<12x384xbf16> to vector<4x384xbf16>
    %67 = vector.extract_strided_slice %50 {offsets = [1, 0], sizes = [4, 384], strides = [1, 1]} : vector<12x384xbf16> to vector<4x384xbf16>
    %68 = vector.extract_strided_slice %50 {offsets = [7, 0], sizes = [4, 384], strides = [1, 1]} : vector<12x384xbf16> to vector<4x384xbf16>
    %69 = vector.extract_strided_slice %50 {offsets = [2, 0], sizes = [4, 384], strides = [1, 1]} : vector<12x384xbf16> to vector<4x384xbf16>
    %70 = vector.extract_strided_slice %50 {offsets = [8, 0], sizes = [4, 384], strides = [1, 1]} : vector<12x384xbf16> to vector<4x384xbf16>
    %71 = tpu.concatenate %66, %67, %68, %69, %70 in 1 : vector<4x384xbf16>, vector<4x384xbf16>, vector<4x384xbf16>, vector<4x384xbf16>, vector<4x384xbf16> -> vector<4x1920xbf16>
    %72 = vector.extract_strided_slice %71 {offsets = [0, 32], sizes = [4, 1888], strides = [1, 1]} : vector<4x1920xbf16> to vector<4x1888xbf16>
    %73 = vector.extract_strided_slice %71 {offsets = [0, 0], sizes = [4, 32], strides = [1, 1]} : vector<4x1920xbf16> to vector<4x32xbf16>
    %74 = tpu.concatenate %72, %73 in 1 : vector<4x1888xbf16>, vector<4x32xbf16> -> vector<4x1920xbf16>
    %cst_25 = arith.constant dense<0.000000e+00> : vector<4x256xf32>
    %75 = tpu.matmul %71, %53, %cst_25 {dimension_numbers = #tpu.dot_dimension_numbers<[1], [0], [0], [1], [0, 0, 1, 1], [], []>} : vector<4x1920xbf16>, vector<1920x256xbf16>, vector<4x256xf32> -> vector<4x256xf32>
    %cst_26 = arith.constant dense<0.000000e+00> : vector<4x256xf32>
    %76 = tpu.matmul %74, %53, %cst_26 {dimension_numbers = #tpu.dot_dimension_numbers<[1], [0], [0], [1], [0, 0, 1, 1], [], []>} : vector<4x1920xbf16>, vector<1920x256xbf16>, vector<4x256xf32> -> vector<4x256xf32>
    %77 = arith.maximumf %75, %76 : vector<4x256xf32>
    %78 = arith.maximumf %65, %77 : vector<4x256xf32>
    %c0_27 = arith.constant 0 : index
    %c0_28 = arith.constant 0 : index
    %79 = vector.load %arg8[%c0_27, %c0_28] : memref<1x256xf32, #tpu.memory_space<vmem>>, vector<1x256xf32>
    %80 = vector.broadcast %79 : vector<1x256xf32> to vector<4x256xf32>
    %81 = arith.addf %78, %80 : vector<4x256xf32>
    %cst_29 = arith.constant 0.000000e+00 : f32
    %82 = vector.broadcast %cst_29 : f32 to vector<4x256xf32>
    %83 = arith.maximumf %81, %82 : vector<4x256xf32>
    %c1_i32_30 = arith.constant 1 : i32
    %84 = tpu.memref_slice %arg16[%c1_i32_30] : memref<2x!tpu.dma_semaphore, #tpu.memory_space<semaphore_mem>> -> memref<1x!tpu.dma_semaphore, #tpu.memory_space<semaphore_mem>>
    %85 = tpu.memref_squeeze %84 : memref<1x!tpu.dma_semaphore, #tpu.memory_space<semaphore_mem>> -> memref<!tpu.dma_semaphore, #tpu.memory_space<semaphore_mem>>
    tpu.wait_dma2 semaphore(%85 : memref<!tpu.dma_semaphore, #tpu.memory_space<semaphore_mem>>) src(%arg9 : memref<4x256x128xbf16, #tpu.memory_space<any>>) dst(%arg15 : memref<4x256x128xbf16, #tpu.memory_space<vmem>>)
    %86 = arith.truncf %83 : vector<4x256xf32> to vector<4x256xbf16>
    %c0_31 = arith.constant 0 : index
    %c0_32 = arith.constant 0 : index
    %87 = vector.load %arg10[%c0_31, %c0_32] : memref<1x128xf32, #tpu.memory_space<vmem>>, vector<1x128xf32>
    %88 = vector.extract_strided_slice %86 {offsets = [0, 0], sizes = [1, 256], strides = [1, 1]} : vector<4x256xbf16> to vector<1x256xbf16>
    %c0_33 = arith.constant 0 : index
    %c0_34 = arith.constant 0 : index
    %c0_35 = arith.constant 0 : index
    %89 = vector.load %arg15[%c0_33, %c0_34, %c0_35] : memref<4x256x128xbf16, #tpu.memory_space<vmem>>, vector<1x256x128xbf16>
    %90 = vector.shape_cast %89 : vector<1x256x128xbf16> to vector<256x128xbf16>
    %cst_36 = arith.constant dense<0.000000e+00> : vector<1x128xf32>
    %91 = tpu.matmul %88, %90, %cst_36 {dimension_numbers = #tpu.dot_dimension_numbers<[1], [0], [0], [1], [0, 0, 1, 1], [], []>} : vector<1x256xbf16>, vector<256x128xbf16>, vector<1x128xf32> -> vector<1x128xf32>
    %92 = arith.addf %87, %91 : vector<1x128xf32>
    %93 = vector.extract_strided_slice %86 {offsets = [1, 0], sizes = [1, 256], strides = [1, 1]} : vector<4x256xbf16> to vector<1x256xbf16>
    %c1 = arith.constant 1 : index
    %c0_37 = arith.constant 0 : index
    %c0_38 = arith.constant 0 : index
    %94 = vector.load %arg15[%c1, %c0_37, %c0_38] : memref<4x256x128xbf16, #tpu.memory_space<vmem>>, vector<1x256x128xbf16>
    %95 = vector.shape_cast %94 : vector<1x256x128xbf16> to vector<256x128xbf16>
    %cst_39 = arith.constant dense<0.000000e+00> : vector<1x128xf32>
    %96 = tpu.matmul %93, %95, %cst_39 {dimension_numbers = #tpu.dot_dimension_numbers<[1], [0], [0], [1], [0, 0, 1, 1], [], []>} : vector<1x256xbf16>, vector<256x128xbf16>, vector<1x128xf32> -> vector<1x128xf32>
    %97 = arith.addf %92, %96 : vector<1x128xf32>
    %98 = vector.extract_strided_slice %86 {offsets = [2, 0], sizes = [1, 256], strides = [1, 1]} : vector<4x256xbf16> to vector<1x256xbf16>
    %c2 = arith.constant 2 : index
    %c0_40 = arith.constant 0 : index
    %c0_41 = arith.constant 0 : index
    %99 = vector.load %arg15[%c2, %c0_40, %c0_41] : memref<4x256x128xbf16, #tpu.memory_space<vmem>>, vector<1x256x128xbf16>
    %100 = vector.shape_cast %99 : vector<1x256x128xbf16> to vector<256x128xbf16>
    %cst_42 = arith.constant dense<0.000000e+00> : vector<1x128xf32>
    %101 = tpu.matmul %98, %100, %cst_42 {dimension_numbers = #tpu.dot_dimension_numbers<[1], [0], [0], [1], [0, 0, 1, 1], [], []>} : vector<1x256xbf16>, vector<256x128xbf16>, vector<1x128xf32> -> vector<1x128xf32>
    %102 = arith.addf %97, %101 : vector<1x128xf32>
    %103 = vector.extract_strided_slice %86 {offsets = [3, 0], sizes = [1, 256], strides = [1, 1]} : vector<4x256xbf16> to vector<1x256xbf16>
    %c3 = arith.constant 3 : index
    %c0_43 = arith.constant 0 : index
    %c0_44 = arith.constant 0 : index
    %104 = vector.load %arg15[%c3, %c0_43, %c0_44] : memref<4x256x128xbf16, #tpu.memory_space<vmem>>, vector<1x256x128xbf16>
    %105 = vector.shape_cast %104 : vector<1x256x128xbf16> to vector<256x128xbf16>
    %cst_45 = arith.constant dense<0.000000e+00> : vector<1x128xf32>
    %106 = tpu.matmul %103, %105, %cst_45 {dimension_numbers = #tpu.dot_dimension_numbers<[1], [0], [0], [1], [0, 0, 1, 1], [], []>} : vector<1x256xbf16>, vector<256x128xbf16>, vector<1x128xf32> -> vector<1x128xf32>
    %107 = arith.addf %102, %106 : vector<1x128xf32>
    %cst_46 = arith.constant 0.000000e+00 : f32
    %108 = vector.broadcast %cst_46 : f32 to vector<1x128xf32>
    %109 = arith.maximumf %107, %108 : vector<1x128xf32>
    %c0_47 = arith.constant 0 : index
    %c0_48 = arith.constant 0 : index
    %110 = vector.load %arg11[%c0_47, %c0_48] : memref<128x10xf32, #tpu.memory_space<vmem>>, vector<128x10xf32>
    %cst_49 = arith.constant dense<0.000000e+00> : vector<1x10xf32>
    %111 = tpu.matmul %109, %110, %cst_49 {dimension_numbers = #tpu.dot_dimension_numbers<[1], [0], [0], [1], [0, 0, 1, 1], [], []>} : vector<1x128xf32>, vector<128x10xf32>, vector<1x10xf32> -> vector<1x10xf32>
    %c0_50 = arith.constant 0 : index
    %c0_51 = arith.constant 0 : index
    %112 = vector.load %arg12[%c0_50, %c0_51] : memref<1x10xf32, #tpu.memory_space<vmem>>, vector<1x10xf32>
    %113 = arith.addf %111, %112 : vector<1x10xf32>
    %cst_52 = arith.constant dense<0xFF800000> : vector<1xf32>
    %114 = vector.multi_reduction <maximumf>, %113, %cst_52 [1] : vector<1x10xf32> to vector<1xf32>
    %115 = vector.shape_cast %114 : vector<1xf32> to vector<1x1xf32>
    %116 = vector.broadcast %115 : vector<1x1xf32> to vector<1x10xf32>
    %117 = arith.subf %113, %116 : vector<1x10xf32>
    %118 = math.exp %117 : vector<1x10xf32>
    %cst_53 = arith.constant dense<0.000000e+00> : vector<1xf32>
    %119 = vector.multi_reduction <add>, %118, %cst_53 [1] : vector<1x10xf32> to vector<1xf32>
    %120 = vector.shape_cast %119 : vector<1xf32> to vector<1x1xf32>
    %121 = vector.broadcast %120 : vector<1x1xf32> to vector<1x10xf32>
    %122 = arith.divf %118, %121 : vector<1x10xf32>
    %c0_54 = arith.constant 0 : index
    %c0_55 = arith.constant 0 : index
    %123 = vector.load %arg13[%c0_54, %c0_55] : memref<1x10xf32, #tpu.memory_space<vmem>>, vector<1x10xf32>
    tpu.vector_store %arg13[%c0_54, %c0_55], %122 {strides = array<i32>} : memref<1x10xf32, #tpu.memory_space<vmem>>, vector<1x10xf32>,
    return
  }
  func.func @transform_0(%arg0: i32) -> (i32, i32) {
    %c0_i32 = arith.constant 0 : i32
    %c0_i32_0 = arith.constant 0 : i32
    %c0_i32_1 = arith.constant 0 : i32
    return %c0_i32, %c0_i32_0 : i32, i32
  }
  func.func @transform_1(%arg0: i32) -> (i32, i32) {
    %c0_i32 = arith.constant 0 : i32
    %c0_i32_0 = arith.constant 0 : i32
    %c0_i32_1 = arith.constant 0 : i32
    return %c0_i32, %c0_i32_0 : i32, i32
  }
  func.func @transform_2(%arg0: i32) -> (i32, i32) {
    %c0_i32 = arith.constant 0 : i32
    %c0_i32_0 = arith.constant 0 : i32
    %c0_i32_1 = arith.constant 0 : i32
    return %c0_i32, %c0_i32_0 : i32, i32
  }
  func.func @transform_3(%arg0: i32) -> (i32, i32) {
    %c0_i32 = arith.constant 0 : i32
    %c0_i32_0 = arith.constant 0 : i32
    %c0_i32_1 = arith.constant 0 : i32
    return %c0_i32, %c0_i32_0 : i32, i32
  }
  func.func @transform_4(%arg0: i32) -> (i32, i32) {
    %c0_i32 = arith.constant 0 : i32
    %c0_i32_0 = arith.constant 0 : i32
    %c0_i32_1 = arith.constant 0 : i32
    return %c0_i32, %c0_i32_0 : i32, i32
  }
  func.func @transform_5(%arg0: i32) -> (i32, i32) {
    %c0_i32 = arith.constant 0 : i32
    %c0_i32_0 = arith.constant 0 : i32
    %c0_i32_1 = arith.constant 0 : i32
    return %c0_i32, %c0_i32_0 : i32, i32
  }
  func.func @transform_7(%arg0: i32) -> (i32, i32) {
    %c0_i32 = arith.constant 0 : i32
    %c0_i32_0 = arith.constant 0 : i32
    %c0_i32_1 = arith.constant 0 : i32
    return %c0_i32, %c0_i32_0 : i32, i32
  }
  func.func @transform_9(%arg0: i32) -> (i32, i32) {
    %c0_i32 = arith.constant 0 : i32
    %c0_i32_0 = arith.constant 0 : i32
    %c0_i32_1 = arith.constant 0 : i32
    return %c0_i32, %c0_i32_0 : i32, i32
  }
  func.func @transform_10(%arg0: i32) -> (i32, i32) {
    %c0_i32 = arith.constant 0 : i32
    %c0_i32_0 = arith.constant 0 : i32
    %c0_i32_1 = arith.constant 0 : i32
    return %c0_i32, %c0_i32_0 : i32, i32
  }
  func.func @transform_11(%arg0: i32) -> (i32, i32) {
    %c0_i32 = arith.constant 0 : i32
    %c0_i32_0 = arith.constant 0 : i32
    %c0_i32_1 = arith.constant 0 : i32
    return %c0_i32, %c0_i32_0 : i32, i32
  }
  func.func @transform_12(%arg0: i32) -> (i32, i32) {
    %c0_i32 = arith.constant 0 : i32
    %c0_i32_0 = arith.constant 0 : i32
    %c0_i32_1 = arith.constant 0 : i32
    return %c0_i32, %c0_i32_0 : i32, i32
  }
}

</mosaic_0001>

<bundles_post_ra>
// kernel: lenet_forward.1
= control target key start
LH: loop header
LB: loop body
LE: loop exit
PB: predicated region body
PF: predicated region fallthrough
CT: control target
= control target key end

     0   :  { %17 = vsyncpa [#allocation6], 0  ;;  %s13443_s0 = inlined_call_operand.vmem [shape: f32[280,1120], index: 0, kind: input, shape index: {}]   ;;  %s13444_s1 = inlined_call_operand.vmem [shape: bf16[28,280], index: 1, kind: input, shape index: {}]   ;;  %s13445_s2 = inlined_call_operand.vmem [shape: bf16[1120,28], index: 2, kind: input, shape index: {}]   ;;  %s13446_s3 = inlined_call_operand.vmem [shape: bf16[140,384], index: 3, kind: input, shape index: {}]   ;;  %s13447_s4 = inlined_call_operand.vmem [shape: f32[1,384], index: 4, kind: input, shape index: {}]   ;;  %s13448_s5 = inlined_call_operand.vmem [shape: bf16[12,12], index: 5, kind: input, shape index: {}]   ;;  %s13449_s6 = inlined_call_operand.vmem [shape: bf16[1920,256], index: 6, kind: input, shape index: {}]   ;;  %s13450_s7 = inlined_call_operand.vmem [shape: f32[1,256], index: 7, kind: input, shape index: {}]   ;;  %s13451_s8 = inlined_call_operand.vmem [shape: bf16[4,256,128], index: 8, kind: input, shape index: {}]   ;;  %s13452_s9 = inlined_call_operand.vmem [shape: f32[1,128], index: 9, kind: input, shape index: {}]   ;;  %s13453_s10 = inlined_call_operand.vmem [shape: f32[128,10], index: 10, kind: input, shape index: {}]   ;;  %s13454_s11 = inlined_call_operand.vmem [shape: f32[1,10], index: 11, kind: input, shape index: {}]   ;;  %s13455_s12 = inlined_call_operand.hbm [shape: f32[1,10], index: 12, kind: output, shape index: {}]  }
   0x1   :  { %v56_v0 = vld [vmem:[%s13449_s6] sm:$0xf]  ;;  %v58_v1 = vld [vmem:[%s13449_s6 + $0x8] sm:$0xf]  ;;  %v60_v2 = vld [vmem:[%s13449_s6 + $0x4] sm:$0xf] }
   0x2   :  { %57 = vst [vmem:[#allocation2] sm:$0xf] %v56_v0  ;;  %59 = vst [vmem:[#allocation2 + $0x4] sm:$0xf] %v58_v1  ;;  %v62_v3 = vld [vmem:[%s13449_s6 + $0xc] sm:$0xff]   ;;  %v70_v6 = vld [vmem:[%s13449_s6 + $0x1c] sm:$0xff]  }
   0x3   :  { %v66_v4 = vld [vmem:[%s13449_s6 + $0x18] sm:$0xf]  ;;  %61 = vst [vmem:[#allocation2 + $0x8] sm:$0xf] %v60_v2  ;;  %63 = vst [vmem:[#allocation2 + $0xc] sm:$0xff] %v62_v3   ;;  %v78_v9 = vld [vmem:[%s13449_s6 + $0x2c] sm:$0xff]  }
   0x4   :  { %67 = vst [vmem:[#allocation2 + $0x14] sm:$0xf] %v66_v4  ;;  %v68_v5 = vld [vmem:[%s13449_s6 + $0x14] sm:$0xf]  ;;  %v74_v7 = vld [vmem:[%s13449_s6 + $0x28] sm:$0xf] }
   0x5   :  { %69 = vst [vmem:[#allocation2 + $0x18] sm:$0xf] %v68_v5  ;;  %71 = vst [vmem:[#allocation2 + $0x1c] sm:$0xff] %v70_v6   ;;  %v76_v8 = vld [vmem:[%s13449_s6 + $0x24] sm:$0xf]  ;;  %v86_v12 = vld [vmem:[%s13449_s6 + $0x3c] sm:$0xff]  }
   0x6   :  { %75 = vst [vmem:[#allocation2 + $0x24] sm:$0xf] %v74_v7  ;;  %v82_v10 = vld [vmem:[%s13449_s6 + $0x38] sm:$0xf]  ;;  %77 = vst [vmem:[#allocation2 + $0x28] sm:$0xf] %v76_v8 }
   0x7   :  { %79 = vst [vmem:[#allocation2 + $0x2c] sm:$0xff] %v78_v9   ;;  %83 = vst [vmem:[#allocation2 + $0x34] sm:$0xf] %v82_v10  ;;  %v84_v11 = vld [vmem:[%s13449_s6 + $0x34] sm:$0xf]  ;;  %v94_v15 = vld [vmem:[%s13449_s6 + $0x4c] sm:$0xff]  }
   0x8   :  { %v90_v13 = vld [vmem:[%s13449_s6 + $0x48] sm:$0xf]  ;;  %85 = vst [vmem:[#allocation2 + $0x38] sm:$0xf] %v84_v11  ;;  %87 = vst [vmem:[#allocation2 + $0x3c] sm:$0xff] %v86_v12   ;;  %v102_v18 = vld [vmem:[%s13449_s6 + $0x5c] sm:$0xff]  }
   0x9   :  { %91 = vst [vmem:[#allocation2 + $0x44] sm:$0xf] %v90_v13  ;;  %v92_v14 = vld [vmem:[%s13449_s6 + $0x44] sm:$0xf]  ;;  %v98_v16 = vld [vmem:[%s13449_s6 + $0x58] sm:$0xf] }
   0xa   :  { %93 = vst [vmem:[#allocation2 + $0x48] sm:$0xf] %v92_v14  ;;  %95 = vst [vmem:[#allocation2 + $0x4c] sm:$0xff] %v94_v15   ;;  %v100_v17 = vld [vmem:[%s13449_s6 + $0x54] sm:$0xf]  ;;  %v110_v21 = vld [vmem:[%s13449_s6 + $0x6c] sm:$0xff]  }
   0xb   :  { %99 = vst [vmem:[#allocation2 + $0x54] sm:$0xf] %v98_v16  ;;  %v106_v19 = vld [vmem:[%s13449_s6 + $0x68] sm:$0xf]  ;;  %101 = vst [vmem:[#allocation2 + $0x58] sm:$0xf] %v100_v17 }
   0xc   :  { %103 = vst [vmem:[#allocation2 + $0x5c] sm:$0xff] %v102_v18   ;;  %107 = vst [vmem:[#allocation2 + $0x64] sm:$0xf] %v106_v19  ;;  %v108_v20 = vld [vmem:[%s13449_s6 + $0x64] sm:$0xf]  ;;  %v118_v24 = vld [vmem:[%s13449_s6 + $0x7c] sm:$0xff]  }
   0xd   :  { %v114_v22 = vld [vmem:[%s13449_s6 + $0x78] sm:$0xf]  ;;  %109 = vst [vmem:[#allocation2 + $0x68] sm:$0xf] %v108_v20  ;;  %111 = vst [vmem:[#allocation2 + $0x6c] sm:$0xff] %v110_v21   ;;  %v126_v27 = vld [vmem:[%s13449_s6 + $0x8c] sm:$0xff]  }
   0xe   :  { %115 = vst [vmem:[#allocation2 + $0x74] sm:$0xf] %v114_v22  ;;  %v116_v23 = vld [vmem:[%s13449_s6 + $0x74] sm:$0xf]  ;;  %v122_v25 = vld [vmem:[%s13449_s6 + $0x88] sm:$0xf] }
   0xf   :  { %117 = vst [vmem:[#allocation2 + $0x78] sm:$0xf] %v116_v23  ;;  %119 = vst [vmem:[#allocation2 + $0x7c] sm:$0xff] %v118_v24   ;;  %v124_v26 = vld [vmem:[%s13449_s6 + $0x84] sm:$0xf]  ;;  %v134_v30 = vld [vmem:[%s13449_s6 + $0x9c] sm:$0xff]  }
  0x10   :  { %123 = vst [vmem:[#allocation2 + $0x84] sm:$0xf] %v122_v25  ;;  %v130_v28 = vld [vmem:[%s13449_s6 + $0x98] sm:$0xf]  ;;  %125 = vst [vmem:[#allocation2 + $0x88] sm:$0xf] %v124_v26 }
  0x11   :  { %127 = vst [vmem:[#allocation2 + $0x8c] sm:$0xff] %v126_v27   ;;  %131 = vst [vmem:[#allocation2 + $0x94] sm:$0xf] %v130_v28  ;;  %v132_v29 = vld [vmem:[%s13449_s6 + $0x94] sm:$0xf]  ;;  %v142_v33 = vld [vmem:[%s13449_s6 + $0xac] sm:$0xff]  }
  0x12   :  { %v138_v31 = vld [vmem:[%s13449_s6 + $0xa8] sm:$0xf]  ;;  %133 = vst [vmem:[#allocation2 + $0x98] sm:$0xf] %v132_v29  ;;  %135 = vst [vmem:[#allocation2 + $0x9c] sm:$0xff] %v134_v30   ;;  %v150_v36 = vld [vmem:[%s13449_s6 + $0xbc] sm:$0xff]  }
  0x13   :  { %139 = vst [vmem:[#allocation2 + $0xa4] sm:$0xf] %v138_v31  ;;  %v140_v32 = vld [vmem:[%s13449_s6 + $0xa4] sm:$0xf]  ;;  %v146_v34 = vld [vmem:[%s13449_s6 + $0xb8] sm:$0xf] }
  0x14   :  { %141 = vst [vmem:[#allocation2 + $0xa8] sm:$0xf] %v140_v32  ;;  %143 = vst [vmem:[#allocation2 + $0xac] sm:$0xff] %v142_v33   ;;  %v148_v35 = vld [vmem:[%s13449_s6 + $0xb4] sm:$0xf]  ;;  %v158_v39 = vld [vmem:[%s13449_s6 + $0xcc] sm:$0xff]  }
  0x15   :  { %147 = vst [vmem:[#allocation2 + $0xb4] sm:$0xf] %v146_v34  ;;  %v154_v37 = vld [vmem:[%s13449_s6 + $0xc8] sm:$0xf]  ;;  %149 = vst [vmem:[#allocation2 + $0xb8] sm:$0xf] %v148_v35 }
  0x16   :  { %151 = vst [vmem:[#allocation2 + $0xbc] sm:$0xff] %v150_v36   ;;  %155 = vst [vmem:[#allocation2 + $0xc4] sm:$0xf] %v154_v37  ;;  %v156_v38 = vld [vmem:[%s13449_s6 + $0xc4] sm:$0xf]  ;;  %v166_v42 = vld [vmem:[%s13449_s6 + $0xdc] sm:$0xff]  }
  0x17   :  { %v162_v40 = vld [vmem:[%s13449_s6 + $0xd8] sm:$0xf]  ;;  %157 = vst [vmem:[#allocation2 + $0xc8] sm:$0xf] %v156_v38  ;;  %159 = vst [vmem:[#allocation2 + $0xcc] sm:$0xff] %v158_v39   ;;  %v174_v45 = vld [vmem:[%s13449_s6 + $0xec] sm:$0xff]  }
  0x18   :  { %163 = vst [vmem:[#allocation2 + $0xd4] sm:$0xf] %v162_v40  ;;  %v164_v41 = vld [vmem:[%s13449_s6 + $0xd4] sm:$0xf]  ;;  %v170_v43 = vld [vmem:[%s13449_s6 + $0xe8] sm:$0xf] }
  0x19   :  { %165 = vst [vmem:[#allocation2 + $0xd8] sm:$0xf] %v164_v41  ;;  %167 = vst [vmem:[#allocation2 + $0xdc] sm:$0xff] %v166_v42   ;;  %v172_v44 = vld [vmem:[%s13449_s6 + $0xe4] sm:$0xf]  ;;  %v182_v48 = vld [vmem:[%s13449_s6 + $0xfc] sm:$0xff]  }
  0x1a   :  { %171 = vst [vmem:[#allocation2 + $0xe4] sm:$0xf] %v170_v43  ;;  %v178_v46 = vld [vmem:[%s13449_s6 + $0xf8] sm:$0xf]  ;;  %173 = vst [vmem:[#allocation2 + $0xe8] sm:$0xf] %v172_v44 }
  0x1b   :  { %175 = vst [vmem:[#allocation2 + $0xec] sm:$0xff] %v174_v45   ;;  %179 = vst [vmem:[#allocation2 + $0xf4] sm:$0xf] %v178_v46  ;;  %v180_v47 = vld [vmem:[%s13449_s6 + $0xf4] sm:$0xf]  ;;  %v190_v51 = vld [vmem:[%s13449_s6 + $0x10c] sm:$0xff]  }
  0x1c   :  { %v186_v49 = vld [vmem:[%s13449_s6 + $0x108] sm:$0xf]  ;;  %181 = vst [vmem:[#allocation2 + $0xf8] sm:$0xf] %v180_v47  ;;  %183 = vst [vmem:[#allocation2 + $0xfc] sm:$0xff] %v182_v48   ;;  %v198_v54 = vld [vmem:[%s13449_s6 + $0x11c] sm:$0xff]  }
  0x1d   :  { %187 = vst [vmem:[#allocation2 + $0x104] sm:$0xf] %v186_v49  ;;  %v188_v50 = vld [vmem:[%s13449_s6 + $0x104] sm:$0xf]  ;;  %v194_v52 = vld [vmem:[%s13449_s6 + $0x118] sm:$0xf] }
  0x1e   :  { %189 = vst [vmem:[#allocation2 + $0x108] sm:$0xf] %v188_v50  ;;  %191 = vst [vmem:[#allocation2 + $0x10c] sm:$0xff] %v190_v51   ;;  %v196_v53 = vld [vmem:[%s13449_s6 + $0x114] sm:$0xf]  ;;  %v206_v57 = vld [vmem:[%s13449_s6 + $0x12c] sm:$0xff]  }
  0x1f   :  { %195 = vst [vmem:[#allocation2 + $0x114] sm:$0xf] %v194_v52  ;;  %v202_v55 = vld [vmem:[%s13449_s6 + $0x128] sm:$0xf]  ;;  %197 = vst [vmem:[#allocation2 + $0x118] sm:$0xf] %v196_v53 }
  0x20   :  { %199 = vst [vmem:[#allocation2 + $0x11c] sm:$0xff] %v198_v54   ;;  %203 = vst [vmem:[#allocation2 + $0x124] sm:$0xf] %v202_v55  ;;  %v204_v56 = vld [vmem:[%s13449_s6 + $0x124] sm:$0xf]  ;;  %v214_v60 = vld [vmem:[%s13449_s6 + $0x13c] sm:$0xff]  }
  0x21   :  { %v210_v58 = vld [vmem:[%s13449_s6 + $0x138] sm:$0xf]  ;;  %205 = vst [vmem:[#allocation2 + $0x128] sm:$0xf] %v204_v56  ;;  %207 = vst [vmem:[#allocation2 + $0x12c] sm:$0xff] %v206_v57   ;;  %v222_v63 = vld [vmem:[%s13449_s6 + $0x14c] sm:$0xff]  }
  0x22   :  { %211 = vst [vmem:[#allocation2 + $0x134] sm:$0xf] %v210_v58  ;;  %v212_v59 = vld [vmem:[%s13449_s6 + $0x134] sm:$0xf]  ;;  %v218_v61 = vld [vmem:[%s13449_s6 + $0x148] sm:$0xf] }
  0x23   :  { %213 = vst [vmem:[#allocation2 + $0x138] sm:$0xf] %v212_v59  ;;  %215 = vst [vmem:[#allocation2 + $0x13c] sm:$0xff] %v214_v60   ;;  %v220_v62 = vld [vmem:[%s13449_s6 + $0x144] sm:$0xf]  ;;  %v230_v2 = vld [vmem:[%s13449_s6 + $0x15c] sm:$0xff]  }
  0x24   :  { %219 = vst [vmem:[#allocation2 + $0x144] sm:$0xf] %v218_v61  ;;  %v226_v0 = vld [vmem:[%s13449_s6 + $0x158] sm:$0xf]  ;;  %221 = vst [vmem:[#allocation2 + $0x148] sm:$0xf] %v220_v62 }
  0x25   :  { %223 = vst [vmem:[#allocation2 + $0x14c] sm:$0xff] %v222_v63   ;;  %227 = vst [vmem:[#allocation2 + $0x154] sm:$0xf] %v226_v0  ;;  %v228_v1 = vld [vmem:[%s13449_s6 + $0x154] sm:$0xf]  ;;  %v238_v5 = vld [vmem:[%s13449_s6 + $0x16c] sm:$0xff]  }
  0x26   :  { %v234_v3 = vld [vmem:[%s13449_s6 + $0x168] sm:$0xf]  ;;  %229 = vst [vmem:[#allocation2 + $0x158] sm:$0xf] %v228_v1  ;;  %231 = vst [vmem:[#allocation2 + $0x15c] sm:$0xff] %v230_v2   ;;  %v246_v8 = vld [vmem:[%s13449_s6 + $0x17c] sm:$0xff]  }
  0x27   :  { %235 = vst [vmem:[#allocation2 + $0x164] sm:$0xf] %v234_v3  ;;  %v236_v4 = vld [vmem:[%s13449_s6 + $0x164] sm:$0xf]  ;;  %v242_v6 = vld [vmem:[%s13449_s6 + $0x178] sm:$0xf] }
  0x28   :  { %237 = vst [vmem:[#allocation2 + $0x168] sm:$0xf] %v236_v4  ;;  %239 = vst [vmem:[#allocation2 + $0x16c] sm:$0xff] %v238_v5   ;;  %v244_v7 = vld [vmem:[%s13449_s6 + $0x174] sm:$0xf]  ;;  %v254_v11 = vld [vmem:[%s13449_s6 + $0x18c] sm:$0xff]  }
  0x29   :  { %243 = vst [vmem:[#allocation2 + $0x174] sm:$0xf] %v242_v6  ;;  %v250_v9 = vld [vmem:[%s13449_s6 + $0x188] sm:$0xf]  ;;  %245 = vst [vmem:[#allocation2 + $0x178] sm:$0xf] %v244_v7 }
  0x2a   :  { %247 = vst [vmem:[#allocation2 + $0x17c] sm:$0xff] %v246_v8   ;;  %251 = vst [vmem:[#allocation2 + $0x184] sm:$0xf] %v250_v9  ;;  %v252_v10 = vld [vmem:[%s13449_s6 + $0x184] sm:$0xf]  ;;  %v262_v14 = vld [vmem:[%s13449_s6 + $0x19c] sm:$0xff]  }
  0x2b   :  { %v258_v12 = vld [vmem:[%s13449_s6 + $0x198] sm:$0xf]  ;;  %253 = vst [vmem:[#allocation2 + $0x188] sm:$0xf] %v252_v10  ;;  %255 = vst [vmem:[#allocation2 + $0x18c] sm:$0xff] %v254_v11   ;;  %v270_v17 = vld [vmem:[%s13449_s6 + $0x1ac] sm:$0xff]  }
  0x2c   :  { %259 = vst [vmem:[#allocation2 + $0x194] sm:$0xf] %v258_v12  ;;  %v260_v13 = vld [vmem:[%s13449_s6 + $0x194] sm:$0xf]  ;;  %v266_v15 = vld [vmem:[%s13449_s6 + $0x1a8] sm:$0xf] }
  0x2d   :  { %261 = vst [vmem:[#allocation2 + $0x198] sm:$0xf] %v260_v13  ;;  %263 = vst [vmem:[#allocation2 + $0x19c] sm:$0xff] %v262_v14   ;;  %v268_v16 = vld [vmem:[%s13449_s6 + $0x1a4] sm:$0xf]  ;;  %v278_v20 = vld [vmem:[%s13449_s6 + $0x1bc] sm:$0xff]  }
  0x2e   :  { %267 = vst [vmem:[#allocation2 + $0x1a4] sm:$0xf] %v266_v15  ;;  %v274_v18 = vld [vmem:[%s13449_s6 + $0x1b8] sm:$0xf]  ;;  %269 = vst [vmem:[#allocation2 + $0x1a8] sm:$0xf] %v268_v16 }
  0x2f   :  { %271 = vst [vmem:[#allocation2 + $0x1ac] sm:$0xff] %v270_v17   ;;  %275 = vst [vmem:[#allocation2 + $0x1b4] sm:$0xf] %v274_v18  ;;  %v276_v19 = vld [vmem:[%s13449_s6 + $0x1b4] sm:$0xf]  ;;  %v286_v23 = vld [vmem:[%s13449_s6 + $0x1cc] sm:$0xff]  }
  0x30   :  { %v282_v21 = vld [vmem:[%s13449_s6 + $0x1c8] sm:$0xf]  ;;  %277 = vst [vmem:[#allocation2 + $0x1b8] sm:$0xf] %v276_v19  ;;  %279 = vst [vmem:[#allocation2 + $0x1bc] sm:$0xff] %v278_v20   ;;  %v294_v26 = vld [vmem:[%s13449_s6 + $0x1dc] sm:$0xff]  }
  0x31   :  { %283 = vst [vmem:[#allocation2 + $0x1c4] sm:$0xf] %v282_v21  ;;  %v284_v22 = vld [vmem:[%s13449_s6 + $0x1c4] sm:$0xf]  ;;  %v290_v24 = vld [vmem:[%s13449_s6 + $0x1d8] sm:$0xf] }
  0x32   :  { %285 = vst [vmem:[#allocation2 + $0x1c8] sm:$0xf] %v284_v22  ;;  %287 = vst [vmem:[#allocation2 + $0x1cc] sm:$0xff] %v286_v23   ;;  %v292_v25 = vld [vmem:[%s13449_s6 + $0x1d4] sm:$0xf]  ;;  %v302_v29 = vld [vmem:[%s13449_s6 + $0x1ec] sm:$0xff]  }
  0x33   :  { %291 = vst [vmem:[#allocation2 + $0x1d4] sm:$0xf] %v290_v24  ;;  %v298_v27 = vld [vmem:[%s13449_s6 + $0x1e8] sm:$0xf]  ;;  %293 = vst [vmem:[#allocation2 + $0x1d8] sm:$0xf] %v292_v25 }
  0x34   :  { %295 = vst [vmem:[#allocation2 + $0x1dc] sm:$0xff] %v294_v26   ;;  %299 = vst [vmem:[#allocation2 + $0x1e4] sm:$0xf] %v298_v27  ;;  %v300_v28 = vld [vmem:[%s13449_s6 + $0x1e4] sm:$0xf]  ;;  %v310_v32 = vld [vmem:[%s13449_s6 + $0x1fc] sm:$0xff]  }
  0x35   :  { %v306_v30 = vld [vmem:[%s13449_s6 + $0x1f8] sm:$0xf]  ;;  %301 = vst [vmem:[#allocation2 + $0x1e8] sm:$0xf] %v300_v28  ;;  %303 = vst [vmem:[#allocation2 + $0x1ec] sm:$0xff] %v302_v29   ;;  %v318_v35 = vld [vmem:[%s13449_s6 + $0x20c] sm:$0xff]  }
  0x36   :  { %307 = vst [vmem:[#allocation2 + $0x1f4] sm:$0xf] %v306_v30  ;;  %v308_v31 = vld [vmem:[%s13449_s6 + $0x1f4] sm:$0xf]  ;;  %v314_v33 = vld [vmem:[%s13449_s6 + $0x208] sm:$0xf] }
  0x37   :  { %309 = vst [vmem:[#allocation2 + $0x1f8] sm:$0xf] %v308_v31  ;;  %311 = vst [vmem:[#allocation2 + $0x1fc] sm:$0xff] %v310_v32   ;;  %v316_v34 = vld [vmem:[%s13449_s6 + $0x204] sm:$0xf]  ;;  %v326_v38 = vld [vmem:[%s13449_s6 + $0x21c] sm:$0xff]  }
  0x38   :  { %315 = vst [vmem:[#allocation2 + $0x204] sm:$0xf] %v314_v33  ;;  %v322_v36 = vld [vmem:[%s13449_s6 + $0x218] sm:$0xf]  ;;  %317 = vst [vmem:[#allocation2 + $0x208] sm:$0xf] %v316_v34 }
  0x39   :  { %319 = vst [vmem:[#allocation2 + $0x20c] sm:$0xff] %v318_v35   ;;  %323 = vst [vmem:[#allocation2 + $0x214] sm:$0xf] %v322_v36  ;;  %v324_v37 = vld [vmem:[%s13449_s6 + $0x214] sm:$0xf]  ;;  %v334_v41 = vld [vmem:[%s13449_s6 + $0x22c] sm:$0xff]  }
  0x3a   :  { %v330_v39 = vld [vmem:[%s13449_s6 + $0x228] sm:$0xf]  ;;  %325 = vst [vmem:[#allocation2 + $0x218] sm:$0xf] %v324_v37  ;;  %327 = vst [vmem:[#allocation2 + $0x21c] sm:$0xff] %v326_v38   ;;  %v342_v44 = vld [vmem:[%s13449_s6 + $0x23c] sm:$0xff]  }
  0x3b   :  { %331 = vst [vmem:[#allocation2 + $0x224] sm:$0xf] %v330_v39  ;;  %v332_v40 = vld [vmem:[%s13449_s6 + $0x224] sm:$0xf]  ;;  %v338_v42 = vld [vmem:[%s13449_s6 + $0x238] sm:$0xf] }
  0x3c   :  { %333 = vst [vmem:[#allocation2 + $0x228] sm:$0xf] %v332_v40  ;;  %335 = vst [vmem:[#allocation2 + $0x22c] sm:$0xff] %v334_v41   ;;  %v340_v43 = vld [vmem:[%s13449_s6 + $0x234] sm:$0xf]  ;;  %v350_v47 = vld [vmem:[%s13449_s6 + $0x24c] sm:$0xff]  }
  0x3d   :  { %339 = vst [vmem:[#allocation2 + $0x234] sm:$0xf] %v338_v42  ;;  %v346_v45 = vld [vmem:[%s13449_s6 + $0x248] sm:$0xf]  ;;  %341 = vst [vmem:[#allocation2 + $0x238] sm:$0xf] %v340_v43 }
  0x3e   :  { %343 = vst [vmem:[#allocation2 + $0x23c] sm:$0xff] %v342_v44   ;;  %347 = vst [vmem:[#allocation2 + $0x244] sm:$0xf] %v346_v45  ;;  %v348_v46 = vld [vmem:[%s13449_s6 + $0x244] sm:$0xf]  ;;  %v358_v50 = vld [vmem:[%s13449_s6 + $0x25c] sm:$0xff]  }
  0x3f   :  { %v354_v48 = vld [vmem:[%s13449_s6 + $0x258] sm:$0xf]  ;;  %349 = vst [vmem:[#allocation2 + $0x248] sm:$0xf] %v348_v46  ;;  %351 = vst [vmem:[#allocation2 + $0x24c] sm:$0xff] %v350_v47   ;;  %v366_v53 = vld [vmem:[%s13449_s6 + $0x26c] sm:$0xff]  }
  0x40   :  { %355 = vst [vmem:[#allocation2 + $0x254] sm:$0xf] %v354_v48  ;;  %v356_v49 = vld [vmem:[%s13449_s6 + $0x254] sm:$0xf]  ;;  %v362_v51 = vld [vmem:[%s13449_s6 + $0x268] sm:$0xf] }
  0x41   :  { %357 = vst [vmem:[#allocation2 + $0x258] sm:$0xf] %v356_v49  ;;  %359 = vst [vmem:[#allocation2 + $0x25c] sm:$0xff] %v358_v50   ;;  %v364_v52 = vld [vmem:[%s13449_s6 + $0x264] sm:$0xf]  ;;  %v374_v56 = vld [vmem:[%s13449_s6 + $0x27c] sm:$0xff]  }
  0x42   :  { %363 = vst [vmem:[#allocation2 + $0x264] sm:$0xf] %v362_v51  ;;  %v370_v54 = vld [vmem:[%s13449_s6 + $0x278] sm:$0xf]  ;;  %365 = vst [vmem:[#allocation2 + $0x268] sm:$0xf] %v364_v52 }
  0x43   :  { %367 = vst [vmem:[#allocation2 + $0x26c] sm:$0xff] %v366_v53   ;;  %371 = vst [vmem:[#allocation2 + $0x274] sm:$0xf] %v370_v54  ;;  %v372_v55 = vld [vmem:[%s13449_s6 + $0x274] sm:$0xf]  ;;  %v382_v59 = vld [vmem:[%s13449_s6 + $0x28c] sm:$0xff]  }
  0x44   :  { %v378_v57 = vld [vmem:[%s13449_s6 + $0x288] sm:$0xf]  ;;  %373 = vst [vmem:[#allocation2 + $0x278] sm:$0xf] %v372_v55  ;;  %375 = vst [vmem:[#allocation2 + $0x27c] sm:$0xff] %v374_v56   ;;  %v390_v62 = vld [vmem:[%s13449_s6 + $0x29c] sm:$0xff]  }
  0x45   :  { %379 = vst [vmem:[#allocation2 + $0x284] sm:$0xf] %v378_v57  ;;  %v380_v58 = vld [vmem:[%s13449_s6 + $0x284] sm:$0xf]  ;;  %v386_v60 = vld [vmem:[%s13449_s6 + $0x298] sm:$0xf] }
  0x46   :  { %381 = vst [vmem:[#allocation2 + $0x288] sm:$0xf] %v380_v58  ;;  %383 = vst [vmem:[#allocation2 + $0x28c] sm:$0xff] %v382_v59   ;;  %v388_v61 = vld [vmem:[%s13449_s6 + $0x294] sm:$0xf]  ;;  %v398_v1 = vld [vmem:[%s13449_s6 + $0x2ac] sm:$0xff]  }
  0x47   :  { %387 = vst [vmem:[#allocation2 + $0x294] sm:$0xf] %v386_v60  ;;  %v394_v63 = vld [vmem:[%s13449_s6 + $0x2a8] sm:$0xf]  ;;  %389 = vst [vmem:[#allocation2 + $0x298] sm:$0xf] %v388_v61 }
  0x48   :  { %391 = vst [vmem:[#allocation2 + $0x29c] sm:$0xff] %v390_v62   ;;  %395 = vst [vmem:[#allocation2 + $0x2a4] sm:$0xf] %v394_v63  ;;  %v396_v0 = vld [vmem:[%s13449_s6 + $0x2a4] sm:$0xf]  ;;  %v406_v4 = vld [vmem:[%s13449_s6 + $0x2bc] sm:$0xff]  }
  0x49   :  { %v402_v2 = vld [vmem:[%s13449_s6 + $0x2b8] sm:$0xf]  ;;  %397 = vst [vmem:[#allocation2 + $0x2a8] sm:$0xf] %v396_v0  ;;  %399 = vst [vmem:[#allocation2 + $0x2ac] sm:$0xff] %v398_v1   ;;  %v414_v7 = vld [vmem:[%s13449_s6 + $0x2cc] sm:$0xff]  }
  0x4a   :  { %403 = vst [vmem:[#allocation2 + $0x2b4] sm:$0xf] %v402_v2  ;;  %v404_v3 = vld [vmem:[%s13449_s6 + $0x2b4] sm:$0xf]  ;;  %v410_v5 = vld [vmem:[%s13449_s6 + $0x2c8] sm:$0xf] }
  0x4b   :  { %405 = vst [vmem:[#allocation2 + $0x2b8] sm:$0xf] %v404_v3  ;;  %407 = vst [vmem:[#allocation2 + $0x2bc] sm:$0xff] %v406_v4   ;;  %v412_v6 = vld [vmem:[%s13449_s6 + $0x2c4] sm:$0xf]  ;;  %v422_v10 = vld [vmem:[%s13449_s6 + $0x2dc] sm:$0xff]  }
  0x4c   :  { %411 = vst [vmem:[#allocation2 + $0x2c4] sm:$0xf] %v410_v5  ;;  %v418_v8 = vld [vmem:[%s13449_s6 + $0x2d8] sm:$0xf]  ;;  %413 = vst [vmem:[#allocation2 + $0x2c8] sm:$0xf] %v412_v6 }
  0x4d   :  { %415 = vst [vmem:[#allocation2 + $0x2cc] sm:$0xff] %v414_v7   ;;  %419 = vst [vmem:[#allocation2 + $0x2d4] sm:$0xf] %v418_v8  ;;  %v420_v9 = vld [vmem:[%s13449_s6 + $0x2d4] sm:$0xf]  ;;  %v430_v13 = vld [vmem:[%s13449_s6 + $0x2ec] sm:$0xff]  }
  0x4e   :  { %v426_v11 = vld [vmem:[%s13449_s6 + $0x2e8] sm:$0xf]  ;;  %421 = vst [vmem:[#allocation2 + $0x2d8] sm:$0xf] %v420_v9  ;;  %423 = vst [vmem:[#allocation2 + $0x2dc] sm:$0xff] %v422_v10   ;;  %v438_v16 = vld [vmem:[%s13449_s6 + $0x2fc] sm:$0xff]  }
  0x4f   :  { %427 = vst [vmem:[#allocation2 + $0x2e4] sm:$0xf] %v426_v11  ;;  %v428_v12 = vld [vmem:[%s13449_s6 + $0x2e4] sm:$0xf]  ;;  %v434_v14 = vld [vmem:[%s13449_s6 + $0x2f8] sm:$0xf] }
  0x50   :  { %429 = vst [vmem:[#allocation2 + $0x2e8] sm:$0xf] %v428_v12  ;;  %431 = vst [vmem:[#allocation2 + $0x2ec] sm:$0xff] %v430_v13   ;;  %v436_v15 = vld [vmem:[%s13449_s6 + $0x2f4] sm:$0xf]  ;;  %v446_v19 = vld [vmem:[%s13449_s6 + $0x30c] sm:$0xff]  }
  0x51   :  { %435 = vst [vmem:[#allocation2 + $0x2f4] sm:$0xf] %v434_v14  ;;  %v442_v17 = vld [vmem:[%s13449_s6 + $0x308] sm:$0xf]  ;;  %437 = vst [vmem:[#allocation2 + $0x2f8] sm:$0xf] %v436_v15 }
  0x52   :  { %439 = vst [vmem:[#allocation2 + $0x2fc] sm:$0xff] %v438_v16   ;;  %443 = vst [vmem:[#allocation2 + $0x304] sm:$0xf] %v442_v17  ;;  %v444_v18 = vld [vmem:[%s13449_s6 + $0x304] sm:$0xf]  ;;  %v454_v22 = vld [vmem:[%s13449_s6 + $0x31c] sm:$0xff]  }
  0x53   :  { %v450_v20 = vld [vmem:[%s13449_s6 + $0x318] sm:$0xf]  ;;  %445 = vst [vmem:[#allocation2 + $0x308] sm:$0xf] %v444_v18  ;;  %447 = vst [vmem:[#allocation2 + $0x30c] sm:$0xff] %v446_v19   ;;  %v462_v25 = vld [vmem:[%s13449_s6 + $0x32c] sm:$0xff]  }
  0x54   :  { %451 = vst [vmem:[#allocation2 + $0x314] sm:$0xf] %v450_v20  ;;  %v452_v21 = vld [vmem:[%s13449_s6 + $0x314] sm:$0xf]  ;;  %v458_v23 = vld [vmem:[%s13449_s6 + $0x328] sm:$0xf] }
  0x55   :  { %453 = vst [vmem:[#allocation2 + $0x318] sm:$0xf] %v452_v21  ;;  %455 = vst [vmem:[#allocation2 + $0x31c] sm:$0xff] %v454_v22   ;;  %v460_v24 = vld [vmem:[%s13449_s6 + $0x324] sm:$0xf]  ;;  %v470_v28 = vld [vmem:[%s13449_s6 + $0x33c] sm:$0xff]  }
  0x56   :  { %459 = vst [vmem:[#allocation2 + $0x324] sm:$0xf] %v458_v23  ;;  %v466_v26 = vld [vmem:[%s13449_s6 + $0x338] sm:$0xf]  ;;  %461 = vst [vmem:[#allocation2 + $0x328] sm:$0xf] %v460_v24 }
  0x57   :  { %463 = vst [vmem:[#allocation2 + $0x32c] sm:$0xff] %v462_v25   ;;  %467 = vst [vmem:[#allocation2 + $0x334] sm:$0xf] %v466_v26  ;;  %v468_v27 = vld [vmem:[%s13449_s6 + $0x334] sm:$0xf]  ;;  %v478_v31 = vld [vmem:[%s13449_s6 + $0x34c] sm:$0xff]  }
  0x58   :  { %v474_v29 = vld [vmem:[%s13449_s6 + $0x348] sm:$0xf]  ;;  %469 = vst [vmem:[#allocation2 + $0x338] sm:$0xf] %v468_v27  ;;  %471 = vst [vmem:[#allocation2 + $0x33c] sm:$0xff] %v470_v28   ;;  %v486_v34 = vld [vmem:[%s13449_s6 + $0x35c] sm:$0xff]  }
  0x59   :  { %475 = vst [vmem:[#allocation2 + $0x344] sm:$0xf] %v474_v29  ;;  %v476_v30 = vld [vmem:[%s13449_s6 + $0x344] sm:$0xf]  ;;  %v482_v32 = vld [vmem:[%s13449_s6 + $0x358] sm:$0xf] }
  0x5a   :  { %477 = vst [vmem:[#allocation2 + $0x348] sm:$0xf] %v476_v30  ;;  %479 = vst [vmem:[#allocation2 + $0x34c] sm:$0xff] %v478_v31   ;;  %v484_v33 = vld [vmem:[%s13449_s6 + $0x354] sm:$0xf]  ;;  %v494_v37 = vld [vmem:[%s13449_s6 + $0x36c] sm:$0xff]  }
  0x5b   :  { %483 = vst [vmem:[#allocation2 + $0x354] sm:$0xf] %v482_v32  ;;  %v490_v35 = vld [vmem:[%s13449_s6 + $0x368] sm:$0xf]  ;;  %485 = vst [vmem:[#allocation2 + $0x358] sm:$0xf] %v484_v33 }
  0x5c   :  { %487 = vst [vmem:[#allocation2 + $0x35c] sm:$0xff] %v486_v34   ;;  %491 = vst [vmem:[#allocation2 + $0x364] sm:$0xf] %v490_v35  ;;  %v492_v36 = vld [vmem:[%s13449_s6 + $0x364] sm:$0xf]  ;;  %v502_v40 = vld [vmem:[%s13449_s6 + $0x37c] sm:$0xff]  }
  0x5d   :  { %v498_v38 = vld [vmem:[%s13449_s6 + $0x378] sm:$0xf]  ;;  %493 = vst [vmem:[#allocation2 + $0x368] sm:$0xf] %v492_v36  ;;  %495 = vst [vmem:[#allocation2 + $0x36c] sm:$0xff] %v494_v37   ;;  %v510_v43 = vld [vmem:[%s13449_s6 + $0x38c] sm:$0xff]  }
  0x5e   :  { %499 = vst [vmem:[#allocation2 + $0x374] sm:$0xf] %v498_v38  ;;  %v500_v39 = vld [vmem:[%s13449_s6 + $0x374] sm:$0xf]  ;;  %v506_v41 = vld [vmem:[%s13449_s6 + $0x388] sm:$0xf] }
  0x5f   :  { %501 = vst [vmem:[#allocation2 + $0x378] sm:$0xf] %v500_v39  ;;  %503 = vst [vmem:[#allocation2 + $0x37c] sm:$0xff] %v502_v40   ;;  %v508_v42 = vld [vmem:[%s13449_s6 + $0x384] sm:$0xf]  ;;  %v518_v46 = vld [vmem:[%s13449_s6 + $0x39c] sm:$0xff]  }
  0x60   :  { %507 = vst [vmem:[#allocation2 + $0x384] sm:$0xf] %v506_v41  ;;  %v514_v44 = vld [vmem:[%s13449_s6 + $0x398] sm:$0xf]  ;;  %509 = vst [vmem:[#allocation2 + $0x388] sm:$0xf] %v508_v42 }
  0x61   :  { %511 = vst [vmem:[#allocation2 + $0x38c] sm:$0xff] %v510_v43   ;;  %515 = vst [vmem:[#allocation2 + $0x394] sm:$0xf] %v514_v44  ;;  %v516_v45 = vld [vmem:[%s13449_s6 + $0x394] sm:$0xf]  ;;  %v526_v49 = vld [vmem:[%s13449_s6 + $0x3ac] sm:$0xff]  }
  0x62   :  { %v522_v47 = vld [vmem:[%s13449_s6 + $0x3a8] sm:$0xf]  ;;  %517 = vst [vmem:[#allocation2 + $0x398] sm:$0xf] %v516_v45  ;;  %519 = vst [vmem:[#allocation2 + $0x39c] sm:$0xff] %v518_v46   ;;  %v534_v52 = vld [vmem:[%s13449_s6 + $0x3bc] sm:$0xff]  }
  0x63   :  { %523 = vst [vmem:[#allocation2 + $0x3a4] sm:$0xf] %v522_v47  ;;  %v524_v48 = vld [vmem:[%s13449_s6 + $0x3a4] sm:$0xf]  ;;  %v530_v50 = vld [vmem:[%s13449_s6 + $0x3b8] sm:$0xf] }
  0x64   :  { %525 = vst [vmem:[#allocation2 + $0x3a8] sm:$0xf] %v524_v48  ;;  %527 = vst [vmem:[#allocation2 + $0x3ac] sm:$0xff] %v526_v49   ;;  %v532_v51 = vld [vmem:[%s13449_s6 + $0x3b4] sm:$0xf]  ;;  %v542_v55 = vld [vmem:[%s13449_s6 + $0x3cc] sm:$0xff]  }
  0x65   :  { %531 = vst [vmem:[#allocation2 + $0x3b4] sm:$0xf] %v530_v50  ;;  %v538_v53 = vld [vmem:[%s13449_s6 + $0x3c8] sm:$0xf]  ;;  %533 = vst [vmem:[#allocation2 + $0x3b8] sm:$0xf] %v532_v51 }
  0x66   :  { %535 = vst [vmem:[#allocation2 + $0x3bc] sm:$0xff] %v534_v52   ;;  %539 = vst [vmem:[#allocation2 + $0x3c4] sm:$0xf] %v538_v53  ;;  %v540_v54 = vld [vmem:[%s13449_s6 + $0x3c4] sm:$0xf]  ;;  %v550_v58 = vld [vmem:[%s13449_s6 + $0x3dc] sm:$0xff]  }
  0x67   :  { %v546_v56 = vld [vmem:[%s13449_s6 + $0x3d8] sm:$0xf]  ;;  %541 = vst [vmem:[#allocation2 + $0x3c8] sm:$0xf] %v540_v54  ;;  %543 = vst [vmem:[#allocation2 + $0x3cc] sm:$0xff] %v542_v55   ;;  %v558_v61 = vld [vmem:[%s13449_s6 + $0x3ec] sm:$0xff]  }
  0x68   :  { %547 = vst [vmem:[#allocation2 + $0x3d4] sm:$0xf] %v546_v56  ;;  %v548_v57 = vld [vmem:[%s13449_s6 + $0x3d4] sm:$0xf]  ;;  %v554_v59 = vld [vmem:[%s13449_s6 + $0x3e8] sm:$0xf] }
  0x69   :  { %549 = vst [vmem:[#allocation2 + $0x3d8] sm:$0xf] %v548_v57  ;;  %551 = vst [vmem:[#allocation2 + $0x3dc] sm:$0xff] %v550_v58   ;;  %v556_v60 = vld [vmem:[%s13449_s6 + $0x3e4] sm:$0xf]  ;;  %v566_v0 = vld [vmem:[%s13449_s6 + $0x3fc] sm:$0xff]  }
  0x6a   :  { %555 = vst [vmem:[#allocation2 + $0x3e4] sm:$0xf] %v554_v59  ;;  %v562_v62 = vld [vmem:[%s13449_s6 + $0x3f8] sm:$0xf]  ;;  %557 = vst [vmem:[#allocation2 + $0x3e8] sm:$0xf] %v556_v60 }
  0x6b   :  { %559 = vst [vmem:[#allocation2 + $0x3ec] sm:$0xff] %v558_v61   ;;  %563 = vst [vmem:[#allocation2 + $0x3f4] sm:$0xf] %v562_v62  ;;  %v564_v63 = vld [vmem:[%s13449_s6 + $0x3f4] sm:$0xf]  ;;  %v574_v3 = vld [vmem:[%s13449_s6 + $0x40c] sm:$0xff]  }
  0x6c   :  { %v570_v1 = vld [vmem:[%s13449_s6 + $0x408] sm:$0xf]  ;;  %565 = vst [vmem:[#allocation2 + $0x3f8] sm:$0xf] %v564_v63  ;;  %567 = vst [vmem:[#allocation2 + $0x3fc] sm:$0xff] %v566_v0   ;;  %v582_v6 = vld [vmem:[%s13449_s6 + $0x41c] sm:$0xff]  }
  0x6d   :  { %571 = vst [vmem:[#allocation2 + $0x404] sm:$0xf] %v570_v1  ;;  %v572_v2 = vld [vmem:[%s13449_s6 + $0x404] sm:$0xf]  ;;  %v578_v4 = vld [vmem:[%s13449_s6 + $0x418] sm:$0xf] }
  0x6e   :  { %573 = vst [vmem:[#allocation2 + $0x408] sm:$0xf] %v572_v2  ;;  %575 = vst [vmem:[#allocation2 + $0x40c] sm:$0xff] %v574_v3   ;;  %v580_v5 = vld [vmem:[%s13449_s6 + $0x414] sm:$0xf]  ;;  %v590_v9 = vld [vmem:[%s13449_s6 + $0x42c] sm:$0xff]  }
  0x6f   :  { %579 = vst [vmem:[#allocation2 + $0x414] sm:$0xf] %v578_v4  ;;  %v586_v7 = vld [vmem:[%s13449_s6 + $0x428] sm:$0xf]  ;;  %581 = vst [vmem:[#allocation2 + $0x418] sm:$0xf] %v580_v5 }
  0x70   :  { %583 = vst [vmem:[#allocation2 + $0x41c] sm:$0xff] %v582_v6   ;;  %587 = vst [vmem:[#allocation2 + $0x424] sm:$0xf] %v586_v7  ;;  %v588_v8 = vld [vmem:[%s13449_s6 + $0x424] sm:$0xf]  ;;  %v598_v12 = vld [vmem:[%s13449_s6 + $0x43c] sm:$0xff]  }
  0x71   :  { %v594_v10 = vld [vmem:[%s13449_s6 + $0x438] sm:$0xf]  ;;  %589 = vst [vmem:[#allocation2 + $0x428] sm:$0xf] %v588_v8  ;;  %591 = vst [vmem:[#allocation2 + $0x42c] sm:$0xff] %v590_v9   ;;  %v606_v15 = vld [vmem:[%s13449_s6 + $0x44c] sm:$0xff]  }
  0x72   :  { %595 = vst [vmem:[#allocation2 + $0x434] sm:$0xf] %v594_v10  ;;  %v596_v11 = vld [vmem:[%s13449_s6 + $0x434] sm:$0xf]  ;;  %v602_v13 = vld [vmem:[%s13449_s6 + $0x448] sm:$0xf] }
  0x73   :  { %597 = vst [vmem:[#allocation2 + $0x438] sm:$0xf] %v596_v11  ;;  %599 = vst [vmem:[#allocation2 + $0x43c] sm:$0xff] %v598_v12   ;;  %v604_v14 = vld [vmem:[%s13449_s6 + $0x444] sm:$0xf]  ;;  %v614_v18 = vld [vmem:[%s13449_s6 + $0x45c] sm:$0xff]  }
  0x74   :  { %603 = vst [vmem:[#allocation2 + $0x444] sm:$0xf] %v602_v13  ;;  %v610_v16 = vld [vmem:[%s13449_s6 + $0x458] sm:$0xf]  ;;  %605 = vst [vmem:[#allocation2 + $0x448] sm:$0xf] %v604_v14 }
  0x75   :  { %607 = vst [vmem:[#allocation2 + $0x44c] sm:$0xff] %v606_v15   ;;  %611 = vst [vmem:[#allocation2 + $0x454] sm:$0xf] %v610_v16  ;;  %v612_v17 = vld [vmem:[%s13449_s6 + $0x454] sm:$0xf]  ;;  %v622_v21 = vld [vmem:[%s13449_s6 + $0x46c] sm:$0xff]  }
  0x76   :  { %v618_v19 = vld [vmem:[%s13449_s6 + $0x468] sm:$0xf]  ;;  %613 = vst [vmem:[#allocation2 + $0x458] sm:$0xf] %v612_v17  ;;  %615 = vst [vmem:[#allocation2 + $0x45c] sm:$0xff] %v614_v18   ;;  %v630_v24 = vld [vmem:[%s13449_s6 + $0x47c] sm:$0xff]  }
  0x77   :  { %619 = vst [vmem:[#allocation2 + $0x464] sm:$0xf] %v618_v19  ;;  %v620_v20 = vld [vmem:[%s13449_s6 + $0x464] sm:$0xf]  ;;  %v626_v22 = vld [vmem:[%s13449_s6 + $0x478] sm:$0xf] }
  0x78   :  { %621 = vst [vmem:[#allocation2 + $0x468] sm:$0xf] %v620_v20  ;;  %623 = vst [vmem:[#allocation2 + $0x46c] sm:$0xff] %v622_v21   ;;  %v628_v23 = vld [vmem:[%s13449_s6 + $0x474] sm:$0xf]  ;;  %v638_v27 = vld [vmem:[%s13449_s6 + $0x48c] sm:$0xff]  }
  0x79   :  { %627 = vst [vmem:[#allocation2 + $0x474] sm:$0xf] %v626_v22  ;;  %v634_v25 = vld [vmem:[%s13449_s6 + $0x488] sm:$0xf]  ;;  %629 = vst [vmem:[#allocation2 + $0x478] sm:$0xf] %v628_v23 }
  0x7a   :  { %631 = vst [vmem:[#allocation2 + $0x47c] sm:$0xff] %v630_v24   ;;  %635 = vst [vmem:[#allocation2 + $0x484] sm:$0xf] %v634_v25  ;;  %v636_v26 = vld [vmem:[%s13449_s6 + $0x484] sm:$0xf]  ;;  %v646_v30 = vld [vmem:[%s13449_s6 + $0x49c] sm:$0xff]  }
  0x7b   :  { %v642_v28 = vld [vmem:[%s13449_s6 + $0x498] sm:$0xf]  ;;  %637 = vst [vmem:[#allocation2 + $0x488] sm:$0xf] %v636_v26  ;;  %639 = vst [vmem:[#allocation2 + $0x48c] sm:$0xff] %v638_v27   ;;  %v654_v33 = vld [vmem:[%s13449_s6 + $0x4ac] sm:$0xff]  }
  0x7c   :  { %643 = vst [vmem:[#allocation2 + $0x494] sm:$0xf] %v642_v28  ;;  %v644_v29 = vld [vmem:[%s13449_s6 + $0x494] sm:$0xf]  ;;  %v650_v31 = vld [vmem:[%s13449_s6 + $0x4a8] sm:$0xf] }
  0x7d   :  { %645 = vst [vmem:[#allocation2 + $0x498] sm:$0xf] %v644_v29  ;;  %647 = vst [vmem:[#allocation2 + $0x49c] sm:$0xff] %v646_v30   ;;  %v652_v32 = vld [vmem:[%s13449_s6 + $0x4a4] sm:$0xf]  ;;  %v662_v36 = vld [vmem:[%s13449_s6 + $0x4bc] sm:$0xff]  }
  0x7e   :  { %651 = vst [vmem:[#allocation2 + $0x4a4] sm:$0xf] %v650_v31  ;;  %v658_v34 = vld [vmem:[%s13449_s6 + $0x4b8] sm:$0xf]  ;;  %653 = vst [vmem:[#allocation2 + $0x4a8] sm:$0xf] %v652_v32 }
  0x7f   :  { %655 = vst [vmem:[#allocation2 + $0x4ac] sm:$0xff] %v654_v33   ;;  %659 = vst [vmem:[#allocation2 + $0x4b4] sm:$0xf] %v658_v34  ;;  %v660_v35 = vld [vmem:[%s13449_s6 + $0x4b4] sm:$0xf]  ;;  %v670_v39 = vld [vmem:[%s13449_s6 + $0x4cc] sm:$0xff]  }
  0x80   :  { %v666_v37 = vld [vmem:[%s13449_s6 + $0x4c8] sm:$0xf]  ;;  %661 = vst [vmem:[#allocation2 + $0x4b8] sm:$0xf] %v660_v35  ;;  %663 = vst [vmem:[#allocation2 + $0x4bc] sm:$0xff] %v662_v36   ;;  %v678_v42 = vld [vmem:[%s13449_s6 + $0x4dc] sm:$0xff]  }
  0x81   :  { %667 = vst [vmem:[#allocation2 + $0x4c4] sm:$0xf] %v666_v37  ;;  %v668_v38 = vld [vmem:[%s13449_s6 + $0x4c4] sm:$0xf]  ;;  %v674_v40 = vld [vmem:[%s13449_s6 + $0x4d8] sm:$0xf] }
  0x82   :  { %669 = vst [vmem:[#allocation2 + $0x4c8] sm:$0xf] %v668_v38  ;;  %671 = vst [vmem:[#allocation2 + $0x4cc] sm:$0xff] %v670_v39   ;;  %v676_v41 = vld [vmem:[%s13449_s6 + $0x4d4] sm:$0xf]  ;;  %v686_v45 = vld [vmem:[%s13449_s6 + $0x4ec] sm:$0xff]  }
  0x83   :  { %675 = vst [vmem:[#allocation2 + $0x4d4] sm:$0xf] %v674_v40  ;;  %v682_v43 = vld [vmem:[%s13449_s6 + $0x4e8] sm:$0xf]  ;;  %677 = vst [vmem:[#allocation2 + $0x4d8] sm:$0xf] %v676_v41 }
  0x84   :  { %679 = vst [vmem:[#allocation2 + $0x4dc] sm:$0xff] %v678_v42   ;;  %683 = vst [vmem:[#allocation2 + $0x4e4] sm:$0xf] %v682_v43  ;;  %v684_v44 = vld [vmem:[%s13449_s6 + $0x4e4] sm:$0xf]  ;;  %v694_v48 = vld [vmem:[%s13449_s6 + $0x4fc] sm:$0xff]  }
  0x85   :  { %v690_v46 = vld [vmem:[%s13449_s6 + $0x4f8] sm:$0xf]  ;;  %685 = vst [vmem:[#allocation2 + $0x4e8] sm:$0xf] %v684_v44  ;;  %687 = vst [vmem:[#allocation2 + $0x4ec] sm:$0xff] %v686_v45   ;;  %v702_v51 = vld [vmem:[%s13449_s6 + $0x50c] sm:$0xff]  }
  0x86   :  { %691 = vst [vmem:[#allocation2 + $0x4f4] sm:$0xf] %v690_v46  ;;  %v692_v47 = vld [vmem:[%s13449_s6 + $0x4f4] sm:$0xf]  ;;  %v698_v49 = vld [vmem:[%s13449_s6 + $0x508] sm:$0xf] }
  0x87   :  { %693 = vst [vmem:[#allocation2 + $0x4f8] sm:$0xf] %v692_v47  ;;  %695 = vst [vmem:[#allocation2 + $0x4fc] sm:$0xff] %v694_v48   ;;  %v700_v50 = vld [vmem:[%s13449_s6 + $0x504] sm:$0xf]  ;;  %v710_v54 = vld [vmem:[%s13449_s6 + $0x51c] sm:$0xff]  }
  0x88   :  { %699 = vst [vmem:[#allocation2 + $0x504] sm:$0xf] %v698_v49  ;;  %v706_v52 = vld [vmem:[%s13449_s6 + $0x518] sm:$0xf]  ;;  %701 = vst [vmem:[#allocation2 + $0x508] sm:$0xf] %v700_v50 }
  0x89   :  { %703 = vst [vmem:[#allocation2 + $0x50c] sm:$0xff] %v702_v51   ;;  %707 = vst [vmem:[#allocation2 + $0x514] sm:$0xf] %v706_v52  ;;  %v708_v53 = vld [vmem:[%s13449_s6 + $0x514] sm:$0xf]  ;;  %v718_v57 = vld [vmem:[%s13449_s6 + $0x52c] sm:$0xff]  }
  0x8a   :  { %v714_v55 = vld [vmem:[%s13449_s6 + $0x528] sm:$0xf]  ;;  %709 = vst [vmem:[#allocation2 + $0x518] sm:$0xf] %v708_v53  ;;  %711 = vst [vmem:[#allocation2 + $0x51c] sm:$0xff] %v710_v54   ;;  %v726_v60 = vld [vmem:[%s13449_s6 + $0x53c] sm:$0xff]  }
  0x8b   :  { %715 = vst [vmem:[#allocation2 + $0x524] sm:$0xf] %v714_v55  ;;  %v716_v56 = vld [vmem:[%s13449_s6 + $0x524] sm:$0xf]  ;;  %v722_v58 = vld [vmem:[%s13449_s6 + $0x538] sm:$0xf] }
  0x8c   :  { %717 = vst [vmem:[#allocation2 + $0x528] sm:$0xf] %v716_v56  ;;  %719 = vst [vmem:[#allocation2 + $0x52c] sm:$0xff] %v718_v57   ;;  %v724_v59 = vld [vmem:[%s13449_s6 + $0x534] sm:$0xf]  ;;  %v734_v63 = vld [vmem:[%s13449_s6 + $0x54c] sm:$0xff]  }
  0x8d   :  { %723 = vst [vmem:[#allocation2 + $0x534] sm:$0xf] %v722_v58  ;;  %v730_v61 = vld [vmem:[%s13449_s6 + $0x548] sm:$0xf]  ;;  %725 = vst [vmem:[#allocation2 + $0x538] sm:$0xf] %v724_v59 }
  0x8e   :  { %727 = vst [vmem:[#allocation2 + $0x53c] sm:$0xff] %v726_v60   ;;  %731 = vst [vmem:[#allocation2 + $0x544] sm:$0xf] %v730_v61  ;;  %v732_v62 = vld [vmem:[%s13449_s6 + $0x544] sm:$0xf]  ;;  %v742_v2 = vld [vmem:[%s13449_s6 + $0x55c] sm:$0xff]  }
  0x8f   :  { %v738_v0 = vld [vmem:[%s13449_s6 + $0x558] sm:$0xf]  ;;  %733 = vst [vmem:[#allocation2 + $0x548] sm:$0xf] %v732_v62  ;;  %735 = vst [vmem:[#allocation2 + $0x54c] sm:$0xff] %v734_v63   ;;  %v750_v5 = vld [vmem:[%s13449_s6 + $0x56c] sm:$0xff]  }
  0x90   :  { %739 = vst [vmem:[#allocation2 + $0x554] sm:$0xf] %v738_v0  ;;  %v740_v1 = vld [vmem:[%s13449_s6 + $0x554] sm:$0xf]  ;;  %v746_v3 = vld [vmem:[%s13449_s6 + $0x568] sm:$0xf] }
  0x91   :  { %741 = vst [vmem:[#allocation2 + $0x558] sm:$0xf] %v740_v1  ;;  %743 = vst [vmem:[#allocation2 + $0x55c] sm:$0xff] %v742_v2   ;;  %v748_v4 = vld [vmem:[%s13449_s6 + $0x564] sm:$0xf]  ;;  %v758_v8 = vld [vmem:[%s13449_s6 + $0x57c] sm:$0xff]  }
  0x92   :  { %747 = vst [vmem:[#allocation2 + $0x564] sm:$0xf] %v746_v3  ;;  %v754_v6 = vld [vmem:[%s13449_s6 + $0x578] sm:$0xf]  ;;  %749 = vst [vmem:[#allocation2 + $0x568] sm:$0xf] %v748_v4 }
  0x93   :  { %751 = vst [vmem:[#allocation2 + $0x56c] sm:$0xff] %v750_v5   ;;  %755 = vst [vmem:[#allocation2 + $0x574] sm:$0xf] %v754_v6  ;;  %v756_v7 = vld [vmem:[%s13449_s6 + $0x574] sm:$0xf]  ;;  %v766_v11 = vld [vmem:[%s13449_s6 + $0x58c] sm:$0xff]  }
  0x94   :  { %v762_v9 = vld [vmem:[%s13449_s6 + $0x588] sm:$0xf]  ;;  %757 = vst [vmem:[#allocation2 + $0x578] sm:$0xf] %v756_v7  ;;  %759 = vst [vmem:[#allocation2 + $0x57c] sm:$0xff] %v758_v8   ;;  %v774_v14 = vld [vmem:[%s13449_s6 + $0x59c] sm:$0xff]  }
  0x95   :  { %763 = vst [vmem:[#allocation2 + $0x584] sm:$0xf] %v762_v9  ;;  %v764_v10 = vld [vmem:[%s13449_s6 + $0x584] sm:$0xf]  ;;  %v770_v12 = vld [vmem:[%s13449_s6 + $0x598] sm:$0xf] }
  0x96   :  { %765 = vst [vmem:[#allocation2 + $0x588] sm:$0xf] %v764_v10  ;;  %767 = vst [vmem:[#allocation2 + $0x58c] sm:$0xff] %v766_v11   ;;  %v772_v13 = vld [vmem:[%s13449_s6 + $0x594] sm:$0xf]  ;;  %v782_v17 = vld [vmem:[%s13449_s6 + $0x5ac] sm:$0xff]  }
  0x97   :  { %771 = vst [vmem:[#allocation2 + $0x594] sm:$0xf] %v770_v12  ;;  %v778_v15 = vld [vmem:[%s13449_s6 + $0x5a8] sm:$0xf]  ;;  %773 = vst [vmem:[#allocation2 + $0x598] sm:$0xf] %v772_v13 }
  0x98   :  { %775 = vst [vmem:[#allocation2 + $0x59c] sm:$0xff] %v774_v14   ;;  %779 = vst [vmem:[#allocation2 + $0x5a4] sm:$0xf] %v778_v15  ;;  %v780_v16 = vld [vmem:[%s13449_s6 + $0x5a4] sm:$0xf]  ;;  %v790_v20 = vld [vmem:[%s13449_s6 + $0x5bc] sm:$0xff]  }
  0x99   :  { %v786_v18 = vld [vmem:[%s13449_s6 + $0x5b8] sm:$0xf]  ;;  %781 = vst [vmem:[#allocation2 + $0x5a8] sm:$0xf] %v780_v16  ;;  %783 = vst [vmem:[#allocation2 + $0x5ac] sm:$0xff] %v782_v17   ;;  %v798_v23 = vld [vmem:[%s13449_s6 + $0x5cc] sm:$0xff]  }
  0x9a   :  { %787 = vst [vmem:[#allocation2 + $0x5b4] sm:$0xf] %v786_v18  ;;  %v788_v19 = vld [vmem:[%s13449_s6 + $0x5b4] sm:$0xf]  ;;  %v794_v21 = vld [vmem:[%s13449_s6 + $0x5c8] sm:$0xf] }
  0x9b   :  { %789 = vst [vmem:[#allocation2 + $0x5b8] sm:$0xf] %v788_v19  ;;  %791 = vst [vmem:[#allocation2 + $0x5bc] sm:$0xff] %v790_v20   ;;  %v796_v22 = vld [vmem:[%s13449_s6 + $0x5c4] sm:$0xf]  ;;  %v806_v26 = vld [vmem:[%s13449_s6 + $0x5dc] sm:$0xff]  }
  0x9c   :  { %795 = vst [vmem:[#allocation2 + $0x5c4] sm:$0xf] %v794_v21  ;;  %v802_v24 = vld [vmem:[%s13449_s6 + $0x5d8] sm:$0xf]  ;;  %797 = vst [vmem:[#allocation2 + $0x5c8] sm:$0xf] %v796_v22 }
  0x9d   :  { %799 = vst [vmem:[#allocation2 + $0x5cc] sm:$0xff] %v798_v23   ;;  %803 = vst [vmem:[#allocation2 + $0x5d4] sm:$0xf] %v802_v24  ;;  %v804_v25 = vld [vmem:[%s13449_s6 + $0x5d4] sm:$0xf]  ;;  %v814_v29 = vld [vmem:[%s13449_s6 + $0x5ec] sm:$0xff]  }
  0x9e   :  { %v810_v27 = vld [vmem:[%s13449_s6 + $0x5e8] sm:$0xf]  ;;  %805 = vst [vmem:[#allocation2 + $0x5d8] sm:$0xf] %v804_v25  ;;  %807 = vst [vmem:[#allocation2 + $0x5dc] sm:$0xff] %v806_v26   ;;  %v822_v32 = vld [vmem:[%s13449_s6 + $0x5fc] sm:$0xff]  }
  0x9f   :  { %811 = vst [vmem:[#allocation2 + $0x5e4] sm:$0xf] %v810_v27  ;;  %v812_v28 = vld [vmem:[%s13449_s6 + $0x5e4] sm:$0xf]  ;;  %v818_v30 = vld [vmem:[%s13449_s6 + $0x5f8] sm:$0xf] }
  0xa0   :  { %813 = vst [vmem:[#allocation2 + $0x5e8] sm:$0xf] %v812_v28  ;;  %815 = vst [vmem:[#allocation2 + $0x5ec] sm:$0xff] %v814_v29   ;;  %v820_v31 = vld [vmem:[%s13449_s6 + $0x5f4] sm:$0xf]  ;;  %v830_v35 = vld [vmem:[%s13449_s6 + $0x60c] sm:$0xff]  }
  0xa1   :  { %819 = vst [vmem:[#allocation2 + $0x5f4] sm:$0xf] %v818_v30  ;;  %v826_v33 = vld [vmem:[%s13449_s6 + $0x608] sm:$0xf]  ;;  %821 = vst [vmem:[#allocation2 + $0x5f8] sm:$0xf] %v820_v31 }
  0xa2   :  { %823 = vst [vmem:[#allocation2 + $0x5fc] sm:$0xff] %v822_v32   ;;  %827 = vst [vmem:[#allocation2 + $0x604] sm:$0xf] %v826_v33  ;;  %v828_v34 = vld [vmem:[%s13449_s6 + $0x604] sm:$0xf]  ;;  %v838_v38 = vld [vmem:[%s13449_s6 + $0x61c] sm:$0xff]  }
  0xa3   :  { %v834_v36 = vld [vmem:[%s13449_s6 + $0x618] sm:$0xf]  ;;  %829 = vst [vmem:[#allocation2 + $0x608] sm:$0xf] %v828_v34  ;;  %831 = vst [vmem:[#allocation2 + $0x60c] sm:$0xff] %v830_v35   ;;  %v846_v41 = vld [vmem:[%s13449_s6 + $0x62c] sm:$0xff]  }
  0xa4   :  { %835 = vst [vmem:[#allocation2 + $0x614] sm:$0xf] %v834_v36  ;;  %v836_v37 = vld [vmem:[%s13449_s6 + $0x614] sm:$0xf]  ;;  %v842_v39 = vld [vmem:[%s13449_s6 + $0x628] sm:$0xf] }
  0xa5   :  { %837 = vst [vmem:[#allocation2 + $0x618] sm:$0xf] %v836_v37  ;;  %839 = vst [vmem:[#allocation2 + $0x61c] sm:$0xff] %v838_v38   ;;  %v844_v40 = vld [vmem:[%s13449_s6 + $0x624] sm:$0xf]  ;;  %v854_v44 = vld [vmem:[%s13449_s6 + $0x63c] sm:$0xff]  }
  0xa6   :  { %843 = vst [vmem:[#allocation2 + $0x624] sm:$0xf] %v842_v39  ;;  %v850_v42 = vld [vmem:[%s13449_s6 + $0x638] sm:$0xf]  ;;  %845 = vst [vmem:[#allocation2 + $0x628] sm:$0xf] %v844_v40 }
  0xa7   :  { %847 = vst [vmem:[#allocation2 + $0x62c] sm:$0xff] %v846_v41   ;;  %851 = vst [vmem:[#allocation2 + $0x634] sm:$0xf] %v850_v42  ;;  %v852_v43 = vld [vmem:[%s13449_s6 + $0x634] sm:$0xf]  ;;  %v862_v47 = vld [vmem:[%s13449_s6 + $0x64c] sm:$0xff]  }
  0xa8   :  { %v858_v45 = vld [vmem:[%s13449_s6 + $0x648] sm:$0xf]  ;;  %853 = vst [vmem:[#allocation2 + $0x638] sm:$0xf] %v852_v43  ;;  %855 = vst [vmem:[#allocation2 + $0x63c] sm:$0xff] %v854_v44   ;;  %v870_v50 = vld [vmem:[%s13449_s6 + $0x65c] sm:$0xff]  }
  0xa9   :  { %859 = vst [vmem:[#allocation2 + $0x644] sm:$0xf] %v858_v45  ;;  %v860_v46 = vld [vmem:[%s13449_s6 + $0x644] sm:$0xf]  ;;  %v866_v48 = vld [vmem:[%s13449_s6 + $0x658] sm:$0xf] }
  0xaa   :  { %861 = vst [vmem:[#allocation2 + $0x648] sm:$0xf] %v860_v46  ;;  %863 = vst [vmem:[#allocation2 + $0x64c] sm:$0xff] %v862_v47   ;;  %v868_v49 = vld [vmem:[%s13449_s6 + $0x654] sm:$0xf]  ;;  %v878_v53 = vld [vmem:[%s13449_s6 + $0x66c] sm:$0xff]  }
  0xab   :  { %867 = vst [vmem:[#allocation2 + $0x654] sm:$0xf] %v866_v48  ;;  %v874_v51 = vld [vmem:[%s13449_s6 + $0x668] sm:$0xf]  ;;  %869 = vst [vmem:[#allocation2 + $0x658] sm:$0xf] %v868_v49 }
  0xac   :  { %871 = vst [vmem:[#allocation2 + $0x65c] sm:$0xff] %v870_v50   ;;  %875 = vst [vmem:[#allocation2 + $0x664] sm:$0xf] %v874_v51  ;;  %v876_v52 = vld [vmem:[%s13449_s6 + $0x664] sm:$0xf]  ;;  %v886_v56 = vld [vmem:[%s13449_s6 + $0x67c] sm:$0xff]  }
  0xad   :  { %v882_v54 = vld [vmem:[%s13449_s6 + $0x678] sm:$0xf]  ;;  %877 = vst [vmem:[#allocation2 + $0x668] sm:$0xf] %v876_v52  ;;  %879 = vst [vmem:[#allocation2 + $0x66c] sm:$0xff] %v878_v53   ;;  %v894_v59 = vld [vmem:[%s13449_s6 + $0x68c] sm:$0xff]  }
  0xae   :  { %883 = vst [vmem:[#allocation2 + $0x674] sm:$0xf] %v882_v54  ;;  %v884_v55 = vld [vmem:[%s13449_s6 + $0x674] sm:$0xf]  ;;  %v890_v57 = vld [vmem:[%s13449_s6 + $0x688] sm:$0xf] }
  0xaf   :  { %885 = vst [vmem:[#allocation2 + $0x678] sm:$0xf] %v884_v55  ;;  %887 = vst [vmem:[#allocation2 + $0x67c] sm:$0xff] %v886_v56   ;;  %v892_v58 = vld [vmem:[%s13449_s6 + $0x684] sm:$0xf]  ;;  %v902_v62 = vld [vmem:[%s13449_s6 + $0x69c] sm:$0xff]  }
  0xb0   :  { %891 = vst [vmem:[#allocation2 + $0x684] sm:$0xf] %v890_v57  ;;  %v898_v60 = vld [vmem:[%s13449_s6 + $0x698] sm:$0xf]  ;;  %893 = vst [vmem:[#allocation2 + $0x688] sm:$0xf] %v892_v58 }
  0xb1   :  { %895 = vst [vmem:[#allocation2 + $0x68c] sm:$0xff] %v894_v59   ;;  %899 = vst [vmem:[#allocation2 + $0x694] sm:$0xf] %v898_v60  ;;  %v900_v61 = vld [vmem:[%s13449_s6 + $0x694] sm:$0xf]  ;;  %v910_v1 = vld [vmem:[%s13449_s6 + $0x6ac] sm:$0xff]  }
  0xb2   :  { %v906_v63 = vld [vmem:[%s13449_s6 + $0x6a8] sm:$0xf]  ;;  %901 = vst [vmem:[#allocation2 + $0x698] sm:$0xf] %v900_v61  ;;  %903 = vst [vmem:[#allocation2 + $0x69c] sm:$0xff] %v902_v62   ;;  %v918_v4 = vld [vmem:[%s13449_s6 + $0x6bc] sm:$0xff]  }
  0xb3   :  { %907 = vst [vmem:[#allocation2 + $0x6a4] sm:$0xf] %v906_v63  ;;  %v908_v0 = vld [vmem:[%s13449_s6 + $0x6a4] sm:$0xf]  ;;  %v914_v2 = vld [vmem:[%s13449_s6 + $0x6b8] sm:$0xf] }
  0xb4   :  { %909 = vst [vmem:[#allocation2 + $0x6a8] sm:$0xf] %v908_v0  ;;  %911 = vst [vmem:[#allocation2 + $0x6ac] sm:$0xff] %v910_v1   ;;  %v916_v3 = vld [vmem:[%s13449_s6 + $0x6b4] sm:$0xf]  ;;  %v926_v7 = vld [vmem:[%s13449_s6 + $0x6cc] sm:$0xff]  }
  0xb5   :  { %915 = vst [vmem:[#allocation2 + $0x6b4] sm:$0xf] %v914_v2  ;;  %v922_v5 = vld [vmem:[%s13449_s6 + $0x6c8] sm:$0xf]  ;;  %917 = vst [vmem:[#allocation2 + $0x6b8] sm:$0xf] %v916_v3 }
  0xb6   :  { %919 = vst [vmem:[#allocation2 + $0x6bc] sm:$0xff] %v918_v4   ;;  %923 = vst [vmem:[#allocation2 + $0x6c4] sm:$0xf] %v922_v5  ;;  %v924_v6 = vld [vmem:[%s13449_s6 + $0x6c4] sm:$0xf]  ;;  %v934_v10 = vld [vmem:[%s13449_s6 + $0x6dc] sm:$0xff]  }
  0xb7   :  { %v930_v8 = vld [vmem:[%s13449_s6 + $0x6d8] sm:$0xf]  ;;  %925 = vst [vmem:[#allocation2 + $0x6c8] sm:$0xf] %v924_v6  ;;  %927 = vst [vmem:[#allocation2 + $0x6cc] sm:$0xff] %v926_v7   ;;  %v942_v13 = vld [vmem:[%s13449_s6 + $0x6ec] sm:$0xff]  }
  0xb8   :  { %931 = vst [vmem:[#allocation2 + $0x6d4] sm:$0xf] %v930_v8  ;;  %v932_v9 = vld [vmem:[%s13449_s6 + $0x6d4] sm:$0xf]  ;;  %v938_v11 = vld [vmem:[%s13449_s6 + $0x6e8] sm:$0xf] }
  0xb9   :  { %933 = vst [vmem:[#allocation2 + $0x6d8] sm:$0xf] %v932_v9  ;;  %935 = vst [vmem:[#allocation2 + $0x6dc] sm:$0xff] %v934_v10   ;;  %v940_v12 = vld [vmem:[%s13449_s6 + $0x6e4] sm:$0xf]  ;;  %v950_v16 = vld [vmem:[%s13449_s6 + $0x6fc] sm:$0xff]  }
  0xba   :  { %939 = vst [vmem:[#allocation2 + $0x6e4] sm:$0xf] %v938_v11  ;;  %v946_v14 = vld [vmem:[%s13449_s6 + $0x6f8] sm:$0xf]  ;;  %941 = vst [vmem:[#allocation2 + $0x6e8] sm:$0xf] %v940_v12 }
  0xbb   :  { %943 = vst [vmem:[#allocation2 + $0x6ec] sm:$0xff] %v942_v13   ;;  %947 = vst [vmem:[#allocation2 + $0x6f4] sm:$0xf] %v946_v14  ;;  %v948_v15 = vld [vmem:[%s13449_s6 + $0x6f4] sm:$0xf]  ;;  %v958_v19 = vld [vmem:[%s13449_s6 + $0x70c] sm:$0xff]  }
  0xbc   :  { %v954_v17 = vld [vmem:[%s13449_s6 + $0x708] sm:$0xf]  ;;  %949 = vst [vmem:[#allocation2 + $0x6f8] sm:$0xf] %v948_v15  ;;  %951 = vst [vmem:[#allocation2 + $0x6fc] sm:$0xff] %v950_v16   ;;  %v966_v22 = vld [vmem:[%s13449_s6 + $0x71c] sm:$0xff]  }
  0xbd   :  { %955 = vst [vmem:[#allocation2 + $0x704] sm:$0xf] %v954_v17  ;;  %v956_v18 = vld [vmem:[%s13449_s6 + $0x704] sm:$0xf]  ;;  %v962_v20 = vld [vmem:[%s13449_s6 + $0x718] sm:$0xf] }
  0xbe   :  { %957 = vst [vmem:[#allocation2 + $0x708] sm:$0xf] %v956_v18  ;;  %959 = vst [vmem:[#allocation2 + $0x70c] sm:$0xff] %v958_v19   ;;  %v964_v21 = vld [vmem:[%s13449_s6 + $0x714] sm:$0xf]  ;;  %v974_v25 = vld [vmem:[%s13449_s6 + $0x72c] sm:$0xff]  }
  0xbf   :  { %963 = vst [vmem:[#allocation2 + $0x714] sm:$0xf] %v962_v20  ;;  %v970_v23 = vld [vmem:[%s13449_s6 + $0x728] sm:$0xf]  ;;  %965 = vst [vmem:[#allocation2 + $0x718] sm:$0xf] %v964_v21 }
  0xc0   :  { %967 = vst [vmem:[#allocation2 + $0x71c] sm:$0xff] %v966_v22   ;;  %971 = vst [vmem:[#allocation2 + $0x724] sm:$0xf] %v970_v23  ;;  %v972_v24 = vld [vmem:[%s13449_s6 + $0x724] sm:$0xf]  ;;  %v982_v28 = vld [vmem:[%s13449_s6 + $0x73c] sm:$0xff]  }
  0xc1   :  { %v978_v26 = vld [vmem:[%s13449_s6 + $0x738] sm:$0xf]  ;;  %973 = vst [vmem:[#allocation2 + $0x728] sm:$0xf] %v972_v24  ;;  %975 = vst [vmem:[#allocation2 + $0x72c] sm:$0xff] %v974_v25   ;;  %v990_v31 = vld [vmem:[%s13449_s6 + $0x74c] sm:$0xff]  }
  0xc2   :  { %979 = vst [vmem:[#allocation2 + $0x734] sm:$0xf] %v978_v26  ;;  %v980_v27 = vld [vmem:[%s13449_s6 + $0x734] sm:$0xf]  ;;  %v986_v29 = vld [vmem:[%s13449_s6 + $0x748] sm:$0xf] }
  0xc3   :  { %981 = vst [vmem:[#allocation2 + $0x738] sm:$0xf] %v980_v27  ;;  %983 = vst [vmem:[#allocation2 + $0x73c] sm:$0xff] %v982_v28   ;;  %v988_v30 = vld [vmem:[%s13449_s6 + $0x744] sm:$0xf]  ;;  %v998_v34 = vld [vmem:[%s13449_s6 + $0x75c] sm:$0xff]  }
  0xc4   :  { %987 = vst [vmem:[#allocation2 + $0x744] sm:$0xf] %v986_v29  ;;  %v994_v32 = vld [vmem:[%s13449_s6 + $0x758] sm:$0xf]  ;;  %989 = vst [vmem:[#allocation2 + $0x748] sm:$0xf] %v988_v30 }
  0xc5   :  { %991 = vst [vmem:[#allocation2 + $0x74c] sm:$0xff] %v990_v31   ;;  %995 = vst [vmem:[#allocation2 + $0x754] sm:$0xf] %v994_v32  ;;  %v996_v33 = vld [vmem:[%s13449_s6 + $0x754] sm:$0xf]  ;;  %v1006_v37 = vld [vmem:[%s13449_s6 + $0x76c] sm:$0xff]  }
  0xc6   :  { %v1002_v35 = vld [vmem:[%s13449_s6 + $0x768] sm:$0xf]  ;;  %997 = vst [vmem:[#allocation2 + $0x758] sm:$0xf] %v996_v33  ;;  %999 = vst [vmem:[#allocation2 + $0x75c] sm:$0xff] %v998_v34  }
  0xc7   :  { %1003 = vst [vmem:[#allocation2 + $0x764] sm:$0xf] %v1002_v35  ;;  %v1004_v36 = vld [vmem:[%s13449_s6 + $0x764] sm:$0xf]  ;;  %v1010_v38 = vld [vmem:[%s13449_s6 + $0x778] sm:$0xf] }
  0xc8   :  { %1005 = vst [vmem:[#allocation2 + $0x768] sm:$0xf] %v1004_v36  ;;  %1007 = vst [vmem:[#allocation2 + $0x76c] sm:$0xff] %v1006_v37   ;;  %v1012_v39 = vld [vmem:[%s13449_s6 + $0x774] sm:$0xf] }
  0xc9   :  { %1011 = vst [vmem:[#allocation2 + $0x774] sm:$0xf] %v1010_v38  ;;  %v1014_v40 = vld [vmem:[%s13449_s6 + $0x77c] sm:$0xf]  ;;  %1013 = vst [vmem:[#allocation2 + $0x778] sm:$0xf] %v1012_v39 }
  0xca   :  { %1015 = vst [vmem:[#allocation2 + $0x77c] sm:$0xf] %v1014_v40 }
  0xcb   :  { %2006 = vsyncadd [#allocation4], 30720  ;;  %v9291_v41 = vld [vmem:[%s13451_s8] sm:$0xff]  ;;  %v9296_v42 = vld [vmem:[%s13451_s8 + $0x8] sm:$0xff] }
  0xcc   :  { %13463 = vst [vmem:[#allocation12_spill] sm:$0xff] %v9296_v42  ;;  %v9301_v43 = vld [vmem:[%s13451_s8 + $0x10] sm:$0xff]  ;;  %v9306_v44 = vld [vmem:[%s13451_s8 + $0x18] sm:$0xff]  ;;  %v9311_v45 = vld [vmem:[%s13451_s8 + $0x20] sm:$0xff] }
  0xcd   :  { %13464 = vst [vmem:[#allocation13_spill] sm:$0xff] %v9301_v43  ;;  %13465 = vst [vmem:[#allocation14_spill] sm:$0xff] %v9306_v44  ;;  %v9316_v46 = vld [vmem:[%s13451_s8 + $0x28] sm:$0xff]  ;;  %v9321_v47 = vld [vmem:[%s13451_s8 + $0x30] sm:$0xff] }
  0xce   :  { %13466 = vst [vmem:[#allocation15_spill] sm:$0xff] %v9311_v45  ;;  %13467 = vst [vmem:[#allocation16_spill] sm:$0xff] %v9316_v46  ;;  %v9326_v48 = vld [vmem:[%s13451_s8 + $0x38] sm:$0xff]  ;;  %v9331_v49 = vld [vmem:[%s13451_s8 + $0x40] sm:$0xff] }
  0xcf   :  { %13468 = vst [vmem:[#allocation17_spill] sm:$0xff] %v9321_v47  ;;  %13469 = vst [vmem:[#allocation18_spill] sm:$0xff] %v9326_v48  ;;  %v9336_v50 = vld [vmem:[%s13451_s8 + $0x48] sm:$0xff]  ;;  %v9341_v51 = vld [vmem:[%s13451_s8 + $0x50] sm:$0xff] }
  0xd0   :  { %13470 = vst [vmem:[#allocation19_spill] sm:$0xff] %v9336_v50  ;;  %13471 = vst [vmem:[#allocation20_spill] sm:$0xff] %v9341_v51  ;;  %v9346_v52 = vld [vmem:[%s13451_s8 + $0x58] sm:$0xff]  ;;  %v9351_v53 = vld [vmem:[%s13451_s8 + $0x60] sm:$0xff] }
  0xd1   :  { %13472 = vst [vmem:[#allocation21_spill] sm:$0xff] %v9346_v52  ;;  %13473 = vst [vmem:[#allocation22_spill] sm:$0xff] %v9351_v53  ;;  %v9356_v54 = vld [vmem:[%s13451_s8 + $0x68] sm:$0xff]  ;;  %v9361_v55 = vld [vmem:[%s13451_s8 + $0x70] sm:$0xff] }
  0xd2   :  { %13474 = vst [vmem:[#allocation23_spill] sm:$0xff] %v9356_v54  ;;  %13475 = vst [vmem:[#allocation24_spill] sm:$0xff] %v9361_v55  ;;  %v9366_v56 = vld [vmem:[%s13451_s8 + $0x78] sm:$0xff]  ;;  %v9371_v57 = vld [vmem:[%s13451_s8 + $0x80] sm:$0xff] }
  0xd3   :  { %13476 = vst [vmem:[#allocation25_spill] sm:$0xff] %v9366_v56  ;;  %v9376_v58 = vld [vmem:[%s13451_s8 + $0x88] sm:$0xff]  ;;  %v9381_v59 = vld [vmem:[%s13451_s8 + $0x90] sm:$0xff]  ;;  %v9386_v60 = vld [vmem:[%s13451_s8 + $0x98] sm:$0xff] }
  0xd4   :  { %13477 = vst [vmem:[#allocation26_spill] sm:$0xff] %v9376_v58  ;;  %13478 = vst [vmem:[#allocation27_spill] sm:$0xff] %v9381_v59  ;;  %v9391_v61 = vld [vmem:[%s13451_s8 + $0xa0] sm:$0xff]  ;;  %v9396_v62 = vld [vmem:[%s13451_s8 + $0xa8] sm:$0xff] }
  0xd5   :  { %13479 = vst [vmem:[#allocation28_spill] sm:$0xff] %v9386_v60  ;;  %13480 = vst [vmem:[#allocation29_spill] sm:$0xff] %v9391_v61  ;;  %v9401_v63 = vld [vmem:[%s13451_s8 + $0xb0] sm:$0xff]  ;;  %v9406_v0 = vld [vmem:[%s13451_s8 + $0xb8] sm:$0xff] }
  0xd6   :  { %13481 = vst [vmem:[#allocation30_spill] sm:$0xff] %v9396_v62  ;;  %13482 = vst [vmem:[#allocation31_spill] sm:$0xff] %v9401_v63  ;;  %v9411_v1 = vld [vmem:[%s13451_s8 + $0xc0] sm:$0xff]  ;;  %v9416_v2 = vld [vmem:[%s13451_s8 + $0xc8] sm:$0xff] }
  0xd7   :  { %13483 = vst [vmem:[#allocation32_spill] sm:$0xff] %v9406_v0  ;;  %13484 = vst [vmem:[#allocation33_spill] sm:$0xff] %v9416_v2  ;;  %v9421_v3 = vld [vmem:[%s13451_s8 + $0xd0] sm:$0xff]  ;;  %v9426_v4 = vld [vmem:[%s13451_s8 + $0xd8] sm:$0xff] }
  0xd8   :  { %13485 = vst [vmem:[#allocation34_spill] sm:$0xff] %v9421_v3  ;;  %13486 = vst [vmem:[#allocation35_spill] sm:$0xff] %v9426_v4  ;;  %v9431_v5 = vld [vmem:[%s13451_s8 + $0xe0] sm:$0xff]  ;;  %v9436_v6 = vld [vmem:[%s13451_s8 + $0xe8] sm:$0xff] }
  0xd9   :  { %13487 = vst [vmem:[#allocation36_spill] sm:$0xff] %v9431_v5  ;;  %13488 = vst [vmem:[#allocation37_spill] sm:$0xff] %v9436_v6  ;;  %v9441_v7 = vld [vmem:[%s13451_s8 + $0xf0] sm:$0xff]  ;;  %v9446_v8 = vld [vmem:[%s13451_s8 + $0xf8] sm:$0xff] }
  0xda   :  { %13489 = vst [vmem:[#allocation38_spill] sm:$0xff] %v9441_v7  ;;  %13490 = vst [vmem:[#allocation39_spill] sm:$0xff] %v9446_v8  ;;  %v9451_v9 = vld [vmem:[%s13451_s8 + $0x100] sm:$0xff]  ;;  %v9456_v10 = vld [vmem:[%s13451_s8 + $0x108] sm:$0xff] }
  0xdb   :  { %13491 = vst [vmem:[#allocation40_spill] sm:$0xff] %v9451_v9  ;;  %13492 = vst [vmem:[#allocation41_spill] sm:$0xff] %v9456_v10  ;;  %v9461_v11 = vld [vmem:[%s13451_s8 + $0x110] sm:$0xff]  ;;  %v9466_v12 = vld [vmem:[%s13451_s8 + $0x118] sm:$0xff] }
  0xdc   :  { %13493 = vst [vmem:[#allocation42_spill] sm:$0xff] %v9461_v11  ;;  %13494 = vst [vmem:[#allocation43_spill] sm:$0xff] %v9466_v12  ;;  %v9471_v13 = vld [vmem:[%s13451_s8 + $0x120] sm:$0xff]  ;;  %v9476_v14 = vld [vmem:[%s13451_s8 + $0x128] sm:$0xff] }
  0xdd   :  { %13495 = vst [vmem:[#allocation44_spill] sm:$0xff] %v9471_v13  ;;  %13496 = vst [vmem:[#allocation45_spill] sm:$0xff] %v9476_v14  ;;  %v9481_v15 = vld [vmem:[%s13451_s8 + $0x130] sm:$0xff]  ;;  %v9486_v16 = vld [vmem:[%s13451_s8 + $0x138] sm:$0xff] }
  0xde   :  { %13497 = vst [vmem:[#allocation46_spill] sm:$0xff] %v9481_v15  ;;  %13498 = vst [vmem:[#allocation47_spill] sm:$0xff] %v9486_v16  ;;  %v9491_v17 = vld [vmem:[%s13451_s8 + $0x140] sm:$0xff]  ;;  %v9496_v18 = vld [vmem:[%s13451_s8 + $0x148] sm:$0xff] }
  0xdf   :  { %13499 = vst [vmem:[#allocation48_spill] sm:$0xff] %v9491_v17  ;;  %13500 = vst [vmem:[#allocation49_spill] sm:$0xff] %v9496_v18  ;;  %v9501_v19 = vld [vmem:[%s13451_s8 + $0x150] sm:$0xff]  ;;  %v9506_v20 = vld [vmem:[%s13451_s8 + $0x158] sm:$0xff] }
  0xe0   :  { %13501 = vst [vmem:[#allocation50_spill] sm:$0xff] %v9501_v19  ;;  %13502 = vst [vmem:[#allocation51_spill] sm:$0xff] %v9506_v20  ;;  %v9511_v21 = vld [vmem:[%s13451_s8 + $0x160] sm:$0xff]  ;;  %v9516_v22 = vld [vmem:[%s13451_s8 + $0x168] sm:$0xff] }
  0xe1   :  { %13503 = vst [vmem:[#allocation52_spill] sm:$0xff] %v9511_v21  ;;  %13504 = vst [vmem:[#allocation53_spill] sm:$0xff] %v9516_v22  ;;  %v9521_v23 = vld [vmem:[%s13451_s8 + $0x170] sm:$0xff]  ;;  %v9526_v24 = vld [vmem:[%s13451_s8 + $0x178] sm:$0xff] }
  0xe2   :  { %13505 = vst [vmem:[#allocation54_spill] sm:$0xff] %v9521_v23  ;;  %13506 = vst [vmem:[#allocation55_spill] sm:$0xff] %v9526_v24  ;;  %v9531_v25 = vld [vmem:[%s13451_s8 + $0x180] sm:$0xff]  ;;  %v9536_v26 = vld [vmem:[%s13451_s8 + $0x188] sm:$0xff] }
  0xe3   :  { %13507 = vst [vmem:[#allocation56_spill] sm:$0xff] %v9531_v25  ;;  %13508 = vst [vmem:[#allocation57_spill] sm:$0xff] %v9536_v26  ;;  %v9541_v27 = vld [vmem:[%s13451_s8 + $0x190] sm:$0xff]  ;;  %v9546_v28 = vld [vmem:[%s13451_s8 + $0x198] sm:$0xff] }
  0xe4   :  { %13509 = vst [vmem:[#allocation58_spill] sm:$0xff] %v9541_v27  ;;  %13510 = vst [vmem:[#allocation59_spill] sm:$0xff] %v9546_v28  ;;  %v9551_v29 = vld [vmem:[%s13451_s8 + $0x1a0] sm:$0xff]  ;;  %v9556_v30 = vld [vmem:[%s13451_s8 + $0x1a8] sm:$0xff] }
  0xe5   :  { %13511 = vst [vmem:[#allocation60_spill] sm:$0xff] %v9551_v29  ;;  %13512 = vst [vmem:[#allocation61_spill] sm:$0xff] %v9556_v30  ;;  %v9561_v31 = vld [vmem:[%s13451_s8 + $0x1b0] sm:$0xff]  ;;  %v9566_v32 = vld [vmem:[%s13451_s8 + $0x1b8] sm:$0xff] }
  0xe6   :  { %13513 = vst [vmem:[#allocation62_spill] sm:$0xff] %v9561_v31  ;;  %13514 = vst [vmem:[#allocation63_spill] sm:$0xff] %v9566_v32  ;;  %v9571_v33 = vld [vmem:[%s13451_s8 + $0x1c0] sm:$0xff]  ;;  %v9576_v34 = vld [vmem:[%s13451_s8 + $0x1c8] sm:$0xff] }
  0xe7   :  { %13515 = vst [vmem:[#allocation64_spill] sm:$0xff] %v9571_v33  ;;  %13516 = vst [vmem:[#allocation65_spill] sm:$0xff] %v9576_v34  ;;  %v9581_v35 = vld [vmem:[%s13451_s8 + $0x1d0] sm:$0xff]  ;;  %v9586_v36 = vld [vmem:[%s13451_s8 + $0x1d8] sm:$0xff] }
  0xe8   :  { %13517 = vst [vmem:[#allocation66_spill] sm:$0xff] %v9581_v35  ;;  %13518 = vst [vmem:[#allocation67_spill] sm:$0xff] %v9586_v36  ;;  %v9591_v37 = vld [vmem:[%s13451_s8 + $0x1e0] sm:$0xff]  ;;  %v9596_v38 = vld [vmem:[%s13451_s8 + $0x1e8] sm:$0xff] }
  0xe9   :  { %13519 = vst [vmem:[#allocation68_spill] sm:$0xff] %v9591_v37  ;;  %13520 = vst [vmem:[#allocation69_spill] sm:$0xff] %v9596_v38  ;;  %v9601_v39 = vld [vmem:[%s13451_s8 + $0x1f0] sm:$0xff]  ;;  %v9606_v40 = vld [vmem:[%s13451_s8 + $0x1f8] sm:$0xff] }
  0xea   :  { %13521 = vst [vmem:[#allocation70_spill] sm:$0xff] %v9601_v39  ;;  %13522 = vst [vmem:[#allocation71_spill] sm:$0xff] %v9606_v40 }
  0xeb   :  { %2175 = vsyncadd [#allocation4 + $0x1], 8192  ;;  %v2177_v32 = vld [vmem:[%s13443_s0 + $0x8] sm:$0xff]  ;;  %v2186_v16 = vld [vmem:[%s13443_s0 + $0x50] sm:$0xff]  ;;  %v13456_v39 = vmov 0   ;;  %vm2698_vm0 = vcmask 1043456  }
  0xec   :  { %v2492_v24 = vpack.c.bf16 %v2186_v16, %v2177_v32  ;;  %v2176_v31 = vld [vmem:[%s13443_s0] sm:$0xff]  ;;  %v2185_v15 = vld [vmem:[%s13443_s0 + $0x48] sm:$0xff]  ;;  %v2195_v40 = vld [vmem:[%s13443_s0 + $0x98] sm:$0xff]  ;;  %2811 = vmatprep.mubr.bf16.mxu1 %v13456_v39  ;;  %vm2691_vm1 = vcmask 195584   ;;  %vm3826_vm2 = vcmask 785408   ;;  %vm4327_vm3 = vcmask 1045504  }
  0xed   :  { %v2491_v23 = vpack.c.bf16 %v2185_v15, %v2176_v31  ;;  %v2204_v16 = vld [vmem:[%s13443_s0 + $0xe0] sm:$0xff]  ;;  %v2194_v32 = vld [vmem:[%s13443_s0 + $0x90] sm:$0xff]  ;;  %v2203_v30 = vld [vmem:[%s13443_s0 + $0xd8] sm:$0xff]  ;;  %vm4126_vm4 = vcmask 1040384   ;;  %vm4518_vm5 = vsmask.f32 7424 }
  0xee   :  { %2726 = vmatprep.subr.bf16.mxu0 %v2492_v24  ;;  %v2501_v14 = vpack.c.bf16 %v2204_v16, %v2195_v40  ;;  %v2213_v38 = vld [vmem:[%s13443_s0 + $0x128] sm:$0xff]  ;;  %v2222_v15 = vld [vmem:[%s13443_s0 + $0x170] sm:$0xff]  ;;  %v2500_v39 = vpack.c.bf16 %v2203_v30, %v2194_v32  ;;  %v2212_v24 = vld [vmem:[%s13443_s0 + $0x120] sm:$0xff]  ;;  %vm4141_vm6 = vsmask.f32 256  ;;  %s8130_s27 = smov 84  }
  0xef   :  { %v2465_v31 = vld [vmem:[%s13443_s0 + $0x908] sm:$0xff]  ;;  %2727 = vmatpush1.bf16.msra.mxu0 %v2491_v23  ;;  %v2474_v22 = vld [vmem:[%s13443_s0 + $0x950] sm:$0xff]  ;;  %v2510_v40 = vpack.c.bf16 %v2222_v15, %v2213_v38  ;;  %v2464_v23 = vld [vmem:[%s13443_s0 + $0x900] sm:$0xff]  ;;  %s8132_s28 = smov 112   ;;  %vm4156_vm7 = vcmask 228352   ;;  %vm4159_vm8 = vcmask 457728  }
  0xf0   :  { %2728 = vmatprep.subr.bf16.mxu0 %v2501_v14  ;;  %v2636_v16 = vpack.c.bf16 %v2474_v22, %v2465_v31  ;;  %v2221_v29 = vld [vmem:[%s13443_s0 + $0x168] sm:$0xff]  ;;  %v2231_v13 = vld [vmem:[%s13443_s0 + $0x1b8] sm:$0xff]  ;;  %v2240_v14 = vld [vmem:[%s13443_s0 + $0x200] sm:$0xff]  ;;  %vm4162_vm9 = vcmask 687104   ;;  %vm4324_vm10 = vcmask 97280   ;;  %vm4165_vm11 = vcmask 916480  }
  0xf1   :  { %v2473_v30 = vld [vmem:[%s13443_s0 + $0x948] sm:$0xff]  ;;  %v2483_v22 = vld [vmem:[%s13443_s0 + $0x998] sm:$0xff]  ;;  %v2482_v15 = vld [vmem:[%s13443_s0 + $0x990] sm:$0xff]  ;;  %v2509_v31 = vpack.c.bf16 %v2221_v29, %v2212_v24  ;;  %s8133_s29 = smov 127   ;;  %s8134_s6 = smov 11   ;;  %vm4179_vm12 = vcmask 89088  }
  0xf2   :  { %v2635_v32 = vpack.c.bf16 %v2473_v30, %v2464_v23  ;;  %2779 = vmatprep.subr.bf16.mxu1 %v2636_v16  ;;  %v2645_v38 = vpack.c.bf16 %v2483_v22, %v2483_v22  ;;  %v2230_v23 = vld [vmem:[%s13443_s0 + $0x1b0] sm:$0xff]  ;;  %v2644_v30 = vpack.c.bf16 %v2482_v15, %v2482_v15  ;;  %v2179_v37 = vld [vmem:[%s13443_s0 + $0x18] sm:$0xff]  ;;  %v2188_v16 = vld [vmem:[%s13443_s0 + $0x60] sm:$0xff]  ;;  %v2519_v22 = vpack.c.bf16 %v2240_v14, %v2231_v13 }
  0xf3   :  { %2729 = vmatpush1.bf16.msra.mxu0 %v2500_v39  ;;  %v2239_v29 = vld [vmem:[%s13443_s0 + $0x1f8] sm:$0xff]  ;;  %v2249_v39 = vld [vmem:[%s13443_s0 + $0x248] sm:$0xff]  ;;  %v2494_v24 = vpack.c.bf16 %v2188_v16, %v2179_v37  ;;  %v2258_v15 = vld [vmem:[%s13443_s0 + $0x290] sm:$0xff]  ;;  %vm4174_vm13 = vcmask 1039360   ;;  %vm8136_vm14 = vmmov 0  }
  0xf4   :  { %2780 = vmatpush1.bf16.msra.mxu1 %v2635_v32  ;;  %2730 = vmatprep.subr.bf16.mxu0 %v2510_v40  ;;  %v2700_v32 = vsel %vm2698_vm0, %v2644_v30, 0  ;;  %v2178_v13 = vld [vmem:[%s13443_s0 + $0x10] sm:$0xff]  ;;  %v2187_v14 = vld [vmem:[%s13443_s0 + $0x58] sm:$0xff]  ;;  %v2518_v37 = vpack.c.bf16 %v2239_v29, %v2230_v23  ;;  %v2197_v16 = vld [vmem:[%s13443_s0 + $0xa8] sm:$0xff]  ;;  %v2528_v28 = vpack.c.bf16 %v2258_v15, %v2249_v39 }
  0xf5   :  { %7095 = vmatprep.subr.msk.bf16.mxu1 %vm2698_vm0, %v2645_v38  ;;  %v9695_v40 = vld [vmem:[%s13444_s1 + $0x8] ss:$12 sps:$4 sm:$0xff]   ;;  %v2248_v38 = vld [vmem:[%s13443_s0 + $0x240] sm:$0xff]  ;;  %v2493_v30 = vpack.c.bf16 %v2187_v14, %v2178_v13  ;;  %v2267_v13 = vld [vmem:[%s13443_s0 + $0x2d8] sm:$0xff] }
  0xf6   :  { %v2206_v21 = vld [vmem:[%s13443_s0 + $0xf0] sm:$0xff]  ;;  %v2196_v29 = vld [vmem:[%s13443_s0 + $0xa0] sm:$0xff]  ;;  %v2275_v14 = vld [vmem:[%s13443_s0 + $0x318] sm:$0xff] }
  0xf7   :  { %2731 = vmatpush1.bf16.msra.mxu0 %v2509_v31  ;;  %v2257_v31 = vld [vmem:[%s13443_s0 + $0x288] sm:$0xff]  ;;  %v2503_v23 = vpack.c.bf16 %v2206_v21, %v2197_v16  ;;  %v2215_v21 = vld [vmem:[%s13443_s0 + $0x138] sm:$0xff]  ;;  %v2224_v39 = vld [vmem:[%s13443_s0 + $0x180] sm:$0xff] }
  0xf8   :  { %2782 = vmatpush1.bf16.msra.mxu1 %v2700_v32  ;;  %2732 = vmatprep.subr.bf16.mxu0 %v2519_v22  ;;  %v2205_v32 = vld [vmem:[%s13443_s0 + $0xe8] sm:$0xff]  ;;  %v2276_v22 = vld [vmem:[%s13443_s0 + $0x320] sm:$0xff]  ;;  %v2266_v15 = vld [vmem:[%s13443_s0 + $0x2d0] sm:$0xff]  ;;  %v2512_v20 = vpack.c.bf16 %v2224_v39, %v2215_v21 }
  0xf9   :  { %2832 = vmatprep.subr.bf16.mxu1 %v2494_v24  ;;  %v2527_v24 = vpack.c.bf16 %v2257_v31, %v2248_v38  ;;  %v2502_v16 = vpack.c.bf16 %v2205_v32, %v2196_v29  ;;  %v2537_v12 = vpack.c.bf16 %v2276_v22, %v2267_v13  ;;  %v2285_v36 = vld [vmem:[%s13443_s0 + $0x368] sm:$0xff]  ;;  %v2223_v38 = vld [vmem:[%s13443_s0 + $0x178] sm:$0xff]  ;;  %v2242_v31 = vld [vmem:[%s13443_s0 + $0x210] sm:$0xff]  ;;  %v2536_v29 = vpack.c.bf16 %v2275_v14, %v2266_v15 }
  0xfa   :  { %v2284_v32 = vld [vmem:[%s13443_s0 + $0x360] sm:$0xff]  ;;  %v2293_v13 = vld [vmem:[%s13443_s0 + $0x3a8] sm:$0xff]  ;;  %v2303_v39 = vld [vmem:[%s13443_s0 + $0x3f8] sm:$0xff] }
  0xfb   :  { %7096 = vmatmul.mubr.msk.bf16.vlgmr.msra.gmra.mrb[0].mxu1 %vm2691_vm1, %v9695_v40  ;;  %2733 = vmatpush1.bf16.msra.mxu0 %v2518_v37  ;;  %v2214_v37 = vld [vmem:[%s13443_s0 + $0x130] sm:$0xff]  ;;  %v2241_v15 = vld [vmem:[%s13443_s0 + $0x208] sm:$0xff]  ;;  %v2312_v14 = vld [vmem:[%s13443_s0 + $0x440] sm:$0xff] }
  0xfc   :  { %2833 = vmatpush1.bf16.msra.mxu1 %v2493_v30  ;;  %2734 = vmatprep.subr.bf16.mxu0 %v2528_v28  ;;  %v2294_v30 = vld [vmem:[%s13443_s0 + $0x3b0] sm:$0xff]  ;;  %v2233_v28 = vld [vmem:[%s13443_s0 + $0x1c8] sm:$0xff]  ;;  %v2511_v22 = vpack.c.bf16 %v2223_v38, %v2214_v37  ;;  %v2311_v37 = vld [vmem:[%s13443_s0 + $0x438] sm:$0xff] }
  0xfd   :  { %2834 = vmatprep.subr.bf16.mxu1 %v2503_v23  ;;  %v13523_v23 = vmov 0   ;;  %v2546_v21 = vpack.c.bf16 %v2294_v30, %v2285_v36  ;;  %v2521_v27 = vpack.c.bf16 %v2242_v31, %v2233_v28  ;;  %v2545_v36 = vpack.c.bf16 %v2293_v13, %v2284_v32  ;;  %v2321_v28 = vld [vmem:[%s13443_s0 + $0x488] sm:$0xff]  ;;  %v2259_v32 = vld [vmem:[%s13443_s0 + $0x298] sm:$0xff]  ;;  %v2330_v13 = vld [vmem:[%s13443_s0 + $0x4d0] sm:$0xff] }
  0xfe   :  { %2821 = vmatprep.mubr.bf16.mxu1 %v13523_v23  ;;  %v2555_v30 = vpack.c.bf16 %v2312_v14, %v2303_v39  ;;  %v2320_v39 = vld [vmem:[%s13443_s0 + $0x480] sm:$0xff]  ;;  %v2564_v14 = vpack.c.bf16 %v2330_v13, %v2321_v28  ;;  %v2331_v35 = vld [vmem:[%s13443_s0 + $0x4d8] sm:$0xff]  ;;  %v2486_v25 = vld [vmem:[%s13443_s0 + $0x9b0] sm:$0xff] }
  0xff   :  { %2735 = vmatpush1.bf16.msra.mxu0 %v2527_v24  ;;  %v2232_v24 = vld [vmem:[%s13443_s0 + $0x1c0] sm:$0xff] }
 0x100   :  { %2835 = vmatpush1.bf16.msra.mxu1 %v2502_v16  ;;  %2736 = vmatprep.subr.bf16.mxu0 %v2537_v12  ;;  %v2251_v12 = vld [vmem:[%s13443_s0 + $0x258] sm:$0xff]  ;;  %v2302_v16 = vld [vmem:[%s13443_s0 + $0x3f0] sm:$0xff]  ;;  %v2520_v38 = vpack.c.bf16 %v2241_v15, %v2232_v24  ;;  %v2329_v24 = vld [vmem:[%s13443_s0 + $0x4c8] sm:$0xff] }
 0x101   :  { %2836 = vmatprep.subr.bf16.mxu1 %v2512_v20  ;;  %v2260_v20 = vld [vmem:[%s13443_s0 + $0x2a0] sm:$0xff]  ;;  %v2563_v28 = vpack.c.bf16 %v2329_v24, %v2320_v39  ;;  %v2295_v39 = vld [vmem:[%s13443_s0 + $0x3b8] sm:$0xff]  ;;  %v2366_v24 = vld [vmem:[%s13443_s0 + $0x5f0] sm:$0xff] }
 0x102   :  { %v2530_v31 = vpack.c.bf16 %v2260_v20, %v2251_v12  ;;  %v2339_v12 = vld [vmem:[%s13443_s0 + $0x518] sm:$0xff] }
 0x103   :  { %2737 = vmatpush1.bf16.msra.mxu0 %v2536_v29  ;;  %v2250_v29 = vld [vmem:[%s13443_s0 + $0x250] sm:$0xff] }
 0x104   :  { %2837 = vmatpush1.bf16.msra.mxu1 %v2511_v22  ;;  %2738 = vmatprep.subr.bf16.mxu0 %v2546_v21  ;;  %v2278_v22 = vld [vmem:[%s13443_s0 + $0x330] sm:$0xff]  ;;  %v2554_v21 = vpack.c.bf16 %v2311_v37, %v2302_v16  ;;  %v2529_v15 = vpack.c.bf16 %v2259_v32, %v2250_v29  ;;  %v2277_v16 = vld [vmem:[%s13443_s0 + $0x328] sm:$0xff]  ;;  %v2348_v37 = vld [vmem:[%s13443_s0 + $0x560] sm:$0xff] }
 0x105   :  { %2838 = vmatprep.subr.bf16.mxu1 %v2521_v27  ;;  %v2269_v27 = vld [vmem:[%s13443_s0 + $0x2e8] sm:$0xff]  ;;  %v2347_v29 = vld [vmem:[%s13443_s0 + $0x558] sm:$0xff]  ;;  %v2573_v13 = vpack.c.bf16 %v2348_v37, %v2339_v12 }
 0x106   :  { %v2539_v20 = vpack.c.bf16 %v2278_v22, %v2269_v27  ;;  %v2357_v27 = vld [vmem:[%s13443_s0 + $0x5a8] sm:$0xff] }
 0x107   :  { %2739 = vmatpush1.bf16.msra.mxu0 %v2545_v36  ;;  %v2268_v36 = vld [vmem:[%s13443_s0 + $0x2e0] sm:$0xff]  ;;  %v2582_v37 = vpack.c.bf16 %v2366_v24, %v2357_v27  ;;  %v2374_v27 = vld [vmem:[%s13443_s0 + $0x630] sm:$0xff]  ;;  %v2393_v24 = vld [vmem:[%s13443_s0 + $0x6c8] sm:$0xff] }
 0x108   :  { %2839 = vmatpush1.bf16.msra.mxu1 %v2520_v38  ;;  %2740 = vmatprep.subr.bf16.mxu0 %v2555_v30  ;;  %v2287_v38 = vld [vmem:[%s13443_s0 + $0x378] sm:$0xff]  ;;  %v2296_v30 = vld [vmem:[%s13443_s0 + $0x3c0] sm:$0xff]  ;;  %v2538_v32 = vpack.c.bf16 %v2277_v16, %v2268_v36  ;;  %v2365_v36 = vld [vmem:[%s13443_s0 + $0x5e8] sm:$0xff] }
 0x109   :  { %2840 = vmatprep.subr.bf16.mxu1 %v2530_v31  ;;  %v2338_v31 = vld [vmem:[%s13443_s0 + $0x510] sm:$0xff]  ;;  %v2548_v22 = vpack.c.bf16 %v2296_v30, %v2287_v38  ;;  %v2375_v38 = vld [vmem:[%s13443_s0 + $0x638] sm:$0xff] }
 0x10a   :  { %v2572_v12 = vpack.c.bf16 %v2347_v29, %v2338_v31  ;;  %v2313_v31 = vld [vmem:[%s13443_s0 + $0x448] sm:$0xff]  ;;  %v2384_v29 = vld [vmem:[%s13443_s0 + $0x680] sm:$0xff] }
 0x10b   :  { %2741 = vmatpush1.bf16.msra.mxu0 %v2554_v21  ;;  %v2286_v21 = vld [vmem:[%s13443_s0 + $0x370] sm:$0xff] }
 0x10c   :  { %2841 = vmatpush1.bf16.msra.mxu1 %v2529_v15  ;;  %2742 = vmatprep.subr.bf16.mxu0 %v2564_v14  ;;  %v2305_v15 = vld [vmem:[%s13443_s0 + $0x408] sm:$0xff]  ;;  %v2314_v14 = vld [vmem:[%s13443_s0 + $0x450] sm:$0xff]  ;;  %v2547_v16 = vpack.c.bf16 %v2295_v39, %v2286_v21 }
 0x10d   :  { %2842 = vmatprep.subr.bf16.mxu1 %v2539_v20  ;;  %v2356_v20 = vld [vmem:[%s13443_s0 + $0x5a0] sm:$0xff]  ;;  %v2557_v30 = vpack.c.bf16 %v2314_v14, %v2305_v15  ;;  %v2322_v15 = vld [vmem:[%s13443_s0 + $0x490] sm:$0xff]  ;;  %v2591_v14 = vpack.c.bf16 %v2384_v29, %v2375_v38 }
 0x10e   :  { %v2581_v21 = vpack.c.bf16 %v2365_v36, %v2356_v20  ;;  %v2402_v20 = vld [vmem:[%s13443_s0 + $0x710] sm:$0xff]  ;;  %v2341_v36 = vld [vmem:[%s13443_s0 + $0x528] sm:$0xff]  ;;  %v2420_v29 = vld [vmem:[%s13443_s0 + $0x7a0] sm:$0xff] }
 0x10f   :  { %2743 = vmatpush1.bf16.msra.mxu0 %v2563_v28  ;;  %v2304_v28 = vld [vmem:[%s13443_s0 + $0x400] sm:$0xff] }
 0x110   :  { %2843 = vmatpush1.bf16.msra.mxu1 %v2538_v32  ;;  %2744 = vmatprep.subr.bf16.mxu0 %v2573_v13  ;;  %v2323_v32 = vld [vmem:[%s13443_s0 + $0x498] sm:$0xff]  ;;  %v2332_v13 = vld [vmem:[%s13443_s0 + $0x4e0] sm:$0xff]  ;;  %v2556_v39 = vpack.c.bf16 %v2313_v31, %v2304_v28  ;;  %v2565_v28 = vpack.c.bf16 %v2331_v35, %v2322_v15  ;;  %v2349_v35 = vld [vmem:[%s13443_s0 + $0x568] sm:$0xff] }
 0x111   :  { %2844 = vmatprep.subr.bf16.mxu1 %v2548_v22  ;;  %v2383_v22 = vld [vmem:[%s13443_s0 + $0x678] sm:$0xff]  ;;  %v2566_v11 = vpack.c.bf16 %v2332_v13, %v2323_v32  ;;  %v2600_v32 = vpack.c.bf16 %v2402_v20, %v2393_v24 }
 0x112   :  { %v2590_v38 = vpack.c.bf16 %v2383_v22, %v2374_v27  ;;  %v2411_v31 = vld [vmem:[%s13443_s0 + $0x758] sm:$0xff]  ;;  %v2340_v27 = vld [vmem:[%s13443_s0 + $0x520] sm:$0xff] }
 0x113   :  { %2745 = vmatpush1.bf16.msra.mxu0 %v2572_v12  ;;  %v9895_v12 = vld [vmem:[%s13444_s1 + $0x4] ss:$12 sps:$4 sm:$0xff]   ;;  %v2359_v22 = vld [vmem:[%s13443_s0 + $0x5b8] sm:$0xff]  ;;  %v2574_v15 = vpack.c.bf16 %v2349_v35, %v2340_v27  ;;  %v2609_v20 = vpack.c.bf16 %v2420_v29, %v2411_v31 }
 0x114   :  { %2845 = vmatpush1.bf16.msra.mxu1 %v2547_v16  ;;  %2746 = vmatprep.subr.bf16.mxu0 %v2582_v37  ;;  %v2350_v16 = vld [vmem:[%s13443_s0 + $0x570] sm:$0xff]  ;;  %v2392_v37 = vld [vmem:[%s13443_s0 + $0x6c0] sm:$0xff]  ;;  %v2419_v24 = vld [vmem:[%s13443_s0 + $0x798] sm:$0xff] }
 0x115   :  { %2846 = vmatprep.subr.bf16.mxu1 %v2557_v30  ;;  %2758 = vmatprep.mubr.bf16.mxu0 %v9895_v12  ;;  %v2401_v30 = vld [vmem:[%s13443_s0 + $0x708] sm:$0xff]  ;;  %v2575_v13 = vpack.c.bf16 %v2350_v16, %v2341_v36  ;;  %v2386_v31 = vld [vmem:[%s13443_s0 + $0x690] sm:$0xff] }
 0x116   :  { %v2429_v36 = vld [vmem:[%s13443_s0 + $0x7e8] sm:$0xff] }
 0x117   :  { %2747 = vmatpush1.bf16.msra.mxu0 %v2581_v21  ;;  %v2368_v21 = vld [vmem:[%s13443_s0 + $0x600] sm:$0xff] }
 0x118   :  { %2847 = vmatpush1.bf16.msra.mxu1 %v2556_v39  ;;  %2748 = vmatprep.subr.bf16.mxu0 %v2591_v14  ;;  %v2599_v39 = vpack.c.bf16 %v2401_v30, %v2392_v37  ;;  %v9940_v14 = vld [vmem:[%s13444_s1 + $0x20] ss:$12 sps:$4 sm:$0x3f]   ;;  %v2584_v16 = vpack.c.bf16 %v2368_v21, %v2359_v22  ;;  %v2358_v37 = vld [vmem:[%s13443_s0 + $0x5b0] sm:$0xff]  ;;  %v2447_v22 = vld [vmem:[%s13443_s0 + $0x878] sm:$0xff] }
 0x119   :  { %2848 = vmatprep.subr.bf16.mxu1 %v2566_v11  ;;  %v2410_v11 = vld [vmem:[%s13443_s0 + $0x750] sm:$0xff]  ;;  %7097 = vmatmul.mubr.msk.bf16.gmra.mrb[4].mxu1 %vm2691_vm1, %v9940_v14 }
 0x11a   :  { %v2438_v30 = vld [vmem:[%s13443_s0 + $0x830] sm:$0xff]  ;;  %2864 = vmatprep.mubr.bf16.mxu1 %v9895_v12  ;;  %v2608_v29 = vpack.c.bf16 %v2419_v24, %v2410_v11  ;;  %v2376_v11 = vld [vmem:[%s13443_s0 + $0x640] sm:$0xff] }
 0x11b   :  { %2749 = vmatpush1.bf16.msra.mxu0 %v2590_v38  ;;  %v2367_v38 = vld [vmem:[%s13443_s0 + $0x5f8] sm:$0xff]  ;;  %v2618_v35 = vpack.c.bf16 %v2438_v30, %v2429_v36  ;;  %v2456_v24 = vld [vmem:[%s13443_s0 + $0x8c0] sm:$0xff] }
 0x11c   :  { %2849 = vmatpush1.bf16.msra.mxu1 %v2565_v28  ;;  %2750 = vmatprep.subr.bf16.mxu0 %v2600_v32  ;;  %v2377_v28 = vld [vmem:[%s13443_s0 + $0x648] sm:$0xff]  ;;  %v2428_v32 = vld [vmem:[%s13443_s0 + $0x7e0] sm:$0xff]  ;;  %v2583_v27 = vpack.c.bf16 %v2367_v38, %v2358_v37  ;;  %v2455_v37 = vld [vmem:[%s13443_s0 + $0x8b8] sm:$0xff]  ;;  %v2627_v30 = vpack.c.bf16 %v2456_v24, %v2447_v22 }
 0x11d   :  { %2850 = vmatprep.subr.bf16.mxu1 %v2575_v13  ;;  %v2437_v13 = vld [vmem:[%s13443_s0 + $0x828] sm:$0xff]  ;;  %v2593_v21 = vpack.c.bf16 %v2386_v31, %v2377_v28  ;;  %v2394_v31 = vld [vmem:[%s13443_s0 + $0x6d0] sm:$0xff] }
 0x11e   :  { %v2617_v36 = vpack.c.bf16 %v2437_v13, %v2428_v32  ;;  %v2413_v32 = vld [vmem:[%s13443_s0 + $0x768] sm:$0xff]  ;;  %v2422_v13 = vld [vmem:[%s13443_s0 + $0x7b0] sm:$0xff] }
 0x11f   :  { %2751 = vmatpush1.bf16.msra.mxu0 %v2599_v39  ;;  %v2385_v39 = vld [vmem:[%s13443_s0 + $0x688] sm:$0xff] }
 0x120   :  { %2851 = vmatpush1.bf16.msra.mxu1 %v2574_v15  ;;  %2752 = vmatprep.subr.bf16.mxu0 %v2609_v20  ;;  %v2395_v15 = vld [vmem:[%s13443_s0 + $0x6d8] sm:$0xff]  ;;  %v2404_v20 = vld [vmem:[%s13443_s0 + $0x720] sm:$0xff]  ;;  %v2592_v38 = vpack.c.bf16 %v2385_v39, %v2376_v11  ;;  %v2611_v39 = vpack.c.bf16 %v2422_v13, %v2413_v32 }
 0x121   :  { %2852 = vmatprep.subr.bf16.mxu1 %v2584_v16  ;;  %v2446_v16 = vld [vmem:[%s13443_s0 + $0x870] sm:$0xff]  ;;  %v2602_v28 = vpack.c.bf16 %v2404_v20, %v2395_v15  ;;  %v2412_v11 = vld [vmem:[%s13443_s0 + $0x760] sm:$0xff]  ;;  %v2421_v15 = vld [vmem:[%s13443_s0 + $0x7a8] sm:$0xff] }
 0x122   :  { %v2626_v22 = vpack.c.bf16 %v2455_v37, %v2446_v16  ;;  %v2466_v20 = vld [vmem:[%s13443_s0 + $0x910] sm:$0xff]  ;;  %v2431_v16 = vld [vmem:[%s13443_s0 + $0x7f8] sm:$0xff]  ;;  %v2440_v37 = vld [vmem:[%s13443_s0 + $0x840] sm:$0xff] }
 0x123   :  { %2753 = vmatpush1.bf16.msra.mxu0 %v2608_v29  ;;  %v2403_v29 = vld [vmem:[%s13443_s0 + $0x718] sm:$0xff]  ;;  %v2620_v13 = vpack.c.bf16 %v2440_v37, %v2431_v16  ;;  %v2448_v37 = vld [vmem:[%s13443_s0 + $0x880] sm:$0xff] }
 0x124   :  { %2853 = vmatpush1.bf16.msra.mxu1 %v2583_v27  ;;  %2754 = vmatprep.subr.bf16.mxu0 %v2618_v35  ;;  %v2467_v27 = vld [vmem:[%s13443_s0 + $0x918] sm:$0xff]  ;;  %v2476_v35 = vld [vmem:[%s13443_s0 + $0x960] sm:$0xff] }
 0x125   :  { %2854 = vmatprep.subr.bf16.mxu1 %v2593_v21  ;;  %v2601_v21 = vpack.c.bf16 %v2403_v29, %v2394_v31  ;;  %v2638_v24 = vpack.c.bf16 %v2476_v35, %v2467_v27  ;;  %v2610_v31 = vpack.c.bf16 %v2421_v15, %v2412_v11  ;;  %v10043_v32 = vld [vmem:[%s13444_s1 + $0x1c] ss:$12 sps:$4 sm:$0x3f]   ;;  %v2430_v27 = vld [vmem:[%s13443_s0 + $0x7f0] sm:$0xff] }
 0x126   :  { %v2439_v35 = vld [vmem:[%s13443_s0 + $0x838] sm:$0xff]  ;;  %v2190_v15 = vld [vmem:[%s13443_s0 + $0x70] sm:$0xff] }
 0x127   :  { %2755 = vmatpush1.bf16.msra.mxu0 %v2617_v36  ;;  %v2475_v36 = vld [vmem:[%s13443_s0 + $0x958] sm:$0xff] }
 0x128   :  { %2855 = vmatpush1.bf16.msra.mxu1 %v2592_v38  ;;  %2756 = vmatprep.subr.bf16.mxu0 %v2627_v30  ;;  %v2484_v38 = vld [vmem:[%s13443_s0 + $0x9a0] sm:$0xff]  ;;  %v2637_v29 = vpack.c.bf16 %v2475_v36, %v2466_v20  ;;  %v2619_v20 = vpack.c.bf16 %v2439_v35, %v2430_v27 }
 0x129   :  { %2856 = vmatprep.subr.bf16.mxu1 %v2602_v28  ;;  %v10035_v30 = vld [vmem:[%s13444_s1] ss:$12 sps:$4 sm:$0xff]  }
 0x12a   :  { %v2485_v28 = vld [vmem:[%s13443_s0 + $0x9a8] sm:$0xff] }
 0x12b   :  { %2757 = vmatpush1.bf16.msra.mxu0 %v2626_v22  ;;  %v2449_v22 = vld [vmem:[%s13443_s0 + $0x888] sm:$0xff]  ;;  %v2647_v11 = vpack.c.bf16 %v2485_v28, %v2485_v28 }
 0x12c   :  { %2857 = vmatpush1.bf16.msra.mxu1 %v2601_v21  ;;  %2885 = vmatprep.subr.bf16.mxu0 %v2638_v24  ;;  %v2646_v21 = vpack.c.bf16 %v2484_v38, %v2484_v38  ;;  %v2181_v24 = vld [vmem:[%s13443_s0 + $0x28] sm:$0xff] }
 0x12d   :  { %2858 = vmatprep.subr.bf16.mxu1 %v2611_v39  ;;  %v2458_v39 = vld [vmem:[%s13443_s0 + $0x8d0] sm:$0xff]  ;;  %v2457_v38 = vld [vmem:[%s13443_s0 + $0x8c8] sm:$0xff]  ;;  %v2496_v28 = vpack.c.bf16 %v2190_v15, %v2181_v24  ;;  %v2180_v24 = vld [vmem:[%s13443_s0 + $0x20] sm:$0xff] }
 0x12e   :  { %2759 = vmatmul.mubr.bf16.vlgmr.msra.gmra.mrb[0].mxu0 %v10035_v30  ;;  %v2629_v36 = vpack.c.bf16 %v2458_v39, %v2449_v22  ;;  %v2706_v16 = vsel %vm2698_vm0, %v2646_v21, 0  ;;  %v2628_v27 = vpack.c.bf16 %v2457_v38, %v2448_v37  ;;  %v2182_v22 = vld [vmem:[%s13443_s0 + $0x30] sm:$0xff]  ;;  %v2191_v21 = vld [vmem:[%s13443_s0 + $0x78] sm:$0xff]  ;;  %v2209_v37 = vld [vmem:[%s13443_s0 + $0x108] sm:$0xff] }
 0x12f   :  { %2886 = vmatpush1.bf16.msra.mxu0 %v2637_v29  ;;  %2768 = vmatprep.mubr.bf16.mxu0 %v10043_v32  ;;  %v2192_v29 = vld [vmem:[%s13443_s0 + $0x80] sm:$0xff]  ;;  %v2210_v39 = vld [vmem:[%s13443_s0 + $0x110] sm:$0xff]  ;;  %v2497_v15 = vpack.c.bf16 %v2191_v21, %v2182_v22  ;;  %v2199_v38 = vld [vmem:[%s13443_s0 + $0xb8] sm:$0xff] }
 0x130   :  { %2859 = vmatpush1.bf16.msra.mxu1 %v2610_v31  ;;  %7098 = vmatprep.subr.msk.bf16.mxu0 %vm2698_vm0, %v2647_v11  ;;  %v2183_v31 = vld [vmem:[%s13443_s0 + $0x38] sm:$0xff]  ;;  %v2201_v11 = vld [vmem:[%s13443_s0 + $0xc8] sm:$0xff] }
 0x131   :  { %2860 = vmatprep.subr.bf16.mxu1 %v2620_v13  ;;  %v10082_v13 = vld [vmem:[%s13444_s1 + $0x18] ss:$12 sps:$4 sm:$0x3f]   ;;  %v2498_v35 = vpack.c.bf16 %v2192_v29, %v2183_v31 }
 0x132   :  { %v2219_v31 = vld [vmem:[%s13443_s0 + $0x158] sm:$0xff]  ;;  %v2228_v29 = vld [vmem:[%s13443_s0 + $0x1a0] sm:$0xff] }
 0x133   :  { %2888 = vmatpush1.bf16.msra.mxu0 %v2706_v16  ;;  %v2200_v16 = vld [vmem:[%s13443_s0 + $0xc0] sm:$0xff]  ;;  %v2207_v22 = vld [vmem:[%s13443_s0 + $0xf8] sm:$0xff] }
 0x134   :  { %2861 = vmatpush1.bf16.msra.mxu1 %v2619_v20  ;;  %2938 = vmatprep.subr.bf16.mxu0 %v2496_v28  ;;  %v2189_v20 = vld [vmem:[%s13443_s0 + $0x68] sm:$0xff]  ;;  %v2208_v28 = vld [vmem:[%s13443_s0 + $0x100] sm:$0xff]  ;;  %v2506_v21 = vpack.c.bf16 %v2209_v37, %v2200_v16  ;;  %v2516_v16 = vpack.c.bf16 %v2228_v29, %v2219_v31  ;;  %v2246_v37 = vld [vmem:[%s13443_s0 + $0x230] sm:$0xff] }
 0x135   :  { %2862 = vmatprep.subr.bf16.mxu1 %v2629_v36  ;;  %v2507_v36 = vpack.c.bf16 %v2210_v39, %v2201_v11  ;;  %v2505_v11 = vpack.c.bf16 %v2208_v28, %v2199_v38  ;;  %v2217_v39 = vld [vmem:[%s13443_s0 + $0x148] sm:$0xff]  ;;  %v2216_v28 = vld [vmem:[%s13443_s0 + $0x140] sm:$0xff] }
 0x136   :  { %2769 = vmatmul.mubr.bf16.gmra.mrb[4].mxu0 %v10082_v13  ;;  %v2225_v31 = vld [vmem:[%s13443_s0 + $0x188] sm:$0xff] }
 0x137   :  { %2917 = vmatprep.mubr.bf16.mxu0 %v13523_v23 }
 0x138   :  { %2863 = vmatpush1.bf16.msra.mxu1 %v2628_v27  ;;  %v2495_v27 = vpack.c.bf16 %v2189_v20, %v2180_v24  ;;  %v2218_v24 = vld [vmem:[%s13443_s0 + $0x150] sm:$0xff] }
 0x139   :  { %3044 = vmatprep.subr.bf16.mxu1 %v2498_v35  ;;  %v2198_v35 = vld [vmem:[%s13443_s0 + $0xb0] sm:$0xff] }
 0x13a   :  { %v2226_v20 = vld [vmem:[%s13443_s0 + $0x190] sm:$0xff]  ;;  %v2504_v38 = vpack.c.bf16 %v2207_v22, %v2198_v35  ;;  %v2236_v35 = vld [vmem:[%s13443_s0 + $0x1e0] sm:$0xff]  ;;  %v2245_v22 = vld [vmem:[%s13443_s0 + $0x228] sm:$0xff] }
 0x13b   :  { %2865 = vmatmul.mubr.bf16.vlgmr.msra.gmra.mrb[8].mxu1 %v10035_v30  ;;  %v2514_v19 = vpack.c.bf16 %v2226_v20, %v2217_v39  ;;  %v2264_v39 = vld [vmem:[%s13443_s0 + $0x2c0] sm:$0xff]  ;;  %v2243_v20 = vld [vmem:[%s13443_s0 + $0x218] sm:$0xff] }
 0x13c   :  { %3045 = vmatpush1.bf16.msra.mxu1 %v2497_v15  ;;  %2874 = vmatprep.mubr.bf16.mxu1 %v10043_v32  ;;  %v2227_v15 = vld [vmem:[%s13443_s0 + $0x198] sm:$0xff] }
 0x13d   :  { %3046 = vmatprep.subr.bf16.mxu1 %v2507_v36  ;;  %v2237_v36 = vld [vmem:[%s13443_s0 + $0x1e8] sm:$0xff]  ;;  %v2515_v29 = vpack.c.bf16 %v2227_v15, %v2218_v24  ;;  %v2513_v24 = vpack.c.bf16 %v2225_v31, %v2216_v28  ;;  %v2234_v15 = vld [vmem:[%s13443_s0 + $0x1d0] sm:$0xff]  ;;  %v2263_v28 = vld [vmem:[%s13443_s0 + $0x2b8] sm:$0xff] }
 0x13e   :  { %7099 = vmatmul.mubr.msk.bf16.vlgmr.msra.gmra.mrb[8].mxu0 %vm2691_vm1, %v9695_v40  ;;  %v2235_v40 = vld [vmem:[%s13443_s0 + $0x1d8] sm:$0xff]  ;;  %v2262_v31 = vld [vmem:[%s13443_s0 + $0x2b0] sm:$0xff] }
 0x13f   :  { %2939 = vmatpush1.bf16.msra.mxu0 %v2495_v27  ;;  %2927 = vmatprep.mubr.bf16.mxu0 %v13523_v23  ;;  %v2525_v27 = vpack.c.bf16 %v2246_v37, %v2237_v36  ;;  %v2253_v37 = vld [vmem:[%s13443_s0 + $0x268] sm:$0xff] }
 0x140   :  { %3047 = vmatpush1.bf16.msra.mxu1 %v2506_v21  ;;  %2940 = vmatprep.subr.bf16.mxu0 %v2505_v11  ;;  %v2244_v21 = vld [vmem:[%s13443_s0 + $0x220] sm:$0xff]  ;;  %v2255_v11 = vld [vmem:[%s13443_s0 + $0x278] sm:$0xff] }
 0x141   :  { %3048 = vmatprep.subr.bf16.mxu1 %v2516_v16  ;;  %v2524_v16 = vpack.c.bf16 %v2245_v22, %v2236_v35  ;;  %v2523_v36 = vpack.c.bf16 %v2244_v21, %v2235_v40  ;;  %v2534_v26 = vpack.c.bf16 %v2264_v39, %v2255_v11  ;;  %v2522_v40 = vpack.c.bf16 %v2243_v20, %v2234_v15  ;;  %v2261_v35 = vld [vmem:[%s13443_s0 + $0x2a8] sm:$0xff]  ;;  %v2271_v11 = vld [vmem:[%s13443_s0 + $0x2f8] sm:$0xff]  ;;  %v2272_v39 = vld [vmem:[%s13443_s0 + $0x300] sm:$0xff] }
 0x142   :  { %v2532_v21 = vpack.c.bf16 %v2262_v31, %v2253_v37  ;;  %v2280_v15 = vld [vmem:[%s13443_s0 + $0x340] sm:$0xff]  ;;  %v2279_v37 = vld [vmem:[%s13443_s0 + $0x338] sm:$0xff]  ;;  %v2289_v31 = vld [vmem:[%s13443_s0 + $0x388] sm:$0xff] }
 0x143   :  { %2875 = vmatmul.mubr.bf16.gmra.mrb[12].mxu1 %v10082_v13  ;;  %2941 = vmatpush1.bf16.msra.mxu0 %v2504_v38  ;;  %v2254_v38 = vld [vmem:[%s13443_s0 + $0x270] sm:$0xff]  ;;  %v2300_v20 = vld [vmem:[%s13443_s0 + $0x3e0] sm:$0xff] }
 0x144   :  { %3049 = vmatpush1.bf16.msra.mxu1 %v2515_v29  ;;  %2942 = vmatprep.subr.bf16.mxu0 %v2514_v19  ;;  %v2273_v19 = vld [vmem:[%s13443_s0 + $0x308] sm:$0xff]  ;;  %v2282_v29 = vld [vmem:[%s13443_s0 + $0x350] sm:$0xff]  ;;  %v2533_v22 = vpack.c.bf16 %v2263_v28, %v2254_v38  ;;  %v2541_v28 = vpack.c.bf16 %v2280_v15, %v2271_v11 }
 0x145   :  { %3050 = vmatprep.subr.bf16.mxu1 %v2525_v27  ;;  %3076 = vmatprep.mubr.bf16.mxu1 %v9895_v12  ;;  %v2252_v27 = vld [vmem:[%s13443_s0 + $0x260] sm:$0xff]  ;;  %v2297_v11 = vld [vmem:[%s13443_s0 + $0x3c8] sm:$0xff] }
 0x146   :  { %7100 = vmatmul.mubr.msk.bf16.gmra.mrb[12].mxu0 %vm2691_vm1, %v9940_v14  ;;  %v2543_v14 = vpack.c.bf16 %v2282_v29, %v2273_v19  ;;  %v2290_v19 = vld [vmem:[%s13443_s0 + $0x390] sm:$0xff]  ;;  %v2299_v29 = vld [vmem:[%s13443_s0 + $0x3d8] sm:$0xff] }
 0x147   :  { %2943 = vmatpush1.bf16.msra.mxu0 %v2513_v24  ;;  %v2281_v24 = vld [vmem:[%s13443_s0 + $0x348] sm:$0xff]  ;;  %2970 = vmatprep.mubr.bf16.mxu0 %v9895_v12 }
 0x148   :  { %3051 = vmatpush1.bf16.msra.mxu1 %v2524_v16  ;;  %2944 = vmatprep.subr.bf16.mxu0 %v2523_v36  ;;  %v2531_v16 = vpack.c.bf16 %v2261_v35, %v2252_v27  ;;  %v2270_v36 = vld [vmem:[%s13443_s0 + $0x2f0] sm:$0xff]  ;;  %v2542_v38 = vpack.c.bf16 %v2281_v24, %v2272_v39  ;;  %v2309_v27 = vld [vmem:[%s13443_s0 + $0x428] sm:$0xff]  ;;  %v2307_v24 = vld [vmem:[%s13443_s0 + $0x418] sm:$0xff] }
 0x149   :  { %3052 = vmatprep.subr.bf16.mxu1 %v2534_v26  ;;  %v2291_v26 = vld [vmem:[%s13443_s0 + $0x398] sm:$0xff]  ;;  %v2318_v35 = vld [vmem:[%s13443_s0 + $0x470] sm:$0xff] }
 0x14a   :  { %v2552_v12 = vpack.c.bf16 %v2300_v20, %v2291_v26  ;;  %v2561_v15 = vpack.c.bf16 %v2318_v35, %v2309_v27  ;;  %v2308_v26 = vld [vmem:[%s13443_s0 + $0x420] sm:$0xff]  ;;  %v2317_v20 = vld [vmem:[%s13443_s0 + $0x468] sm:$0xff]  ;;  %v2326_v27 = vld [vmem:[%s13443_s0 + $0x4b0] sm:$0xff] }
 0x14b   :  { %2945 = vmatpush1.bf16.msra.mxu0 %v2522_v40  ;;  %v2298_v40 = vld [vmem:[%s13443_s0 + $0x3d0] sm:$0xff]  ;;  %v2335_v35 = vld [vmem:[%s13443_s0 + $0x4f8] sm:$0xff] }
 0x14c   :  { %3053 = vmatpush1.bf16.msra.mxu1 %v2533_v22  ;;  %2946 = vmatprep.subr.bf16.mxu0 %v2532_v21  ;;  %v2540_v22 = vpack.c.bf16 %v2279_v37, %v2270_v36  ;;  %v2288_v21 = vld [vmem:[%s13443_s0 + $0x380] sm:$0xff]  ;;  %v2550_v39 = vpack.c.bf16 %v2298_v40, %v2289_v31  ;;  %v2327_v36 = vld [vmem:[%s13443_s0 + $0x4b8] sm:$0xff] }
 0x14d   :  { %3054 = vmatprep.subr.bf16.mxu1 %v2543_v14  ;;  %v2551_v14 = vpack.c.bf16 %v2299_v29, %v2290_v19  ;;  %v2336_v37 = vld [vmem:[%s13443_s0 + $0x500] sm:$0xff]  ;;  %v2315_v31 = vld [vmem:[%s13443_s0 + $0x458] sm:$0xff]  ;;  %v2325_v29 = vld [vmem:[%s13443_s0 + $0x4a8] sm:$0xff] }
 0x14e   :  { %v2570_v40 = vpack.c.bf16 %v2336_v37, %v2327_v36  ;;  %v2344_v37 = vld [vmem:[%s13443_s0 + $0x540] sm:$0xff] }
 0x14f   :  { %2947 = vmatpush1.bf16.msra.mxu0 %v2531_v16  ;;  %v2316_v16 = vld [vmem:[%s13443_s0 + $0x460] sm:$0xff] }
 0x150   :  { %3055 = vmatpush1.bf16.msra.mxu1 %v2542_v38  ;;  %2948 = vmatprep.subr.bf16.mxu0 %v2541_v28  ;;  %v2549_v38 = vpack.c.bf16 %v2297_v11, %v2288_v21  ;;  %v2306_v28 = vld [vmem:[%s13443_s0 + $0x410] sm:$0xff]  ;;  %v2559_v19 = vpack.c.bf16 %v2316_v16, %v2307_v24  ;;  %v2345_v21 = vld [vmem:[%s13443_s0 + $0x548] sm:$0xff] }
 0x151   :  { %3056 = vmatprep.subr.bf16.mxu1 %v2552_v12  ;;  %v2560_v12 = vpack.c.bf16 %v2317_v20, %v2308_v26  ;;  %v2354_v11 = vld [vmem:[%s13443_s0 + $0x590] sm:$0xff]  ;;  %v2333_v24 = vld [vmem:[%s13443_s0 + $0x4e8] sm:$0xff]  ;;  %v2343_v26 = vld [vmem:[%s13443_s0 + $0x538] sm:$0xff] }
 0x152   :  { %v2352_v20 = vld [vmem:[%s13443_s0 + $0x580] sm:$0xff]  ;;  %v2579_v36 = vpack.c.bf16 %v2354_v11, %v2345_v21  ;;  %v2371_v21 = vld [vmem:[%s13443_s0 + $0x618] sm:$0xff] }
 0x153   :  { %2949 = vmatpush1.bf16.msra.mxu0 %v2540_v22  ;;  %v2334_v22 = vld [vmem:[%s13443_s0 + $0x4f0] sm:$0xff]  ;;  %v2577_v11 = vpack.c.bf16 %v2352_v20, %v2343_v26  ;;  %v2379_v26 = vld [vmem:[%s13443_s0 + $0x658] sm:$0xff]  ;;  %v2388_v20 = vld [vmem:[%s13443_s0 + $0x6a0] sm:$0xff] }
 0x154   :  { %3057 = vmatpush1.bf16.msra.mxu1 %v2551_v14  ;;  %2950 = vmatprep.subr.bf16.mxu0 %v2550_v39  ;;  %v2324_v14 = vld [vmem:[%s13443_s0 + $0x4a0] sm:$0xff]  ;;  %v2558_v39 = vpack.c.bf16 %v2315_v31, %v2306_v28  ;;  %v2568_v16 = vpack.c.bf16 %v2334_v22, %v2325_v29  ;;  %v2363_v28 = vld [vmem:[%s13443_s0 + $0x5d8] sm:$0xff]  ;;  %v2362_v29 = vld [vmem:[%s13443_s0 + $0x5d0] sm:$0xff] }
 0x155   :  { %3058 = vmatprep.subr.bf16.mxu1 %v2561_v15  ;;  %v2569_v15 = vpack.c.bf16 %v2335_v35, %v2326_v27  ;;  %v2372_v31 = vld [vmem:[%s13443_s0 + $0x620] sm:$0xff]  ;;  %v2361_v35 = vld [vmem:[%s13443_s0 + $0x5c8] sm:$0xff]  ;;  %v2370_v22 = vld [vmem:[%s13443_s0 + $0x610] sm:$0xff] }
 0x156   :  { %v2588_v10 = vpack.c.bf16 %v2372_v31, %v2363_v28  ;;  %v2399_v28 = vld [vmem:[%s13443_s0 + $0x6f8] sm:$0xff]  ;;  %v2408_v31 = vld [vmem:[%s13443_s0 + $0x740] sm:$0xff]  ;;  %v2586_v34 = vpack.c.bf16 %v2370_v22, %v2361_v35  ;;  %v2397_v22 = vld [vmem:[%s13443_s0 + $0x6e8] sm:$0xff] }
 0x157   :  { %2951 = vmatpush1.bf16.msra.mxu0 %v2549_v38  ;;  %v2353_v38 = vld [vmem:[%s13443_s0 + $0x588] sm:$0xff] }
 0x158   :  { %3059 = vmatpush1.bf16.msra.mxu1 %v2560_v12  ;;  %2952 = vmatprep.subr.bf16.mxu0 %v2559_v19  ;;  %v2342_v12 = vld [vmem:[%s13443_s0 + $0x530] sm:$0xff]  ;;  %v2351_v19 = vld [vmem:[%s13443_s0 + $0x578] sm:$0xff]  ;;  %v2578_v27 = vpack.c.bf16 %v2353_v38, %v2344_v37  ;;  %v2587_v38 = vpack.c.bf16 %v2371_v21, %v2362_v29 }
 0x159   :  { %3060 = vmatprep.subr.bf16.mxu1 %v2570_v40  ;;  %v2567_v40 = vpack.c.bf16 %v2333_v24, %v2324_v14  ;;  %v2381_v14 = vld [vmem:[%s13443_s0 + $0x668] sm:$0xff]  ;;  %v2360_v24 = vld [vmem:[%s13443_s0 + $0x5c0] sm:$0xff]  ;;  %v2576_v37 = vpack.c.bf16 %v2351_v19, %v2342_v12  ;;  %v2378_v19 = vld [vmem:[%s13443_s0 + $0x650] sm:$0xff] }
 0x15a   :  { %v2488_v12 = vld [vmem:[%s13443_s0 + $0x9c0] sm:$0xff]  ;;  %v2387_v29 = vld [vmem:[%s13443_s0 + $0x698] sm:$0xff]  ;;  %v2406_v21 = vld [vmem:[%s13443_s0 + $0x730] sm:$0xff] }
 0x15b   :  { %2953 = vmatpush1.bf16.msra.mxu0 %v2558_v39  ;;  %v2390_v39 = vld [vmem:[%s13443_s0 + $0x6b0] sm:$0xff] }
 0x15c   :  { %3061 = vmatpush1.bf16.msra.mxu1 %v2569_v15  ;;  %2954 = vmatprep.subr.bf16.mxu0 %v2568_v16  ;;  %v2369_v15 = vld [vmem:[%s13443_s0 + $0x608] sm:$0xff]  ;;  %v2380_v16 = vld [vmem:[%s13443_s0 + $0x660] sm:$0xff]  ;;  %v2597_v18 = vpack.c.bf16 %v2390_v39, %v2381_v14  ;;  %v2606_v14 = vpack.c.bf16 %v2408_v31, %v2399_v28  ;;  %v2435_v28 = vld [vmem:[%s13443_s0 + $0x818] sm:$0xff] }
 0x15d   :  { %3062 = vmatprep.subr.bf16.mxu1 %v2579_v36  ;;  %v2389_v36 = vld [vmem:[%s13443_s0 + $0x6a8] sm:$0xff]  ;;  %v2444_v31 = vld [vmem:[%s13443_s0 + $0x860] sm:$0xff] }
 0x15e   :  { %v2596_v35 = vpack.c.bf16 %v2389_v36, %v2380_v16  ;;  %v2417_v39 = vld [vmem:[%s13443_s0 + $0x788] sm:$0xff]  ;;  %v2594_v16 = vpack.c.bf16 %v2387_v29, %v2378_v19 }
 0x15f   :  { %2955 = vmatpush1.bf16.msra.mxu0 %v2567_v40  ;;  %v2585_v40 = vpack.c.bf16 %v2369_v15, %v2360_v24  ;;  %v2648_v24 = vpack.c.bf16 %v2486_v25, %v2486_v25  ;;  %v2650_v15 = vpack.c.bf16 %v2488_v12, %v2488_v12  ;;  %v2425_v25 = vld [vmem:[%s13443_s0 + $0x7c8] sm:$0xff]  ;;  %v2604_v12 = vpack.c.bf16 %v2406_v21, %v2397_v22  ;;  %v2443_v22 = vld [vmem:[%s13443_s0 + $0x858] sm:$0xff] }
 0x160   :  { %3063 = vmatpush1.bf16.msra.mxu1 %v2578_v27  ;;  %2956 = vmatprep.subr.bf16.mxu0 %v2577_v11  ;;  %v2595_v27 = vpack.c.bf16 %v2388_v20, %v2379_v26  ;;  %v2407_v11 = vld [vmem:[%s13443_s0 + $0x738] sm:$0xff]  ;;  %v2426_v26 = vld [vmem:[%s13443_s0 + $0x7d0] sm:$0xff]  ;;  %v2396_v20 = vld [vmem:[%s13443_s0 + $0x6e0] sm:$0xff] }
 0x161   :  { %3064 = vmatprep.subr.bf16.mxu1 %v2588_v10  ;;  %v2398_v10 = vld [vmem:[%s13443_s0 + $0x6f0] sm:$0xff]  ;;  %v2615_v19 = vpack.c.bf16 %v2426_v26, %v2417_v39  ;;  %v10427_v29 = vsel %vm2698_vm0, %v2648_v24, 0  ;;  %v2453_v24 = vld [vmem:[%s13443_s0 + $0x8a8] sm:$0xff] }
 0x162   :  { %v2605_v36 = vpack.c.bf16 %v2407_v11, %v2398_v10  ;;  %v10430_v10 = vsel %vm2698_vm0, %v2650_v15, 0  ;;  %v2442_v39 = vld [vmem:[%s13443_s0 + $0x850] sm:$0xff] }
 0x163   :  { %2957 = vmatpush1.bf16.msra.mxu0 %v2576_v37  ;;  %v2415_v37 = vld [vmem:[%s13443_s0 + $0x778] sm:$0xff]  ;;  %v2462_v15 = vld [vmem:[%s13443_s0 + $0x8f0] sm:$0xff] }
 0x164   :  { %3065 = vmatpush1.bf16.msra.mxu1 %v2587_v38  ;;  %2958 = vmatprep.subr.bf16.mxu0 %v2586_v34  ;;  %v2405_v34 = vld [vmem:[%s13443_s0 + $0x728] sm:$0xff]  ;;  %v2424_v38 = vld [vmem:[%s13443_s0 + $0x7c0] sm:$0xff] }
 0x165   :  { %3066 = vmatprep.subr.bf16.mxu1 %v2597_v18  ;;  %v2416_v18 = vld [vmem:[%s13443_s0 + $0x780] sm:$0xff]  ;;  %v2603_v21 = vpack.c.bf16 %v2405_v34, %v2396_v20  ;;  %v2613_v26 = vpack.c.bf16 %v2424_v38, %v2415_v37  ;;  %v2624_v20 = vpack.c.bf16 %v2444_v31, %v2435_v28  ;;  %v2451_v38 = vld [vmem:[%s13443_s0 + $0x898] sm:$0xff] }
 0x166   :  { %v2614_v11 = vpack.c.bf16 %v2425_v25, %v2416_v18  ;;  %v2432_v34 = vld [vmem:[%s13443_s0 + $0x800] sm:$0xff]  ;;  %v2441_v18 = vld [vmem:[%s13443_s0 + $0x848] sm:$0xff]  ;;  %v2471_v31 = vld [vmem:[%s13443_s0 + $0x938] sm:$0xff] }
 0x167   :  { %2959 = vmatpush1.bf16.msra.mxu0 %v2585_v40  ;;  %v2414_v40 = vld [vmem:[%s13443_s0 + $0x770] sm:$0xff]  ;;  %v2452_v25 = vld [vmem:[%s13443_s0 + $0x8a0] sm:$0xff] }
 0x168   :  { %3067 = vmatpush1.bf16.msra.mxu1 %v2596_v35  ;;  %2960 = vmatprep.subr.bf16.mxu0 %v2595_v27  ;;  %v2423_v35 = vld [vmem:[%s13443_s0 + $0x7b8] sm:$0xff]  ;;  %v2434_v27 = vld [vmem:[%s13443_s0 + $0x810] sm:$0xff]  ;;  %v2460_v28 = vld [vmem:[%s13443_s0 + $0x8e0] sm:$0xff] }
 0x169   :  { %3068 = vmatprep.subr.bf16.mxu1 %v2606_v14  ;;  %v2433_v14 = vld [vmem:[%s13443_s0 + $0x808] sm:$0xff]  ;;  %v2623_v37 = vpack.c.bf16 %v2443_v22, %v2434_v27  ;;  %v2459_v27 = vld [vmem:[%s13443_s0 + $0x8d8] sm:$0xff]  ;;  %v2621_v22 = vpack.c.bf16 %v2441_v18, %v2432_v34  ;;  %v2468_v34 = vld [vmem:[%s13443_s0 + $0x920] sm:$0xff] }
 0x16a   :  { %v2477_v18 = vld [vmem:[%s13443_s0 + $0x968] sm:$0xff] }
 0x16b   :  { %2961 = vmatpush1.bf16.msra.mxu0 %v2594_v16  ;;  %v2461_v16 = vld [vmem:[%s13443_s0 + $0x8e8] sm:$0xff] }
 0x16c   :  { %3069 = vmatpush1.bf16.msra.mxu1 %v2605_v36  ;;  %2962 = vmatprep.subr.bf16.mxu0 %v2604_v12  ;;  %v2612_v36 = vpack.c.bf16 %v2423_v35, %v2414_v40  ;;  %v2480_v12 = vld [vmem:[%s13443_s0 + $0x980] sm:$0xff]  ;;  %v2633_v40 = vpack.c.bf16 %v2462_v15, %v2453_v24  ;;  %v2450_v35 = vld [vmem:[%s13443_s0 + $0x890] sm:$0xff]  ;;  %v2479_v24 = vld [vmem:[%s13443_s0 + $0x978] sm:$0xff]  ;;  %v2631_v15 = vpack.c.bf16 %v2460_v28, %v2451_v38 }
 0x16d   :  { %3070 = vmatprep.subr.bf16.mxu1 %v2615_v19  ;;  %v2622_v19 = vpack.c.bf16 %v2442_v39, %v2433_v14  ;;  %v2478_v14 = vld [vmem:[%s13443_s0 + $0x970] sm:$0xff]  ;;  %v2472_v38 = vld [vmem:[%s13443_s0 + $0x940] sm:$0xff]  ;;  %v2481_v28 = vld [vmem:[%s13443_s0 + $0x988] sm:$0xff] }
 0x16e   :  { %v2470_v39 = vld [vmem:[%s13443_s0 + $0x930] sm:$0xff] }
 0x16f   :  { %2963 = vmatpush1.bf16.msra.mxu0 %v2603_v21  ;;  %v2632_v21 = vpack.c.bf16 %v2461_v16, %v2452_v25  ;;  %v2630_v25 = vpack.c.bf16 %v2459_v27, %v2450_v35  ;;  %v2487_v16 = vld [vmem:[%s13443_s0 + $0x9b8] sm:$0xff]  ;;  %v2643_v27 = vpack.c.bf16 %v2481_v28, %v2472_v38 }
 0x170   :  { %3071 = vmatpush1.bf16.msra.mxu1 %v2614_v11  ;;  %2964 = vmatprep.subr.bf16.mxu0 %v2613_v26  ;;  %v2469_v11 = vld [vmem:[%s13443_s0 + $0x928] sm:$0xff]  ;;  %v2642_v26 = vpack.c.bf16 %v2480_v12, %v2471_v31  ;;  %v2639_v12 = vpack.c.bf16 %v2477_v18, %v2468_v34  ;;  %v2649_v35 = vpack.c.bf16 %v2487_v16, %v2487_v16  ;;  %v7743_v34 = vld [vmem:[%s13445_s2 + $0x40] sm:$0xff]   ;;  %v2391_v38 = vld [vmem:[%s13443_s0 + $0x6b8] sm:$0xff] }
 0x171   :  { %3072 = vmatprep.subr.bf16.mxu1 %v2624_v20  ;;  %v2489_v20 = vld [vmem:[%s13443_s0 + $0x9c8] sm:$0xff] }
 0x172   :  { %v2651_v31 = vpack.c.bf16 %v2489_v20, %v2489_v20  ;;  %v2229_v16 = vld [vmem:[%s13443_s0 + $0x1a8] sm:$0xff] }
 0x173   :  { %2965 = vmatpush1.bf16.msra.mxu0 %v2612_v36  ;;  %v2640_v36 = vpack.c.bf16 %v2478_v14, %v2469_v11  ;;  %v2202_v14 = vld [vmem:[%s13443_s0 + $0xd0] sm:$0xff] }
 0x174   :  { %3073 = vmatpush1.bf16.msra.mxu1 %v2623_v37  ;;  %2966 = vmatprep.subr.bf16.mxu0 %v2622_v19  ;;  %v2641_v37 = vpack.c.bf16 %v2479_v24, %v2470_v39  ;;  %v2328_v19 = vld [vmem:[%s13443_s0 + $0x4c0] sm:$0xff]  ;;  %v2211_v39 = vld [vmem:[%s13443_s0 + $0x118] sm:$0xff] }
 0x175   :  { %3074 = vmatprep.subr.bf16.mxu1 %v2633_v40  ;;  %v2337_v40 = vld [vmem:[%s13443_s0 + $0x508] sm:$0xff] }
 0x177   :  { %2967 = vmatpush1.bf16.msra.mxu0 %v2621_v22  ;;  %v2571_v22 = vpack.c.bf16 %v2337_v40, %v2328_v19  ;;  %v2247_v19 = vld [vmem:[%s13443_s0 + $0x238] sm:$0xff] }
 0x178   :  { %3075 = vmatpush1.bf16.msra.mxu1 %v2632_v21  ;;  %2968 = vmatprep.subr.bf16.mxu0 %v2631_v15  ;;  %v2490_v21 = vld [vmem:[%s13443_s0 + $0x9d0] sm:$0xff]  ;;  %v2364_v15 = vld [vmem:[%s13443_s0 + $0x5e0] sm:$0xff] }
 0x179   :  { %3097 = vmatprep.subr.bf16.mxu1 %v2642_v26  ;;  %v2652_v11 = vpack.c.bf16 %v2490_v21, %v2490_v21  ;;  %v2373_v26 = vld [vmem:[%s13443_s0 + $0x628] sm:$0xff]  ;;  %v2256_v21 = vld [vmem:[%s13443_s0 + $0x280] sm:$0xff] }
 0x17a   :  { %v2589_v28 = vpack.c.bf16 %v2373_v26, %v2364_v15  ;;  %v2274_v15 = vld [vmem:[%s13443_s0 + $0x310] sm:$0xff]  ;;  %v2283_v26 = vld [vmem:[%s13443_s0 + $0x358] sm:$0xff] }
 0x17b   :  { %3077 = vmatmul.mubr.bf16.vlgmr.msra.gmra.mrb[16].mxu1 %v10035_v30  ;;  %2969 = vmatpush1.bf16.msra.mxu0 %v2630_v25  ;;  %v2724_v20 = vsel %vm2698_vm0, %v2652_v11, 0  ;;  %v2220_v25 = vld [vmem:[%s13443_s0 + $0x160] sm:$0xff] }
 0x17c   :  { %3086 = vmatprep.mubr.bf16.mxu1 %v10043_v32  ;;  %2991 = vmatprep.subr.bf16.mxu0 %v2640_v36  ;;  %v2508_v36 = vpack.c.bf16 %v2211_v39, %v2202_v14  ;;  %v2517_v40 = vpack.c.bf16 %v2229_v16, %v2220_v25  ;;  %v7745_v14 = vld [vmem:[%s13445_s2 + $0x48] sm:$0xff]  }
 0x17d   :  { %3098 = vmatpush1.bf16.msra.mxu1 %v2641_v37  ;;  %v2382_v37 = vld [vmem:[%s13443_s0 + $0x670] sm:$0xff]  ;;  %v2445_v25 = vld [vmem:[%s13443_s0 + $0x868] sm:$0xff] }
 0x17e   :  { %7104 = vmatprep.subr.msk.bf16.mxu1 %vm2698_vm0, %v2651_v31  ;;  %2971 = vmatmul.mubr.bf16.vlgmr.msra.gmra.mrb[16].mxu0 %v10035_v30  ;;  %v2184_v30 = vld [vmem:[%s13443_s0 + $0x40] sm:$0xff] }
 0x17f   :  { %2992 = vmatpush1.bf16.msra.mxu0 %v2639_v12  ;;  %2980 = vmatprep.mubr.bf16.mxu0 %v10043_v32  ;;  %v2193_v32 = vld [vmem:[%s13443_s0 + $0x88] sm:$0xff]  ;;  %v2238_v12 = vld [vmem:[%s13443_s0 + $0x1f0] sm:$0xff] }
 0x180   :  { %7101 = vmatprep.subr.msk.bf16.mxu0 %vm2698_vm0, %v2649_v35  ;;  %v2499_v24 = vpack.c.bf16 %v2193_v32, %v2184_v30  ;;  %v7851_v31 = vld [vmem:[%s13444_s1 + $0x20] ss:$12 sps:$4 sm:$0x3f]  }
 0x181   :  { %3100 = vmatpush1.bf16.msra.mxu1 %v10430_v10  ;;  %v2355_v10 = vld [vmem:[%s13443_s0 + $0x598] sm:$0xff]  ;;  %v2400_v35 = vld [vmem:[%s13443_s0 + $0x700] sm:$0xff]  ;;  %v2265_v30 = vld [vmem:[%s13443_s0 + $0x2c8] sm:$0xff] }
 0x182   :  { %7489 = vmatprep.subr.bf16.mxu1 %v2643_v27  ;;  %v7744_v32 = vld [vmem:[%s13445_s2] sm:$0xff]  }
 0x183   :  { %3087 = vmatmul.mubr.bf16.gmra.mrb[20].mxu1 %v10082_v13  ;;  %2994 = vmatpush1.bf16.msra.mxu0 %v10427_v29  ;;  %v2346_v29 = vld [vmem:[%s13443_s0 + $0x550] sm:$0xff] }
 0x184   :  { %3129 = vmatprep.mubr.bf16.mxu1 %v13523_v23  ;;  %7230 = vmatprep.subr.bf16.mxu0 %v2571_v22  ;;  %v2580_v18 = vpack.c.bf16 %v2355_v10, %v2346_v29  ;;  %v2598_v22 = vpack.c.bf16 %v2391_v38, %v2382_v37  ;;  %v2526_v29 = vpack.c.bf16 %v2247_v19, %v2238_v12  ;;  %v2418_v10 = vld [vmem:[%s13443_s0 + $0x790] sm:$0xff]  ;;  %v7749_v12 = vld [vmem:[%s13445_s2 + $0x58] sm:$0xff]  }
 0x185   :  { %v7748_v37 = vld [vmem:[%s13445_s2 + $0x10] sm:$0xff]  }
 0x186   :  { %2981 = vmatmul.mubr.bf16.gmra.mrb[20].mxu0 %v10082_v13  ;;  %v7850_v13 = vld [vmem:[%s13444_s1 + $0x8] ss:$12 sps:$4 sm:$0xff]  }
 0x187   :  { %3023 = vmatprep.mubr.bf16.mxu0 %v13523_v23  ;;  %v2454_v19 = vld [vmem:[%s13443_s0 + $0x8b0] sm:$0xff] }
 0x18b   :  { %7105 = vmatmul.mubr.msk.bf16.vlgmr.msra.gmra.mrb[16].mxu1 %vm2691_vm1, %v7850_v13 }
 0x18c   :  { %3139 = vmatprep.mubr.bf16.mxu1 %v13523_v23  ;;  %7490 = vmatpush3.bf16.msra.mxu1 %v2643_v27  ;;  %v2409_v27 = vld [vmem:[%s13443_s0 + $0x748] sm:$0xff] }
 0x18d   :  { %7722 = vmatprep.subr.msk.bf16.mxu1 %vm2698_vm0, %v2652_v11  ;;  %v2427_v11 = vld [vmem:[%s13443_s0 + $0x7d8] sm:$0xff]  ;;  %v2607_v39 = vpack.c.bf16 %v2409_v27, %v2400_v35 }
 0x18e   :  { %7102 = vmatmul.mubr.msk.bf16.vlgmr.msra.gmra.mrb[16].mxu0 %vm2691_vm1, %v7850_v13  ;;  %v2616_v16 = vpack.c.bf16 %v2427_v11, %v2418_v10  ;;  %v7750_v27 = vld [vmem:[%s13445_s2 + $0x18] sm:$0xff]   ;;  %v7753_v10 = vld [vmem:[%s13445_s2 + $0x20] sm:$0xff]  }
 0x18f   :  { %7231 = vmatpush3.bf16.msra.mxu0 %v2499_v24  ;;  %3033 = vmatprep.mubr.bf16.mxu0 %v13523_v23  ;;  %v7746_v24 = vld [vmem:[%s13445_s2 + $0x8] sm:$0xff]   ;;  %v7752_v11 = vld [vmem:[%s13445_s2 + $0xc0] sm:$0xff]  }
 0x190   :  { %7232 = vmatprep.subr.bf16.mxu0 %v2580_v18  ;;  %7492 = vmatpush3.bf16.msra.mxu1 %v2724_v20  ;;  %v7747_v20 = vld [vmem:[%s13445_s2 + $0x50] sm:$0xff]   ;;  %v2436_v18 = vld [vmem:[%s13443_s0 + $0x820] sm:$0xff] }
 0x191   :  { %7262 = vmatprep.subr.bf16.mxu1 %v7743_v34  ;;  %v2535_v34 = vpack.c.bf16 %v2265_v30, %v2256_v21  ;;  %v2625_v38 = vpack.c.bf16 %v2445_v25, %v2436_v18  ;;  %v2310_v21 = vld [vmem:[%s13443_s0 + $0x430] sm:$0xff]  ;;  %v2319_v30 = vld [vmem:[%s13443_s0 + $0x478] sm:$0xff] }
 0x192   :  { %v7760_v18 = vld [vmem:[%s13445_s2 + $0xd0] sm:$0xff]  }
 0x193   :  { %7106 = vmatmul.mubr.msk.bf16.gmra.mrb[20].mxu1 %vm2691_vm1, %v7851_v31  ;;  %7233 = vmatpush3.bf16.msra.mxu0 %v2508_v36  ;;  %v2544_v36 = vpack.c.bf16 %v2283_v26, %v2274_v15  ;;  %v7759_v15 = vld [vmem:[%s13445_s2 + $0x70] sm:$0xff]   ;;  %v7853_v26 = vld [vmem:[%s13444_s1] ss:$12 sps:$4 sm:$0xff]  }
 0x194   :  { %7493 = vmatprep.mubr.msk.bf16.mxu1 %vm2691_vm1, %v7850_v13  ;;  %7234 = vmatprep.subr.bf16.mxu0 %v2589_v28  ;;  %v7852_v13 = vld [vmem:[%s13444_s1 + $0x4] ss:$12 sps:$4 sm:$0xff]  }
 0x195   :  { %v2292_v28 = vld [vmem:[%s13443_s0 + $0x3a0] sm:$0xff]  ;;  %v7761_v25 = vld [vmem:[%s13445_s2 + $0x30] sm:$0xff]  }
 0x196   :  { %7103 = vmatmul.mubr.msk.bf16.gmra.mrb[20].mxu0 %vm2691_vm1, %v7851_v31 }
 0x197   :  { %7235 = vmatpush3.bf16.msra.mxu0 %v2517_v40  ;;  %3182 = vmatprep.mubr.bf16.mxu0 %v7852_v13  ;;  %v2463_v40 = vld [vmem:[%s13443_s0 + $0x8f8] sm:$0xff]  ;;  %v7755_v13 = vld [vmem:[%s13445_s2 + $0x68] sm:$0xff]  }
 0x198   :  { %7236 = vmatprep.subr.bf16.mxu0 %v2598_v22  ;;  %v2634_v22 = vpack.c.bf16 %v2463_v40, %v2454_v19  ;;  %v7767_v19 = vld [vmem:[%s13445_s2 + $0xe0] sm:$0xff]  }
 0x199   :  { %v7768_v40 = vld [vmem:[%s13445_s2 + $0xa0] sm:$0xff]  }
 0x19b   :  { %7494 = vmatmul.mubr.msk.bf16.vlgmr.msra.gmra.mrb[24].mxu1 %vm2691_vm1, %v7851_v31  ;;  %7237 = vmatpush3.bf16.msra.mxu0 %v2526_v29  ;;  %v2301_v31 = vld [vmem:[%s13443_s0 + $0x3e8] sm:$0xff]  ;;  %v2562_v29 = vpack.c.bf16 %v2319_v30, %v2310_v21  ;;  %v7772_v21 = vld [vmem:[%s13445_s2 + $0xb0] sm:$0xff]   ;;  %v7773_v30 = vld [vmem:[%s13445_s2 + $0xf8] sm:$0xff]   ;;  %s8131_s0 = smov 56  }
 0x19c   :  { %7263 = vmatpush3.bf16.msra.mxu1 %v7744_v32  ;;  %7238 = vmatprep.subr.bf16.mxu0 %v2607_v39  ;;  %v2553_v35 = vpack.c.bf16 %v2301_v31, %v2292_v28  ;;  %v7751_v32 = vld [vmem:[%s13445_s2 + $0x60] sm:$0xff]   ;;  %v7756_v39 = vld [vmem:[%s13445_s2 + $0xc8] sm:$0xff]  }
 0x19d   :  { %7264 = vmatprep.subr.bf16.mxu1 %v7745_v14  ;;  %v7754_v14 = vld [vmem:[%s13445_s2 + $0x80] sm:$0xff]  }
 0x19e   :  { %v7775_v28 = vld [vmem:[%s13445_s2 + $0x140] sm:$0xff]  }
 0x19f   :  { %7239 = vmatpush3.bf16.msra.mxu0 %v2535_v34  ;;  %v7758_v34 = vld [vmem:[%s13445_s2 + $0x88] sm:$0xff]   ;;  %v7855_v31 = vld [vmem:[%s13444_s1 + $0x18] ss:$12 sps:$4 sm:$0x3f]  }
 0x1a0   :  { %7265 = vmatpush3.bf16.msra.mxu1 %v7746_v24  ;;  %7240 = vmatprep.subr.bf16.mxu0 %v2616_v16  ;;  %v7757_v24 = vld [vmem:[%s13445_s2 + $0x28] sm:$0xff]   ;;  %v7763_v16 = vld [vmem:[%s13445_s2 + $0x78] sm:$0xff]  }
 0x1a1   :  { %7266 = vmatprep.subr.bf16.mxu1 %v7747_v20  ;;  %v7854_v20 = vld [vmem:[%s13444_s1 + $0x1c] ss:$12 sps:$4 sm:$0x3f]  }
 0x1a3   :  { %7241 = vmatpush3.bf16.msra.mxu0 %v2544_v36  ;;  %v7762_v36 = vld [vmem:[%s13445_s2 + $0x90] sm:$0xff]  }
 0x1a4   :  { %7267 = vmatpush3.bf16.msra.mxu1 %v7748_v37  ;;  %7242 = vmatprep.subr.bf16.mxu0 %v2625_v38  ;;  %v7764_v37 = vld [vmem:[%s13445_s2 + $0xd8] sm:$0xff]  }
 0x1a5   :  { %7268 = vmatprep.subr.bf16.mxu1 %v7749_v12  ;;  %v7765_v38 = vld [vmem:[%s13445_s2 + $0x38] sm:$0xff]  }
 0x1a6   :  { %v7766_v12 = vld [vmem:[%s13445_s2 + $0x98] sm:$0xff]  }
 0x1a7   :  { %7243 = vmatpush3.bf16.msra.mxu0 %v2553_v35  ;;  %v7769_v35 = vld [vmem:[%s13445_s2 + $0xe8] sm:$0xff]  }
 0x1a8   :  { %7269 = vmatpush3.bf16.msra.mxu1 %v7750_v27  ;;  %7244 = vmatprep.subr.bf16.mxu0 %v2634_v22  ;;  %v7770_v27 = vld [vmem:[%s13445_s2 + $0xa8] sm:$0xff]   ;;  %v7771_v22 = vld [vmem:[%s13445_s2 + $0xf0] sm:$0xff]  }
 0x1a9   :  { %7270 = vmatprep.subr.bf16.mxu1 %v7751_v32  ;;  %v7774_v32 = vld [vmem:[%s13445_s2 + $0xb8] sm:$0xff]  }
 0x1ab   :  { %7245 = vmatpush3.bf16.msra.mxu0 %v2562_v29  ;;  %v7777_v29 = vld [vmem:[%s13445_s2 + $0x1c0] sm:$0xff]  }
 0x1ac   :  { %7271 = vmatpush3.bf16.msra.mxu1 %v7753_v10  ;;  %7290 = vmatprep.subr.bf16.mxu0 %v7752_v11 }
 0x1ad   :  { %7272 = vmatprep.subr.bf16.mxu1 %v7755_v13 }
 0x1ae   :  { %3183 = vmatmul.mubr.bf16.vlgmr.msra.gmra.mrb[24].mxu0 %v7853_v26 }
 0x1af   :  { %3190 = vmatprep.mubr.bf16.mxu0 %v7854_v20  ;;  %7291 = vmatpush3.bf16.msra.mxu0 %v7754_v14 }
 0x1b0   :  { %7292 = vmatprep.subr.bf16.mxu0 %v7756_v39  ;;  %7273 = vmatpush3.bf16.msra.mxu1 %v7757_v24 }
 0x1b1   :  { %7274 = vmatprep.subr.bf16.mxu1 %v7759_v15 }
 0x1b3   :  { %7293 = vmatpush3.bf16.msra.mxu0 %v7758_v34 }
 0x1b4   :  { %7294 = vmatprep.subr.bf16.mxu0 %v7760_v18  ;;  %7275 = vmatpush3.bf16.msra.mxu1 %v7761_v25 }
 0x1b5   :  { %7276 = vmatprep.subr.bf16.mxu1 %v7763_v16 }
 0x1b6   :  { %3191 = vmatmul.mubr.bf16.gmra.mrb[28].mxu0 %v7855_v31 }
 0x1b7   :  { %7295 = vmatpush3.bf16.msra.mxu0 %v7762_v36 }
 0x1b8   :  { %7296 = vmatprep.subr.bf16.mxu0 %v7764_v37  ;;  %7277 = vmatpush3.bf16.msra.mxu1 %v7765_v38 }
 0x1b9   :  { %7318 = vmatprep.subr.bf16.mxu1 %v7775_v28 }
 0x1bb   :  { %7297 = vmatpush3.bf16.msra.mxu0 %v7766_v12  ;;  %v7776_v12 = vld [vmem:[%s13445_s2 + $0x100] sm:$0xff]  }
 0x1bc   :  { %7298 = vmatprep.subr.bf16.mxu0 %v7767_v19  ;;  %v7779_v19 = vld [vmem:[%s13445_s2 + $0x148] sm:$0xff]  }
 0x1bf   :  { %7299 = vmatpush3.bf16.msra.mxu0 %v7768_v40 }
 0x1c0   :  { %7300 = vmatprep.subr.bf16.mxu0 %v7769_v35 }
 0x1c3   :  { %7301 = vmatpush3.bf16.msra.mxu0 %v7770_v27 }
 0x1c4   :  { %7302 = vmatprep.subr.bf16.mxu0 %v7771_v22 }
 0x1c7   :  { %7303 = vmatpush3.bf16.msra.mxu0 %v7772_v21 }
 0x1c8   :  { %7304 = vmatprep.subr.bf16.mxu0 %v7773_v30  ;;  %v7780_v30 = vld [vmem:[%s13445_s2 + $0x108] sm:$0xff]  }
 0x1cb   :  { %7305 = vmatpush3.bf16.msra.mxu0 %v7774_v32 }
 0x1cc   :  { %7346 = vmatprep.subr.bf16.mxu0 %v7777_v29 }
 0x1ce   :  { %v2813_v10 = vpop.f32.mrb[0].mxu1 }
 0x1cf   :  { %v2815_v11 = vpop.f32.mrb[1].mxu1 }
 0x1d0   :  { %v2817_v13 = vpop.f32.mrb[2].mxu1 }
 0x1d1   :  { %v2819_v14 = vpop.f32.mrb[3].mxu1 }
 0x1ec   :  { %v2823_v39 = vpop.f32.mrb[4].mxu1 }
 0x1ed   :  { %v2825_v24 = vpop.f32.mrb[5].mxu1 }
 0x1ee   :  { %v2827_v15 = vpop.f32.mrb[6].mxu1 }
 0x1ef   :  { %v2829_v26 = vpop.f32.mrb[7].mxu1 }
 0x201   :  { %v2760_v20 = vpop.f32.mrb[0].mxu0 }
 0x202   :  { %v2814_v34 = vadd.f32 %v2813_v10, %v2760_v20  ;;  %v2762_v18 = vpop.f32.mrb[1].mxu0  ;;  %v7783_v10 = vld [vmem:[%s13445_s2 + $0x150] sm:$0xff]  }
 0x203   :  { %v2816_v25 = vadd.f32 %v2815_v11, %v2762_v18  ;;  %v2764_v16 = vpop.f32.mrb[2].mxu0 }
 0x204   :  { %v2818_v36 = vadd.f32 %v2817_v13, %v2764_v16  ;;  %v2766_v37 = vpop.f32.mrb[3].mxu0 }
 0x205   :  { %v2820_v38 = vadd.f32 %v2819_v14, %v2766_v37 }
 0x206   :  { %v3248_v28 = vpack.c.bf16 %v2818_v36, %v2814_v34 }
 0x207   :  { %v3249_v31 = vpack.c.bf16 %v2820_v38, %v2816_v25  ;;  %v7788_v38 = vld [vmem:[%s13445_s2 + $0x118] sm:$0xff]  }
 0x209   :  { %v2770_v40 = vpop.f32.mrb[4].mxu0  ;;  %3865 = vmatprep.mubr.bf16.mxu1 %v3249_v31 }
 0x20a   :  { %v2824_v35 = vadd.f32 %v2823_v39, %v2770_v40  ;;  %v2772_v27 = vpop.f32.mrb[5].mxu0  ;;  %3866 = vmatmul.mubr.bf16.vlgmr.msra.gmra.mrb[28].mxu1 %v3248_v28 }
 0x20b   :  { %v2826_v22 = vadd.f32 %v2825_v24, %v2772_v27  ;;  %v2774_v21 = vpop.f32.mrb[6].mxu0  ;;  %7319 = vmatpush3.bf16.msra.mxu1 %v7776_v12  ;;  %v7784_v24 = vld [vmem:[%s13445_s2 + $0x110] sm:$0xff]   ;;  %v7791_v12 = vld [vmem:[%s13445_s2 + $0x160] sm:$0xff]  }
 0x20c   :  { %v2828_v32 = vadd.f32 %v2827_v15, %v2774_v21  ;;  %v2776_v29 = vpop.f32.mrb[7].mxu0  ;;  %7320 = vmatprep.subr.bf16.mxu1 %v7779_v19  ;;  %v7787_v15 = vld [vmem:[%s13445_s2 + $0x158] sm:$0xff]  }
 0x20d   :  { %v2830_v11 = vadd.f32 %v2829_v26, %v2776_v29 }
 0x20e   :  { %v2866_v13 = vpop.f32.mrb[8].mxu1  ;;  %v3257_v14 = vpack.c.bf16 %v2828_v32, %v2824_v35  ;;  %v7792_v32 = vld [vmem:[%s13445_s2 + $0x120] sm:$0xff]  }
 0x20f   :  { %v2868_v39 = vpop.f32.mrb[9].mxu1  ;;  %v3258_v20 = vpack.c.bf16 %v2830_v11, %v2826_v22  ;;  %7321 = vmatpush3.bf16.msra.mxu1 %v7780_v30  ;;  %v7778_v30 = vld [vmem:[%s13445_s2 + $0x180] sm:$0xff]   ;;  %v7795_v11 = vld [vmem:[%s13445_s2 + $0x168] sm:$0xff]  }
 0x210   :  { %v2870_v34 = vpop.f32.mrb[10].mxu1  ;;  %7322 = vmatprep.subr.bf16.mxu1 %v7783_v10  ;;  %v7781_v10 = vld [vmem:[%s13445_s2 + $0x1c8] sm:$0xff]  }
 0x211   :  { %v2872_v18 = vpop.f32.mrb[11].mxu1  ;;  %v2919_v25 = vpop.f32.mrb[8].mxu0  ;;  %3873 = vmatprep.mubr.bf16.mxu1 %v3258_v20 }
 0x212   :  { %v2920_v16 = vadd.f32 %v2919_v25, %v2866_v13  ;;  %v2921_v26 = vpop.f32.mrb[9].mxu0  ;;  %3874 = vmatmul.mubr.bf16.gmra.mrb[32].mxu1 %v3257_v14 }
 0x213   :  { %v2922_v36 = vadd.f32 %v2921_v26, %v2868_v39  ;;  %v2923_v37 = vpop.f32.mrb[10].mxu0  ;;  %7323 = vmatpush3.bf16.msra.mxu1 %v7784_v24  ;;  %v7782_v24 = vld [vmem:[%s13445_s2 + $0x188] sm:$0xff]   ;;  %v7799_v26 = vld [vmem:[%s13445_s2 + $0x170] sm:$0xff]  }
 0x214   :  { %v2924_v28 = vadd.f32 %v2923_v37, %v2870_v34  ;;  %v2925_v31 = vpop.f32.mrb[11].mxu0  ;;  %7324 = vmatprep.subr.bf16.mxu1 %v7787_v15 }
 0x215   :  { %v2926_v19 = vadd.f32 %v2925_v31, %v2872_v18  ;;  %v7796_v18 = vld [vmem:[%s13445_s2 + $0x128] sm:$0xff]   ;;  %v7800_v31 = vld [vmem:[%s13445_s2 + $0x130] sm:$0xff]  }
 0x216   :  { %v2876_v40 = vpop.f32.mrb[12].mxu1  ;;  %v3250_v35 = vpack.c.bf16 %v2924_v28, %v2920_v16  ;;  %v7785_v16 = vld [vmem:[%s13445_s2 + $0x1d0] sm:$0xff]  }
 0x217   :  { %v2878_v27 = vpop.f32.mrb[13].mxu1  ;;  %v3251_v22 = vpack.c.bf16 %v2926_v19, %v2922_v36  ;;  %7325 = vmatpush3.bf16.msra.mxu1 %v7788_v38  ;;  %v7786_v28 = vld [vmem:[%s13445_s2 + $0x190] sm:$0xff]   ;;  %v7803_v19 = vld [vmem:[%s13445_s2 + $0x178] sm:$0xff]  }
 0x218   :  { %v2880_v21 = vpop.f32.mrb[14].mxu1  ;;  %7326 = vmatprep.subr.bf16.mxu1 %v7791_v12  ;;  %v7789_v12 = vld [vmem:[%s13445_s2 + $0x1d8] sm:$0xff]  }
 0x219   :  { %v2882_v29 = vpop.f32.mrb[15].mxu1  ;;  %v2929_v13 = vpop.f32.mrb[12].mxu0  ;;  %3914 = vmatprep.mubr.bf16.mxu0 %v3251_v22  ;;  %v7807_v22 = vld [vmem:[%s13445_s2 + $0x200] sm:$0xff]  }
 0x21a   :  { %v2930_v14 = vadd.f32 %v2929_v13, %v2876_v40  ;;  %v2931_v39 = vpop.f32.mrb[13].mxu0  ;;  %3915 = vmatmul.mubr.bf16.vlgmr.msra.gmra.mrb[32].mxu0 %v3250_v35  ;;  %v7790_v40 = vld [vmem:[%s13445_s2 + $0x198] sm:$0xff]  }
 0x21b   :  { %v2932_v20 = vadd.f32 %v2931_v39, %v2878_v27  ;;  %v2933_v34 = vpop.f32.mrb[14].mxu0  ;;  %7347 = vmatpush3.bf16.msra.mxu0 %v7778_v30  ;;  %7327 = vmatpush3.bf16.msra.mxu1 %v7792_v32  ;;  %v7804_v35 = vld [vmem:[%s13445_s2 + $0x138] sm:$0xff]   ;;  %v7793_v27 = vld [vmem:[%s13445_s2 + $0x1e0] sm:$0xff]   ;;  %v7797_v30 = vld [vmem:[%s13445_s2 + $0x1e8] sm:$0xff]  }
 0x21c   :  { %v2934_v15 = vadd.f32 %v2933_v34, %v2880_v21  ;;  %v2935_v25 = vpop.f32.mrb[15].mxu0  ;;  %7348 = vmatprep.subr.bf16.mxu0 %v7781_v10  ;;  %7328 = vmatprep.subr.bf16.mxu1 %v7795_v11  ;;  %v7794_v21 = vld [vmem:[%s13445_s2 + $0x1a0] sm:$0xff]   ;;  %v7798_v32 = vld [vmem:[%s13445_s2 + $0x1a8] sm:$0xff]   ;;  %v7802_v10 = vld [vmem:[%s13445_s2 + $0x1b0] sm:$0xff]  }
 0x21d   :  { %v2936_v36 = vadd.f32 %v2935_v25, %v2882_v29  ;;  %v7801_v29 = vld [vmem:[%s13445_s2 + $0x1f0] sm:$0xff]   ;;  %v7805_v11 = vld [vmem:[%s13445_s2 + $0x1f8] sm:$0xff]  }
 0x21e   :  { %v3259_v37 = vpack.c.bf16 %v2934_v15, %v2930_v14  ;;  %v7806_v13 = vld [vmem:[%s13445_s2 + $0x1b8] sm:$0xff]  }
 0x21f   :  { %v3260_v38 = vpack.c.bf16 %v2936_v36, %v2932_v20  ;;  %7349 = vmatpush3.bf16.msra.mxu0 %v7782_v24  ;;  %7329 = vmatpush3.bf16.msra.mxu1 %v7796_v18 }
 0x220   :  { %7350 = vmatprep.subr.bf16.mxu0 %v7785_v16  ;;  %7330 = vmatprep.subr.bf16.mxu1 %v7799_v26 }
 0x221   :  { %3922 = vmatprep.mubr.bf16.mxu0 %v3260_v38 }
 0x222   :  { %3923 = vmatmul.mubr.bf16.gmra.mrb[36].mxu0 %v3259_v37 }
 0x223   :  { %7351 = vmatpush3.bf16.msra.mxu0 %v7786_v28  ;;  %7331 = vmatpush3.bf16.msra.mxu1 %v7800_v31  ;;  %v7808_v31 = vld [vmem:[%s13445_s2 + $0x208] sm:$0xff]  }
 0x224   :  { %7352 = vmatprep.subr.bf16.mxu0 %v7789_v12  ;;  %7332 = vmatprep.subr.bf16.mxu1 %v7803_v19 }
 0x227   :  { %7353 = vmatpush3.bf16.msra.mxu0 %v7790_v40  ;;  %7333 = vmatpush3.bf16.msra.mxu1 %v7804_v35 }
 0x228   :  { %7354 = vmatprep.subr.bf16.mxu0 %v7793_v27  ;;  %7497 = vmatprep.subr.bf16.mxu1 %v7807_v22 }
 0x22b   :  { %7355 = vmatpush3.bf16.msra.mxu0 %v7794_v21 }
 0x22c   :  { %7356 = vmatprep.subr.bf16.mxu0 %v7797_v30  ;;  %v7809_v30 = vld [vmem:[%s13445_s2 + $0x210] sm:$0xff]  }
 0x22f   :  { %7357 = vmatpush3.bf16.msra.mxu0 %v7798_v32 }
 0x230   :  { %7358 = vmatprep.subr.bf16.mxu0 %v7801_v29 }
 0x233   :  { %7359 = vmatpush3.bf16.msra.mxu0 %v7802_v10 }
 0x234   :  { %7360 = vmatprep.subr.bf16.mxu0 %v7805_v11 }
 0x237   :  { %7361 = vmatpush3.bf16.msra.mxu0 %v7806_v13 }
 0x25e   :  { %v3131_v14 = vpop.f32.mrb[16].mxu1 }
 0x25f   :  { %v3133_v39 = vpop.f32.mrb[17].mxu1 }
 0x260   :  { %v3135_v20 = vpop.f32.mrb[18].mxu1 }
 0x261   :  { %v3254_v34 = vpack.c.bf16 %v3135_v20, %v3131_v14  ;;  %v3137_v24 = vpop.f32.mrb[19].mxu1  ;;  %v3025_v18 = vpop.f32.mrb[16].mxu0 }
 0x262   :  { %v3255_v15 = vpack.c.bf16 %v3137_v24, %v3133_v39  ;;  %v3027_v25 = vpop.f32.mrb[17].mxu0  ;;  %v7812_v24 = vld [vmem:[%s13445_s2 + $0x228] sm:$0xff]  }
 0x263   :  { %v3029_v16 = vpop.f32.mrb[18].mxu0 }
 0x264   :  { %4012 = vmatprep.mubr.bf16.mxu0 %v3255_v15  ;;  %v3252_v26 = vpack.c.bf16 %v3029_v16, %v3025_v18  ;;  %v3031_v36 = vpop.f32.mrb[19].mxu0 }
 0x265   :  { %4013 = vmatmul.mubr.bf16.vlgmr.msra.gmra.mrb[40].mxu0 %v3254_v34  ;;  %v3253_v37 = vpack.c.bf16 %v3031_v36, %v3027_v25  ;;  %v7811_v34 = vld [vmem:[%s13445_s2 + $0x220] sm:$0xff]  }
 0x266   :  { %v3141_v38 = vpop.f32.mrb[20].mxu1 }
 0x267   :  { %v3143_v28 = vpop.f32.mrb[21].mxu1  ;;  %3963 = vmatprep.mubr.bf16.mxu1 %v3253_v37 }
 0x268   :  { %v3145_v12 = vpop.f32.mrb[22].mxu1  ;;  %3964 = vmatmul.mubr.bf16.vlgmr.msra.gmra.mrb[36].mxu1 %v3252_v26 }
 0x269   :  { %v3263_v19 = vpack.c.bf16 %v3145_v12, %v3141_v38  ;;  %v3147_v40 = vpop.f32.mrb[23].mxu1  ;;  %v3035_v35 = vpop.f32.mrb[20].mxu0  ;;  %7498 = vmatpush3.bf16.msra.mxu1 %v7807_v22  ;;  %v7810_v22 = vld [vmem:[%s13445_s2 + $0x218] sm:$0xff]  }
 0x26a   :  { %v3264_v27 = vpack.c.bf16 %v3147_v40, %v3143_v28  ;;  %v3037_v21 = vpop.f32.mrb[21].mxu0  ;;  %7499 = vmatprep.subr.bf16.mxu1 %v7808_v31 }
 0x26b   :  { %v3039_v32 = vpop.f32.mrb[22].mxu0 }
 0x26c   :  { %4020 = vmatprep.mubr.bf16.mxu0 %v3264_v27  ;;  %v3261_v29 = vpack.c.bf16 %v3039_v32, %v3035_v35  ;;  %v3041_v10 = vpop.f32.mrb[23].mxu0 }
 0x26d   :  { %4021 = vmatmul.mubr.bf16.gmra.mrb[44].mxu0 %v3263_v19  ;;  %v3262_v11 = vpack.c.bf16 %v3041_v10, %v3037_v21  ;;  %7500 = vmatpush3.bf16.msra.mxu1 %v7808_v31 }
 0x26e   :  { %v7495_v13 = vpop.f32.mrb[24].mxu1  ;;  %7501 = vmatprep.subr.bf16.mxu1 %v7809_v30 }
 0x26f   :  { %v3233_v14 = vpop.f32.mrb[25].mxu1  ;;  %3971 = vmatprep.mubr.bf16.mxu1 %v3262_v11 }
 0x270   :  { %v7496_v39 = vpop.f32.mrb[26].mxu1  ;;  %3972 = vmatmul.mubr.bf16.gmra.mrb[40].mxu1 %v3261_v29 }
 0x271   :  { %v3236_v20 = vpop.f32.mrb[27].mxu1  ;;  %7502 = vmatpush3.bf16.msra.mxu1 %v7809_v30 }
 0x272   :  { %7503 = vmatprep.subr.bf16.mxu1 %v7810_v22 }
 0x275   :  { %7504 = vmatpush3.bf16.msra.mxu1 %v7810_v22 }
 0x276   :  { %7505 = vmatprep.subr.bf16.mxu1 %v7811_v34 }
 0x279   :  { %7506 = vmatpush3.bf16.msra.mxu1 %v7811_v34 }
 0x27a   :  { %7507 = vmatprep.subr.bf16.mxu1 %v7812_v24 }
 0x27d   :  { %7508 = vmatpush3.bf16.msra.mxu1 %v7812_v24 }
 0x27e   :  { %4380 = vmatprep.subr.bf16.mxu1 %v13523_v23 }
 0x281   :  { %v7246_v18 = vpop.f32.mrb[24].mxu0 }
 0x282   :  { %v7247_v15 = vpop.f32.mrb[25].mxu0 }
 0x283   :  { %v7248_v25 = vadd.f32 %v7247_v15, %v7246_v18  ;;  %v7249_v16 = vpop.f32.mrb[26].mxu0 }
 0x284   :  { %v7250_v26 = vpop.f32.mrb[27].mxu0 }
 0x285   :  { %v7251_v36 = vadd.f32 %v7250_v26, %v7249_v16  ;;  %v3234_v37 = vadd.f32 %v7248_v25, %v3233_v14 }
 0x287   :  { %v3237_v38 = vadd.f32 %v7251_v36, %v3236_v20 }
 0x289   :  { %v3256_v28 = vpack.c.bf16 %v3237_v38, %v3234_v37  ;;  %v7252_v31 = vpop.f32.mrb[28].mxu0 }
 0x28a   :  { %v7253_v12 = vpop.f32.mrb[29].mxu0 }
 0x28b   :  { %v7254_v19 = vadd.f32 %v7253_v12, %v7252_v31  ;;  %v7255_v40 = vpop.f32.mrb[30].mxu0  ;;  %7509 = vmatprep.mubr.msk.bf16.mxu1 %vm3826_vm2, %v3256_v28 }
 0x28c   :  { %v7256_v35 = vpop.f32.mrb[31].mxu0 }
 0x28d   :  { %v3242_v27 = vadd.f32 %v7495_v13, %v7254_v19  ;;  %v7257_v21 = vadd.f32 %v7256_v35, %v7255_v40 }
 0x28f   :  { %v3245_v30 = vadd.f32 %v7496_v39, %v7257_v21 }
 0x291   :  { %v3265_v32 = vpack.c.bf16 %v3245_v30, %v3242_v27 }
 0x293   :  { %7510 = vmatmul.mubr.msk.bf16.vlgmr.msra.gmra.mrb[44].mxu1 %vm3826_vm2, %v3265_v32 }
 0x2dd   :  { %v7278_v29 = vpop.f32.mrb[28].mxu1 }
 0x2de   :  { %v7279_v10 = vpop.f32.mrb[29].mxu1 }
 0x2df   :  { %v7280_v11 = vadd.f32 %v7279_v10, %v7278_v29  ;;  %v7281_v14 = vpop.f32.mrb[30].mxu1  ;;  %v10879_v29 = vld [vmem:[%s13446_s3 + $0x4] ss:$12 sps:$4 sm:$0xff]   ;;  %v10884_v10 = vld [vmem:[%s13446_s3] ss:$12 sps:$4 sm:$0xff]  }
 0x2e0   :  { %v7282_v22 = vpop.f32.mrb[31].mxu1  ;;  %4337 = vmatprep.subr.bf16.mxu0 %v10879_v29 }
 0x2e1   :  { %v7283_v20 = vadd.f32 %v7282_v22, %v7281_v14  ;;  %v10894_v14 = vld [vmem:[%s13446_s3 + $0x1c] ss:$12 sps:$4 sm:$0xff]   ;;  %v10901_v22 = vld [vmem:[%s13446_s3 + $0x20] ss:$12 sps:$4 sm:$0xff]   ;;  %4338 = vmatpush1.bf16.msra.mxu0 %v10884_v10 }
 0x2e2   :  { %4339 = vmatprep.subr.bf16.mxu0 %v10894_v14 }
 0x2e5   :  { %v7284_v34 = vpop.f32.mrb[32].mxu1 }
 0x2e6   :  { %v7285_v24 = vpop.f32.mrb[33].mxu1 }
 0x2e7   :  { %v7286_v18 = vadd.f32 %v7285_v24, %v7284_v34  ;;  %v7287_v15 = vpop.f32.mrb[34].mxu1  ;;  %v10914_v34 = vld [vmem:[%s13446_s3 + $0x34] ss:$12 sps:$4 sm:$0xff]   ;;  %v10920_v24 = vld [vmem:[%s13446_s3 + $0x38] ss:$12 sps:$4 sm:$0xff]  }
 0x2e8   :  { %v7288_v25 = vpop.f32.mrb[35].mxu1 }
 0x2e9   :  { %v7289_v16 = vadd.f32 %v7288_v25, %v7287_v15  ;;  %v10933_v15 = vld [vmem:[%s13446_s3 + $0x4c] ss:$12 sps:$4 sm:$0xff]   ;;  %v10939_v25 = vld [vmem:[%s13446_s3 + $0x50] ss:$12 sps:$4 sm:$0xff]  }
 0x2ed   :  { %v7306_v26 = vpop.f32.mrb[32].mxu0 }
 0x2ee   :  { %v7307_v36 = vpop.f32.mrb[33].mxu0 }
 0x2ef   :  { %v7308_v13 = vadd.f32 %v7307_v36, %v7306_v26  ;;  %v7309_v37 = vpop.f32.mrb[34].mxu0  ;;  %v10952_v26 = vld [vmem:[%s13446_s3 + $0x64] ss:$12 sps:$4 sm:$0xff]   ;;  %v10958_v36 = vld [vmem:[%s13446_s3 + $0x68] ss:$12 sps:$4 sm:$0xff]  }
 0x2f0   :  { %v7310_v39 = vpop.f32.mrb[35].mxu0 }
 0x2f1   :  { %v10868_v38 = vadd.f32 %v7308_v13, %v7280_v11  ;;  %v7311_v28 = vadd.f32 %v7310_v39, %v7309_v37  ;;  %v10889_v11 = vld [vmem:[%s13446_s3 + $0x8] ss:$12 sps:$4 sm:$0xff]   ;;  %v10965_v13 = vld [vmem:[%s13446_s3 + $0x60] ss:$12 sps:$4 sm:$0xff]  }
 0x2f2   :  { %4381 = vmatpush1.bf16.msra.mxu1 %v10889_v11  ;;  %v10971_v37 = vld [vmem:[%s13446_s3 + $0x7c] ss:$12 sps:$4 sm:$0xff]   ;;  %v10977_v39 = vld [vmem:[%s13446_s3 + $0x80] ss:$12 sps:$4 sm:$0xff]  }
 0x2f3   :  { %v10870_v31 = vadd.f32 %v7311_v28, %v7283_v20  ;;  %4382 = vmatprep.subr.bf16.mxu1 %v13523_v23  ;;  %v10908_v20 = vld [vmem:[%s13446_s3 + $0x18] ss:$12 sps:$4 sm:$0xff]  }
 0x2f4   :  { %4340 = vmatpush1.bf16.msra.mxu0 %v10908_v20  ;;  %v10984_v28 = vld [vmem:[%s13446_s3 + $0x78] ss:$12 sps:$4 sm:$0xff]  }
 0x2f5   :  { %v7312_v12 = vpop.f32.mrb[36].mxu0  ;;  %4341 = vmatprep.subr.bf16.mxu0 %v10914_v34 }
 0x2f6   :  { %v7313_v19 = vpop.f32.mrb[37].mxu0  ;;  %4383 = vmatpush1.bf16.msra.mxu1 %v10901_v22 }
 0x2f7   :  { %v7314_v40 = vadd.f32 %v7313_v19, %v7312_v12  ;;  %v7315_v35 = vpop.f32.mrb[38].mxu0  ;;  %4384 = vmatprep.subr.bf16.mxu1 %v13523_v23  ;;  %v10990_v12 = vld [vmem:[%s13446_s3 + $0x94] ss:$12 sps:$4 sm:$0xff]   ;;  %v10996_v19 = vld [vmem:[%s13446_s3 + $0x98] ss:$12 sps:$4 sm:$0xff]  }
 0x2f8   :  { %v7316_v27 = vpop.f32.mrb[39].mxu0 }
 0x2f9   :  { %v10872_v21 = vadd.f32 %v7314_v40, %v7286_v18  ;;  %v7317_v30 = vadd.f32 %v7316_v27, %v7315_v35  ;;  %v10927_v18 = vld [vmem:[%s13446_s3 + $0x30] ss:$12 sps:$4 sm:$0xff]  }
 0x2fa   :  { %4385 = vmatpush1.bf16.msra.mxu1 %v10920_v24  ;;  %4342 = vmatpush1.bf16.msra.mxu0 %v10927_v18  ;;  %v11003_v40 = vld [vmem:[%s13446_s3 + $0x90] ss:$12 sps:$4 sm:$0xff]  }
 0x2fb   :  { %v10874_v32 = vadd.f32 %v7317_v30, %v7289_v16  ;;  %4386 = vmatprep.subr.bf16.mxu1 %v13523_v23  ;;  %v10946_v16 = vld [vmem:[%s13446_s3 + $0x48] ss:$12 sps:$4 sm:$0xff]   ;;  %4343 = vmatprep.subr.bf16.mxu0 %v10933_v15 }
 0x2fe   :  { %4387 = vmatpush1.bf16.msra.mxu1 %v10939_v25  ;;  %4344 = vmatpush1.bf16.msra.mxu0 %v10946_v16 }
 0x2ff   :  { %4388 = vmatprep.subr.bf16.mxu1 %v13523_v23  ;;  %4345 = vmatprep.subr.bf16.mxu0 %v10952_v26 }
 0x302   :  { %4389 = vmatpush1.bf16.msra.mxu1 %v10958_v36  ;;  %4346 = vmatpush1.bf16.msra.mxu0 %v10965_v13 }
 0x303   :  { %4390 = vmatprep.subr.bf16.mxu1 %v13523_v23  ;;  %4347 = vmatprep.subr.bf16.mxu0 %v10971_v37 }
 0x306   :  { %4391 = vmatpush1.bf16.msra.mxu1 %v10977_v39  ;;  %4348 = vmatpush1.bf16.msra.mxu0 %v10984_v28 }
 0x307   :  { %4392 = vmatprep.subr.bf16.mxu1 %v13523_v23  ;;  %4349 = vmatprep.subr.bf16.mxu0 %v10990_v12 }
 0x30a   :  { %4393 = vmatpush1.bf16.msra.mxu1 %v10996_v19  ;;  %4350 = vmatpush1.bf16.msra.mxu0 %v11003_v40 }
 0x30b   :  { %4394 = vmatprep.subr.bf16.mxu1 %v13523_v23 }
 0x338   :  { %v7362_v35 = vpop.f32.mrb[40].mxu0 }
 0x339   :  { %v7363_v27 = vpop.f32.mrb[41].mxu0 }
 0x33a   :  { %v7364_v30 = vadd.f32 %v7363_v27, %v7362_v35  ;;  %v7365_v9 = vpop.f32.mrb[42].mxu0 }
 0x33b   :  { %v7366_v33 = vpop.f32.mrb[43].mxu0  ;;  %v7334_v17 = vpop.f32.mrb[36].mxu1 }
 0x33c   :  { %v7367_v0 = vadd.f32 %v7366_v33, %v7365_v9  ;;  %v7335_v48 = vpop.f32.mrb[37].mxu1 }
 0x33d   :  { %v7336_v8 = vadd.f32 %v7335_v48, %v7334_v17  ;;  %v7337_v56 = vpop.f32.mrb[38].mxu1 }
 0x33e   :  { %v7338_v63 = vpop.f32.mrb[39].mxu1 }
 0x33f   :  { %v3966_v47 = vadd.f32 %v7336_v8, %v10868_v38  ;;  %v7339_v7 = vadd.f32 %v7338_v63, %v7337_v56 }
 0x340   :  { %v7368_v55 = vpop.f32.mrb[44].mxu0 }
 0x341   :  { %v7369_v62 = vpop.f32.mrb[45].mxu0  ;;  %v3969_v46 = vadd.f32 %v7339_v7, %v10870_v31  ;;  %v4015_v61 = vadd.f32 %v7364_v30, %v3966_v47  ;;  %v11016_v47 = vld [vmem:[%s13446_s3 + $0xac] ss:$12 sps:$4 sm:$0xff]  }
 0x342   :  { %v7370_v6 = vadd.f32 %v7369_v62, %v7368_v55  ;;  %v7371_v54 = vpop.f32.mrb[46].mxu0  ;;  %4351 = vmatprep.subr.bf16.mxu0 %v11016_v47 }
 0x343   :  { %v7372_v45 = vpop.f32.mrb[47].mxu0  ;;  %v7340_v35 = vpop.f32.mrb[40].mxu1  ;;  %v4018_v5 = vadd.f32 %v7367_v0, %v3969_v46  ;;  %v11021_v46 = vld [vmem:[%s13446_s3 + $0xa8] ss:$12 sps:$4 sm:$0xff]  }
 0x344   :  { %v7373_v27 = vadd.f32 %v7372_v45, %v7371_v54  ;;  %v7341_v53 = vpop.f32.mrb[41].mxu1  ;;  %4352 = vmatpush1.bf16.msra.mxu0 %v11021_v46 }
 0x345   :  { %v7342_v9 = vadd.f32 %v7341_v53, %v7340_v35  ;;  %v7343_v33 = vpop.f32.mrb[42].mxu1  ;;  %v11026_v53 = vld [vmem:[%s13446_s3 + $0xb0] ss:$12 sps:$4 sm:$0xff]  }
 0x346   :  { %v7344_v48 = vpop.f32.mrb[43].mxu1  ;;  %4395 = vmatpush1.bf16.msra.mxu1 %v11026_v53 }
 0x347   :  { %v3974_v17 = vadd.f32 %v7342_v9, %v10872_v21  ;;  %v7345_v60 = vadd.f32 %v7344_v48, %v7343_v33  ;;  %4396 = vmatprep.subr.bf16.mxu1 %v13523_v23  ;;  %v7847_v33 = vld [vmem:[%s13446_s3 + $0xc0] ss:$12 sps:$4 sm:$0x3f]  }
 0x349   :  { %v3977_v56 = vadd.f32 %v7345_v60, %v10874_v32  ;;  %v4023_v63 = vadd.f32 %v7370_v6, %v3974_v17 }
 0x34b   :  { %v4026_v8 = vadd.f32 %v7373_v27, %v3977_v56  ;;  %v11035_v27 = vld [vmem:[%s13446_s3 + $0xc4] ss:$12 sps:$4 sm:$0x3f]   ;;  %v11050_v56 = vsel %vm4327_vm3, %v7847_v33, 0 }
 0x34c   :  { %7212 = vmatprep.subr.msk.bf16.mxu0 %vm4327_vm3, %v11035_v27 }
 0x34d   :  { %4354 = vmatpush1.bf16.msra.mxu0 %v11050_v56 }
 0x34e   :  { %4423 = vmatprep.subr.bf16.mxu0 %v10879_v29 }
 0x366   :  { %v7511_v38 = vpop.f32.mrb[44].mxu1 }
 0x367   :  { %v4072_v55 = vadd.f32 %v7511_v38, %v4023_v63  ;;  %v4063_v45 = vpop.f32.mrb[45].mxu1 }
 0x368   :  { %v4064_v54 = vadd.f32 %v4063_v45, %v4015_v61  ;;  %v7512_v60 = vpop.f32.mrb[46].mxu1 }
 0x369   :  { %v4080_v62 = vmul.f32 0.00012728233, %v4072_v55  ;;  %v4075_v0 = vadd.f32 %v7512_v60, %v4026_v8  ;;  %v4066_v6 = vpop.f32.mrb[47].mxu1 }
 0x36a   :  { %v4078_v7 = vmul.f32 0.00012728233, %v4064_v54  ;;  %v4067_v31 = vadd.f32 %v4066_v6, %v4018_v5  ;;  %v7848_v5 = vld [vmem:[%s13446_s3 + $0xc8] ss:$12 sps:$4 sm:$0x3f]   ;;  %s8129_s3 = smov 28  }
 0x36b   :  { %v7183_v21 = vadd.f32 -0.42421293, %v4080_v62  ;;  %v4081_v32 = vmul.f32 0.00012728233, %v4075_v0  ;;  %v11057_v55 = vsel %vm4327_vm3, %v7848_v5, 0 }
 0x36c   :  { %v7181_v30 = vadd.f32 -0.42421293, %v4078_v7  ;;  %v4079_v35 = vmul.f32 0.00012728233, %v4067_v31  ;;  %4397 = vmatpush1.bf16.msra.mxu1 %v11057_v55 }
 0x36d   :  { %v7184_v61 = vadd.f32 -0.42421293, %v4081_v32  ;;  %4466 = vmatprep.subr.bf16.mxu1 %v13523_v23 }
 0x36e   :  { %v7182_v9 = vadd.f32 -0.42421293, %v4079_v35 }
 0x36f   :  { %v11040_v48 = vpack.c.bf16 %v7184_v61, %v7183_v21 }
 0x370   :  { %v11047_v17 = vpack.c.bf16 %v7182_v9, %v7181_v30 }
 0x371   :  { %v4128_v63 = vrot.slane %v11040_v48, 7  ;;  %v4144_v8 = vshrl.u32 %v11040_v48, 16  ;;  %v4147_v38 = vshll.u32 %v11040_v48, 16 }
 0x372   :  { %v4127_v45 = vrot.slane %v11047_v17, 7  ;;  %v4133_v54 = vshrl.u32 %v11047_v17, 16  ;;  %v4135_v60 = vshll.u32 %v11047_v17, 16 }
 0x373   :  { %v4146_v62 = vrot.slane %v4144_v8, 7  ;;  %v4519_v0 = vrot.slane %v4147_v38, 1 }
 0x374   :  { %v4129_v6 = vsel %vm4126_vm4, %v4127_v45, %v4128_v63  ;;  %v4142_v7 = vrot.slane %v4133_v54, 7  ;;  %v4137_v31 = vrot.slane %v4135_v60, 1  ;;  %v4513_v21 = vrot.slane %v4133_v54, 1 }
 0x375   :  { %4130 = vrot.lane.b32.xlu0 %v4129_v6, %s8129_s3  ;;  %v4149_v32 = vor.u32 %v4147_v38, %v4146_v62  ;;  %v4514_v30 = vrot.slane %v4135_v60, 2  ;;  %v4520_v35 = vsel %vm4518_vm5, %v4133_v54, %v4519_v0  ;;  %v4521_v61 = vor.u32 %v4519_v0, %v4144_v8 }
 0x376   :  { %v4138_v9 = vor.u32 %v4137_v31, %v4133_v54  ;;  %v4153_v63 = vrot.slane %v11047_v17, 1  ;;  %v4529_v31 = vrot.slane %v11040_v48, 1 }
 0x377   :  { %v4150_v33 = vsel %vm4141_vm6, %v4142_v7, %v4149_v32  ;;  %v4515_v5 = vor.u32 %v4514_v30, %v4513_v21  ;;  %v4526_v7 = vrot.slane %v11047_v17, 2 }
 0x378   :  { %4151 = vrot.lane.b32.xlu1 %v4150_v33, %s8130_s27 }
 0x379   :  { %4139 = vrot.lane.b32.xlu0 %v4138_v9, %s8131_s0 }
 0x37c   :  { %4154 = vrot.lane.b32.xlu1 %v4153_v63, %s8132_s28 }
 0x3e7   :  { %v4131_v45 = vpop.permute.xlu0 %4130 }
 0x3e8   :  { %v4158_v8 = vsel %vm4156_vm7, %v11047_v17, %v4131_v45 }
 0x3ea   :  { %v4152_v38 = vpop.permute.xlu1 %4151 }
 0x3eb   :  { %v4140_v54 = vpop.permute.xlu0 %4139 }
 0x3ec   :  { %v4161_v60 = vsel %vm4159_vm8, %v4158_v8, %v4140_v54 }
 0x3ed   :  { %v4164_v62 = vsel %vm4162_vm9, %v4161_v60, %v4152_v38 }
 0x3ee   :  { %v4155_v0 = vpop.permute.xlu1 %4154 }
 0x3ef   :  { %7213 = vmatprep.mubr.msk.bf16.mxu0 %vm4324_vm10, %v4155_v0  ;;  %7214 = vmatprep.mubr.msk.bf16.mxu1 %vm4324_vm10, %v4155_v0  ;;  %v4167_v6 = vsel %vm4165_vm11, %v4164_v62, %v4155_v0 }
 0x3f0   :  { %4172 = vrot.lane.b32.xlu0 %v4155_v0, %s8133_s29  ;;  %4177 = vrot.lane.b32.xlu1 %v4167_v6, %s8134_s6 }
 0x3f1   :  { %4370 = vmatmul.mubr.bf16.vlgmr.msra.gmra.mrb[48].mxu0 %v4167_v6  ;;  %4413 = vmatmul.mubr.bf16.vlgmr.msra.gmra.mrb[48].mxu1 %v4167_v6 }
 0x3f2   :  { %4424 = vmatpush1.bf16.msra.mxu0 %v10884_v10  ;;  %4467 = vmatpush1.bf16.msra.mxu1 %v10889_v11 }
 0x3f3   :  { %4425 = vmatprep.subr.bf16.mxu0 %v10894_v14  ;;  %4468 = vmatprep.subr.bf16.mxu1 %v13523_v23 }
 0x3f4   :  { %4170 = vrot.lane.b32.xlu0 %v4167_v6, %s8133_s29  ;;  %4516 = vrot.lane.b32.xlu1 %v4515_v5, %s8129_s3 }
 0x3f6   :  { %4426 = vmatpush1.bf16.msra.mxu0 %v10908_v20  ;;  %4469 = vmatpush1.bf16.msra.mxu1 %v10901_v22 }
 0x3f7   :  { %4427 = vmatprep.subr.bf16.mxu0 %v10914_v34  ;;  %4470 = vmatprep.subr.bf16.mxu1 %v13523_v23 }
 0x3f8   :  { %4522 = vrot.lane.b32.xlu0 %v4520_v35, %s8131_s0  ;;  %4524 = vrot.lane.b32.xlu1 %v4521_v61, %s8131_s0 }
 0x3fa   :  { %4428 = vmatpush1.bf16.msra.mxu0 %v10927_v18  ;;  %4471 = vmatpush1.bf16.msra.mxu1 %v10920_v24 }
 0x3fb   :  { %4429 = vmatprep.subr.bf16.mxu0 %v10933_v15  ;;  %4472 = vmatprep.subr.bf16.mxu1 %v13523_v23 }
 0x3fc   :  { %4527 = vrot.lane.b32.xlu0 %v4526_v7, %s8130_s27  ;;  %4530 = vrot.lane.b32.xlu1 %v4529_v31, %s8132_s28 }
 0x3fe   :  { %4430 = vmatpush1.bf16.msra.mxu0 %v10946_v16  ;;  %4473 = vmatpush1.bf16.msra.mxu1 %v10939_v25 }
 0x3ff   :  { %4431 = vmatprep.subr.bf16.mxu0 %v10952_v26  ;;  %4474 = vmatprep.subr.bf16.mxu1 %v13523_v23 }
 0x402   :  { %4432 = vmatpush1.bf16.msra.mxu0 %v10965_v13  ;;  %4475 = vmatpush1.bf16.msra.mxu1 %v10958_v36 }
 0x403   :  { %4433 = vmatprep.subr.bf16.mxu0 %v10971_v37  ;;  %4476 = vmatprep.subr.bf16.mxu1 %v13523_v23 }
 0x406   :  { %4434 = vmatpush1.bf16.msra.mxu0 %v10984_v28  ;;  %4477 = vmatpush1.bf16.msra.mxu1 %v10977_v39 }
 0x407   :  { %4435 = vmatprep.subr.bf16.mxu0 %v10990_v12  ;;  %4478 = vmatprep.subr.bf16.mxu1 %v13523_v23 }
 0x40a   :  { %4436 = vmatpush1.bf16.msra.mxu0 %v11003_v40  ;;  %4479 = vmatpush1.bf16.msra.mxu1 %v10996_v19 }
 0x40b   :  { %4437 = vmatprep.subr.bf16.mxu0 %v11016_v47  ;;  %4480 = vmatprep.subr.bf16.mxu1 %v13523_v23 }
 0x40e   :  { %4438 = vmatpush1.bf16.msra.mxu0 %v11021_v46  ;;  %4481 = vmatpush1.bf16.msra.mxu1 %v11026_v53 }
 0x40f   :  { %7215 = vmatprep.subr.msk.bf16.mxu0 %vm4327_vm3, %v11035_v27  ;;  %4482 = vmatprep.subr.bf16.mxu1 %v13523_v23 }
 0x412   :  { %4440 = vmatpush1.bf16.msra.mxu0 %v11050_v56  ;;  %4483 = vmatpush1.bf16.msra.mxu1 %v11057_v55 }
 0x413   :  { %4573 = vmatprep.subr.bf16.mxu0 %v10879_v29  ;;  %4616 = vmatprep.subr.bf16.mxu1 %v13523_v23 }
 0x462   :  { %v4173_v21 = vpop.permute.xlu0 %4172  ;;  %v4178_v32 = vpop.permute.xlu1 %4177 }
 0x463   :  { %v4182_v30 = vsel %vm4179_vm12, %v4173_v21, %v4178_v32 }
 0x464   :  { %7216 = vmatprep.mubr.msk.bf16.mxu0 %vm4324_vm10, %v4182_v30  ;;  %7217 = vmatprep.mubr.msk.bf16.mxu1 %vm4324_vm10, %v4182_v30 }
 0x466   :  { %v4171_v35 = vpop.permute.xlu0 %4170  ;;  %v4517_v61 = vpop.permute.xlu1 %4516 }
 0x467   :  { %v4175_v9 = vsel %vm4174_vm13, %v4171_v35, %v4173_v21  ;;  %v4533_v63 = vsel %vm4156_vm7, %v11047_v17, %v4517_v61  ;;  %v4534_v45 = vsel %vm4156_vm7, %v11040_v48, %v4517_v61 }
 0x468   :  { %4456 = vmatmul.mubr.bf16.vlgmr.msra.gmra.mrb[52].mxu0 %v4175_v9  ;;  %4499 = vmatmul.mubr.bf16.vlgmr.msra.gmra.mrb[52].mxu1 %v4175_v9 }
 0x469   :  { %4574 = vmatpush1.bf16.msra.mxu0 %v10884_v10  ;;  %4617 = vmatpush1.bf16.msra.mxu1 %v10889_v11 }
 0x46a   :  { %v4523_v33 = vpop.permute.xlu0 %4522  ;;  %v4525_v5 = vpop.permute.xlu1 %4524  ;;  %4575 = vmatprep.subr.bf16.mxu0 %v10894_v14  ;;  %4618 = vmatprep.subr.bf16.mxu1 %v13523_v23 }
 0x46b   :  { %v4536_v38 = vsel %vm4159_vm8, %v4533_v63, %v4523_v33  ;;  %v4538_v60 = vsel %vm4159_vm8, %v4534_v45, %v4525_v5 }
 0x46d   :  { %4576 = vmatpush1.bf16.msra.mxu0 %v10908_v20  ;;  %4619 = vmatpush1.bf16.msra.mxu1 %v10901_v22 }
 0x46e   :  { %v4528_v8 = vpop.permute.xlu0 %4527  ;;  %v4531_v54 = vpop.permute.xlu1 %4530  ;;  %4577 = vmatprep.subr.bf16.mxu0 %v10914_v34  ;;  %4620 = vmatprep.subr.bf16.mxu1 %v13523_v23 }
 0x46f   :  { %v4540_v62 = vsel %vm4162_vm9, %v4536_v38, %v4528_v8  ;;  %v4567_v17 = vrot.slane %v4531_v54, 7  ;;  %4549 = vrot.lane.b32.xlu0 %v4531_v54, %s8133_s29  ;;  %v4541_v0 = vsel %vm4162_vm9, %v4538_v60, %v4528_v8 }
 0x470   :  { %v4543_v6 = vsel %vm4165_vm11, %v4540_v62, %v4531_v54  ;;  %v4544_v48 = vsel %vm4165_vm11, %v4541_v0, %v4531_v54 }
 0x471   :  { %4578 = vmatpush1.bf16.msra.mxu0 %v10927_v18  ;;  %4621 = vmatpush1.bf16.msra.mxu1 %v10920_v24  ;;  %v4564_v7 = vrot.slane %v4543_v6, 7  ;;  %v4565_v31 = vrot.slane %v4544_v48, 7 }
 0x472   :  { %4555 = vrot.lane.b32.xlu1 %v4543_v6, %s8134_s6  ;;  %7219 = vmatprep.mubr.msk.bf16.mxu0 %vm4324_vm10, %v4567_v17 }
 0x473   :  { %7220 = vmatprep.mubr.msk.bf16.mxu1 %vm4324_vm10, %v4567_v17  ;;  %4579 = vmatprep.subr.bf16.mxu0 %v10933_v15  ;;  %v4566_v21 = vsel %vm4126_vm4, %v4564_v7, %v4565_v31  ;;  %v4767_v7 = vlaneseq }
 0x474   :  { %4622 = vmatprep.subr.bf16.mxu1 %v13523_v23  ;;  %4557 = vrot.lane.b32.xlu0 %v4544_v48, %s8134_s6 }
 0x475   :  { %4580 = vmatpush1.bf16.msra.mxu0 %v10946_v16  ;;  %4623 = vmatpush1.bf16.msra.mxu1 %v10939_v25  ;;  %v11246_v31 = vshrl.u32 %v4767_v7, 7 }
 0x476   :  { %4547 = vrot.lane.b32.xlu1 %v4543_v6, %s8133_s29  ;;  %4581 = vmatprep.subr.bf16.mxu0 %v10952_v26 }
 0x477   :  { %4624 = vmatprep.subr.bf16.mxu1 %v13523_v23 }
 0x478   :  { %4551 = vrot.lane.b32.xlu0 %v4544_v48, %s8133_s29 }
 0x479   :  { %4582 = vmatpush1.bf16.msra.mxu0 %v10965_v13  ;;  %4625 = vmatpush1.bf16.msra.mxu1 %v10958_v36 }
 0x47a   :  { %4583 = vmatprep.subr.bf16.mxu0 %v10971_v37  ;;  %4626 = vmatprep.subr.bf16.mxu1 %v13523_v23 }
 0x47d   :  { %4584 = vmatpush1.bf16.msra.mxu0 %v10984_v28  ;;  %4627 = vmatpush1.bf16.msra.mxu1 %v10977_v39 }
 0x47e   :  { %4585 = vmatprep.subr.bf16.mxu0 %v10990_v12  ;;  %4628 = vmatprep.subr.bf16.mxu1 %v13523_v23 }
 0x481   :  { %4586 = vmatpush1.bf16.msra.mxu0 %v11003_v40  ;;  %4629 = vmatpush1.bf16.msra.mxu1 %v10996_v19 }
 0x482   :  { %4587 = vmatprep.subr.bf16.mxu0 %v11016_v47  ;;  %4630 = vmatprep.subr.bf16.mxu1 %v13523_v23 }
 0x485   :  { %4588 = vmatpush1.bf16.msra.mxu0 %v11021_v46  ;;  %4631 = vmatpush1.bf16.msra.mxu1 %v11026_v53 }
 0x486   :  { %7218 = vmatprep.subr.msk.bf16.mxu0 %vm4327_vm3, %v11035_v27  ;;  %4632 = vmatprep.subr.bf16.mxu1 %v13523_v23 }
 0x489   :  { %4590 = vmatpush1.bf16.msra.mxu0 %v11050_v56  ;;  %4633 = vmatpush1.bf16.msra.mxu1 %v11057_v55 }
 0x48a   :  { %4669 = vmatprep.subr.bf16.mxu0 %v10879_v29  ;;  %4712 = vmatprep.subr.bf16.mxu1 %v13523_v23 }
 0x48c   :  { %4606 = vmatmul.mubr.bf16.vlgmr.msra.gmra.mrb[56].mxu0 %v4566_v21  ;;  %4649 = vmatmul.mubr.bf16.vlgmr.msra.gmra.mrb[56].mxu1 %v4566_v21  ;;  %v13460_v21 = vsub.s32 0, %v11246_v31 }
 0x48d   :  { %4670 = vmatpush1.bf16.msra.mxu0 %v10884_v10  ;;  %4713 = vmatpush1.bf16.msra.mxu1 %v10889_v11 }
 0x48e   :  { %4671 = vmatprep.subr.bf16.mxu0 %v10894_v14  ;;  %4714 = vmatprep.subr.bf16.mxu1 %v13523_v23 }
 0x491   :  { %4672 = vmatpush1.bf16.msra.mxu0 %v10908_v20  ;;  %4715 = vmatpush1.bf16.msra.mxu1 %v10901_v22 }
 0x492   :  { %4673 = vmatprep.subr.bf16.mxu0 %v10914_v34  ;;  %4716 = vmatprep.subr.bf16.mxu1 %v13523_v23 }
 0x495   :  { %4674 = vmatpush1.bf16.msra.mxu0 %v10927_v18  ;;  %4717 = vmatpush1.bf16.msra.mxu1 %v10920_v24 }
 0x496   :  { %4675 = vmatprep.subr.bf16.mxu0 %v10933_v15  ;;  %4718 = vmatprep.subr.bf16.mxu1 %v13523_v23 }
 0x499   :  { %4676 = vmatpush1.bf16.msra.mxu0 %v10946_v16  ;;  %4719 = vmatpush1.bf16.msra.mxu1 %v10939_v25 }
 0x49a   :  { %4677 = vmatprep.subr.bf16.mxu0 %v10952_v26  ;;  %4720 = vmatprep.subr.bf16.mxu1 %v13523_v23 }
 0x49d   :  { %4678 = vmatpush1.bf16.msra.mxu0 %v10965_v13  ;;  %4721 = vmatpush1.bf16.msra.mxu1 %v10958_v36 }
 0x49e   :  { %4679 = vmatprep.subr.bf16.mxu0 %v10971_v37  ;;  %4722 = vmatprep.subr.bf16.mxu1 %v13523_v23 }
 0x4a1   :  { %4680 = vmatpush1.bf16.msra.mxu0 %v10984_v28  ;;  %4723 = vmatpush1.bf16.msra.mxu1 %v10977_v39 }
 0x4a2   :  { %4681 = vmatprep.subr.bf16.mxu0 %v10990_v12  ;;  %4724 = vmatprep.subr.bf16.mxu1 %v13523_v23 }
 0x4a5   :  { %4682 = vmatpush1.bf16.msra.mxu0 %v11003_v40  ;;  %4725 = vmatpush1.bf16.msra.mxu1 %v10996_v19 }
 0x4a6   :  { %4683 = vmatprep.subr.bf16.mxu0 %v11016_v47  ;;  %4726 = vmatprep.subr.bf16.mxu1 %v13523_v23 }
 0x4a9   :  { %4684 = vmatpush1.bf16.msra.mxu0 %v11021_v46  ;;  %4727 = vmatpush1.bf16.msra.mxu1 %v11026_v53 }
 0x4aa   :  { %7221 = vmatprep.subr.msk.bf16.mxu0 %vm4327_vm3, %v11035_v27  ;;  %4728 = vmatprep.subr.bf16.mxu1 %v13523_v23 }
 0x4ad   :  { %4686 = vmatpush1.bf16.msra.mxu0 %v11050_v56  ;;  %4729 = vmatpush1.bf16.msra.mxu1 %v11057_v55 }
 0x4c4   :  { %v11219_v29 = vpop.f32.mrb[48].mxu0  ;;  %v11221_v10 = vpop.f32.mrb[48].mxu1 }
 0x4c5   :  { %v11223_v11 = vpop.f32.mrb[49].mxu0  ;;  %v4416_v14 = vpop.f32.mrb[49].mxu1 }
 0x4c6   :  { %v11225_v22 = vpop.f32.mrb[50].mxu0  ;;  %v11227_v20 = vpop.f32.mrb[50].mxu1 }
 0x4c7   :  { %v11229_v34 = vpop.f32.mrb[51].mxu0  ;;  %v4419_v24 = vpop.f32.mrb[51].mxu1 }
 0x4e1   :  { %v4550_v18 = vpop.permute.xlu0 %4549 }
 0x4e4   :  { %v4556_v15 = vpop.permute.xlu1 %4555 }
 0x4e5   :  { %v4561_v25 = vsel %vm4179_vm12, %v4550_v18, %v4556_v15 }
 0x4e6   :  { %v4558_v16 = vpop.permute.xlu0 %4557  ;;  %v4662_v36 = vrot.slane %v4561_v25, 7 }
 0x4e7   :  { %v4563_v26 = vsel %vm4179_vm12, %v4550_v18, %v4558_v16 }
 0x4e8   :  { %v4663_v13 = vrot.slane %v4563_v26, 7  ;;  %v4548_v37 = vpop.permute.xlu1 %4547 }
 0x4e9   :  { %v4553_v39 = vsel %vm4174_vm13, %v4548_v37, %v4550_v18 }
 0x4ea   :  { %v4552_v28 = vpop.permute.xlu0 %4551  ;;  %v4664_v12 = vsel %vm4126_vm4, %v4662_v36, %v4663_v13  ;;  %v4659_v40 = vrot.slane %v4553_v39, 7 }
 0x4eb   :  { %v4554_v19 = vsel %vm4174_vm13, %v4552_v28, %v4550_v18  ;;  %7222 = vmatprep.mubr.msk.bf16.mxu0 %vm4324_vm10, %v4664_v12  ;;  %7223 = vmatprep.mubr.msk.bf16.mxu1 %vm4324_vm10, %v4664_v12 }
 0x4ec   :  { %v4660_v47 = vrot.slane %v4554_v19, 7 }
 0x4ee   :  { %v4661_v46 = vsel %vm4126_vm4, %v4659_v40, %v4660_v47 }
 0x4ef   :  { %4702 = vmatmul.mubr.bf16.vlgmr.msra.gmra.mrb[60].mxu0 %v4661_v46  ;;  %4745 = vmatmul.mubr.bf16.vlgmr.msra.gmra.mrb[60].mxu1 %v4661_v46 }
 0x4f0   :  { %4848 = vmatprep.mubr.bf16.mxu0 %v13523_v23 }
 0x53b   :  { %v4457_v53 = vpop.f32.mrb[52].mxu0  ;;  %v4500_v27 = vpop.f32.mrb[52].mxu1 }
 0x53c   :  { %v4507_v56 = vmax.f32 %v11219_v29, %v4457_v53  ;;  %v4509_v55 = vmax.f32 %v11221_v10, %v4500_v27  ;;  %v4459_v32 = vpop.f32.mrb[53].mxu0  ;;  %v4502_v30 = vpop.f32.mrb[53].mxu1  ;;  %v4777_v29 = vsub.s32 2, %v11246_v31  ;;  %v4765_v10 = vld [vmem:[%s13447_s4] sm:$0x7] }
 0x53d   :  { %v4508_v35 = vmax.f32 %v11223_v11, %v4459_v32  ;;  %v4461_v61 = vpop.f32.mrb[54].mxu0  ;;  %v4503_v9 = vpop.f32.mrb[54].mxu1  ;;  %v13459_v11 = vsub.s32 1, %v11246_v31 }
 0x53e   :  { %v4510_v33 = vmax.f32 %v11225_v22, %v4461_v61  ;;  %v4512_v5 = vmax.f32 %v11227_v20, %v4503_v9  ;;  %v4463_v63 = vpop.f32.mrb[55].mxu0  ;;  %v4505_v45 = vpop.f32.mrb[55].mxu1  ;;  %v4778_v18 = vrot.slane %v4765_v10, %v4777_v29 }
 0x53f   :  { %v4511_v38 = vmax.f32 %v11229_v34, %v4463_v63  ;;  %v4770_v34 = vrot.slane %v4765_v10, %v13460_v21  ;;  %v4774_v26 = vrot.slane %v4765_v10, %v13459_v11 }
 0x55f   :  { %v4607_v8 = vpop.f32.mrb[56].mxu0  ;;  %v4650_v54 = vpop.f32.mrb[56].mxu1 }
 0x560   :  { %v4609_v60 = vpop.f32.mrb[57].mxu0  ;;  %v4652_v62 = vpop.f32.mrb[57].mxu1 }
 0x561   :  { %v4611_v17 = vpop.f32.mrb[58].mxu0  ;;  %v4653_v0 = vpop.f32.mrb[58].mxu1 }
 0x562   :  { %v4613_v6 = vpop.f32.mrb[59].mxu0  ;;  %v4655_v48 = vpop.f32.mrb[59].mxu1 }
 0x5c2   :  { %v4703_v14 = vpop.f32.mrb[60].mxu0  ;;  %v4746_v22 = vpop.f32.mrb[60].mxu1 }
 0x5c3   :  { %v4753_v20 = vmax.f32 %v4607_v8, %v4703_v14  ;;  %v4755_v24 = vmax.f32 %v4650_v54, %v4746_v22  ;;  %v4705_v15 = vpop.f32.mrb[61].mxu0  ;;  %v4748_v25 = vpop.f32.mrb[61].mxu1 }
 0x5c4   :  { %v4754_v16 = vmax.f32 %v4609_v60, %v4705_v15  ;;  %v4707_v36 = vpop.f32.mrb[62].mxu0  ;;  %v4749_v13 = vpop.f32.mrb[62].mxu1 }
 0x5c5   :  { %v4759_v37 = vmax.f32 %v4507_v56, %v4753_v20  ;;  %v4761_v39 = vmax.f32 %v4509_v55, %v4755_v24  ;;  %v4756_v28 = vmax.f32 %v4611_v17, %v4707_v36  ;;  %v4758_v12 = vmax.f32 %v4653_v0, %v4749_v13  ;;  %v4709_v19 = vpop.f32.mrb[63].mxu0  ;;  %v4751_v40 = vpop.f32.mrb[63].mxu1 }
 0x5c6   :  { %v4760_v47 = vmax.f32 %v4508_v35, %v4754_v16  ;;  %v4757_v46 = vmax.f32 %v4613_v6, %v4709_v19 }
 0x5c7   :  { %v4782_v53 = vadd.f32 %v4770_v34, %v4759_v37  ;;  %v4784_v27 = vadd.f32 %v4778_v18, %v4761_v39  ;;  %v4762_v32 = vmax.f32 %v4510_v33, %v4756_v28  ;;  %v4764_v30 = vmax.f32 %v4512_v5, %v4758_v12  ;;  %v7849_v33 = vld [vmem:[%s13448_s5] sm:$0x3f]  }
 0x5c8   :  { %v4783_v61 = vadd.f32 %v4774_v26, %v4760_v47  ;;  %v4763_v9 = vmax.f32 %v4511_v38, %v4757_v46  ;;  %v13458_v5 = vmov 0.0  }
 0x5c9   :  { %v4785_v63 = vadd.f32 %v4770_v34, %v4762_v32  ;;  %v4787_v45 = vadd.f32 %v4778_v18, %v4764_v30  ;;  %v4788_v54 = vmax.f32 %v4782_v53, 0.0  ;;  %v4790_v60 = vmax.f32 %v4784_v27, 0.0 }
 0x5ca   :  { %v4786_v8 = vadd.f32 %v4774_v26, %v4763_v9  ;;  %v4789_v55 = vmax.f32 %v4783_v61, 0.0 }
 0x5cb   :  { %v4791_v62 = vmax.f32 %v4785_v63, 0.0  ;;  %v4793_v56 = vmax.f32 %v4787_v45, 0.0 }
 0x5cc   :  { %v4792_v17 = vmax.f32 %v4786_v8, 0.0 }
 0x5cd   :  { %v4796_v0 = vpack.c.bf16 %v4791_v62, %v4788_v54  ;;  %v4798_v48 = vpack.c.bf16 %v4793_v56, %v4790_v60 }
 0x5ce   :  { %v4797_v7 = vpack.c.bf16 %v4792_v17, %v4789_v55 }
 0x5cf   :  { %v4808_v35 = vsel %vm4327_vm3, %v4796_v0, 0  ;;  %v4814_v38 = vsel %vm4327_vm3, %v4798_v48, 0 }
 0x5d0   :  { %7225 = vmatprep.subr.msk.bf16.mxu0 %vm4327_vm3, %v4797_v7 }
 0x5d1   :  { %4817 = vmatpush1.bf16.msra.mxu0 %v4808_v35 }
 0x5d2   :  { %7513 = vmatprep.subr.bf16.mxu0 %v13458_v5 }
 0x5d4   :  { %7226 = vmatmul.mubr.msk.bf16.vlgmr.msra.gmra.mrb[64].mxu0 %vm4324_vm10, %v7849_v33 }
 0x5d5   :  { %7514 = vmatpush3.bf16.msra.mxu0 %v4814_v38  ;;  %7515 = vmatprep.mubr.msk.bf16.mxu0 %vm8136_vm14, %v13458_v5 }
 0x5dc   :  { %7516 = vmatmul.mubr.msk.bf16.vlgmr.msra.gmra.mrb[68].mxu0 %vm4324_vm10, %v7849_v33 }
 0x6a7   :  { %v4850_v6 = vpop.f32.mrb[64].mxu0 }
 0x6a8   :  { %v4852_v29 = vpop.f32.mrb[65].mxu0 }
 0x6a9   :  { %v4854_v10 = vpop.f32.mrb[66].mxu0 }
 0x6aa   :  { %v11269_v14 = vpack.c.bf16 %v4854_v10, %v4850_v6  ;;  %v4856_v22 = vpop.f32.mrb[67].mxu0 }
 0x6ab   :  { %v11271_v20 = vpack.c.bf16 %v4856_v22, %v4852_v29 }
 0x6af   :  { %v4893_v34 = vpop.f32.mrb[68].mxu0 }
 0x6b0   :  { %v7517_v24 = vpop.f32.mrb[69].mxu0 }
 0x6b1   :  { %v4896_v18 = vpop.f32.mrb[70].mxu0 }
 0x6b2   :  { %v11273_v15 = vpack.c.bf16 %v4896_v18, %v4893_v34  ;;  %v7518_v25 = vpop.f32.mrb[71].mxu0 }
 0x6b3   :  { %8122 = dma.done.wait [#allocation4], 30720 }
 0x6b4   :  { %8123 = vsyncadd [#allocation4], 4294936576  ;;  %5293 = vmatprep.mubr.bf16.mxu1 %v11271_v20  ;;  %s8137_s5 = smov 96   ;;  %v11281_v16 = vrot.slane %v11269_v14, 3  ;;  %v11284_v26 = vshll.u32 %v11269_v14, 16  ;;  %v11287_v36 = vshll.u32 %v11271_v20, 16 }
 0x6b5   :  { %5198 = vrot.lane.b32.xlu1 %v11269_v14, %s8137_s5  ;;  %5200 = vrot.lane.b32.xlu0 %v11271_v20, %s8137_s5  ;;  %v11290_v13 = vrot.slane %v11271_v20, 3  ;;  %v11293_v37 = vrot.slane %v11273_v15, 3  ;;  %v11296_v39 = vshrl.u32 %v11269_v14, 16  ;;  %v11304_v12 = vshrl.u32 %v11271_v20, 16  ;;  %v4908_v47 = vld [vmem:[#allocation2 + $0x8] sm:$0xff]  ;;  %v4907_v46 = vld [vmem:[#allocation2] sm:$0xff] }
 0x6b6   :  { %v5161_v28 = vrot.slane %v11284_v26, 1  ;;  %v5168_v19 = vrot.slane %v11287_v36, 1  ;;  %v11308_v40 = vshll.u32 %v11273_v15, 16  ;;  %5261 = vmatprep.subr.bf16.mxu1 %v4908_v47  ;;  %v4910_v53 = vld [vmem:[#allocation2 + $0x18] sm:$0xff]  ;;  %v11311_v27 = vshrl.u32 %v11273_v15, 16  ;;  %5589 = vmatprep.subr.bf16.mxu0 %v4908_v47  ;;  %v4909_v45 = vld [vmem:[#allocation2 + $0x10] sm:$0xff] }
 0x6b7   :  { %v5180_v32 = vrot.slane %v11296_v39, 3  ;;  %v5181_v63 = vrot.slane %v11284_v26, 4  ;;  %5262 = vmatpush1.bf16.msra.mxu1 %v4907_v46  ;;  %5590 = vmatpush1.bf16.msra.mxu0 %v4907_v46  ;;  %v4912_v8 = vld [vmem:[#allocation2 + $0x28] sm:$0xff]  ;;  %v5183_v54 = vrot.slane %v11304_v12, 3  ;;  %v5184_v60 = vrot.slane %v11287_v36, 4  ;;  %v4911_v0 = vld [vmem:[#allocation2 + $0x20] sm:$0xff] }
 0x6b8   :  { %v11319_v30 = vor.u32 %v5161_v28, %v11296_v39  ;;  %v11322_v61 = vor.u32 %v5168_v19, %v11304_v12  ;;  %v5175_v9 = vrot.slane %v11308_v40, 1  ;;  %5263 = vmatprep.subr.bf16.mxu1 %v4910_v53  ;;  %5591 = vmatprep.subr.bf16.mxu0 %v4910_v53  ;;  %v5186_v55 = vrot.slane %v11311_v27, 3  ;;  %v4914_v48 = vld [vmem:[#allocation2 + $0x38] sm:$0xff]  ;;  %v4913_v33 = vld [vmem:[#allocation2 + $0x30] sm:$0xff]  ;;  %v4916_v38 = vld [vmem:[#allocation2 + $0x48] sm:$0xff] }
 0x6b9   :  { %5202 = vrot.lane.b32.xlu0 %v11273_v15, %s8137_s5  ;;  %5204 = vrot.lane.b32.xlu1 %v11281_v16, %s8137_s5  ;;  %v11335_v56 = vor.u32 %v5181_v63, %v5180_v32  ;;  %v5187_v17 = vrot.slane %v11308_v40, 4  ;;  %v11343_v7 = vor.u32 %v5184_v60, %v5183_v54  ;;  %v11352_v6 = vrot.slane %v11269_v14, 1  ;;  %v4915_v34 = vld [vmem:[#allocation2 + $0x40] sm:$0xff]  ;;  %v4918_v24 = vld [vmem:[#allocation2 + $0x58] sm:$0xff]  ;;  %v4917_v28 = vld [vmem:[#allocation2 + $0x50] sm:$0xff] }
 0x6ba   :  { %v11333_v62 = vor.u32 %v5175_v9, %v11311_v27  ;;  %v11355_v29 = vrot.slane %v11271_v20, 1  ;;  %v5919_v10 = vrot.slane %v11296_v39, 5  ;;  %v5920_v22 = vrot.slane %v11284_v26, 6  ;;  %v4920_v19 = vld [vmem:[#allocation2 + $0x68] sm:$0xff]  ;;  %v4919_v46 = vld [vmem:[#allocation2 + $0x60] sm:$0xff]  ;;  %v4921_v53 = vld [vmem:[#allocation2 + $0x70] sm:$0xff] }
 0x6bb   :  { %5264 = vmatpush1.bf16.msra.mxu1 %v4909_v45  ;;  %5592 = vmatpush1.bf16.msra.mxu0 %v4909_v45  ;;  %v11345_v35 = vor.u32 %v5187_v17, %v5186_v55  ;;  %v11364_v18 = vrot.slane %v11273_v15, 1  ;;  %v5925_v39 = vrot.slane %v11311_v27, 5  ;;  %v5926_v26 = vrot.slane %v11308_v40, 6  ;;  %v4922_v40 = vld [vmem:[#allocation2 + $0x78] sm:$0xff]  ;;  %v4924_v27 = vld [vmem:[#allocation2 + $0x88] sm:$0xff]  ;;  %v4923_v32 = vld [vmem:[#allocation2 + $0x80] sm:$0xff] }
 0x6bc   :  { %5265 = vmatprep.subr.bf16.mxu1 %v4912_v8  ;;  %5593 = vmatprep.subr.bf16.mxu0 %v4912_v8  ;;  %v11366_v25 = vor.u32 %v5920_v22, %v5919_v10  ;;  %v4926_v9 = vld [vmem:[#allocation2 + $0x98] sm:$0xff]  ;;  %v4925_v63 = vld [vmem:[#allocation2 + $0x90] sm:$0xff]  ;;  %v4928_v45 = vld [vmem:[#allocation2 + $0xa8] sm:$0xff]  ;;  %v5923_v10 = vrot.slane %v11287_v36, 6 }
 0x6bd   :  { %5206 = vrot.lane.b32.xlu0 %v11290_v13, %s8137_s5  ;;  %5208 = vrot.lane.b32.xlu1 %v11293_v37, %s8137_s5  ;;  %v11374_v47 = vor.u32 %v5926_v26, %v5925_v39  ;;  %v4927_v8 = vld [vmem:[#allocation2 + $0xa0] sm:$0xff]  ;;  %v4930_v54 = vld [vmem:[#allocation2 + $0xb8] sm:$0xff]  ;;  %v4929_v60 = vld [vmem:[#allocation2 + $0xb0] sm:$0xff] }
 0x6be   :  { %v4932_v55 = vld [vmem:[#allocation2 + $0xc8] sm:$0xff]  ;;  %v4931_v17 = vld [vmem:[#allocation2 + $0xc0] sm:$0xff]  ;;  %v4937_v39 = vld [vmem:[#allocation2 + $0xf0] sm:$0xff] }
 0x6bf   :  { %5266 = vmatpush1.bf16.msra.mxu1 %v4911_v0  ;;  %5594 = vmatpush1.bf16.msra.mxu0 %v4911_v0  ;;  %v4934_v0 = vld [vmem:[#allocation2 + $0xd8] sm:$0xff]  ;;  %v4935_v22 = vld [vmem:[#allocation2 + $0xe0] sm:$0xff]  ;;  %v4940_v26 = vld [vmem:[#allocation2 + $0x108] sm:$0xff] }
 0x6c0   :  { %5267 = vmatprep.subr.bf16.mxu1 %v4914_v48  ;;  %5595 = vmatprep.subr.bf16.mxu0 %v4914_v48  ;;  %v4933_v48 = vld [vmem:[#allocation2 + $0xd0] sm:$0xff]  ;;  %v4939_v36 = vld [vmem:[#allocation2 + $0x100] sm:$0xff]  ;;  %v11469_v44 = vld [vmem:[#allocation2 + $0x1d8] sm:$0xff] }
 0x6c1   :  { %5210 = vrot.lane.b32.xlu0 %v11319_v30, %s8137_s5  ;;  %5212 = vrot.lane.b32.xlu1 %v11322_v61, %s8137_s5  ;;  %v11463_v21 = vld [vmem:[#allocation2 + $0x1c0] sm:$0xff]  ;;  %v11483_v43 = vld [vmem:[#allocation2 + $0x1d0] sm:$0xff]  ;;  %v11486_v3 = vld [vmem:[#allocation2 + $0x1e8] sm:$0xff] }
 0x6c2   :  { %v11497_v51 = vld [vmem:[#allocation2 + $0x1f8] sm:$0xff]  ;;  %v11626_v42 = vld [vmem:[#allocation2 + $0x2d0] sm:$0xff] }
 0x6c3   :  { %5268 = vmatpush1.bf16.msra.mxu1 %v4913_v33  ;;  %5596 = vmatpush1.bf16.msra.mxu0 %v4913_v33  ;;  %v4936_v33 = vld [vmem:[#allocation2 + $0xe8] sm:$0xff]  ;;  %v11772_v2 = vld [vmem:[#allocation2 + $0x3d0] sm:$0xff] }
 0x6c4   :  { %5269 = vmatprep.subr.bf16.mxu1 %v4916_v38  ;;  %5597 = vmatprep.subr.bf16.mxu0 %v4916_v38  ;;  %v5922_v38 = vrot.slane %v11304_v12, 5  ;;  %v11385_v12 = vld [vmem:[#allocation2 + $0x118] sm:$0xff]  ;;  %v12056_v50 = vld [vmem:[#allocation2 + $0x5d0] sm:$0xff] }
 0x6c5   :  { %5214 = vrot.lane.b32.xlu0 %v11333_v62, %s8137_s5  ;;  %5216 = vrot.lane.b32.xlu1 %v11335_v56, %s8137_s5 }
 0x6c7   :  { %5270 = vmatpush1.bf16.msra.mxu1 %v4915_v34  ;;  %5598 = vmatpush1.bf16.msra.mxu0 %v4915_v34  ;;  %v4938_v34 = vld [vmem:[#allocation2 + $0xf8] sm:$0xff] }
 0x6c8   :  { %5271 = vmatprep.subr.bf16.mxu1 %v4918_v24  ;;  %5599 = vmatprep.subr.bf16.mxu0 %v4918_v24  ;;  %v11380_v24 = vor.u32 %v5923_v10, %v5922_v38  ;;  %v11443_v38 = vld [vmem:[#allocation2 + $0x1a8] sm:$0xff]  ;;  %v11447_v10 = vld [vmem:[#allocation2 + $0x1a0] sm:$0xff] }
 0x6c9   :  { %5218 = vrot.lane.b32.xlu0 %v11343_v7, %s8137_s5  ;;  %5220 = vrot.lane.b32.xlu1 %v11345_v35, %s8137_s5 }
 0x6cb   :  { %5272 = vmatpush1.bf16.msra.mxu1 %v4917_v28  ;;  %5600 = vmatpush1.bf16.msra.mxu0 %v4917_v28  ;;  %v13461_v28 = vrot.slane %v11269_v14, 6 }
 0x6cc   :  { %5273 = vmatprep.subr.bf16.mxu1 %v4920_v19  ;;  %5601 = vmatprep.subr.bf16.mxu0 %v4920_v19  ;;  %v11393_v19 = vld [vmem:[#allocation2 + $0x110] sm:$0xff] }
 0x6cd   :  { %5222 = vrot.lane.b32.xlu0 %v11352_v6, %s8137_s5  ;;  %5224 = vrot.lane.b32.xlu1 %v11355_v29, %s8137_s5 }
 0x6cf   :  { %5274 = vmatpush1.bf16.msra.mxu1 %v4919_v46  ;;  %5602 = vmatpush1.bf16.msra.mxu0 %v4919_v46  ;;  %v11395_v46 = vld [vmem:[#allocation2 + $0x128] sm:$0xff] }
 0x6d0   :  { %5275 = vmatprep.subr.bf16.mxu1 %v4922_v40  ;;  %5603 = vmatprep.subr.bf16.mxu0 %v4922_v40  ;;  %v11399_v40 = vld [vmem:[#allocation2 + $0x120] sm:$0xff] }
 0x6d1   :  { %5226 = vrot.lane.b32.xlu0 %v11364_v18, %s8137_s5  ;;  %5931 = vrot.lane.b32.xlu1 %v11366_v25, %s8137_s5 }
 0x6d3   :  { %5276 = vmatpush1.bf16.msra.mxu1 %v4921_v53  ;;  %5604 = vmatpush1.bf16.msra.mxu0 %v4921_v53  ;;  %v11401_v53 = vld [vmem:[#allocation2 + $0x138] sm:$0xff] }
 0x6d4   :  { %5277 = vmatprep.subr.bf16.mxu1 %v4924_v27  ;;  %5605 = vmatprep.subr.bf16.mxu0 %v4924_v27  ;;  %v11405_v27 = vld [vmem:[#allocation2 + $0x130] sm:$0xff] }
 0x6d5   :  { %5935 = vrot.lane.b32.xlu1 %v11374_v47, %s8137_s5  ;;  %5933 = vrot.lane.b32.xlu0 %v11380_v24, %s8137_s5 }
 0x6d7   :  { %5278 = vmatpush1.bf16.msra.mxu1 %v4923_v32  ;;  %5606 = vmatpush1.bf16.msra.mxu0 %v4923_v32  ;;  %v11407_v32 = vld [vmem:[#allocation2 + $0x148] sm:$0xff] }
 0x6d8   :  { %5279 = vmatprep.subr.bf16.mxu1 %v4926_v9  ;;  %5607 = vmatprep.subr.bf16.mxu0 %v4926_v9  ;;  %v11411_v9 = vld [vmem:[#allocation2 + $0x140] sm:$0xff] }
 0x6d9   :  { %5937 = vrot.lane.b32.xlu0 %v13461_v28, %s8137_s5 }
 0x6db   :  { %5280 = vmatpush1.bf16.msra.mxu1 %v4925_v63  ;;  %5608 = vmatpush1.bf16.msra.mxu0 %v4925_v63  ;;  %v11413_v63 = vld [vmem:[#allocation2 + $0x158] sm:$0xff] }
 0x6dc   :  { %5281 = vmatprep.subr.bf16.mxu1 %v4928_v45  ;;  %5609 = vmatprep.subr.bf16.mxu0 %v4928_v45  ;;  %v11417_v45 = vld [vmem:[#allocation2 + $0x150] sm:$0xff] }
 0x6df   :  { %5282 = vmatpush1.bf16.msra.mxu1 %v4927_v8  ;;  %5610 = vmatpush1.bf16.msra.mxu0 %v4927_v8  ;;  %v11419_v8 = vld [vmem:[#allocation2 + $0x168] sm:$0xff] }
 0x6e0   :  { %5283 = vmatprep.subr.bf16.mxu1 %v4930_v54  ;;  %5611 = vmatprep.subr.bf16.mxu0 %v4930_v54  ;;  %v11423_v54 = vld [vmem:[#allocation2 + $0x160] sm:$0xff] }
 0x6e3   :  { %5284 = vmatpush1.bf16.msra.mxu1 %v4929_v60  ;;  %5612 = vmatpush1.bf16.msra.mxu0 %v4929_v60  ;;  %v11425_v60 = vld [vmem:[#allocation2 + $0x178] sm:$0xff] }
 0x6e4   :  { %5285 = vmatprep.subr.bf16.mxu1 %v4932_v55  ;;  %5613 = vmatprep.subr.bf16.mxu0 %v4932_v55  ;;  %v11429_v55 = vld [vmem:[#allocation2 + $0x170] sm:$0xff] }
 0x6e7   :  { %5286 = vmatpush1.bf16.msra.mxu1 %v4931_v17  ;;  %5614 = vmatpush1.bf16.msra.mxu0 %v4931_v17  ;;  %v11431_v17 = vld [vmem:[#allocation2 + $0x188] sm:$0xff] }
 0x6e8   :  { %5287 = vmatprep.subr.bf16.mxu1 %v4934_v0  ;;  %5615 = vmatprep.subr.bf16.mxu0 %v4934_v0  ;;  %v11435_v0 = vld [vmem:[#allocation2 + $0x180] sm:$0xff] }
 0x6eb   :  { %5288 = vmatpush1.bf16.msra.mxu1 %v4933_v48  ;;  %5616 = vmatpush1.bf16.msra.mxu0 %v4933_v48  ;;  %v11437_v48 = vld [vmem:[#allocation2 + $0x198] sm:$0xff] }
 0x6ec   :  { %5289 = vmatprep.subr.bf16.mxu1 %v4936_v33  ;;  %5617 = vmatprep.subr.bf16.mxu0 %v4936_v33  ;;  %v11441_v33 = vld [vmem:[#allocation2 + $0x190] sm:$0xff] }
 0x6ef   :  { %5290 = vmatpush1.bf16.msra.mxu1 %v4935_v22  ;;  %5618 = vmatpush1.bf16.msra.mxu0 %v4935_v22  ;;  %v11449_v22 = vld [vmem:[#allocation2 + $0x1b8] sm:$0xff] }
 0x6f0   :  { %5291 = vmatprep.subr.bf16.mxu1 %v4938_v34  ;;  %5619 = vmatprep.subr.bf16.mxu0 %v4938_v34 }
 0x6f3   :  { %5292 = vmatpush1.bf16.msra.mxu1 %v4937_v39  ;;  %5620 = vmatpush1.bf16.msra.mxu0 %v4937_v39  ;;  %v11453_v39 = vld [vmem:[#allocation2 + $0x1b0] sm:$0xff] }
 0x6f4   :  { %5302 = vmatprep.subr.bf16.mxu1 %v4940_v26  ;;  %5630 = vmatprep.subr.bf16.mxu0 %v4940_v26  ;;  %v11455_v26 = vld [vmem:[#allocation2 + $0x1c8] sm:$0xff] }
 0x6f6   :  { %5294 = vmatmul.mubr.bf16.vlgmr.msra.gmra.mrb[64].mxu1 %v11269_v14 }
 0x6f7   :  { %5303 = vmatpush1.bf16.msra.mxu1 %v4939_v36  ;;  %5334 = vmatprep.mubr.bf16.mxu1 %v11281_v16 }
 0x6f8   :  { %5304 = vmatprep.subr.bf16.mxu1 %v11385_v12 }
 0x6fb   :  { %5305 = vmatpush1.bf16.msra.mxu1 %v11393_v19 }
 0x6fc   :  { %5306 = vmatprep.subr.bf16.mxu1 %v11395_v46 }
 0x6ff   :  { %5307 = vmatpush1.bf16.msra.mxu1 %v11399_v40 }
 0x700   :  { %5308 = vmatprep.subr.bf16.mxu1 %v11401_v53 }
 0x703   :  { %5309 = vmatpush1.bf16.msra.mxu1 %v11405_v27 }
 0x704   :  { %5310 = vmatprep.subr.bf16.mxu1 %v11407_v32 }
 0x707   :  { %5311 = vmatpush1.bf16.msra.mxu1 %v11411_v9 }
 0x708   :  { %5312 = vmatprep.subr.bf16.mxu1 %v11413_v63 }
 0x70b   :  { %5313 = vmatpush1.bf16.msra.mxu1 %v11417_v45 }
 0x70c   :  { %5314 = vmatprep.subr.bf16.mxu1 %v11419_v8 }
 0x70f   :  { %5315 = vmatpush1.bf16.msra.mxu1 %v11423_v54 }
 0x710   :  { %5316 = vmatprep.subr.bf16.mxu1 %v11425_v60 }
 0x713   :  { %5317 = vmatpush1.bf16.msra.mxu1 %v11429_v55 }
 0x714   :  { %5318 = vmatprep.subr.bf16.mxu1 %v11431_v17 }
 0x717   :  { %5319 = vmatpush1.bf16.msra.mxu1 %v11435_v0 }
 0x718   :  { %5320 = vmatprep.subr.bf16.mxu1 %v11437_v48 }
 0x71b   :  { %5321 = vmatpush1.bf16.msra.mxu1 %v11441_v33 }
 0x71c   :  { %5322 = vmatprep.subr.bf16.mxu1 %v11443_v38 }
 0x71f   :  { %5323 = vmatpush1.bf16.msra.mxu1 %v11447_v10 }
 0x720   :  { %5324 = vmatprep.subr.bf16.mxu1 %v11449_v22 }
 0x723   :  { %5325 = vmatpush1.bf16.msra.mxu1 %v11453_v39 }
 0x724   :  { %5326 = vmatprep.subr.bf16.mxu1 %v11455_v26 }
 0x727   :  { %v5201_v34 = vpop.permute.xlu0 %5200  ;;  %v11457_v5 = vpop.permute.xlu1 %5198  ;;  %5327 = vmatpush1.bf16.msra.mxu1 %v11463_v21 }
 0x728   :  { %v11474_v4 = vsel %vm3826_vm2, %v11457_v5, %v5201_v34  ;;  %5328 = vmatprep.subr.bf16.mxu1 %v11469_v44 }
 0x72b   :  { %v11460_v11 = vpop.permute.xlu0 %5202  ;;  %v11478_v52 = vpop.permute.xlu1 %5204  ;;  %5329 = vmatpush1.bf16.msra.mxu1 %v11483_v43 }
 0x72c   :  { %v11467_v28 = vsel %vm3826_vm2, %v5201_v34, %v11460_v11  ;;  %5330 = vmatprep.subr.bf16.mxu1 %v11486_v3 }
 0x72d   :  { %5621 = vmatprep.mubr.bf16.mxu0 %v11467_v28 }
 0x72e   :  { %5622 = vmatmul.mubr.bf16.vlgmr.msra.gmra.mrb[72].mxu0 %v11474_v4 }
 0x72f   :  { %5631 = vmatpush1.bf16.msra.mxu0 %v4939_v36  ;;  %v11480_v59 = vpop.permute.xlu0 %5206  ;;  %v11494_v36 = vld [vmem:[#allocation2 + $0x1e0] sm:$0xff] }
 0x730   :  { %5632 = vmatprep.subr.bf16.mxu0 %v11385_v12  ;;  %v5232_v34 = vsel %vm3826_vm2, %v11478_v52, %v11480_v59  ;;  %5331 = vmatpush1.bf16.msra.mxu1 %v11494_v36  ;;  %v11502_v12 = vld [vmem:[#allocation2 + $0x1f0] sm:$0xff] }
 0x731   :  { %5662 = vmatprep.mubr.bf16.mxu0 %v5232_v34  ;;  %5332 = vmatprep.subr.bf16.mxu1 %v11497_v51  ;;  %v11505_v34 = vld [vmem:[#allocation2 + $0x208] sm:$0xff] }
 0x733   :  { %5633 = vmatpush1.bf16.msra.mxu0 %v11393_v19  ;;  %v11510_v19 = vld [vmem:[#allocation2 + $0x200] sm:$0xff]  ;;  %v11612_v58 = vpop.permute.xlu0 %5210 }
 0x734   :  { %5634 = vmatprep.subr.bf16.mxu0 %v11395_v46  ;;  %5333 = vmatpush1.bf16.msra.mxu1 %v11502_v12  ;;  %v11513_v46 = vld [vmem:[#allocation2 + $0x218] sm:$0xff] }
 0x735   :  { %5343 = vmatprep.subr.bf16.mxu1 %v11505_v34 }
 0x737   :  { %5635 = vmatpush1.bf16.msra.mxu0 %v11399_v40  ;;  %5335 = vmatmul.mubr.bf16.vlgmr.msra.gmra.mrb[64].mxu1 %v11273_v15  ;;  %v11520_v40 = vld [vmem:[#allocation2 + $0x210] sm:$0xff] }
 0x738   :  { %5636 = vmatprep.subr.bf16.mxu0 %v11401_v53  ;;  %5344 = vmatpush1.bf16.msra.mxu1 %v11510_v19  ;;  %v11523_v53 = vld [vmem:[#allocation2 + $0x228] sm:$0xff] }
 0x739   :  { %5375 = vmatprep.mubr.bf16.mxu1 %v11293_v37  ;;  %5345 = vmatprep.subr.bf16.mxu1 %v11513_v46 }
 0x73b   :  { %5637 = vmatpush1.bf16.msra.mxu0 %v11405_v27  ;;  %v11528_v27 = vld [vmem:[#allocation2 + $0x220] sm:$0xff] }
 0x73c   :  { %5638 = vmatprep.subr.bf16.mxu0 %v11407_v32  ;;  %5346 = vmatpush1.bf16.msra.mxu1 %v11520_v40  ;;  %v11531_v32 = vld [vmem:[#allocation2 + $0x238] sm:$0xff] }
 0x73d   :  { %5347 = vmatprep.subr.bf16.mxu1 %v11523_v53 }
 0x73f   :  { %5639 = vmatpush1.bf16.msra.mxu0 %v11411_v9  ;;  %v11536_v9 = vld [vmem:[#allocation2 + $0x230] sm:$0xff] }
 0x740   :  { %5640 = vmatprep.subr.bf16.mxu0 %v11413_v63  ;;  %5348 = vmatpush1.bf16.msra.mxu1 %v11528_v27  ;;  %v11539_v63 = vld [vmem:[#allocation2 + $0x248] sm:$0xff] }
 0x741   :  { %5349 = vmatprep.subr.bf16.mxu1 %v11531_v32 }
 0x743   :  { %5641 = vmatpush1.bf16.msra.mxu0 %v11417_v45  ;;  %v11544_v45 = vld [vmem:[#allocation2 + $0x240] sm:$0xff] }
 0x744   :  { %5642 = vmatprep.subr.bf16.mxu0 %v11419_v8  ;;  %5350 = vmatpush1.bf16.msra.mxu1 %v11536_v9  ;;  %v11547_v8 = vld [vmem:[#allocation2 + $0x258] sm:$0xff] }
 0x745   :  { %5351 = vmatprep.subr.bf16.mxu1 %v11539_v63 }
 0x747   :  { %5643 = vmatpush1.bf16.msra.mxu0 %v11423_v54  ;;  %v11552_v54 = vld [vmem:[#allocation2 + $0x250] sm:$0xff] }
 0x748   :  { %5644 = vmatprep.subr.bf16.mxu0 %v11425_v60  ;;  %5352 = vmatpush1.bf16.msra.mxu1 %v11544_v45  ;;  %v11555_v60 = vld [vmem:[#allocation2 + $0x268] sm:$0xff] }
 0x749   :  { %5353 = vmatprep.subr.bf16.mxu1 %v11547_v8 }
 0x74b   :  { %5645 = vmatpush1.bf16.msra.mxu0 %v11429_v55  ;;  %v11560_v55 = vld [vmem:[#allocation2 + $0x260] sm:$0xff] }
 0x74c   :  { %5646 = vmatprep.subr.bf16.mxu0 %v11431_v17  ;;  %5354 = vmatpush1.bf16.msra.mxu1 %v11552_v54  ;;  %v11563_v17 = vld [vmem:[#allocation2 + $0x278] sm:$0xff] }
 0x74d   :  { %5355 = vmatprep.subr.bf16.mxu1 %v11555_v60 }
 0x74f   :  { %5647 = vmatpush1.bf16.msra.mxu0 %v11435_v0  ;;  %v11568_v0 = vld [vmem:[#allocation2 + $0x270] sm:$0xff] }
 0x750   :  { %5648 = vmatprep.subr.bf16.mxu0 %v11437_v48  ;;  %5356 = vmatpush1.bf16.msra.mxu1 %v11560_v55  ;;  %v11571_v48 = vld [vmem:[#allocation2 + $0x288] sm:$0xff] }
 0x751   :  { %5357 = vmatprep.subr.bf16.mxu1 %v11563_v17 }
 0x753   :  { %5649 = vmatpush1.bf16.msra.mxu0 %v11441_v33  ;;  %v11576_v33 = vld [vmem:[#allocation2 + $0x280] sm:$0xff] }
 0x754   :  { %5650 = vmatprep.subr.bf16.mxu0 %v11443_v38  ;;  %5358 = vmatpush1.bf16.msra.mxu1 %v11568_v0  ;;  %v11579_v38 = vld [vmem:[#allocation2 + $0x298] sm:$0xff] }
 0x755   :  { %5359 = vmatprep.subr.bf16.mxu1 %v11571_v48 }
 0x757   :  { %5651 = vmatpush1.bf16.msra.mxu0 %v11447_v10  ;;  %v11584_v10 = vld [vmem:[#allocation2 + $0x290] sm:$0xff] }
 0x758   :  { %5652 = vmatprep.subr.bf16.mxu0 %v11449_v22  ;;  %5360 = vmatpush1.bf16.msra.mxu1 %v11576_v33  ;;  %v11587_v22 = vld [vmem:[#allocation2 + $0x2a8] sm:$0xff] }
 0x759   :  { %5361 = vmatprep.subr.bf16.mxu1 %v11579_v38 }
 0x75b   :  { %5653 = vmatpush1.bf16.msra.mxu0 %v11453_v39  ;;  %v11592_v39 = vld [vmem:[#allocation2 + $0x2a0] sm:$0xff] }
 0x75c   :  { %5654 = vmatprep.subr.bf16.mxu0 %v11455_v26  ;;  %5362 = vmatpush1.bf16.msra.mxu1 %v11584_v10  ;;  %v11595_v26 = vld [vmem:[#allocation2 + $0x2b8] sm:$0xff] }
 0x75d   :  { %5363 = vmatprep.subr.bf16.mxu1 %v11587_v22 }
 0x75f   :  { %5655 = vmatpush1.bf16.msra.mxu0 %v11463_v21  ;;  %v11603_v21 = vld [vmem:[#allocation2 + $0x2c8] sm:$0xff] }
 0x760   :  { %5656 = vmatprep.subr.bf16.mxu0 %v11469_v44  ;;  %5364 = vmatpush1.bf16.msra.mxu1 %v11592_v39  ;;  %v11600_v44 = vld [vmem:[#allocation2 + $0x2b0] sm:$0xff] }
 0x761   :  { %5365 = vmatprep.subr.bf16.mxu1 %v11595_v26 }
 0x763   :  { %5657 = vmatpush1.bf16.msra.mxu0 %v11483_v43  ;;  %v11608_v43 = vld [vmem:[#allocation2 + $0x2c0] sm:$0xff] }
 0x764   :  { %5658 = vmatprep.subr.bf16.mxu0 %v11486_v3  ;;  %5366 = vmatpush1.bf16.msra.mxu1 %v11600_v44  ;;  %v11610_v3 = vpop.permute.xlu1 %5208 }
 0x765   :  { %5367 = vmatprep.subr.bf16.mxu1 %v11603_v21 }
 0x767   :  { %5659 = vmatpush1.bf16.msra.mxu0 %v11494_v36  ;;  %v11615_v36 = vld [vmem:[#allocation2 + $0x2d8] sm:$0xff] }
 0x768   :  { %5660 = vmatprep.subr.bf16.mxu0 %v11497_v51  ;;  %v5231_v51 = vsel %vm3826_vm2, %v11460_v11, %v11478_v52  ;;  %5368 = vmatpush1.bf16.msra.mxu1 %v11608_v43  ;;  %v11634_v52 = vld [vmem:[#allocation2 + $0x2e0] sm:$0xff] }
 0x769   :  { %5369 = vmatprep.subr.bf16.mxu1 %v11615_v36 }
 0x76b   :  { %5661 = vmatpush1.bf16.msra.mxu0 %v11502_v12  ;;  %v5234_v12 = vsel %vm3826_vm2, %v11610_v3, %v11612_v58 }
 0x76c   :  { %5671 = vmatprep.subr.bf16.mxu0 %v11505_v34  ;;  %v11629_v34 = vld [vmem:[#allocation2 + $0x2e8] sm:$0xff]  ;;  %5370 = vmatpush1.bf16.msra.mxu1 %v11626_v42 }
 0x76d   :  { %5371 = vmatprep.subr.bf16.mxu1 %v11629_v34 }
 0x76e   :  { %5663 = vmatmul.mubr.bf16.vlgmr.msra.gmra.mrb[72].mxu0 %v5231_v51  ;;  %v13462_v51 = vrot.slane %v11273_v15, 6 }
 0x76f   :  { %5672 = vmatpush1.bf16.msra.mxu0 %v11510_v19  ;;  %5703 = vmatprep.mubr.bf16.mxu0 %v5234_v12  ;;  %v11637_v19 = vld [vmem:[#allocation2 + $0x2f8] sm:$0xff] }
 0x770   :  { %5673 = vmatprep.subr.bf16.mxu0 %v11513_v46  ;;  %5372 = vmatpush1.bf16.msra.mxu1 %v11634_v52  ;;  %v11642_v46 = vld [vmem:[#allocation2 + $0x2f0] sm:$0xff]  ;;  %v11675_v12 = vld [vmem:[#allocation2 + $0x338] sm:$0xff] }
 0x771   :  { %5373 = vmatprep.subr.bf16.mxu1 %v11637_v19  ;;  %5941 = vrot.lane.b32.xlu0 %v13462_v51, %s8137_s5  ;;  %v11756_v51 = vpop.permute.xlu0 %5214 }
 0x773   :  { %5674 = vmatpush1.bf16.msra.mxu0 %v11520_v40  ;;  %v11646_v40 = vld [vmem:[#allocation2 + $0x308] sm:$0xff] }
 0x774   :  { %5675 = vmatprep.subr.bf16.mxu0 %v11523_v53  ;;  %5374 = vmatpush1.bf16.msra.mxu1 %v11642_v46  ;;  %v11654_v53 = vld [vmem:[#allocation2 + $0x300] sm:$0xff] }
 0x775   :  { %5384 = vmatprep.subr.bf16.mxu1 %v11646_v40 }
 0x777   :  { %5676 = vmatpush1.bf16.msra.mxu0 %v11528_v27  ;;  %v11657_v27 = vld [vmem:[#allocation2 + $0x318] sm:$0xff]  ;;  %5376 = vmatmul.mubr.bf16.vlgmr.msra.gmra.mrb[64].mxu1 %v11290_v13 }
 0x778   :  { %5677 = vmatprep.subr.bf16.mxu0 %v11531_v32  ;;  %5385 = vmatpush1.bf16.msra.mxu1 %v11654_v53  ;;  %v11664_v32 = vld [vmem:[#allocation2 + $0x310] sm:$0xff] }
 0x779   :  { %5416 = vmatprep.mubr.bf16.mxu1 %v11322_v61  ;;  %5386 = vmatprep.subr.bf16.mxu1 %v11657_v27 }
 0x77b   :  { %5678 = vmatpush1.bf16.msra.mxu0 %v11536_v9  ;;  %v11667_v9 = vld [vmem:[#allocation2 + $0x328] sm:$0xff] }
 0x77c   :  { %5679 = vmatprep.subr.bf16.mxu0 %v11539_v63  ;;  %5387 = vmatpush1.bf16.msra.mxu1 %v11664_v32  ;;  %v11672_v63 = vld [vmem:[#allocation2 + $0x320] sm:$0xff] }
 0x77d   :  { %5388 = vmatprep.subr.bf16.mxu1 %v11667_v9 }
 0x77f   :  { %5680 = vmatpush1.bf16.msra.mxu0 %v11544_v45  ;;  %v11680_v45 = vld [vmem:[#allocation2 + $0x330] sm:$0xff] }
 0x780   :  { %5681 = vmatprep.subr.bf16.mxu0 %v11547_v8  ;;  %5389 = vmatpush1.bf16.msra.mxu1 %v11672_v63  ;;  %v11683_v8 = vld [vmem:[#allocation2 + $0x348] sm:$0xff] }
 0x781   :  { %5390 = vmatprep.subr.bf16.mxu1 %v11675_v12 }
 0x783   :  { %5682 = vmatpush1.bf16.msra.mxu0 %v11552_v54  ;;  %v11688_v54 = vld [vmem:[#allocation2 + $0x340] sm:$0xff] }
 0x784   :  { %5683 = vmatprep.subr.bf16.mxu0 %v11555_v60  ;;  %5391 = vmatpush1.bf16.msra.mxu1 %v11680_v45  ;;  %v11691_v60 = vld [vmem:[#allocation2 + $0x358] sm:$0xff] }
 0x785   :  { %5392 = vmatprep.subr.bf16.mxu1 %v11683_v8 }
 0x787   :  { %5684 = vmatpush1.bf16.msra.mxu0 %v11560_v55  ;;  %v11696_v55 = vld [vmem:[#allocation2 + $0x350] sm:$0xff] }
 0x788   :  { %5685 = vmatprep.subr.bf16.mxu0 %v11563_v17  ;;  %5393 = vmatpush1.bf16.msra.mxu1 %v11688_v54  ;;  %v11699_v17 = vld [vmem:[#allocation2 + $0x368] sm:$0xff] }
 0x789   :  { %5394 = vmatprep.subr.bf16.mxu1 %v11691_v60 }
 0x78b   :  { %5686 = vmatpush1.bf16.msra.mxu0 %v11568_v0  ;;  %v11704_v0 = vld [vmem:[#allocation2 + $0x360] sm:$0xff] }
 0x78c   :  { %5687 = vmatprep.subr.bf16.mxu0 %v11571_v48  ;;  %5395 = vmatpush1.bf16.msra.mxu1 %v11696_v55  ;;  %v11707_v48 = vld [vmem:[#allocation2 + $0x378] sm:$0xff] }
 0x78d   :  { %5396 = vmatprep.subr.bf16.mxu1 %v11699_v17 }
 0x78f   :  { %5688 = vmatpush1.bf16.msra.mxu0 %v11576_v33  ;;  %v11712_v33 = vld [vmem:[#allocation2 + $0x370] sm:$0xff] }
 0x790   :  { %5689 = vmatprep.subr.bf16.mxu0 %v11579_v38  ;;  %5397 = vmatpush1.bf16.msra.mxu1 %v11704_v0  ;;  %v11715_v38 = vld [vmem:[#allocation2 + $0x388] sm:$0xff] }
 0x791   :  { %5398 = vmatprep.subr.bf16.mxu1 %v11707_v48 }
 0x793   :  { %5690 = vmatpush1.bf16.msra.mxu0 %v11584_v10  ;;  %v11720_v10 = vld [vmem:[#allocation2 + $0x380] sm:$0xff] }
 0x794   :  { %5691 = vmatprep.subr.bf16.mxu0 %v11587_v22  ;;  %5399 = vmatpush1.bf16.msra.mxu1 %v11712_v33  ;;  %v11723_v22 = vld [vmem:[#allocation2 + $0x398] sm:$0xff] }
 0x795   :  { %5400 = vmatprep.subr.bf16.mxu1 %v11715_v38 }
 0x797   :  { %5692 = vmatpush1.bf16.msra.mxu0 %v11592_v39  ;;  %v11728_v39 = vld [vmem:[#allocation2 + $0x390] sm:$0xff] }
 0x798   :  { %5693 = vmatprep.subr.bf16.mxu0 %v11595_v26  ;;  %5401 = vmatpush1.bf16.msra.mxu1 %v11720_v10  ;;  %v11731_v26 = vld [vmem:[#allocation2 + $0x3a8] sm:$0xff] }
 0x799   :  { %5402 = vmatprep.subr.bf16.mxu1 %v11723_v22 }
 0x79b   :  { %5694 = vmatpush1.bf16.msra.mxu0 %v11600_v44  ;;  %v11736_v44 = vld [vmem:[#allocation2 + $0x3a0] sm:$0xff] }
 0x79c   :  { %5695 = vmatprep.subr.bf16.mxu0 %v11603_v21  ;;  %5403 = vmatpush1.bf16.msra.mxu1 %v11728_v39  ;;  %v11739_v21 = vld [vmem:[#allocation2 + $0x3b8] sm:$0xff] }
 0x79d   :  { %5404 = vmatprep.subr.bf16.mxu1 %v11731_v26 }
 0x79f   :  { %5696 = vmatpush1.bf16.msra.mxu0 %v11608_v43  ;;  %v11744_v43 = vld [vmem:[#allocation2 + $0x3b0] sm:$0xff] }
 0x7a0   :  { %5697 = vmatprep.subr.bf16.mxu0 %v11615_v36  ;;  %5405 = vmatpush1.bf16.msra.mxu1 %v11736_v44  ;;  %v11747_v36 = vld [vmem:[#allocation2 + $0x3c8] sm:$0xff] }
 0x7a1   :  { %5406 = vmatprep.subr.bf16.mxu1 %v11739_v21 }
 0x7a3   :  { %5698 = vmatpush1.bf16.msra.mxu0 %v11626_v42  ;;  %v11752_v42 = vld [vmem:[#allocation2 + $0x3c0] sm:$0xff] }
 0x7a4   :  { %5699 = vmatprep.subr.bf16.mxu0 %v11629_v34  ;;  %5407 = vmatpush1.bf16.msra.mxu1 %v11744_v43  ;;  %v11754_v34 = vpop.permute.xlu1 %5212 }
 0x7a5   :  { %5408 = vmatprep.subr.bf16.mxu1 %v11747_v36 }
 0x7a7   :  { %5700 = vmatpush1.bf16.msra.mxu0 %v11634_v52  ;;  %v11759_v52 = vld [vmem:[#allocation2 + $0x3d8] sm:$0xff] }
 0x7a8   :  { %5701 = vmatprep.subr.bf16.mxu0 %v11637_v19  ;;  %v5233_v19 = vsel %vm3826_vm2, %v11480_v59, %v11610_v3  ;;  %5409 = vmatpush1.bf16.msra.mxu1 %v11752_v42  ;;  %v11781_v59 = vld [vmem:[#allocation2 + $0x3e0] sm:$0xff]  ;;  %v11784_v3 = vld [vmem:[#allocation2 + $0x3f8] sm:$0xff] }
 0x7a9   :  { %5410 = vmatprep.subr.bf16.mxu1 %v11759_v52 }
 0x7ab   :  { %5702 = vmatpush1.bf16.msra.mxu0 %v11642_v46  ;;  %v11767_v46 = vsel %vm3826_vm2, %v11754_v34, %v11756_v51 }
 0x7ac   :  { %5712 = vmatprep.subr.bf16.mxu0 %v11646_v40  ;;  %v11775_v40 = vld [vmem:[#allocation2 + $0x3e8] sm:$0xff]  ;;  %5411 = vmatpush1.bf16.msra.mxu1 %v11772_v2 }
 0x7ad   :  { %5412 = vmatprep.subr.bf16.mxu1 %v11775_v40 }
 0x7ae   :  { %5704 = vmatmul.mubr.bf16.vlgmr.msra.gmra.mrb[72].mxu0 %v5233_v19  ;;  %v11899_v19 = vpop.permute.xlu0 %5218 }
 0x7af   :  { %5713 = vmatpush1.bf16.msra.mxu0 %v11654_v53  ;;  %5744 = vmatprep.mubr.bf16.mxu0 %v11767_v46  ;;  %v11789_v53 = vld [vmem:[#allocation2 + $0x3f0] sm:$0xff] }
 0x7b0   :  { %5714 = vmatprep.subr.bf16.mxu0 %v11657_v27  ;;  %5413 = vmatpush1.bf16.msra.mxu1 %v11781_v59  ;;  %v11792_v27 = vld [vmem:[#allocation2 + $0x408] sm:$0xff] }
 0x7b1   :  { %5414 = vmatprep.subr.bf16.mxu1 %v11784_v3 }
 0x7b3   :  { %5715 = vmatpush1.bf16.msra.mxu0 %v11664_v32  ;;  %v11797_v32 = vld [vmem:[#allocation2 + $0x400] sm:$0xff] }
 0x7b4   :  { %5716 = vmatprep.subr.bf16.mxu0 %v11667_v9  ;;  %5415 = vmatpush1.bf16.msra.mxu1 %v11789_v53  ;;  %v11800_v9 = vld [vmem:[#allocation2 + $0x418] sm:$0xff] }
 0x7b5   :  { %5425 = vmatprep.subr.bf16.mxu1 %v11792_v27 }
 0x7b7   :  { %5717 = vmatpush1.bf16.msra.mxu0 %v11672_v63  ;;  %5417 = vmatmul.mubr.bf16.vlgmr.msra.gmra.mrb[64].mxu1 %v11319_v30  ;;  %v11807_v63 = vld [vmem:[#allocation2 + $0x410] sm:$0xff] }
 0x7b8   :  { %5718 = vmatprep.subr.bf16.mxu0 %v11675_v12  ;;  %5426 = vmatpush1.bf16.msra.mxu1 %v11797_v32  ;;  %v11810_v12 = vld [vmem:[#allocation2 + $0x428] sm:$0xff] }
 0x7b9   :  { %5457 = vmatprep.mubr.bf16.mxu1 %v11335_v56  ;;  %5427 = vmatprep.subr.bf16.mxu1 %v11800_v9  ;;  %v11818_v56 = vld [vmem:[#allocation2 + $0x438] sm:$0xff] }
 0x7bb   :  { %5719 = vmatpush1.bf16.msra.mxu0 %v11680_v45  ;;  %v11815_v45 = vld [vmem:[#allocation2 + $0x420] sm:$0xff] }
 0x7bc   :  { %5720 = vmatprep.subr.bf16.mxu0 %v11683_v8  ;;  %5428 = vmatpush1.bf16.msra.mxu1 %v11807_v63  ;;  %v11823_v8 = vld [vmem:[#allocation2 + $0x430] sm:$0xff] }
 0x7bd   :  { %5429 = vmatprep.subr.bf16.mxu1 %v11810_v12 }
 0x7bf   :  { %5721 = vmatpush1.bf16.msra.mxu0 %v11688_v54  ;;  %v11826_v54 = vld [vmem:[#allocation2 + $0x448] sm:$0xff] }
 0x7c0   :  { %5722 = vmatprep.subr.bf16.mxu0 %v11691_v60  ;;  %5430 = vmatpush1.bf16.msra.mxu1 %v11815_v45  ;;  %v11831_v60 = vld [vmem:[#allocation2 + $0x440] sm:$0xff] }
 0x7c1   :  { %5431 = vmatprep.subr.bf16.mxu1 %v11818_v56 }
 0x7c3   :  { %5723 = vmatpush1.bf16.msra.mxu0 %v11696_v55  ;;  %v11834_v55 = vld [vmem:[#allocation2 + $0x458] sm:$0xff] }
 0x7c4   :  { %5724 = vmatprep.subr.bf16.mxu0 %v11699_v17  ;;  %5432 = vmatpush1.bf16.msra.mxu1 %v11823_v8  ;;  %v11839_v17 = vld [vmem:[#allocation2 + $0x450] sm:$0xff] }
 0x7c5   :  { %5433 = vmatprep.subr.bf16.mxu1 %v11826_v54 }
 0x7c7   :  { %5725 = vmatpush1.bf16.msra.mxu0 %v11704_v0  ;;  %v11842_v0 = vld [vmem:[#allocation2 + $0x468] sm:$0xff] }
 0x7c8   :  { %5726 = vmatprep.subr.bf16.mxu0 %v11707_v48  ;;  %5434 = vmatpush1.bf16.msra.mxu1 %v11831_v60  ;;  %v11847_v48 = vld [vmem:[#allocation2 + $0x460] sm:$0xff] }
 0x7c9   :  { %5435 = vmatprep.subr.bf16.mxu1 %v11834_v55 }
 0x7cb   :  { %5727 = vmatpush1.bf16.msra.mxu0 %v11712_v33  ;;  %v11850_v33 = vld [vmem:[#allocation2 + $0x478] sm:$0xff] }
 0x7cc   :  { %5728 = vmatprep.subr.bf16.mxu0 %v11715_v38  ;;  %5436 = vmatpush1.bf16.msra.mxu1 %v11839_v17  ;;  %v11855_v38 = vld [vmem:[#allocation2 + $0x470] sm:$0xff] }
 0x7cd   :  { %5437 = vmatprep.subr.bf16.mxu1 %v11842_v0 }
 0x7cf   :  { %5729 = vmatpush1.bf16.msra.mxu0 %v11720_v10  ;;  %v11858_v10 = vld [vmem:[#allocation2 + $0x488] sm:$0xff] }
 0x7d0   :  { %5730 = vmatprep.subr.bf16.mxu0 %v11723_v22  ;;  %5438 = vmatpush1.bf16.msra.mxu1 %v11847_v48  ;;  %v11863_v22 = vld [vmem:[#allocation2 + $0x480] sm:$0xff] }
 0x7d1   :  { %5439 = vmatprep.subr.bf16.mxu1 %v11850_v33 }
 0x7d3   :  { %5731 = vmatpush1.bf16.msra.mxu0 %v11728_v39  ;;  %v11866_v39 = vld [vmem:[#allocation2 + $0x498] sm:$0xff] }
 0x7d4   :  { %5732 = vmatprep.subr.bf16.mxu0 %v11731_v26  ;;  %5440 = vmatpush1.bf16.msra.mxu1 %v11855_v38  ;;  %v11871_v26 = vld [vmem:[#allocation2 + $0x490] sm:$0xff] }
 0x7d5   :  { %5441 = vmatprep.subr.bf16.mxu1 %v11858_v10 }
 0x7d7   :  { %5733 = vmatpush1.bf16.msra.mxu0 %v11736_v44  ;;  %v11874_v44 = vld [vmem:[#allocation2 + $0x4a8] sm:$0xff] }
 0x7d8   :  { %5734 = vmatprep.subr.bf16.mxu0 %v11739_v21  ;;  %5442 = vmatpush1.bf16.msra.mxu1 %v11863_v22  ;;  %v11879_v21 = vld [vmem:[#allocation2 + $0x4a0] sm:$0xff] }
 0x7d9   :  { %5443 = vmatprep.subr.bf16.mxu1 %v11866_v39 }
 0x7db   :  { %5735 = vmatpush1.bf16.msra.mxu0 %v11744_v43  ;;  %v11882_v43 = vld [vmem:[#allocation2 + $0x4b8] sm:$0xff] }
 0x7dc   :  { %5736 = vmatprep.subr.bf16.mxu0 %v11747_v36  ;;  %5444 = vmatpush1.bf16.msra.mxu1 %v11871_v26  ;;  %v11887_v36 = vld [vmem:[#allocation2 + $0x4b0] sm:$0xff] }
 0x7dd   :  { %5445 = vmatprep.subr.bf16.mxu1 %v11874_v44 }
 0x7df   :  { %5737 = vmatpush1.bf16.msra.mxu0 %v11752_v42  ;;  %v11890_v42 = vld [vmem:[#allocation2 + $0x4c8] sm:$0xff] }
 0x7e0   :  { %5738 = vmatprep.subr.bf16.mxu0 %v11759_v52  ;;  %5446 = vmatpush1.bf16.msra.mxu1 %v11879_v21  ;;  %v11897_v52 = vpop.permute.xlu1 %5216 }
 0x7e1   :  { %5447 = vmatprep.subr.bf16.mxu1 %v11882_v43 }
 0x7e3   :  { %5739 = vmatpush1.bf16.msra.mxu0 %v11772_v2  ;;  %v11895_v2 = vld [vmem:[#allocation2 + $0x4c0] sm:$0xff] }
 0x7e4   :  { %5740 = vmatprep.subr.bf16.mxu0 %v11775_v40  ;;  %5448 = vmatpush1.bf16.msra.mxu1 %v11887_v36  ;;  %v11902_v40 = vld [vmem:[#allocation2 + $0x4d8] sm:$0xff] }
 0x7e5   :  { %5449 = vmatprep.subr.bf16.mxu1 %v11890_v42 }
 0x7e7   :  { %5741 = vmatpush1.bf16.msra.mxu0 %v11781_v59  ;;  %v11907_v59 = vsel %vm3826_vm2, %v11612_v58, %v11754_v34  ;;  %v11924_v34 = vld [vmem:[#allocation2 + $0x4e0] sm:$0xff] }
 0x7e8   :  { %5742 = vmatprep.subr.bf16.mxu0 %v11784_v3  ;;  %v5238_v3 = vsel %vm3826_vm2, %v11897_v52, %v11899_v19  ;;  %5450 = vmatpush1.bf16.msra.mxu1 %v11895_v2 }
 0x7e9   :  { %5451 = vmatprep.subr.bf16.mxu1 %v11902_v40 }
 0x7eb   :  { %5743 = vmatpush1.bf16.msra.mxu0 %v11789_v53  ;;  %v11916_v53 = vld [vmem:[#allocation2 + $0x4d0] sm:$0xff] }
 0x7ec   :  { %5753 = vmatprep.subr.bf16.mxu0 %v11792_v27  ;;  %v11919_v27 = vld [vmem:[#allocation2 + $0x4e8] sm:$0xff]  ;;  %5452 = vmatpush1.bf16.msra.mxu1 %v11916_v53 }
 0x7ed   :  { %5453 = vmatprep.subr.bf16.mxu1 %v11919_v27 }
 0x7ee   :  { %5745 = vmatmul.mubr.bf16.vlgmr.msra.gmra.mrb[72].mxu0 %v11907_v59 }
 0x7ef   :  { %5754 = vmatpush1.bf16.msra.mxu0 %v11797_v32  ;;  %5785 = vmatprep.mubr.bf16.mxu0 %v5238_v3  ;;  %v11927_v32 = vld [vmem:[#allocation2 + $0x4f8] sm:$0xff]  ;;  %v11935_v3 = vld [vmem:[#allocation2 + $0x508] sm:$0xff] }
 0x7f0   :  { %5755 = vmatprep.subr.bf16.mxu0 %v11800_v9  ;;  %5454 = vmatpush1.bf16.msra.mxu1 %v11924_v34  ;;  %v11932_v9 = vld [vmem:[#allocation2 + $0x4f0] sm:$0xff] }
 0x7f1   :  { %5455 = vmatprep.subr.bf16.mxu1 %v11927_v32 }
 0x7f3   :  { %5756 = vmatpush1.bf16.msra.mxu0 %v11807_v63  ;;  %v11940_v63 = vld [vmem:[#allocation2 + $0x500] sm:$0xff] }
 0x7f4   :  { %5757 = vmatprep.subr.bf16.mxu0 %v11810_v12  ;;  %5456 = vmatpush1.bf16.msra.mxu1 %v11932_v9  ;;  %v11943_v12 = vld [vmem:[#allocation2 + $0x518] sm:$0xff] }
 0x7f5   :  { %5466 = vmatprep.subr.bf16.mxu1 %v11935_v3 }
 0x7f7   :  { %5758 = vmatpush1.bf16.msra.mxu0 %v11815_v45  ;;  %5458 = vmatmul.mubr.bf16.vlgmr.msra.gmra.mrb[64].mxu1 %v11333_v62  ;;  %v11950_v45 = vld [vmem:[#allocation2 + $0x510] sm:$0xff] }
 0x7f8   :  { %5759 = vmatprep.subr.bf16.mxu0 %v11818_v56  ;;  %5467 = vmatpush1.bf16.msra.mxu1 %v11940_v63  ;;  %v11953_v56 = vld [vmem:[#allocation2 + $0x528] sm:$0xff] }
 0x7f9   :  { %5498 = vmatprep.mubr.bf16.mxu1 %v11345_v35  ;;  %5468 = vmatprep.subr.bf16.mxu1 %v11943_v12  ;;  %v11961_v35 = vld [vmem:[#allocation2 + $0x538] sm:$0xff] }
 0x7fb   :  { %5760 = vmatpush1.bf16.msra.mxu0 %v11823_v8  ;;  %v11958_v8 = vld [vmem:[#allocation2 + $0x520] sm:$0xff] }
 0x7fc   :  { %5761 = vmatprep.subr.bf16.mxu0 %v11826_v54  ;;  %5469 = vmatpush1.bf16.msra.mxu1 %v11950_v45  ;;  %v11966_v54 = vld [vmem:[#allocation2 + $0x530] sm:$0xff] }
 0x7fd   :  { %5470 = vmatprep.subr.bf16.mxu1 %v11953_v56 }
 0x7ff   :  { %5762 = vmatpush1.bf16.msra.mxu0 %v11831_v60  ;;  %v11969_v60 = vld [vmem:[#allocation2 + $0x548] sm:$0xff] }
 0x800   :  { %5763 = vmatprep.subr.bf16.mxu0 %v11834_v55  ;;  %5471 = vmatpush1.bf16.msra.mxu1 %v11958_v8  ;;  %v11974_v55 = vld [vmem:[#allocation2 + $0x540] sm:$0xff] }
 0x801   :  { %5472 = vmatprep.subr.bf16.mxu1 %v11961_v35 }
 0x803   :  { %5764 = vmatpush1.bf16.msra.mxu0 %v11839_v17  ;;  %v11977_v17 = vld [vmem:[#allocation2 + $0x558] sm:$0xff] }
 0x804   :  { %5765 = vmatprep.subr.bf16.mxu0 %v11842_v0  ;;  %5473 = vmatpush1.bf16.msra.mxu1 %v11966_v54  ;;  %v11982_v0 = vld [vmem:[#allocation2 + $0x550] sm:$0xff] }
 0x805   :  { %5474 = vmatprep.subr.bf16.mxu1 %v11969_v60 }
 0x807   :  { %5766 = vmatpush1.bf16.msra.mxu0 %v11847_v48  ;;  %v11985_v48 = vld [vmem:[#allocation2 + $0x568] sm:$0xff] }
 0x808   :  { %5767 = vmatprep.subr.bf16.mxu0 %v11850_v33  ;;  %5475 = vmatpush1.bf16.msra.mxu1 %v11974_v55  ;;  %v11990_v33 = vld [vmem:[#allocation2 + $0x560] sm:$0xff] }
 0x809   :  { %5476 = vmatprep.subr.bf16.mxu1 %v11977_v17 }
 0x80b   :  { %5768 = vmatpush1.bf16.msra.mxu0 %v11855_v38  ;;  %v11993_v38 = vld [vmem:[#allocation2 + $0x578] sm:$0xff] }
 0x80c   :  { %5769 = vmatprep.subr.bf16.mxu0 %v11858_v10  ;;  %5477 = vmatpush1.bf16.msra.mxu1 %v11982_v0  ;;  %v11998_v10 = vld [vmem:[#allocation2 + $0x570] sm:$0xff] }
 0x80d   :  { %5478 = vmatprep.subr.bf16.mxu1 %v11985_v48 }
 0x80f   :  { %5770 = vmatpush1.bf16.msra.mxu0 %v11863_v22  ;;  %v12001_v22 = vld [vmem:[#allocation2 + $0x588] sm:$0xff] }
 0x810   :  { %5771 = vmatprep.subr.bf16.mxu0 %v11866_v39  ;;  %5479 = vmatpush1.bf16.msra.mxu1 %v11990_v33  ;;  %v12006_v39 = vld [vmem:[#allocation2 + $0x580] sm:$0xff] }
 0x811   :  { %5480 = vmatprep.subr.bf16.mxu1 %v11993_v38 }
 0x813   :  { %5772 = vmatpush1.bf16.msra.mxu0 %v11871_v26  ;;  %v12009_v26 = vld [vmem:[#allocation2 + $0x598] sm:$0xff] }
 0x814   :  { %5773 = vmatprep.subr.bf16.mxu0 %v11874_v44  ;;  %5481 = vmatpush1.bf16.msra.mxu1 %v11998_v10  ;;  %v12014_v44 = vld [vmem:[#allocation2 + $0x590] sm:$0xff] }
 0x815   :  { %5482 = vmatprep.subr.bf16.mxu1 %v12001_v22 }
 0x817   :  { %5774 = vmatpush1.bf16.msra.mxu0 %v11879_v21  ;;  %v12017_v21 = vld [vmem:[#allocation2 + $0x5a8] sm:$0xff] }
 0x818   :  { %5775 = vmatprep.subr.bf16.mxu0 %v11882_v43  ;;  %5483 = vmatpush1.bf16.msra.mxu1 %v12006_v39  ;;  %v12022_v43 = vld [vmem:[#allocation2 + $0x5a0] sm:$0xff] }
 0x819   :  { %5484 = vmatprep.subr.bf16.mxu1 %v12009_v26 }
 0x81b   :  { %5776 = vmatpush1.bf16.msra.mxu0 %v11887_v36  ;;  %v12025_v36 = vld [vmem:[#allocation2 + $0x5b8] sm:$0xff] }
 0x81c   :  { %5777 = vmatprep.subr.bf16.mxu0 %v11890_v42  ;;  %5485 = vmatpush1.bf16.msra.mxu1 %v12014_v44  ;;  %v12030_v42 = vld [vmem:[#allocation2 + $0x5b0] sm:$0xff] }
 0x81d   :  { %5486 = vmatprep.subr.bf16.mxu1 %v12017_v21 }
 0x81f   :  { %5778 = vmatpush1.bf16.msra.mxu0 %v11895_v2  ;;  %v12033_v2 = vld [vmem:[#allocation2 + $0x5c8] sm:$0xff] }
 0x820   :  { %5779 = vmatprep.subr.bf16.mxu0 %v11902_v40  ;;  %5487 = vmatpush1.bf16.msra.mxu1 %v12022_v43  ;;  %v12038_v40 = vld [vmem:[#allocation2 + $0x5c0] sm:$0xff] }
 0x821   :  { %5488 = vmatprep.subr.bf16.mxu1 %v12025_v36 }
 0x823   :  { %5780 = vmatpush1.bf16.msra.mxu0 %v11916_v53  ;;  %v12040_v53 = vpop.permute.xlu1 %5220 }
 0x824   :  { %5781 = vmatprep.subr.bf16.mxu0 %v11919_v27  ;;  %5489 = vmatpush1.bf16.msra.mxu1 %v12030_v42  ;;  %v12042_v27 = vpop.permute.xlu0 %5222 }
 0x825   :  { %5490 = vmatprep.subr.bf16.mxu1 %v12033_v2 }
 0x827   :  { %5782 = vmatpush1.bf16.msra.mxu0 %v11924_v34  ;;  %v12045_v34 = vld [vmem:[#allocation2 + $0x5d8] sm:$0xff] }
 0x828   :  { %5783 = vmatprep.subr.bf16.mxu0 %v11927_v32  ;;  %v5237_v32 = vsel %vm3826_vm2, %v11756_v51, %v11897_v52  ;;  %5491 = vmatpush1.bf16.msra.mxu1 %v12038_v40  ;;  %v12064_v52 = vld [vmem:[#allocation2 + $0x5e0] sm:$0xff] }
 0x829   :  { %5492 = vmatprep.subr.bf16.mxu1 %v12045_v34 }
 0x82b   :  { %5784 = vmatpush1.bf16.msra.mxu0 %v11932_v9  ;;  %v5240_v9 = vsel %vm3826_vm2, %v12040_v53, %v12042_v27 }
 0x82c   :  { %5794 = vmatprep.subr.bf16.mxu0 %v11935_v3  ;;  %v12059_v3 = vld [vmem:[#allocation2 + $0x5e8] sm:$0xff]  ;;  %5493 = vmatpush1.bf16.msra.mxu1 %v12056_v50 }
 0x82d   :  { %5494 = vmatprep.subr.bf16.mxu1 %v12059_v3 }
 0x82e   :  { %5786 = vmatmul.mubr.bf16.vlgmr.msra.gmra.mrb[72].mxu0 %v5237_v32  ;;  %v12075_v32 = vld [vmem:[#allocation2 + $0x608] sm:$0xff] }
 0x82f   :  { %5795 = vmatpush1.bf16.msra.mxu0 %v11940_v63  ;;  %5826 = vmatprep.mubr.bf16.mxu0 %v5240_v9  ;;  %v12067_v63 = vld [vmem:[#allocation2 + $0x5f8] sm:$0xff]  ;;  %v12182_v9 = vpop.permute.xlu0 %5226 }
 0x830   :  { %5796 = vmatprep.subr.bf16.mxu0 %v11943_v12  ;;  %5495 = vmatpush1.bf16.msra.mxu1 %v12064_v52  ;;  %v12072_v12 = vld [vmem:[#allocation2 + $0x5f0] sm:$0xff] }
 0x831   :  { %5496 = vmatprep.subr.bf16.mxu1 %v12067_v63 }
 0x833   :  { %5797 = vmatpush1.bf16.msra.mxu0 %v11950_v45  ;;  %v12080_v45 = vld [vmem:[#allocation2 + $0x600] sm:$0xff] }
 0x834   :  { %5798 = vmatprep.subr.bf16.mxu0 %v11953_v56  ;;  %5497 = vmatpush1.bf16.msra.mxu1 %v12072_v12  ;;  %v12083_v56 = vld [vmem:[#allocation2 + $0x618] sm:$0xff] }
 0x835   :  { %5507 = vmatprep.subr.bf16.mxu1 %v12075_v32 }
 0x837   :  { %5799 = vmatpush1.bf16.msra.mxu0 %v11958_v8  ;;  %5499 = vmatmul.mubr.bf16.vlgmr.msra.gmra.mrb[64].mxu1 %v11343_v7  ;;  %v12090_v8 = vld [vmem:[#allocation2 + $0x610] sm:$0xff]  ;;  %v12098_v7 = vld [vmem:[#allocation2 + $0x620] sm:$0xff] }
 0x838   :  { %5800 = vmatprep.subr.bf16.mxu0 %v11961_v35  ;;  %5508 = vmatpush1.bf16.msra.mxu1 %v12080_v45  ;;  %v12093_v35 = vld [vmem:[#allocation2 + $0x628] sm:$0xff] }
 0x839   :  { %5539 = vmatprep.mubr.bf16.mxu1 %v11355_v29  ;;  %5509 = vmatprep.subr.bf16.mxu1 %v12083_v56 }
 0x83b   :  { %5801 = vmatpush1.bf16.msra.mxu0 %v11966_v54  ;;  %v12101_v54 = vld [vmem:[#allocation2 + $0x638] sm:$0xff] }
 0x83c   :  { %5802 = vmatprep.subr.bf16.mxu0 %v11969_v60  ;;  %5510 = vmatpush1.bf16.msra.mxu1 %v12090_v8  ;;  %v12106_v60 = vld [vmem:[#allocation2 + $0x630] sm:$0xff] }
 0x83d   :  { %5511 = vmatprep.subr.bf16.mxu1 %v12093_v35 }
 0x83f   :  { %5803 = vmatpush1.bf16.msra.mxu0 %v11974_v55  ;;  %v12109_v55 = vld [vmem:[#allocation2 + $0x648] sm:$0xff] }
 0x840   :  { %5804 = vmatprep.subr.bf16.mxu0 %v11977_v17  ;;  %5512 = vmatpush1.bf16.msra.mxu1 %v12098_v7  ;;  %v12114_v17 = vld [vmem:[#allocation2 + $0x640] sm:$0xff] }
 0x841   :  { %5513 = vmatprep.subr.bf16.mxu1 %v12101_v54 }
 0x843   :  { %5805 = vmatpush1.bf16.msra.mxu0 %v11982_v0  ;;  %v12117_v0 = vld [vmem:[#allocation2 + $0x658] sm:$0xff] }
 0x844   :  { %5806 = vmatprep.subr.bf16.mxu0 %v11985_v48  ;;  %5514 = vmatpush1.bf16.msra.mxu1 %v12106_v60  ;;  %v12122_v48 = vld [vmem:[#allocation2 + $0x650] sm:$0xff] }
 0x845   :  { %5515 = vmatprep.subr.bf16.mxu1 %v12109_v55 }
 0x847   :  { %5807 = vmatpush1.bf16.msra.mxu0 %v11990_v33  ;;  %v12125_v33 = vld [vmem:[#allocation2 + $0x668] sm:$0xff] }
 0x848   :  { %5808 = vmatprep.subr.bf16.mxu0 %v11993_v38  ;;  %5516 = vmatpush1.bf16.msra.mxu1 %v12114_v17  ;;  %v12130_v38 = vld [vmem:[#allocation2 + $0x660] sm:$0xff] }
 0x849   :  { %5517 = vmatprep.subr.bf16.mxu1 %v12117_v0 }
 0x84b   :  { %5809 = vmatpush1.bf16.msra.mxu0 %v11998_v10  ;;  %v12133_v10 = vld [vmem:[#allocation2 + $0x678] sm:$0xff] }
 0x84c   :  { %5810 = vmatprep.subr.bf16.mxu0 %v12001_v22  ;;  %5518 = vmatpush1.bf16.msra.mxu1 %v12122_v48  ;;  %v12138_v22 = vld [vmem:[#allocation2 + $0x670] sm:$0xff] }
 0x84d   :  { %5519 = vmatprep.subr.bf16.mxu1 %v12125_v33 }
 0x84f   :  { %5811 = vmatpush1.bf16.msra.mxu0 %v12006_v39  ;;  %v12141_v39 = vld [vmem:[#allocation2 + $0x688] sm:$0xff] }
 0x850   :  { %5812 = vmatprep.subr.bf16.mxu0 %v12009_v26  ;;  %5520 = vmatpush1.bf16.msra.mxu1 %v12130_v38  ;;  %v12146_v26 = vld [vmem:[#allocation2 + $0x680] sm:$0xff] }
 0x851   :  { %5521 = vmatprep.subr.bf16.mxu1 %v12133_v10 }
 0x853   :  { %5813 = vmatpush1.bf16.msra.mxu0 %v12014_v44  ;;  %v12149_v44 = vld [vmem:[#allocation2 + $0x698] sm:$0xff] }
 0x854   :  { %5814 = vmatprep.subr.bf16.mxu0 %v12017_v21  ;;  %5522 = vmatpush1.bf16.msra.mxu1 %v12138_v22  ;;  %v12154_v21 = vld [vmem:[#allocation2 + $0x690] sm:$0xff] }
 0x855   :  { %5523 = vmatprep.subr.bf16.mxu1 %v12141_v39 }
 0x857   :  { %5815 = vmatpush1.bf16.msra.mxu0 %v12022_v43  ;;  %v12157_v43 = vld [vmem:[#allocation2 + $0x6a8] sm:$0xff] }
 0x858   :  { %5816 = vmatprep.subr.bf16.mxu0 %v12025_v36  ;;  %5524 = vmatpush1.bf16.msra.mxu1 %v12146_v26  ;;  %v12162_v36 = vld [vmem:[#allocation2 + $0x6a0] sm:$0xff] }
 0x859   :  { %5525 = vmatprep.subr.bf16.mxu1 %v12149_v44 }
 0x85b   :  { %5817 = vmatpush1.bf16.msra.mxu0 %v12030_v42  ;;  %v12165_v42 = vld [vmem:[#allocation2 + $0x6b8] sm:$0xff] }
 0x85c   :  { %5818 = vmatprep.subr.bf16.mxu0 %v12033_v2  ;;  %5526 = vmatpush1.bf16.msra.mxu1 %v12154_v21  ;;  %v12170_v2 = vld [vmem:[#allocation2 + $0x6b0] sm:$0xff] }
 0x85d   :  { %5527 = vmatprep.subr.bf16.mxu1 %v12157_v43 }
 0x85f   :  { %5819 = vmatpush1.bf16.msra.mxu0 %v12038_v40  ;;  %v12173_v40 = vld [vmem:[#allocation2 + $0x6c8] sm:$0xff] }
 0x860   :  { %5820 = vmatprep.subr.bf16.mxu0 %v12045_v34  ;;  %5528 = vmatpush1.bf16.msra.mxu1 %v12162_v36  ;;  %v12180_v34 = vpop.permute.xlu1 %5224 }
 0x861   :  { %5529 = vmatprep.subr.bf16.mxu1 %v12165_v42 }
 0x863   :  { %5821 = vmatpush1.bf16.msra.mxu0 %v12056_v50  ;;  %v12178_v50 = vld [vmem:[#allocation2 + $0x6c0] sm:$0xff] }
 0x864   :  { %5822 = vmatprep.subr.bf16.mxu0 %v12059_v3  ;;  %5530 = vmatpush1.bf16.msra.mxu1 %v12170_v2  ;;  %v12185_v3 = vld [vmem:[#allocation2 + $0x6d8] sm:$0xff] }
 0x865   :  { %5531 = vmatprep.subr.bf16.mxu1 %v12173_v40 }
 0x867   :  { %5823 = vmatpush1.bf16.msra.mxu0 %v12064_v52  ;;  %v5239_v52 = vsel %vm3826_vm2, %v11899_v19, %v12040_v53  ;;  %v12207_v19 = vld [vmem:[#allocation2 + $0x6e0] sm:$0xff]  ;;  %v12210_v53 = vld [vmem:[#allocation2 + $0x6f8] sm:$0xff] }
 0x868   :  { %5824 = vmatprep.subr.bf16.mxu0 %v12067_v63  ;;  %v12193_v63 = vsel %vm3826_vm2, %v12180_v34, %v12182_v9  ;;  %5532 = vmatpush1.bf16.msra.mxu1 %v12178_v50 }
 0x869   :  { %5533 = vmatprep.subr.bf16.mxu1 %v12185_v3 }
 0x86b   :  { %5825 = vmatpush1.bf16.msra.mxu0 %v12072_v12  ;;  %v12198_v12 = vld [vmem:[#allocation2 + $0x6d0] sm:$0xff] }
 0x86c   :  { %5835 = vmatprep.subr.bf16.mxu0 %v12075_v32  ;;  %v12201_v32 = vld [vmem:[#allocation2 + $0x6e8] sm:$0xff]  ;;  %5534 = vmatpush1.bf16.msra.mxu1 %v12198_v12 }
 0x86d   :  { %5535 = vmatprep.subr.bf16.mxu1 %v12201_v32 }
 0x86e   :  { %5827 = vmatmul.mubr.bf16.vlgmr.msra.gmra.mrb[72].mxu0 %v5239_v52  ;;  %v12330_v52 = vld [vmem:[#allocation2 + $0x40] sm:$0xff] }
 0x86f   :  { %5836 = vmatpush1.bf16.msra.mxu0 %v12080_v45  ;;  %5867 = vmatprep.mubr.bf16.mxu0 %v12193_v63  ;;  %v12215_v45 = vld [vmem:[#allocation2 + $0x6f0] sm:$0xff] }
 0x870   :  { %5837 = vmatprep.subr.bf16.mxu0 %v12083_v56  ;;  %5536 = vmatpush1.bf16.msra.mxu1 %v12207_v19  ;;  %v12218_v56 = vld [vmem:[#allocation2 + $0x708] sm:$0xff] }
 0x871   :  { %5537 = vmatprep.subr.bf16.mxu1 %v12210_v53 }
 0x873   :  { %5838 = vmatpush1.bf16.msra.mxu0 %v12090_v8  ;;  %v12223_v8 = vld [vmem:[#allocation2 + $0x700] sm:$0xff] }
 0x874   :  { %5839 = vmatprep.subr.bf16.mxu0 %v12093_v35  ;;  %5538 = vmatpush1.bf16.msra.mxu1 %v12215_v45  ;;  %v12226_v35 = vld [vmem:[#allocation2 + $0x718] sm:$0xff] }
 0x875   :  { %5548 = vmatprep.subr.bf16.mxu1 %v12218_v56 }
 0x877   :  { %5840 = vmatpush1.bf16.msra.mxu0 %v12098_v7  ;;  %5540 = vmatmul.mubr.bf16.vlgmr.msra.gmra.mrb[64].mxu1 %v11352_v6  ;;  %v12233_v7 = vld [vmem:[#allocation2 + $0x710] sm:$0xff] }
 0x878   :  { %5841 = vmatprep.subr.bf16.mxu0 %v12101_v54  ;;  %5549 = vmatpush1.bf16.msra.mxu1 %v12223_v8  ;;  %v12236_v54 = vld [vmem:[#allocation2 + $0x728] sm:$0xff] }
 0x879   :  { %5580 = vmatprep.mubr.bf16.mxu1 %v13523_v23  ;;  %5550 = vmatprep.subr.bf16.mxu1 %v12226_v35 }
 0x87b   :  { %5842 = vmatpush1.bf16.msra.mxu0 %v12106_v60  ;;  %v12241_v60 = vld [vmem:[#allocation2 + $0x720] sm:$0xff] }
 0x87c   :  { %5843 = vmatprep.subr.bf16.mxu0 %v12109_v55  ;;  %5551 = vmatpush1.bf16.msra.mxu1 %v12233_v7  ;;  %v12244_v55 = vld [vmem:[#allocation2 + $0x738] sm:$0xff] }
 0x87d   :  { %5552 = vmatprep.subr.bf16.mxu1 %v12236_v54 }
 0x87f   :  { %5844 = vmatpush1.bf16.msra.mxu0 %v12114_v17  ;;  %v12249_v17 = vld [vmem:[#allocation2 + $0x730] sm:$0xff] }
 0x880   :  { %5845 = vmatprep.subr.bf16.mxu0 %v12117_v0  ;;  %5553 = vmatpush1.bf16.msra.mxu1 %v12241_v60  ;;  %v12252_v0 = vld [vmem:[#allocation2 + $0x748] sm:$0xff] }
 0x881   :  { %5554 = vmatprep.subr.bf16.mxu1 %v12244_v55 }
 0x883   :  { %5846 = vmatpush1.bf16.msra.mxu0 %v12122_v48  ;;  %v12257_v48 = vld [vmem:[#allocation2 + $0x740] sm:$0xff] }
 0x884   :  { %5847 = vmatprep.subr.bf16.mxu0 %v12125_v33  ;;  %5555 = vmatpush1.bf16.msra.mxu1 %v12249_v17  ;;  %v12260_v33 = vld [vmem:[#allocation2 + $0x758] sm:$0xff] }
 0x885   :  { %5556 = vmatprep.subr.bf16.mxu1 %v12252_v0 }
 0x887   :  { %5848 = vmatpush1.bf16.msra.mxu0 %v12130_v38  ;;  %v12265_v38 = vld [vmem:[#allocation2 + $0x750] sm:$0xff] }
 0x888   :  { %5849 = vmatprep.subr.bf16.mxu0 %v12133_v10  ;;  %5557 = vmatpush1.bf16.msra.mxu1 %v12257_v48  ;;  %v12268_v10 = vld [vmem:[#allocation2 + $0x768] sm:$0xff] }
 0x889   :  { %5558 = vmatprep.subr.bf16.mxu1 %v12260_v33 }
 0x88b   :  { %5850 = vmatpush1.bf16.msra.mxu0 %v12138_v22  ;;  %v12273_v22 = vld [vmem:[#allocation2 + $0x760] sm:$0xff] }
 0x88c   :  { %5851 = vmatprep.subr.bf16.mxu0 %v12141_v39  ;;  %5559 = vmatpush1.bf16.msra.mxu1 %v12265_v38  ;;  %v12276_v39 = vld [vmem:[#allocation2 + $0x778] sm:$0xff] }
 0x88d   :  { %5560 = vmatprep.subr.bf16.mxu1 %v12268_v10 }
 0x88f   :  { %5852 = vmatpush1.bf16.msra.mxu0 %v12146_v26  ;;  %v12281_v26 = vld [vmem:[#allocation2 + $0x770] sm:$0xff] }
 0x890   :  { %5853 = vmatprep.subr.bf16.mxu0 %v12149_v44  ;;  %5561 = vmatpush1.bf16.msra.mxu1 %v12273_v22  ;;  %v12286_v44 = vld [vmem:[#allocation2 + $0x8] sm:$0xff] }
 0x891   :  { %5562 = vmatprep.subr.bf16.mxu1 %v12276_v39 }
 0x893   :  { %5854 = vmatpush1.bf16.msra.mxu0 %v12154_v21  ;;  %v12291_v21 = vld [vmem:[#allocation2] sm:$0xff] }
 0x894   :  { %5855 = vmatprep.subr.bf16.mxu0 %v12157_v43  ;;  %5563 = vmatpush1.bf16.msra.mxu1 %v12281_v26  ;;  %v12296_v43 = vld [vmem:[#allocation2 + $0x18] sm:$0xff] }
 0x895   :  { %5975 = vmatprep.subr.bf16.mxu1 %v12286_v44 }
 0x897   :  { %5856 = vmatpush1.bf16.msra.mxu0 %v12162_v36  ;;  %5581 = vmatmul.mubr.bf16.vlgmr.msra.gmra.mrb[64].mxu1 %v11364_v18  ;;  %v12300_v36 = vld [vmem:[#allocation2 + $0x10] sm:$0xff] }
 0x898   :  { %5857 = vmatprep.subr.bf16.mxu0 %v12165_v42  ;;  %5976 = vmatpush1.bf16.msra.mxu1 %v12291_v21  ;;  %v12304_v42 = vld [vmem:[#allocation2 + $0x28] sm:$0xff] }
 0x899   :  { %6007 = vmatprep.mubr.bf16.mxu1 %v11290_v13  ;;  %5977 = vmatprep.subr.bf16.mxu1 %v12296_v43  ;;  %v12308_v13 = vld [vmem:[#allocation2 + $0x20] sm:$0xff] }
 0x89b   :  { %5858 = vmatpush1.bf16.msra.mxu0 %v12170_v2  ;;  %v12312_v2 = vld [vmem:[#allocation2 + $0x38] sm:$0xff] }
 0x89c   :  { %5859 = vmatprep.subr.bf16.mxu0 %v12173_v40  ;;  %5978 = vmatpush1.bf16.msra.mxu1 %v12300_v36  ;;  %v12316_v40 = vld [vmem:[#allocation2 + $0x30] sm:$0xff] }
 0x89d   :  { %5979 = vmatprep.subr.bf16.mxu1 %v12304_v42 }
 0x89f   :  { %5860 = vmatpush1.bf16.msra.mxu0 %v12178_v50  ;;  %v12320_v50 = vld [vmem:[#allocation2 + $0x48] sm:$0xff] }
 0x8a0   :  { %5861 = vmatprep.subr.bf16.mxu0 %v12185_v3  ;;  %5980 = vmatpush1.bf16.msra.mxu1 %v12308_v13  ;;  %v12327_v3 = vsel %vm3826_vm2, %v12042_v27, %v12180_v34  ;;  %v12343_v34 = vld [vmem:[#allocation2 + $0x68] sm:$0xff] }
 0x8a1   :  { %5981 = vmatprep.subr.bf16.mxu1 %v12312_v2 }
 0x8a3   :  { %5862 = vmatpush1.bf16.msra.mxu0 %v12198_v12  ;;  %v12334_v12 = vld [vmem:[#allocation2 + $0x58] sm:$0xff] }
 0x8a4   :  { %5863 = vmatprep.subr.bf16.mxu0 %v12201_v32  ;;  %5982 = vmatpush1.bf16.msra.mxu1 %v12316_v40  ;;  %v12339_v32 = vld [vmem:[#allocation2 + $0x50] sm:$0xff] }
 0x8a5   :  { %5983 = vmatprep.subr.bf16.mxu1 %v12320_v50 }
 0x8a7   :  { %5864 = vmatpush1.bf16.msra.mxu0 %v12207_v19  ;;  %v12347_v19 = vld [vmem:[#allocation2 + $0x60] sm:$0xff] }
 0x8a8   :  { %5865 = vmatprep.subr.bf16.mxu0 %v12210_v53  ;;  %5984 = vmatpush1.bf16.msra.mxu1 %v12330_v52  ;;  %v12351_v53 = vld [vmem:[#allocation2 + $0x78] sm:$0xff] }
 0x8a9   :  { %5985 = vmatprep.subr.bf16.mxu1 %v12334_v12 }
 0x8ab   :  { %5866 = vmatpush1.bf16.msra.mxu0 %v12215_v45  ;;  %v12355_v45 = vld [vmem:[#allocation2 + $0x70] sm:$0xff] }
 0x8ac   :  { %5876 = vmatprep.subr.bf16.mxu0 %v12218_v56  ;;  %5986 = vmatpush1.bf16.msra.mxu1 %v12339_v32  ;;  %v12359_v56 = vld [vmem:[#allocation2 + $0x88] sm:$0xff] }
 0x8ad   :  { %5987 = vmatprep.subr.bf16.mxu1 %v12343_v34 }
 0x8ae   :  { %5868 = vmatmul.mubr.bf16.vlgmr.msra.gmra.mrb[72].mxu0 %v12327_v3 }
 0x8af   :  { %5877 = vmatpush1.bf16.msra.mxu0 %v12223_v8  ;;  %5908 = vmatprep.mubr.bf16.mxu0 %v13523_v23  ;;  %v12363_v8 = vld [vmem:[#allocation2 + $0x80] sm:$0xff] }
 0x8b0   :  { %5878 = vmatprep.subr.bf16.mxu0 %v12226_v35  ;;  %5988 = vmatpush1.bf16.msra.mxu1 %v12347_v19  ;;  %v12367_v35 = vld [vmem:[#allocation2 + $0x98] sm:$0xff] }
 0x8b1   :  { %5989 = vmatprep.subr.bf16.mxu1 %v12351_v53 }
 0x8b3   :  { %5879 = vmatpush1.bf16.msra.mxu0 %v12233_v7  ;;  %v12371_v7 = vld [vmem:[#allocation2 + $0x90] sm:$0xff] }
 0x8b4   :  { %5880 = vmatprep.subr.bf16.mxu0 %v12236_v54  ;;  %5990 = vmatpush1.bf16.msra.mxu1 %v12355_v45  ;;  %v12375_v54 = vld [vmem:[#allocation2 + $0xa8] sm:$0xff] }
 0x8b5   :  { %5991 = vmatprep.subr.bf16.mxu1 %v12359_v56 }
 0x8b7   :  { %5881 = vmatpush1.bf16.msra.mxu0 %v12241_v60  ;;  %v12379_v60 = vld [vmem:[#allocation2 + $0xa0] sm:$0xff] }
 0x8b8   :  { %5882 = vmatprep.subr.bf16.mxu0 %v12244_v55  ;;  %5992 = vmatpush1.bf16.msra.mxu1 %v12363_v8  ;;  %v12383_v55 = vld [vmem:[#allocation2 + $0xb8] sm:$0xff] }
 0x8b9   :  { %5993 = vmatprep.subr.bf16.mxu1 %v12367_v35 }
 0x8bb   :  { %5883 = vmatpush1.bf16.msra.mxu0 %v12249_v17  ;;  %v12387_v17 = vld [vmem:[#allocation2 + $0xb0] sm:$0xff] }
 0x8bc   :  { %5884 = vmatprep.subr.bf16.mxu0 %v12252_v0  ;;  %5994 = vmatpush1.bf16.msra.mxu1 %v12371_v7  ;;  %v12391_v0 = vld [vmem:[#allocation2 + $0xc8] sm:$0xff] }
 0x8bd   :  { %5995 = vmatprep.subr.bf16.mxu1 %v12375_v54 }
 0x8bf   :  { %5885 = vmatpush1.bf16.msra.mxu0 %v12257_v48  ;;  %v6305_v48 = vrot.slane %v11467_v28, 3  ;;  %v12410_v28 = vld [vmem:[#allocation2 + $0xd0] sm:$0xff] }
 0x8c0   :  { %5886 = vmatprep.subr.bf16.mxu0 %v12260_v33  ;;  %5996 = vmatpush1.bf16.msra.mxu1 %v12379_v60  ;;  %v12399_v33 = vsel %vm3826_vm2, %v12182_v9, %v11457_v5  ;;  %v12414_v5 = vld [vmem:[#allocation2 + $0xe8] sm:$0xff]  ;;  %v12418_v9 = vld [vmem:[#allocation2 + $0xe0] sm:$0xff] }
 0x8c1   :  { %5997 = vmatprep.subr.bf16.mxu1 %v12383_v55 }
 0x8c3   :  { %5887 = vmatpush1.bf16.msra.mxu0 %v12265_v38  ;;  %v12402_v38 = vld [vmem:[#allocation2 + $0xc0] sm:$0xff] }
 0x8c4   :  { %5888 = vmatprep.subr.bf16.mxu0 %v12268_v10  ;;  %5998 = vmatpush1.bf16.msra.mxu1 %v12387_v17  ;;  %v12406_v10 = vld [vmem:[#allocation2 + $0xd8] sm:$0xff] }
 0x8c5   :  { %5999 = vmatprep.subr.bf16.mxu1 %v12391_v0 }
 0x8c7   :  { %5889 = vmatpush1.bf16.msra.mxu0 %v12273_v22  ;;  %v12422_v22 = vld [vmem:[#allocation2 + $0xf8] sm:$0xff] }
 0x8c8   :  { %5890 = vmatprep.subr.bf16.mxu0 %v12276_v39  ;;  %6000 = vmatpush1.bf16.msra.mxu1 %v12402_v38  ;;  %v12426_v39 = vld [vmem:[#allocation2 + $0xf0] sm:$0xff] }
 0x8c9   :  { %6001 = vmatprep.subr.bf16.mxu1 %v12406_v10 }
 0x8cb   :  { %5891 = vmatpush1.bf16.msra.mxu0 %v12281_v26  ;;  %v5951_v26 = vrot.slane %v11366_v25, 3  ;;  %v12444_v25 = vld [vmem:[#allocation2 + $0x110] sm:$0xff] }
 0x8cc   :  { %6334 = vmatprep.subr.bf16.mxu0 %v12286_v44  ;;  %6002 = vmatpush1.bf16.msra.mxu1 %v12410_v28  ;;  %v12431_v44 = vld [vmem:[#allocation2 + $0x108] sm:$0xff] }
 0x8cd   :  { %6003 = vmatprep.subr.bf16.mxu1 %v12414_v5 }
 0x8ce   :  { %5909 = vmatmul.mubr.bf16.vlgmr.msra.gmra.mrb[72].mxu0 %v12399_v33 }
 0x8cf   :  { %6335 = vmatpush1.bf16.msra.mxu0 %v12291_v21  ;;  %6366 = vmatprep.mubr.bf16.mxu0 %v6305_v48  ;;  %v12436_v21 = vld [vmem:[#allocation2 + $0x100] sm:$0xff]  ;;  %v12535_v48 = vld [vmem:[#allocation2 + $0x1c8] sm:$0xff] }
 0x8d0   :  { %6336 = vmatprep.subr.bf16.mxu0 %v12296_v43  ;;  %6004 = vmatpush1.bf16.msra.mxu1 %v12418_v9  ;;  %v12440_v43 = vld [vmem:[#allocation2 + $0x118] sm:$0xff] }
 0x8d1   :  { %6005 = vmatprep.subr.bf16.mxu1 %v12422_v22 }
 0x8d3   :  { %6337 = vmatpush1.bf16.msra.mxu0 %v12300_v36  ;;  %v12452_v36 = vld [vmem:[#allocation2 + $0x120] sm:$0xff] }
 0x8d4   :  { %6338 = vmatprep.subr.bf16.mxu0 %v12304_v42  ;;  %6006 = vmatpush1.bf16.msra.mxu1 %v12426_v39  ;;  %v12456_v42 = vld [vmem:[#allocation2 + $0x138] sm:$0xff] }
 0x8d5   :  { %6016 = vmatprep.subr.bf16.mxu1 %v12431_v44 }
 0x8d7   :  { %6339 = vmatpush1.bf16.msra.mxu0 %v12308_v13  ;;  %6008 = vmatmul.mubr.bf16.vlgmr.msra.gmra.mrb[68].mxu1 %v11281_v16  ;;  %v12448_v16 = vld [vmem:[#allocation2 + $0x128] sm:$0xff]  ;;  %v12460_v13 = vld [vmem:[#allocation2 + $0x130] sm:$0xff] }
 0x8d8   :  { %6340 = vmatprep.subr.bf16.mxu0 %v12312_v2  ;;  %6017 = vmatpush1.bf16.msra.mxu1 %v12436_v21  ;;  %v12464_v2 = vld [vmem:[#allocation2 + $0x148] sm:$0xff] }
 0x8d9   :  { %6048 = vmatprep.mubr.bf16.mxu1 %v5951_v26  ;;  %6018 = vmatprep.subr.bf16.mxu1 %v12440_v43  ;;  %v12561_v26 = vld [vmem:[#allocation2 + $0x1f8] sm:$0xff] }
 0x8db   :  { %6341 = vmatpush1.bf16.msra.mxu0 %v12316_v40  ;;  %v12468_v40 = vld [vmem:[#allocation2 + $0x140] sm:$0xff] }
 0x8dc   :  { %6342 = vmatprep.subr.bf16.mxu0 %v12320_v50  ;;  %6019 = vmatpush1.bf16.msra.mxu1 %v12444_v25  ;;  %v12472_v50 = vld [vmem:[#allocation2 + $0x158] sm:$0xff] }
 0x8dd   :  { %6020 = vmatprep.subr.bf16.mxu1 %v12448_v16 }
 0x8df   :  { %6343 = vmatpush1.bf16.msra.mxu0 %v12330_v52  ;;  %v12476_v52 = vld [vmem:[#allocation2 + $0x150] sm:$0xff] }
 0x8e0   :  { %6344 = vmatprep.subr.bf16.mxu0 %v12334_v12  ;;  %6021 = vmatpush1.bf16.msra.mxu1 %v12452_v36  ;;  %v12480_v12 = vld [vmem:[#allocation2 + $0x168] sm:$0xff] }
 0x8e1   :  { %6022 = vmatprep.subr.bf16.mxu1 %v12456_v42 }
 0x8e3   :  { %6345 = vmatpush1.bf16.msra.mxu0 %v12339_v32  ;;  %v12484_v32 = vld [vmem:[#allocation2 + $0x160] sm:$0xff] }
 0x8e4   :  { %6346 = vmatprep.subr.bf16.mxu0 %v12343_v34  ;;  %6023 = vmatpush1.bf16.msra.mxu1 %v12460_v13  ;;  %v12488_v34 = vld [vmem:[#allocation2 + $0x178] sm:$0xff] }
 0x8e5   :  { %6024 = vmatprep.subr.bf16.mxu1 %v12464_v2 }
 0x8e7   :  { %6347 = vmatpush1.bf16.msra.mxu0 %v12347_v19  ;;  %v12492_v19 = vld [vmem:[#allocation2 + $0x170] sm:$0xff] }
 0x8e8   :  { %6348 = vmatprep.subr.bf16.mxu0 %v12351_v53  ;;  %6025 = vmatpush1.bf16.msra.mxu1 %v12468_v40  ;;  %v12496_v53 = vld [vmem:[#allocation2 + $0x188] sm:$0xff] }
 0x8e9   :  { %6026 = vmatprep.subr.bf16.mxu1 %v12472_v50 }
 0x8eb   :  { %6349 = vmatpush1.bf16.msra.mxu0 %v12355_v45  ;;  %v12500_v45 = vld [vmem:[#allocation2 + $0x180] sm:$0xff] }
 0x8ec   :  { %6350 = vmatprep.subr.bf16.mxu0 %v12359_v56  ;;  %6027 = vmatpush1.bf16.msra.mxu1 %v12476_v52  ;;  %v12504_v56 = vld [vmem:[#allocation2 + $0x198] sm:$0xff] }
 0x8ed   :  { %6028 = vmatprep.subr.bf16.mxu1 %v12480_v12 }
 0x8ef   :  { %6351 = vmatpush1.bf16.msra.mxu0 %v12363_v8  ;;  %v12508_v8 = vld [vmem:[#allocation2 + $0x190] sm:$0xff] }
 0x8f0   :  { %6352 = vmatprep.subr.bf16.mxu0 %v12367_v35  ;;  %6029 = vmatpush1.bf16.msra.mxu1 %v12484_v32  ;;  %v12512_v35 = vld [vmem:[#allocation2 + $0x1a8] sm:$0xff] }
 0x8f1   :  { %6030 = vmatprep.subr.bf16.mxu1 %v12488_v34 }
 0x8f3   :  { %6353 = vmatpush1.bf16.msra.mxu0 %v12371_v7  ;;  %v12516_v7 = vld [vmem:[#allocation2 + $0x1a0] sm:$0xff] }
 0x8f4   :  { %6354 = vmatprep.subr.bf16.mxu0 %v12375_v54  ;;  %6031 = vmatpush1.bf16.msra.mxu1 %v12492_v19  ;;  %v12520_v54 = vld [vmem:[#allocation2 + $0x1b8] sm:$0xff] }
 0x8f5   :  { %6032 = vmatprep.subr.bf16.mxu1 %v12496_v53 }
 0x8f7   :  { %6355 = vmatpush1.bf16.msra.mxu0 %v12379_v60  ;;  %v12523_v60 = vpop.permute.xlu1 %5931 }
 0x8f8   :  { %6356 = vmatprep.subr.bf16.mxu0 %v12383_v55  ;;  %6033 = vmatpush1.bf16.msra.mxu1 %v12500_v45  ;;  %v12525_v55 = vpop.permute.xlu0 %5933 }
 0x8f9   :  { %6034 = vmatprep.subr.bf16.mxu1 %v12504_v56 }
 0x8fb   :  { %6357 = vmatpush1.bf16.msra.mxu0 %v12387_v17  ;;  %v5944_v17 = vsel %vm3826_vm2, %v12523_v60, %v12525_v55 }
 0x8fc   :  { %6358 = vmatprep.subr.bf16.mxu0 %v12391_v0  ;;  %6035 = vmatpush1.bf16.msra.mxu1 %v12508_v8  ;;  %v12531_v0 = vld [vmem:[#allocation2 + $0x1b0] sm:$0xff] }
 0x8fd   :  { %6036 = vmatprep.subr.bf16.mxu1 %v12512_v35 }
 0x8ff   :  { %6359 = vmatpush1.bf16.msra.mxu0 %v12402_v38  ;;  %v6304_v38 = vrot.slane %v11474_v4, 3  ;;  %v12552_v4 = vld [vmem:[#allocation2 + $0x1e8] sm:$0xff] }
 0x900   :  { %6360 = vmatprep.subr.bf16.mxu0 %v12406_v10  ;;  %6037 = vmatpush1.bf16.msra.mxu1 %v12516_v7  ;;  %v6307_v10 = vrot.slane %v5944_v17, 3  ;;  %v12664_v17 = vld [vmem:[#allocation2 + $0x2b8] sm:$0xff] }
 0x901   :  { %6038 = vmatprep.subr.bf16.mxu1 %v12520_v54 }
 0x903   :  { %6361 = vmatpush1.bf16.msra.mxu0 %v12410_v28  ;;  %v12540_v28 = vld [vmem:[#allocation2 + $0x1c0] sm:$0xff] }
 0x904   :  { %6362 = vmatprep.subr.bf16.mxu0 %v12414_v5  ;;  %6039 = vmatpush1.bf16.msra.mxu1 %v12531_v0  ;;  %v12544_v5 = vld [vmem:[#allocation2 + $0x1d8] sm:$0xff] }
 0x905   :  { %6040 = vmatprep.subr.bf16.mxu1 %v12535_v48 }
 0x907   :  { %6363 = vmatpush1.bf16.msra.mxu0 %v12418_v9  ;;  %v12548_v9 = vld [vmem:[#allocation2 + $0x1d0] sm:$0xff] }
 0x908   :  { %6364 = vmatprep.subr.bf16.mxu0 %v12422_v22  ;;  %6041 = vmatpush1.bf16.msra.mxu1 %v12540_v28  ;;  %v5929_v22 = vrot.slane %v11271_v20, 6  ;;  %v13145_v20 = vld [vmem:[#allocation2 + $0x618] sm:$0xff] }
 0x909   :  { %6042 = vmatprep.subr.bf16.mxu1 %v12544_v5 }
 0x90a   :  { %5939 = vrot.lane.b32.xlu1 %v5929_v22, %s8137_s5 }
 0x90b   :  { %6365 = vmatpush1.bf16.msra.mxu0 %v12426_v39  ;;  %v12557_v39 = vld [vmem:[#allocation2 + $0x1e0] sm:$0xff] }
 0x90c   :  { %6375 = vmatprep.subr.bf16.mxu0 %v12431_v44  ;;  %6043 = vmatpush1.bf16.msra.mxu1 %v12548_v9  ;;  %v12568_v44 = vld [vmem:[#allocation2 + $0x1f0] sm:$0xff] }
 0x90d   :  { %6044 = vmatprep.subr.bf16.mxu1 %v12552_v4 }
 0x90e   :  { %6367 = vmatmul.mubr.bf16.vlgmr.msra.gmra.mrb[76].mxu0 %v6304_v38  ;;  %v12674_v38 = vld [vmem:[#allocation2 + $0x2b0] sm:$0xff] }
 0x90f   :  { %6376 = vmatpush1.bf16.msra.mxu0 %v12436_v21  ;;  %6407 = vmatprep.mubr.bf16.mxu0 %v6307_v10  ;;  %v5953_v21 = vrot.slane %v11374_v47, 3  ;;  %v12586_v47 = vld [vmem:[#allocation2 + $0x210] sm:$0xff]  ;;  %v12678_v10 = vld [vmem:[#allocation2 + $0x2c8] sm:$0xff] }
 0x910   :  { %6377 = vmatprep.subr.bf16.mxu0 %v12440_v43  ;;  %6045 = vmatpush1.bf16.msra.mxu1 %v12557_v39  ;;  %v12573_v43 = vld [vmem:[#allocation2 + $0x208] sm:$0xff] }
 0x911   :  { %6046 = vmatprep.subr.bf16.mxu1 %v12561_v26 }
 0x913   :  { %6378 = vmatpush1.bf16.msra.mxu0 %v12444_v25  ;;  %v12578_v25 = vld [vmem:[#allocation2 + $0x200] sm:$0xff] }
 0x914   :  { %6379 = vmatprep.subr.bf16.mxu0 %v12448_v16  ;;  %6047 = vmatpush1.bf16.msra.mxu1 %v12568_v44  ;;  %v12582_v16 = vld [vmem:[#allocation2 + $0x218] sm:$0xff] }
 0x915   :  { %6057 = vmatprep.subr.bf16.mxu1 %v12573_v43 }
 0x917   :  { %6380 = vmatpush1.bf16.msra.mxu0 %v12452_v36  ;;  %6049 = vmatmul.mubr.bf16.vlgmr.msra.gmra.mrb[68].mxu1 %v11293_v37  ;;  %v12590_v37 = vld [vmem:[#allocation2 + $0x228] sm:$0xff]  ;;  %v12594_v36 = vld [vmem:[#allocation2 + $0x220] sm:$0xff] }
 0x918   :  { %6381 = vmatprep.subr.bf16.mxu0 %v12456_v42  ;;  %6058 = vmatpush1.bf16.msra.mxu1 %v12578_v25  ;;  %v12598_v42 = vld [vmem:[#allocation2 + $0x238] sm:$0xff] }
 0x919   :  { %6089 = vmatprep.mubr.bf16.mxu1 %v5953_v21  ;;  %6059 = vmatprep.subr.bf16.mxu1 %v12582_v16  ;;  %v5955_v21 = vrot.slane %v11322_v61, 3  ;;  %v12724_v61 = vld [vmem:[#allocation2 + $0x310] sm:$0xff] }
 0x91b   :  { %6382 = vmatpush1.bf16.msra.mxu0 %v12460_v13  ;;  %v12602_v13 = vld [vmem:[#allocation2 + $0x230] sm:$0xff] }
 0x91c   :  { %6383 = vmatprep.subr.bf16.mxu0 %v12464_v2  ;;  %6060 = vmatpush1.bf16.msra.mxu1 %v12586_v47  ;;  %v12606_v2 = vld [vmem:[#allocation2 + $0x248] sm:$0xff] }
 0x91d   :  { %6061 = vmatprep.subr.bf16.mxu1 %v12590_v37 }
 0x91f   :  { %6384 = vmatpush1.bf16.msra.mxu0 %v12468_v40  ;;  %v12610_v40 = vld [vmem:[#allocation2 + $0x240] sm:$0xff] }
 0x920   :  { %6385 = vmatprep.subr.bf16.mxu0 %v12472_v50  ;;  %6062 = vmatpush1.bf16.msra.mxu1 %v12594_v36  ;;  %v12614_v50 = vld [vmem:[#allocation2 + $0x258] sm:$0xff] }
 0x921   :  { %6063 = vmatprep.subr.bf16.mxu1 %v12598_v42 }
 0x923   :  { %6386 = vmatpush1.bf16.msra.mxu0 %v12476_v52  ;;  %v12618_v52 = vld [vmem:[#allocation2 + $0x250] sm:$0xff] }
 0x924   :  { %6387 = vmatprep.subr.bf16.mxu0 %v12480_v12  ;;  %6064 = vmatpush1.bf16.msra.mxu1 %v12602_v13  ;;  %v12622_v12 = vld [vmem:[#allocation2 + $0x268] sm:$0xff] }
 0x925   :  { %6065 = vmatprep.subr.bf16.mxu1 %v12606_v2 }
 0x927   :  { %6388 = vmatpush1.bf16.msra.mxu0 %v12484_v32  ;;  %v12626_v32 = vld [vmem:[#allocation2 + $0x260] sm:$0xff] }
 0x928   :  { %6389 = vmatprep.subr.bf16.mxu0 %v12488_v34  ;;  %6066 = vmatpush1.bf16.msra.mxu1 %v12610_v40  ;;  %v12630_v34 = vld [vmem:[#allocation2 + $0x278] sm:$0xff] }
 0x929   :  { %6067 = vmatprep.subr.bf16.mxu1 %v12614_v50 }
 0x92b   :  { %6390 = vmatpush1.bf16.msra.mxu0 %v12492_v19  ;;  %v12634_v19 = vld [vmem:[#allocation2 + $0x270] sm:$0xff] }
 0x92c   :  { %6391 = vmatprep.subr.bf16.mxu0 %v12496_v53  ;;  %6068 = vmatpush1.bf16.msra.mxu1 %v12618_v52  ;;  %v12638_v53 = vld [vmem:[#allocation2 + $0x288] sm:$0xff] }
 0x92d   :  { %6069 = vmatprep.subr.bf16.mxu1 %v12622_v12 }
 0x92f   :  { %6392 = vmatpush1.bf16.msra.mxu0 %v12500_v45  ;;  %v12642_v45 = vld [vmem:[#allocation2 + $0x280] sm:$0xff] }
 0x930   :  { %6393 = vmatprep.subr.bf16.mxu0 %v12504_v56  ;;  %6070 = vmatpush1.bf16.msra.mxu1 %v12626_v32  ;;  %v12646_v56 = vld [vmem:[#allocation2 + $0x298] sm:$0xff] }
 0x931   :  { %6071 = vmatprep.subr.bf16.mxu1 %v12630_v34 }
 0x933   :  { %6394 = vmatpush1.bf16.msra.mxu0 %v12508_v8  ;;  %v12650_v8 = vld [vmem:[#allocation2 + $0x290] sm:$0xff] }
 0x934   :  { %6395 = vmatprep.subr.bf16.mxu0 %v12512_v35  ;;  %6072 = vmatpush1.bf16.msra.mxu1 %v12634_v19  ;;  %v12654_v35 = vld [vmem:[#allocation2 + $0x2a8] sm:$0xff] }
 0x935   :  { %6073 = vmatprep.subr.bf16.mxu1 %v12638_v53 }
 0x937   :  { %6396 = vmatpush1.bf16.msra.mxu0 %v12516_v7  ;;  %v12658_v7 = vld [vmem:[#allocation2 + $0x2a0] sm:$0xff] }
 0x938   :  { %6397 = vmatprep.subr.bf16.mxu0 %v12520_v54  ;;  %6074 = vmatpush1.bf16.msra.mxu1 %v12642_v45  ;;  %v12661_v54 = vpop.permute.xlu1 %5935 }
 0x939   :  { %6075 = vmatprep.subr.bf16.mxu1 %v12646_v56 }
 0x93b   :  { %6398 = vmatpush1.bf16.msra.mxu0 %v12531_v0  ;;  %v5943_v0 = vsel %vm3826_vm2, %v11460_v11, %v12523_v60  ;;  %v12690_v11 = vld [vmem:[#allocation2 + $0x2d0] sm:$0xff]  ;;  %v12694_v60 = vld [vmem:[#allocation2 + $0x2e8] sm:$0xff] }
 0x93c   :  { %6399 = vmatprep.subr.bf16.mxu0 %v12535_v48  ;;  %6076 = vmatpush1.bf16.msra.mxu1 %v12650_v8  ;;  %v5946_v48 = vsel %vm3826_vm2, %v12661_v54, %v11612_v58  ;;  %v12686_v58 = vld [vmem:[#allocation2 + $0x2d8] sm:$0xff] }
 0x93d   :  { %6077 = vmatprep.subr.bf16.mxu1 %v12654_v35 }
 0x93f   :  { %6400 = vmatpush1.bf16.msra.mxu0 %v12540_v28  ;;  %v6306_v28 = vrot.slane %v5943_v0, 3  ;;  %v12800_v0 = vld [vmem:[#allocation2 + $0x3a0] sm:$0xff] }
 0x940   :  { %6401 = vmatprep.subr.bf16.mxu0 %v12544_v5  ;;  %6078 = vmatpush1.bf16.msra.mxu1 %v12658_v7  ;;  %v6309_v5 = vrot.slane %v5946_v48, 3  ;;  %v12804_v48 = vld [vmem:[#allocation2 + $0x3b8] sm:$0xff] }
 0x941   :  { %6079 = vmatprep.subr.bf16.mxu1 %v12664_v17 }
 0x943   :  { %6402 = vmatpush1.bf16.msra.mxu0 %v12548_v9  ;;  %v12682_v9 = vld [vmem:[#allocation2 + $0x2c0] sm:$0xff] }
 0x944   :  { %6403 = vmatprep.subr.bf16.mxu0 %v12552_v4  ;;  %6080 = vmatpush1.bf16.msra.mxu1 %v12674_v38  ;;  %v12698_v4 = vld [vmem:[#allocation2 + $0x2e0] sm:$0xff] }
 0x945   :  { %6081 = vmatprep.subr.bf16.mxu1 %v12678_v10 }
 0x947   :  { %6404 = vmatpush1.bf16.msra.mxu0 %v12557_v39  ;;  %v12702_v39 = vld [vmem:[#allocation2 + $0x2f8] sm:$0xff] }
 0x948   :  { %6405 = vmatprep.subr.bf16.mxu0 %v12561_v26  ;;  %6082 = vmatpush1.bf16.msra.mxu1 %v12682_v9  ;;  %v5952_v26 = vrot.slane %v11380_v24, 3  ;;  %v12720_v24 = vld [vmem:[#allocation2 + $0x318] sm:$0xff] }
 0x949   :  { %6083 = vmatprep.subr.bf16.mxu1 %v12686_v58 }
 0x94b   :  { %6406 = vmatpush1.bf16.msra.mxu0 %v12568_v44  ;;  %v12707_v44 = vld [vmem:[#allocation2 + $0x2f0] sm:$0xff] }
 0x94c   :  { %6416 = vmatprep.subr.bf16.mxu0 %v12573_v43  ;;  %6084 = vmatpush1.bf16.msra.mxu1 %v12690_v11  ;;  %v12712_v43 = vld [vmem:[#allocation2 + $0x308] sm:$0xff] }
 0x94d   :  { %6085 = vmatprep.subr.bf16.mxu1 %v12694_v60 }
 0x94e   :  { %6408 = vmatmul.mubr.bf16.vlgmr.msra.gmra.mrb[76].mxu0 %v6306_v28  ;;  %v12815_v28 = vld [vmem:[#allocation2 + $0x3c8] sm:$0xff] }
 0x94f   :  { %6417 = vmatpush1.bf16.msra.mxu0 %v12578_v25  ;;  %6448 = vmatprep.mubr.bf16.mxu0 %v6309_v5  ;;  %v12716_v25 = vld [vmem:[#allocation2 + $0x300] sm:$0xff] }
 0x950   :  { %6418 = vmatprep.subr.bf16.mxu0 %v12582_v16  ;;  %6086 = vmatpush1.bf16.msra.mxu1 %v12698_v4  ;;  %v12728_v16 = vld [vmem:[#allocation2 + $0x328] sm:$0xff] }
 0x951   :  { %6087 = vmatprep.subr.bf16.mxu1 %v12702_v39 }
 0x953   :  { %6419 = vmatpush1.bf16.msra.mxu0 %v12586_v47  ;;  %v12732_v47 = vld [vmem:[#allocation2 + $0x320] sm:$0xff] }
 0x954   :  { %6420 = vmatprep.subr.bf16.mxu0 %v12590_v37  ;;  %6088 = vmatpush1.bf16.msra.mxu1 %v12707_v44  ;;  %v12736_v37 = vld [vmem:[#allocation2 + $0x338] sm:$0xff] }
 0x955   :  { %6098 = vmatprep.subr.bf16.mxu1 %v12712_v43 }
 0x957   :  { %6421 = vmatpush1.bf16.msra.mxu0 %v12594_v36  ;;  %6090 = vmatmul.mubr.bf16.vlgmr.msra.gmra.mrb[68].mxu1 %v5952_v26  ;;  %v12740_v36 = vld [vmem:[#allocation2 + $0x330] sm:$0xff]  ;;  %v13524_v26 = vrot.slane %v11269_v14, 6 }
 0x958   :  { %6422 = vmatprep.subr.bf16.mxu0 %v12598_v42  ;;  %6099 = vmatpush1.bf16.msra.mxu1 %v12716_v25  ;;  %v12744_v42 = vld [vmem:[#allocation2 + $0x348] sm:$0xff] }
 0x959   :  { %6130 = vmatprep.mubr.bf16.mxu1 %v5955_v21  ;;  %6100 = vmatprep.subr.bf16.mxu1 %v12720_v24  ;;  %v12851_v21 = vld [vmem:[#allocation2 + $0x408] sm:$0xff] }
 0x95b   :  { %6423 = vmatpush1.bf16.msra.mxu0 %v12602_v13  ;;  %v12748_v13 = vld [vmem:[#allocation2 + $0x340] sm:$0xff] }
 0x95c   :  { %6424 = vmatprep.subr.bf16.mxu0 %v12606_v2  ;;  %6101 = vmatpush1.bf16.msra.mxu1 %v12724_v61  ;;  %v12752_v2 = vld [vmem:[#allocation2 + $0x358] sm:$0xff] }
 0x95d   :  { %6102 = vmatprep.subr.bf16.mxu1 %v12728_v16 }
 0x95f   :  { %6425 = vmatpush1.bf16.msra.mxu0 %v12610_v40 }
 0x960   :  { %6426 = vmatprep.subr.bf16.mxu0 %v12614_v50  ;;  %6103 = vmatpush1.bf16.msra.mxu1 %v12732_v47 }
 0x961   :  { %6104 = vmatprep.subr.bf16.mxu1 %v12736_v37 }
 0x963   :  { %6427 = vmatpush1.bf16.msra.mxu0 %v12618_v52 }
 0x964   :  { %6428 = vmatprep.subr.bf16.mxu0 %v12622_v12  ;;  %6105 = vmatpush1.bf16.msra.mxu1 %v12740_v36  ;;  %v12760_v12 = vld [vmem:[#allocation2 + $0x350] sm:$0xff] }
 0x965   :  { %6106 = vmatprep.subr.bf16.mxu1 %v12744_v42 }
 0x967   :  { %6429 = vmatpush1.bf16.msra.mxu0 %v12626_v32 }
 0x968   :  { %6430 = vmatprep.subr.bf16.mxu0 %v12630_v34  ;;  %6107 = vmatpush1.bf16.msra.mxu1 %v12748_v13  ;;  %v12764_v34 = vld [vmem:[#allocation2 + $0x368] sm:$0xff] }
 0x969   :  { %6108 = vmatprep.subr.bf16.mxu1 %v12752_v2 }
 0x96a   :  { %v12755_v40 = vpop.f32.mrb[64].mxu1 }
 0x96b   :  { %6431 = vmatpush1.bf16.msra.mxu0 %v12634_v19  ;;  %v12758_v50 = vpop.f32.mrb[65].mxu1  ;;  %v12768_v19 = vld [vmem:[#allocation2 + $0x360] sm:$0xff] }
 0x96c   :  { %6432 = vmatprep.subr.bf16.mxu0 %v12638_v53  ;;  %v5586_v52 = vpop.f32.mrb[66].mxu1  ;;  %6109 = vmatpush1.bf16.msra.mxu1 %v12760_v12  ;;  %v12772_v53 = vld [vmem:[#allocation2 + $0x378] sm:$0xff] }
 0x96d   :  { %v5587_v32 = vpop.f32.mrb[67].mxu1  ;;  %6110 = vmatprep.subr.bf16.mxu1 %v12764_v34  ;;  %v12891_v52 = vld [vmem:[#allocation2 + $0x448] sm:$0xff] }
 0x96e   :  { %v12899_v32 = vld [vmem:[#allocation2 + $0x458] sm:$0xff] }
 0x96f   :  { %6433 = vmatpush1.bf16.msra.mxu0 %v12642_v45  ;;  %v12776_v45 = vld [vmem:[#allocation2 + $0x370] sm:$0xff] }
 0x970   :  { %6434 = vmatprep.subr.bf16.mxu0 %v12646_v56  ;;  %6111 = vmatpush1.bf16.msra.mxu1 %v12768_v19  ;;  %v12780_v56 = vld [vmem:[#allocation2 + $0x388] sm:$0xff] }
 0x971   :  { %6112 = vmatprep.subr.bf16.mxu1 %v12772_v53 }
 0x973   :  { %6435 = vmatpush1.bf16.msra.mxu0 %v12650_v8  ;;  %v12784_v8 = vld [vmem:[#allocation2 + $0x380] sm:$0xff] }
 0x974   :  { %6436 = vmatprep.subr.bf16.mxu0 %v12654_v35  ;;  %6113 = vmatpush1.bf16.msra.mxu1 %v12776_v45  ;;  %v12788_v35 = vld [vmem:[#allocation2 + $0x398] sm:$0xff] }
 0x975   :  { %6114 = vmatprep.subr.bf16.mxu1 %v12780_v56 }
 0x977   :  { %6437 = vmatpush1.bf16.msra.mxu0 %v12658_v7  ;;  %v12792_v7 = vld [vmem:[#allocation2 + $0x390] sm:$0xff] }
 0x978   :  { %6438 = vmatprep.subr.bf16.mxu0 %v12664_v17  ;;  %6115 = vmatpush1.bf16.msra.mxu1 %v12784_v8  ;;  %v12796_v17 = vld [vmem:[#allocation2 + $0x3a8] sm:$0xff] }
 0x979   :  { %6116 = vmatprep.subr.bf16.mxu1 %v12788_v35 }
 0x97b   :  { %6439 = vmatpush1.bf16.msra.mxu0 %v12674_v38  ;;  %v5945_v38 = vsel %vm3826_vm2, %v12525_v55, %v12661_v54  ;;  %v12824_v55 = vld [vmem:[#allocation2 + $0x3d8] sm:$0xff]  ;;  %v12828_v54 = vld [vmem:[#allocation2 + $0x3d0] sm:$0xff] }
 0x97c   :  { %6440 = vmatprep.subr.bf16.mxu0 %v12678_v10  ;;  %6117 = vmatpush1.bf16.msra.mxu1 %v12792_v7  ;;  %v12811_v10 = vld [vmem:[#allocation2 + $0x3b0] sm:$0xff]  ;;  %v6308_v5 = vrot.slane %v5945_v38, 3  ;;  %v12946_v38 = vpop.permute.xlu1 %5939 }
 0x97d   :  { %6118 = vmatprep.subr.bf16.mxu1 %v12796_v17 }
 0x97f   :  { %6441 = vmatpush1.bf16.msra.mxu0 %v12682_v9  ;;  %v6311_v9 = vrot.slane %v11767_v46, 3  ;;  %v12832_v46 = vld [vmem:[#allocation2 + $0x3e8] sm:$0xff] }
 0x980   :  { %6442 = vmatprep.subr.bf16.mxu0 %v12686_v58  ;;  %6119 = vmatpush1.bf16.msra.mxu1 %v12800_v0  ;;  %v12820_v58 = vld [vmem:[#allocation2 + $0x3c0] sm:$0xff] }
 0x981   :  { %6120 = vmatprep.subr.bf16.mxu1 %v12804_v48 }
 0x983   :  { %6443 = vmatpush1.bf16.msra.mxu0 %v12690_v11  ;;  %v12836_v11 = vld [vmem:[#allocation2 + $0x3e0] sm:$0xff] }
 0x984   :  { %6444 = vmatprep.subr.bf16.mxu0 %v12694_v60  ;;  %6121 = vmatpush1.bf16.msra.mxu1 %v12811_v10  ;;  %v12840_v60 = vld [vmem:[#allocation2 + $0x3f8] sm:$0xff] }
 0x985   :  { %6122 = vmatprep.subr.bf16.mxu1 %v12815_v28 }
 0x987   :  { %6445 = vmatpush1.bf16.msra.mxu0 %v12698_v4  ;;  %v5954_v4 = vrot.slane %v11319_v30, 3  ;;  %v12859_v30 = vld [vmem:[#allocation2 + $0x418] sm:$0xff] }
 0x988   :  { %6446 = vmatprep.subr.bf16.mxu0 %v12702_v39  ;;  %6123 = vmatpush1.bf16.msra.mxu1 %v12820_v58  ;;  %v12845_v39 = vld [vmem:[#allocation2 + $0x3f0] sm:$0xff] }
 0x989   :  { %6124 = vmatprep.subr.bf16.mxu1 %v12824_v55 }
 0x98b   :  { %6447 = vmatpush1.bf16.msra.mxu0 %v12707_v44  ;;  %v5957_v44 = vrot.slane %v13524_v26, 3  ;;  %v5956_v26 = vrot.slane %v11333_v62, 3  ;;  %v13006_v62 = vld [vmem:[#allocation2 + $0x518] sm:$0xff] }
 0x98c   :  { %6457 = vmatprep.subr.bf16.mxu0 %v12712_v43  ;;  %6125 = vmatpush1.bf16.msra.mxu1 %v12828_v54  ;;  %v12855_v43 = vld [vmem:[#allocation2 + $0x400] sm:$0xff] }
 0x98d   :  { %6126 = vmatprep.subr.bf16.mxu1 %v12832_v46 }
 0x98e   :  { %6449 = vmatmul.mubr.bf16.vlgmr.msra.gmra.mrb[76].mxu0 %v6308_v5 }
 0x98f   :  { %6458 = vmatpush1.bf16.msra.mxu0 %v12716_v25  ;;  %6489 = vmatprep.mubr.bf16.mxu0 %v6311_v9  ;;  %v12958_v9 = vld [vmem:[#allocation2 + $0x4b0] sm:$0xff] }
 0x990   :  { %6459 = vmatprep.subr.bf16.mxu0 %v12720_v24  ;;  %6127 = vmatpush1.bf16.msra.mxu1 %v12836_v11 }
 0x991   :  { %6128 = vmatprep.subr.bf16.mxu1 %v12840_v60 }
 0x993   :  { %6460 = vmatpush1.bf16.msra.mxu0 %v12724_v61  ;;  %v12869_v61 = vld [vmem:[#allocation2 + $0x410] sm:$0xff] }
 0x994   :  { %6461 = vmatprep.subr.bf16.mxu0 %v12728_v16  ;;  %6129 = vmatpush1.bf16.msra.mxu1 %v12845_v39 }
 0x995   :  { %6139 = vmatprep.subr.bf16.mxu1 %v12851_v21 }
 0x997   :  { %6462 = vmatpush1.bf16.msra.mxu0 %v12732_v47  ;;  %6131 = vmatmul.mubr.bf16.vlgmr.msra.gmra.mrb[68].mxu1 %v5954_v4  ;;  %v12983_v4 = vld [vmem:[#allocation2 + $0x4e0] sm:$0xff] }
 0x998   :  { %6463 = vmatprep.subr.bf16.mxu0 %v12736_v37  ;;  %6140 = vmatpush1.bf16.msra.mxu1 %v12855_v43  ;;  %v12875_v37 = vld [vmem:[#allocation2 + $0x428] sm:$0xff] }
 0x999   :  { %6171 = vmatprep.mubr.bf16.mxu1 %v5957_v44  ;;  %6141 = vmatprep.subr.bf16.mxu1 %v12859_v30  ;;  %v12992_v44 = vld [vmem:[#allocation2 + $0x4f0] sm:$0xff] }
 0x99b   :  { %6464 = vmatpush1.bf16.msra.mxu0 %v12740_v36 }
 0x99c   :  { %6465 = vmatprep.subr.bf16.mxu0 %v12744_v42  ;;  %6142 = vmatpush1.bf16.msra.mxu1 %v12869_v61  ;;  %v12879_v42 = vld [vmem:[#allocation2 + $0x420] sm:$0xff] }
 0x99d   :  { %6143 = vmatprep.subr.bf16.mxu1 %v12875_v37 }
 0x99f   :  { %6466 = vmatpush1.bf16.msra.mxu0 %v12748_v13  ;;  %v12883_v13 = vld [vmem:[#allocation2 + $0x438] sm:$0xff] }
 0x9a0   :  { %6467 = vmatprep.subr.bf16.mxu0 %v12752_v2  ;;  %6144 = vmatpush1.bf16.msra.mxu1 %v12879_v42  ;;  %v12887_v2 = vld [vmem:[#allocation2 + $0x430] sm:$0xff] }
 0x9a1   :  { %v12863_v14 = vpop.f32.mrb[72].mxu0  ;;  %6145 = vmatprep.subr.bf16.mxu1 %v12883_v13 }
 0x9a2   :  { %v5917_v25 = vmax.f32 %v12755_v40, %v12863_v14  ;;  %v12867_v24 = vpop.f32.mrb[73].mxu0 }
 0x9a3   :  { %v5918_v16 = vmax.f32 %v12758_v50, %v12867_v24  ;;  %v5914_v47 = vpop.f32.mrb[74].mxu0  ;;  %6468 = vmatpush1.bf16.msra.mxu0 %v12760_v12  ;;  %v12895_v12 = vld [vmem:[#allocation2 + $0x440] sm:$0xff] }
 0x9a4   :  { %v5915_v36 = vpop.f32.mrb[75].mxu0  ;;  %6469 = vmatprep.subr.bf16.mxu0 %v12764_v34  ;;  %6146 = vmatpush1.bf16.msra.mxu1 %v12887_v2  ;;  %v12903_v34 = vld [vmem:[#allocation2 + $0x450] sm:$0xff]  ;;  %v13014_v47 = vld [vmem:[#allocation2 + $0x528] sm:$0xff] }
 0x9a5   :  { %6147 = vmatprep.subr.bf16.mxu1 %v12891_v52  ;;  %v13022_v36 = vld [vmem:[#allocation2 + $0x538] sm:$0xff] }
 0x9a7   :  { %6470 = vmatpush1.bf16.msra.mxu0 %v12768_v19  ;;  %v12907_v19 = vld [vmem:[#allocation2 + $0x468] sm:$0xff] }
 0x9a8   :  { %6471 = vmatprep.subr.bf16.mxu0 %v12772_v53  ;;  %6148 = vmatpush1.bf16.msra.mxu1 %v12895_v12  ;;  %v12911_v53 = vld [vmem:[#allocation2 + $0x460] sm:$0xff] }
 0x9a9   :  { %6149 = vmatprep.subr.bf16.mxu1 %v12899_v32 }
 0x9ab   :  { %6472 = vmatpush1.bf16.msra.mxu0 %v12776_v45  ;;  %v12915_v45 = vld [vmem:[#allocation2 + $0x478] sm:$0xff] }
 0x9ac   :  { %6473 = vmatprep.subr.bf16.mxu0 %v12780_v56  ;;  %6150 = vmatpush1.bf16.msra.mxu1 %v12903_v34  ;;  %v12919_v56 = vld [vmem:[#allocation2 + $0x470] sm:$0xff] }
 0x9ad   :  { %6151 = vmatprep.subr.bf16.mxu1 %v12907_v19 }
 0x9af   :  { %6474 = vmatpush1.bf16.msra.mxu0 %v12784_v8  ;;  %v12923_v8 = vld [vmem:[#allocation2 + $0x488] sm:$0xff] }
 0x9b0   :  { %6475 = vmatprep.subr.bf16.mxu0 %v12788_v35  ;;  %6152 = vmatpush1.bf16.msra.mxu1 %v12911_v53  ;;  %v12927_v35 = vld [vmem:[#allocation2 + $0x480] sm:$0xff] }
 0x9b1   :  { %6153 = vmatprep.subr.bf16.mxu1 %v12915_v45 }
 0x9b3   :  { %6476 = vmatpush1.bf16.msra.mxu0 %v12792_v7  ;;  %v12931_v7 = vld [vmem:[#allocation2 + $0x498] sm:$0xff] }
 0x9b4   :  { %6477 = vmatprep.subr.bf16.mxu0 %v12796_v17  ;;  %6154 = vmatpush1.bf16.msra.mxu1 %v12919_v56  ;;  %v12935_v17 = vld [vmem:[#allocation2 + $0x490] sm:$0xff] }
 0x9b5   :  { %6155 = vmatprep.subr.bf16.mxu1 %v12923_v8 }
 0x9b7   :  { %6478 = vmatpush1.bf16.msra.mxu0 %v12800_v0  ;;  %v12939_v0 = vld [vmem:[#allocation2 + $0x4a8] sm:$0xff] }
 0x9b8   :  { %6479 = vmatprep.subr.bf16.mxu0 %v12804_v48  ;;  %6156 = vmatpush1.bf16.msra.mxu1 %v12927_v35  ;;  %v12943_v48 = vld [vmem:[#allocation2 + $0x4a0] sm:$0xff] }
 0x9b9   :  { %6157 = vmatprep.subr.bf16.mxu1 %v12931_v7 }
 0x9bb   :  { %6480 = vmatpush1.bf16.msra.mxu0 %v12811_v10  ;;  %v12949_v10 = vld [vmem:[#allocation2 + $0x4b8] sm:$0xff] }
 0x9bc   :  { %6481 = vmatprep.subr.bf16.mxu0 %v12815_v28  ;;  %6158 = vmatpush1.bf16.msra.mxu1 %v12935_v17  ;;  %v12952_v28 = vpop.permute.xlu0 %5937 }
 0x9bd   :  { %6159 = vmatprep.subr.bf16.mxu1 %v12939_v0  ;;  %v5948_v5 = vsel %vm3826_vm2, %v12952_v28, %v12946_v38 }
 0x9bf   :  { %6482 = vmatpush1.bf16.msra.mxu0 %v12820_v58  ;;  %v12962_v58 = vld [vmem:[#allocation2 + $0x4c8] sm:$0xff] }
 0x9c0   :  { %6483 = vmatprep.subr.bf16.mxu0 %v12824_v55  ;;  %6160 = vmatpush1.bf16.msra.mxu1 %v12943_v48  ;;  %v6310_v55 = vrot.slane %v11907_v59, 3  ;;  %v12979_v59 = vld [vmem:[#allocation2 + $0x4e8] sm:$0xff] }
 0x9c1   :  { %6161 = vmatprep.subr.bf16.mxu1 %v12949_v10 }
 0x9c3   :  { %6484 = vmatpush1.bf16.msra.mxu0 %v12828_v54  ;;  %v6313_v54 = vrot.slane %v5948_v5, 3 }
 0x9c4   :  { %6485 = vmatprep.subr.bf16.mxu0 %v12832_v46  ;;  %6162 = vmatpush1.bf16.msra.mxu1 %v12958_v9  ;;  %v12967_v46 = vld [vmem:[#allocation2 + $0x4c0] sm:$0xff] }
 0x9c5   :  { %6163 = vmatprep.subr.bf16.mxu1 %v12962_v58 }
 0x9c7   :  { %6486 = vmatpush1.bf16.msra.mxu0 %v12836_v11  ;;  %v12971_v11 = vld [vmem:[#allocation2 + $0x4d8] sm:$0xff] }
 0x9c8   :  { %6487 = vmatprep.subr.bf16.mxu0 %v12840_v60  ;;  %6164 = vmatpush1.bf16.msra.mxu1 %v12967_v46  ;;  %v12975_v60 = vld [vmem:[#allocation2 + $0x4d0] sm:$0xff] }
 0x9c9   :  { %6165 = vmatprep.subr.bf16.mxu1 %v12971_v11 }
 0x9cb   :  { %6488 = vmatpush1.bf16.msra.mxu0 %v12845_v39  ;;  %v12987_v39 = vld [vmem:[#allocation2 + $0x4f8] sm:$0xff] }
 0x9cc   :  { %6498 = vmatprep.subr.bf16.mxu0 %v12851_v21  ;;  %6166 = vmatpush1.bf16.msra.mxu1 %v12975_v60  ;;  %v13525_v21 = vrot.slane %v11273_v15, 6  ;;  %v13010_v15 = vld [vmem:[#allocation2 + $0x510] sm:$0xff] }
 0x9cd   :  { %6167 = vmatprep.subr.bf16.mxu1 %v12979_v59 }
 0x9ce   :  { %6490 = vmatmul.mubr.bf16.vlgmr.msra.gmra.mrb[76].mxu0 %v6310_v55 }
 0x9cf   :  { %6499 = vmatpush1.bf16.msra.mxu0 %v12855_v43  ;;  %6530 = vmatprep.mubr.bf16.mxu0 %v6313_v54  ;;  %v5959_v43 = vrot.slane %v13525_v21, 3  ;;  %v13157_v21 = vld [vmem:[#allocation2 + $0x620] sm:$0xff] }
 0x9d0   :  { %6500 = vmatprep.subr.bf16.mxu0 %v12859_v30  ;;  %6168 = vmatpush1.bf16.msra.mxu1 %v12983_v4  ;;  %v12998_v30 = vld [vmem:[#allocation2 + $0x508] sm:$0xff] }
 0x9d1   :  { %6169 = vmatprep.subr.bf16.mxu1 %v12987_v39 }
 0x9d3   :  { %6501 = vmatpush1.bf16.msra.mxu0 %v12869_v61  ;;  %v13002_v61 = vld [vmem:[#allocation2 + $0x500] sm:$0xff] }
 0x9d4   :  { %6502 = vmatprep.subr.bf16.mxu0 %v12875_v37  ;;  %6170 = vmatpush1.bf16.msra.mxu1 %v12992_v44  ;;  %v13018_v37 = vld [vmem:[#allocation2 + $0x520] sm:$0xff] }
 0x9d5   :  { %6180 = vmatprep.subr.bf16.mxu1 %v12998_v30 }
 0x9d7   :  { %6503 = vmatpush1.bf16.msra.mxu0 %v12879_v42  ;;  %6172 = vmatmul.mubr.bf16.vlgmr.msra.gmra.mrb[68].mxu1 %v5956_v26  ;;  %v13026_v42 = vld [vmem:[#allocation2 + $0x530] sm:$0xff]  ;;  %v13137_v26 = vld [vmem:[#allocation2 + $0x608] sm:$0xff] }
 0x9d8   :  { %6504 = vmatprep.subr.bf16.mxu0 %v12883_v13  ;;  %6181 = vmatpush1.bf16.msra.mxu1 %v13002_v61  ;;  %v13030_v13 = vld [vmem:[#allocation2 + $0x548] sm:$0xff] }
 0x9d9   :  { %6212 = vmatprep.mubr.bf16.mxu1 %v5959_v43  ;;  %6182 = vmatprep.subr.bf16.mxu1 %v13006_v62  ;;  %v13161_v43 = vld [vmem:[#allocation2 + $0x638] sm:$0xff] }
 0x9db   :  { %6505 = vmatpush1.bf16.msra.mxu0 %v12887_v2  ;;  %v13034_v2 = vld [vmem:[#allocation2 + $0x540] sm:$0xff] }
 0x9dc   :  { %6506 = vmatprep.subr.bf16.mxu0 %v12891_v52  ;;  %6183 = vmatpush1.bf16.msra.mxu1 %v13010_v15  ;;  %v13038_v52 = vld [vmem:[#allocation2 + $0x558] sm:$0xff] }
 0x9dd   :  { %6184 = vmatprep.subr.bf16.mxu1 %v13014_v47 }
 0x9df   :  { %6507 = vmatpush1.bf16.msra.mxu0 %v12895_v12  ;;  %v13042_v12 = vld [vmem:[#allocation2 + $0x550] sm:$0xff] }
 0x9e0   :  { %6508 = vmatprep.subr.bf16.mxu0 %v12899_v32  ;;  %6185 = vmatpush1.bf16.msra.mxu1 %v13018_v37  ;;  %v13046_v32 = vld [vmem:[#allocation2 + $0x568] sm:$0xff] }
 0x9e1   :  { %6186 = vmatprep.subr.bf16.mxu1 %v13022_v36 }
 0x9e3   :  { %6509 = vmatpush1.bf16.msra.mxu0 %v12903_v34  ;;  %v13050_v34 = vld [vmem:[#allocation2 + $0x560] sm:$0xff] }
 0x9e4   :  { %6510 = vmatprep.subr.bf16.mxu0 %v12907_v19  ;;  %6187 = vmatpush1.bf16.msra.mxu1 %v13026_v42  ;;  %v13054_v19 = vld [vmem:[#allocation2 + $0x578] sm:$0xff] }
 0x9e5   :  { %6188 = vmatprep.subr.bf16.mxu1 %v13030_v13 }
 0x9e7   :  { %6511 = vmatpush1.bf16.msra.mxu0 %v12911_v53  ;;  %v13058_v53 = vld [vmem:[#allocation2 + $0x570] sm:$0xff] }
 0x9e8   :  { %6512 = vmatprep.subr.bf16.mxu0 %v12915_v45  ;;  %6189 = vmatpush1.bf16.msra.mxu1 %v13034_v2  ;;  %v13062_v45 = vld [vmem:[#allocation2 + $0x588] sm:$0xff] }
 0x9e9   :  { %6190 = vmatprep.subr.bf16.mxu1 %v13038_v52 }
 0x9eb   :  { %6513 = vmatpush1.bf16.msra.mxu0 %v12919_v56  ;;  %v13066_v56 = vld [vmem:[#allocation2 + $0x580] sm:$0xff] }
 0x9ec   :  { %6514 = vmatprep.subr.bf16.mxu0 %v12923_v8  ;;  %6191 = vmatpush1.bf16.msra.mxu1 %v13042_v12  ;;  %v13070_v8 = vld [vmem:[#allocation2 + $0x598] sm:$0xff] }
 0x9ed   :  { %6192 = vmatprep.subr.bf16.mxu1 %v13046_v32 }
 0x9ef   :  { %6515 = vmatpush1.bf16.msra.mxu0 %v12927_v35  ;;  %v13074_v35 = vld [vmem:[#allocation2 + $0x590] sm:$0xff] }
 0x9f0   :  { %6516 = vmatprep.subr.bf16.mxu0 %v12931_v7  ;;  %6193 = vmatpush1.bf16.msra.mxu1 %v13050_v34  ;;  %v13078_v7 = vld [vmem:[#allocation2 + $0x5a8] sm:$0xff] }
 0x9f1   :  { %6194 = vmatprep.subr.bf16.mxu1 %v13054_v19 }
 0x9f3   :  { %6517 = vmatpush1.bf16.msra.mxu0 %v12935_v17  ;;  %v13082_v17 = vld [vmem:[#allocation2 + $0x5a0] sm:$0xff] }
 0x9f4   :  { %6518 = vmatprep.subr.bf16.mxu0 %v12939_v0  ;;  %6195 = vmatpush1.bf16.msra.mxu1 %v13058_v53  ;;  %v13085_v0 = vpop.permute.xlu0 %5941 }
 0x9f5   :  { %6196 = vmatprep.subr.bf16.mxu1 %v13062_v45  ;;  %v5950_v5 = vsel %vm3826_vm2, %v13085_v0, %v12042_v27  ;;  %v13114_v27 = vld [vmem:[#allocation2 + $0x5d0] sm:$0xff] }
 0x9f6   :  { %v6315_v54 = vrot.slane %v5950_v5, 3  ;;  %v5960_v5 = vrot.slane %v11352_v6, 3  ;;  %v8083_v6 = vld [vmem:[#allocation2 + $0x710] sm:$0xff] }
 0x9f7   :  { %6519 = vmatpush1.bf16.msra.mxu0 %v12943_v48  ;;  %v13088_v48 = vld [vmem:[#allocation2 + $0x5b8] sm:$0xff] }
 0x9f8   :  { %6520 = vmatprep.subr.bf16.mxu0 %v12949_v10  ;;  %6197 = vmatpush1.bf16.msra.mxu1 %v13066_v56  ;;  %v5947_v10 = vsel %vm3826_vm2, %v11756_v51, %v12952_v28  ;;  %v13110_v51 = vld [vmem:[#allocation2 + $0x5d8] sm:$0xff]  ;;  %v13118_v28 = vld [vmem:[#allocation2 + $0x5e8] sm:$0xff] }
 0x9f9   :  { %6198 = vmatprep.subr.bf16.mxu1 %v13070_v8  ;;  %v6312_v55 = vrot.slane %v5947_v10, 3  ;;  %v13261_v10 = vld [vmem:[#allocation2 + $0x6f8] sm:$0xff] }
 0x9fb   :  { %6521 = vmatpush1.bf16.msra.mxu0 %v12958_v9  ;;  %v13098_v9 = vld [vmem:[#allocation2 + $0x5b0] sm:$0xff] }
 0x9fc   :  { %6522 = vmatprep.subr.bf16.mxu0 %v12962_v58  ;;  %6199 = vmatpush1.bf16.msra.mxu1 %v13074_v35  ;;  %v13102_v58 = vld [vmem:[#allocation2 + $0x5c8] sm:$0xff] }
 0x9fd   :  { %6200 = vmatprep.subr.bf16.mxu1 %v13078_v7 }
 0x9ff   :  { %6523 = vmatpush1.bf16.msra.mxu0 %v12967_v46  ;;  %v13106_v46 = vld [vmem:[#allocation2 + $0x5c0] sm:$0xff] }
 0xa00   :  { %6524 = vmatprep.subr.bf16.mxu0 %v12971_v11  ;;  %6201 = vmatpush1.bf16.msra.mxu1 %v13082_v17  ;;  %v13122_v11 = vld [vmem:[#allocation2 + $0x5e0] sm:$0xff] }
 0xa01   :  { %6202 = vmatprep.subr.bf16.mxu1 %v13088_v48 }
 0xa03   :  { %6525 = vmatpush1.bf16.msra.mxu0 %v12975_v60  ;;  %v13126_v60 = vld [vmem:[#allocation2 + $0x5f8] sm:$0xff] }
 0xa04   :  { %6526 = vmatprep.subr.bf16.mxu0 %v12979_v59  ;;  %6203 = vmatpush1.bf16.msra.mxu1 %v13098_v9  ;;  %v5958_v59 = vrot.slane %v5929_v22, 3  ;;  %v13153_v22 = vld [vmem:[#allocation2 + $0x628] sm:$0xff] }
 0xa05   :  { %6204 = vmatprep.subr.bf16.mxu1 %v13102_v58 }
 0xa07   :  { %6527 = vmatpush1.bf16.msra.mxu0 %v12983_v4  ;;  %v13132_v4 = vld [vmem:[#allocation2 + $0x5f0] sm:$0xff] }
 0xa08   :  { %6528 = vmatprep.subr.bf16.mxu0 %v12987_v39  ;;  %6205 = vmatpush1.bf16.msra.mxu1 %v13106_v46  ;;  %v5961_v39 = vrot.slane %v11355_v29, 3  ;;  %v13149_v29 = vld [vmem:[#allocation2 + $0x610] sm:$0xff] }
 0xa09   :  { %6206 = vmatprep.subr.bf16.mxu1 %v13110_v51 }
 0xa0b   :  { %6529 = vmatpush1.bf16.msra.mxu0 %v12992_v44  ;;  %v13141_v44 = vld [vmem:[#allocation2 + $0x600] sm:$0xff] }
 0xa0c   :  { %6539 = vmatprep.subr.bf16.mxu0 %v12998_v30  ;;  %6207 = vmatpush1.bf16.msra.mxu1 %v13114_v27  ;;  %v13165_v30 = vld [vmem:[#allocation2 + $0x630] sm:$0xff] }
 0xa0d   :  { %6208 = vmatprep.subr.bf16.mxu1 %v13118_v28 }
 0xa0e   :  { %6531 = vmatmul.mubr.bf16.vlgmr.msra.gmra.mrb[76].mxu0 %v6312_v55  ;;  %v8081_v55 = vld [vmem:[#allocation2 + $0x700] sm:$0xff] }
 0xa0f   :  { %6540 = vmatpush1.bf16.msra.mxu0 %v13002_v61  ;;  %6571 = vmatprep.mubr.bf16.mxu0 %v6315_v54  ;;  %v13169_v61 = vld [vmem:[#allocation2 + $0x648] sm:$0xff]  ;;  %v8082_v54 = vld [vmem:[#allocation2 + $0x718] sm:$0xff] }
 0xa10   :  { %6541 = vmatprep.subr.bf16.mxu0 %v13006_v62  ;;  %6209 = vmatpush1.bf16.msra.mxu1 %v13122_v11  ;;  %v13173_v62 = vld [vmem:[#allocation2 + $0x640] sm:$0xff] }
 0xa11   :  { %6210 = vmatprep.subr.bf16.mxu1 %v13126_v60 }
 0xa13   :  { %6542 = vmatpush1.bf16.msra.mxu0 %v13010_v15  ;;  %v13177_v15 = vld [vmem:[#allocation2 + $0x658] sm:$0xff] }
 0xa14   :  { %6543 = vmatprep.subr.bf16.mxu0 %v13014_v47  ;;  %6211 = vmatpush1.bf16.msra.mxu1 %v13132_v4  ;;  %v13181_v47 = vld [vmem:[#allocation2 + $0x650] sm:$0xff] }
 0xa15   :  { %6221 = vmatprep.subr.bf16.mxu1 %v13137_v26 }
 0xa17   :  { %6544 = vmatpush1.bf16.msra.mxu0 %v13018_v37  ;;  %6213 = vmatmul.mubr.bf16.vlgmr.msra.gmra.mrb[68].mxu1 %v5958_v59  ;;  %v13185_v37 = vld [vmem:[#allocation2 + $0x668] sm:$0xff]  ;;  %v8090_v59 = vld [vmem:[#allocation2 + $0x758] sm:$0xff] }
 0xa18   :  { %6545 = vmatprep.subr.bf16.mxu0 %v13022_v36  ;;  %6222 = vmatpush1.bf16.msra.mxu1 %v13141_v44  ;;  %v13189_v36 = vld [vmem:[#allocation2 + $0x660] sm:$0xff] }
 0xa19   :  { %6253 = vmatprep.mubr.bf16.mxu1 %v5961_v39  ;;  %6223 = vmatprep.subr.bf16.mxu1 %v13145_v20  ;;  %v8092_v39 = vld [vmem:[#allocation2 + $0x768] sm:$0xff] }
 0xa1b   :  { %6546 = vmatpush1.bf16.msra.mxu0 %v13026_v42  ;;  %v13193_v42 = vld [vmem:[#allocation2 + $0x678] sm:$0xff] }
 0xa1c   :  { %6547 = vmatprep.subr.bf16.mxu0 %v13030_v13  ;;  %6224 = vmatpush1.bf16.msra.mxu1 %v13149_v29  ;;  %v13197_v13 = vld [vmem:[#allocation2 + $0x670] sm:$0xff] }
 0xa1d   :  { %6225 = vmatprep.subr.bf16.mxu1 %v13153_v22 }
 0xa1f   :  { %6548 = vmatpush1.bf16.msra.mxu0 %v13034_v2  ;;  %v13201_v2 = vld [vmem:[#allocation2 + $0x688] sm:$0xff] }
 0xa20   :  { %6549 = vmatprep.subr.bf16.mxu0 %v13038_v52  ;;  %6226 = vmatpush1.bf16.msra.mxu1 %v13157_v21  ;;  %v13205_v52 = vld [vmem:[#allocation2 + $0x680] sm:$0xff] }
 0xa21   :  { %6227 = vmatprep.subr.bf16.mxu1 %v13161_v43 }
 0xa23   :  { %6550 = vmatpush1.bf16.msra.mxu0 %v13042_v12  ;;  %v13209_v12 = vld [vmem:[#allocation2 + $0x698] sm:$0xff] }
 0xa24   :  { %6551 = vmatprep.subr.bf16.mxu0 %v13046_v32  ;;  %6228 = vmatpush1.bf16.msra.mxu1 %v13165_v30  ;;  %v13213_v32 = vld [vmem:[#allocation2 + $0x690] sm:$0xff] }
 0xa25   :  { %6229 = vmatprep.subr.bf16.mxu1 %v13169_v61 }
 0xa27   :  { %6552 = vmatpush1.bf16.msra.mxu0 %v13050_v34  ;;  %v13217_v34 = vld [vmem:[#allocation2 + $0x6a8] sm:$0xff] }
 0xa28   :  { %6553 = vmatprep.subr.bf16.mxu0 %v13054_v19  ;;  %6230 = vmatpush1.bf16.msra.mxu1 %v13173_v62  ;;  %v13221_v19 = vld [vmem:[#allocation2 + $0x6a0] sm:$0xff] }
 0xa29   :  { %6231 = vmatprep.subr.bf16.mxu1 %v13177_v15 }
 0xa2b   :  { %6554 = vmatpush1.bf16.msra.mxu0 %v13058_v53  ;;  %v13225_v53 = vld [vmem:[#allocation2 + $0x6b8] sm:$0xff] }
 0xa2c   :  { %6555 = vmatprep.subr.bf16.mxu0 %v13062_v45  ;;  %6232 = vmatpush1.bf16.msra.mxu1 %v13181_v47  ;;  %v5949_v45 = vsel %vm3826_vm2, %v12946_v38, %v13085_v0  ;;  %v13245_v38 = vld [vmem:[#allocation2 + $0x6d8] sm:$0xff]  ;;  %v13249_v0 = vld [vmem:[#allocation2 + $0x6d0] sm:$0xff] }
 0xa2d   :  { %6233 = vmatprep.subr.bf16.mxu1 %v13185_v37 }
 0xa2f   :  { %6556 = vmatpush1.bf16.msra.mxu0 %v13066_v56  ;;  %v13232_v56 = vld [vmem:[#allocation2 + $0x6b0] sm:$0xff] }
 0xa30   :  { %6557 = vmatprep.subr.bf16.mxu0 %v13070_v8  ;;  %6234 = vmatpush1.bf16.msra.mxu1 %v13189_v36  ;;  %v13236_v8 = vld [vmem:[#allocation2 + $0x6c8] sm:$0xff] }
 0xa31   :  { %6235 = vmatprep.subr.bf16.mxu1 %v13193_v42 }
 0xa33   :  { %6558 = vmatpush1.bf16.msra.mxu0 %v13074_v35  ;;  %v6314_v35 = vrot.slane %v5949_v45, 3 }
 0xa34   :  { %6559 = vmatprep.subr.bf16.mxu0 %v13078_v7  ;;  %6236 = vmatpush1.bf16.msra.mxu1 %v13197_v13  ;;  %v6317_v7 = vrot.slane %v12193_v63, 3  ;;  %v13253_v63 = vld [vmem:[#allocation2 + $0x6e8] sm:$0xff] }
 0xa35   :  { %6237 = vmatprep.subr.bf16.mxu1 %v13201_v2 }
 0xa37   :  { %6560 = vmatpush1.bf16.msra.mxu0 %v13082_v17  ;;  %v13241_v17 = vld [vmem:[#allocation2 + $0x6c0] sm:$0xff] }
 0xa38   :  { %6561 = vmatprep.subr.bf16.mxu0 %v13088_v48  ;;  %6238 = vmatpush1.bf16.msra.mxu1 %v13205_v52  ;;  %v13257_v48 = vld [vmem:[#allocation2 + $0x6e0] sm:$0xff] }
 0xa39   :  { %6239 = vmatprep.subr.bf16.mxu1 %v13209_v12 }
 0xa3b   :  { %6562 = vmatpush1.bf16.msra.mxu0 %v13098_v9  ;;  %v8079_v9 = vld [vmem:[#allocation2 + $0x6f0] sm:$0xff] }
 0xa3c   :  { %6563 = vmatprep.subr.bf16.mxu0 %v13102_v58  ;;  %6240 = vmatpush1.bf16.msra.mxu1 %v13213_v32  ;;  %v8080_v58 = vld [vmem:[#allocation2 + $0x708] sm:$0xff] }
 0xa3d   :  { %6241 = vmatprep.subr.bf16.mxu1 %v13217_v34 }
 0xa3f   :  { %6564 = vmatpush1.bf16.msra.mxu0 %v13106_v46  ;;  %v8084_v46 = vld [vmem:[#allocation2 + $0x728] sm:$0xff] }
 0xa40   :  { %6565 = vmatprep.subr.bf16.mxu0 %v13110_v51  ;;  %6242 = vmatpush1.bf16.msra.mxu1 %v13221_v19  ;;  %v8085_v51 = vld [vmem:[#allocation2 + $0x720] sm:$0xff] }
 0xa41   :  { %6243 = vmatprep.subr.bf16.mxu1 %v13225_v53 }
 0xa43   :  { %6566 = vmatpush1.bf16.msra.mxu0 %v13114_v27  ;;  %v8086_v27 = vld [vmem:[#allocation2 + $0x738] sm:$0xff] }
 0xa44   :  { %6567 = vmatprep.subr.bf16.mxu0 %v13118_v28  ;;  %6244 = vmatpush1.bf16.msra.mxu1 %v13232_v56  ;;  %v8087_v28 = vld [vmem:[#allocation2 + $0x730] sm:$0xff] }
 0xa45   :  { %6245 = vmatprep.subr.bf16.mxu1 %v13236_v8 }
 0xa47   :  { %6568 = vmatpush1.bf16.msra.mxu0 %v13122_v11  ;;  %v8088_v11 = vld [vmem:[#allocation2 + $0x748] sm:$0xff] }
 0xa48   :  { %6569 = vmatprep.subr.bf16.mxu0 %v13126_v60  ;;  %6246 = vmatpush1.bf16.msra.mxu1 %v13241_v17  ;;  %v8089_v60 = vld [vmem:[#allocation2 + $0x740] sm:$0xff] }
 0xa49   :  { %6247 = vmatprep.subr.bf16.mxu1 %v13245_v38 }
 0xa4b   :  { %6570 = vmatpush1.bf16.msra.mxu0 %v13132_v4  ;;  %v8091_v4 = vld [vmem:[#allocation2 + $0x750] sm:$0xff] }
 0xa4c   :  { %6580 = vmatprep.subr.bf16.mxu0 %v13137_v26  ;;  %6248 = vmatpush1.bf16.msra.mxu1 %v13249_v0  ;;  %v8093_v26 = vld [vmem:[#allocation2 + $0x760] sm:$0xff] }
 0xa4d   :  { %6249 = vmatprep.subr.bf16.mxu1 %v13253_v63 }
 0xa4e   :  { %6572 = vmatmul.mubr.bf16.vlgmr.msra.gmra.mrb[76].mxu0 %v6314_v35 }
 0xa4f   :  { %6581 = vmatpush1.bf16.msra.mxu0 %v13141_v44  ;;  %6612 = vmatprep.mubr.bf16.mxu0 %v6317_v7  ;;  %v8094_v44 = vld [vmem:[#allocation2 + $0x778] sm:$0xff] }
 0xa50   :  { %6582 = vmatprep.subr.bf16.mxu0 %v13145_v20  ;;  %6250 = vmatpush1.bf16.msra.mxu1 %v13257_v48  ;;  %v5962_v20 = vrot.slane %v11364_v18, 3  ;;  %v6316_v18 = vrot.slane %v12327_v3, 3  ;;  %v6318_v3 = vrot.slane %v12399_v33, 3 }
 0xa51   :  { %6251 = vmatprep.subr.bf16.mxu1 %v13261_v10 }
 0xa53   :  { %6583 = vmatpush1.bf16.msra.mxu0 %v13149_v29  ;;  %v8095_v29 = vld [vmem:[#allocation2 + $0x770] sm:$0xff] }
 0xa54   :  { %6584 = vmatprep.subr.bf16.mxu0 %v13153_v22  ;;  %6252 = vmatpush1.bf16.msra.mxu1 %v8079_v9 }
 0xa55   :  { %6262 = vmatprep.subr.bf16.mxu1 %v8080_v58 }
 0xa57   :  { %6585 = vmatpush1.bf16.msra.mxu0 %v13157_v21  ;;  %6254 = vmatmul.mubr.bf16.vlgmr.msra.gmra.mrb[68].mxu1 %v5960_v5 }
 0xa58   :  { %6586 = vmatprep.subr.bf16.mxu0 %v13161_v43  ;;  %6263 = vmatpush1.bf16.msra.mxu1 %v8081_v55 }
 0xa59   :  { %6294 = vmatprep.mubr.bf16.mxu1 %v13523_v23  ;;  %6264 = vmatprep.subr.bf16.mxu1 %v8082_v54 }
 0xa5b   :  { %6587 = vmatpush1.bf16.msra.mxu0 %v13165_v30  ;;  %v6666_v30 = vld [vmem:[%s13450_s7] sm:$0x3] }
 0xa5c   :  { %6588 = vmatprep.subr.bf16.mxu0 %v13169_v61  ;;  %6265 = vmatpush1.bf16.msra.mxu1 %v8083_v6 }
 0xa5d   :  { %6266 = vmatprep.subr.bf16.mxu1 %v8084_v46 }
 0xa5f   :  { %6589 = vmatpush1.bf16.msra.mxu0 %v13173_v62 }
 0xa60   :  { %6590 = vmatprep.subr.bf16.mxu0 %v13177_v15  ;;  %6267 = vmatpush1.bf16.msra.mxu1 %v8085_v51  ;;  %v13526_v15 = vsub.s32 0, %v11246_v31 }
 0xa61   :  { %6268 = vmatprep.subr.bf16.mxu1 %v8086_v27 }
 0xa63   :  { %6591 = vmatpush1.bf16.msra.mxu0 %v13181_v47  ;;  %v6671_v47 = vrot.slane %v6666_v30, %v13526_v15 }
 0xa64   :  { %6592 = vmatprep.subr.bf16.mxu0 %v13185_v37  ;;  %6269 = vmatpush1.bf16.msra.mxu1 %v8087_v28 }
 0xa65   :  { %6270 = vmatprep.subr.bf16.mxu1 %v8088_v11 }
 0xa67   :  { %6593 = vmatpush1.bf16.msra.mxu0 %v13189_v36 }
 0xa68   :  { %6594 = vmatprep.subr.bf16.mxu0 %v13193_v42  ;;  %6271 = vmatpush1.bf16.msra.mxu1 %v8089_v60  ;;  %v13527_v42 = vsub.s32 1, %v11246_v31 }
 0xa69   :  { %6272 = vmatprep.subr.bf16.mxu1 %v8090_v59 }
 0xa6b   :  { %6595 = vmatpush1.bf16.msra.mxu0 %v13197_v13  ;;  %v6675_v13 = vrot.slane %v6666_v30, %v13527_v42 }
 0xa6c   :  { %6596 = vmatprep.subr.bf16.mxu0 %v13201_v2  ;;  %6273 = vmatpush1.bf16.msra.mxu1 %v8091_v4 }
 0xa6d   :  { %6274 = vmatprep.subr.bf16.mxu1 %v8092_v39 }
 0xa6f   :  { %6597 = vmatpush1.bf16.msra.mxu0 %v13205_v52 }
 0xa70   :  { %6598 = vmatprep.subr.bf16.mxu0 %v13209_v12  ;;  %6275 = vmatpush1.bf16.msra.mxu1 %v8093_v26 }
 0xa71   :  { %6276 = vmatprep.subr.bf16.mxu1 %v8094_v44 }
 0xa73   :  { %6599 = vmatpush1.bf16.msra.mxu0 %v13213_v32 }
 0xa74   :  { %6600 = vmatprep.subr.bf16.mxu0 %v13217_v34  ;;  %6277 = vmatpush1.bf16.msra.mxu1 %v8095_v29 }
 0xa75   :  { %7384 = vmatprep.subr.bf16.mxu1 %v9331_v49 }
 0xa77   :  { %6601 = vmatpush1.bf16.msra.mxu0 %v13221_v19  ;;  %6295 = vmatmul.mubr.bf16.vlgmr.msra.gmra.mrb[68].mxu1 %v5962_v20 }
 0xa78   :  { %6602 = vmatprep.subr.bf16.mxu0 %v13225_v53 }
 0xa7b   :  { %6603 = vmatpush1.bf16.msra.mxu0 %v13232_v56 }
 0xa7c   :  { %6604 = vmatprep.subr.bf16.mxu0 %v13236_v8 }
 0xa7f   :  { %6605 = vmatpush1.bf16.msra.mxu0 %v13241_v17 }
 0xa80   :  { %6606 = vmatprep.subr.bf16.mxu0 %v13245_v38 }
 0xa83   :  { %6607 = vmatpush1.bf16.msra.mxu0 %v13249_v0 }
 0xa84   :  { %6608 = vmatprep.subr.bf16.mxu0 %v13253_v63 }
 0xa87   :  { %6609 = vmatpush1.bf16.msra.mxu0 %v13257_v48 }
 0xa88   :  { %6610 = vmatprep.subr.bf16.mxu0 %v13261_v10 }
 0xa8b   :  { %6611 = vmatpush1.bf16.msra.mxu0 %v8079_v9 }
 0xa8c   :  { %6621 = vmatprep.subr.bf16.mxu0 %v8080_v58 }
 0xa8e   :  { %6613 = vmatmul.mubr.bf16.vlgmr.msra.gmra.mrb[76].mxu0 %v6316_v18 }
 0xa8f   :  { %6622 = vmatpush1.bf16.msra.mxu0 %v8081_v55  ;;  %6653 = vmatprep.mubr.bf16.mxu0 %v13523_v23 }
 0xa90   :  { %6623 = vmatprep.subr.bf16.mxu0 %v8082_v54 }
 0xa93   :  { %6624 = vmatpush1.bf16.msra.mxu0 %v8083_v6 }
 0xa94   :  { %6625 = vmatprep.subr.bf16.mxu0 %v8084_v46 }
 0xa97   :  { %6626 = vmatpush1.bf16.msra.mxu0 %v8085_v51 }
 0xa98   :  { %6627 = vmatprep.subr.bf16.mxu0 %v8086_v27 }
 0xa9b   :  { %6628 = vmatpush1.bf16.msra.mxu0 %v8087_v28 }
 0xa9c   :  { %6629 = vmatprep.subr.bf16.mxu0 %v8088_v11 }
 0xa9f   :  { %6630 = vmatpush1.bf16.msra.mxu0 %v8089_v60 }
 0xaa0   :  { %6631 = vmatprep.subr.bf16.mxu0 %v8090_v59 }
 0xaa3   :  { %6632 = vmatpush1.bf16.msra.mxu0 %v8091_v4 }
 0xaa4   :  { %6633 = vmatprep.subr.bf16.mxu0 %v8092_v39 }
 0xaa7   :  { %6634 = vmatpush1.bf16.msra.mxu0 %v8093_v26 }
 0xaa8   :  { %6635 = vmatprep.subr.bf16.mxu0 %v8094_v44 }
 0xaab   :  { %6636 = vmatpush1.bf16.msra.mxu0 %v8095_v29 }
 0xaac   :  { %7406 = vmatprep.subr.bf16.mxu0 %v9411_v1 }
 0xaae   :  { %6654 = vmatmul.mubr.bf16.vlgmr.msra.gmra.mrb[76].mxu0 %v6318_v3 }
 0xb4a   :  { %v6296_v22 = vpop.f32.mrb[68].mxu1 }
 0xb4b   :  { %v6298_v21 = vpop.f32.mrb[69].mxu1 }
 0xb4c   :  { %v6300_v23 = vpop.f32.mrb[70].mxu1 }
 0xb4d   :  { %v6301_v43 = vpop.f32.mrb[71].mxu1 }
 0xb81   :  { %v6655_v61 = vpop.f32.mrb[76].mxu0 }
 0xb82   :  { %v6662_v62 = vmax.f32 %v6296_v22, %v6655_v61  ;;  %v6657_v37 = vpop.f32.mrb[77].mxu0 }
 0xb83   :  { %v6663_v36 = vmax.f32 %v6298_v21, %v6657_v37  ;;  %v6659_v33 = vpop.f32.mrb[78].mxu0 }
 0xb84   :  { %v6664_v2 = vmax.f32 %v5917_v25, %v6662_v62  ;;  %v6660_v52 = vpop.f32.mrb[79].mxu0 }
 0xb85   :  { %v6665_v12 = vmax.f32 %v5918_v16, %v6663_v36 }
 0xb86   :  { %v6678_v32 = vadd.f32 %v6671_v47, %v6664_v2 }
 0xb87   :  { %v6679_v34 = vadd.f32 %v6675_v13, %v6665_v12 }
 0xb88   :  { %v6680_v19 = vmax.f32 %v6678_v32, 0.0 }
 0xb89   :  { %v6681_v53 = vmax.f32 %v6679_v34, 0.0 }
 0xb8b   :  { %v6688_v31 = vpack.c.bf16 %v6681_v53, %v6681_v53 }
 0xb8c   :  { %8124 = dma.done.wait [#allocation4 + $0x1], 8192 }
 0xb8d   :  { %8125 = vsyncadd [#allocation4 + $0x1], 4294959104  ;;  %7385 = vmatpush3.bf16.msra.mxu1 %v9291_v41  ;;  %7407 = vmatpush3.bf16.msra.mxu0 %v9371_v57  ;;  %v13528_v40 = vld [vmem:[#allocation19_spill] sm:$0xff]  ;;  %v13529_v14 = vld [vmem:[#allocation33_spill] sm:$0xff]  ;;  %v6768_v50 = vshrl.u32 %v6688_v31, 16  ;;  %v6687_v58 = vpack.c.bf16 %v6680_v19, %v6680_v19  ;;  %v6833_v4 = vrot.slane %v6688_v31, 1 }
 0xb8e   :  { %7386 = vmatprep.subr.bf16.mxu1 %v13528_v40  ;;  %7408 = vmatprep.subr.bf16.mxu0 %v13529_v14  ;;  %v13530_v25 = vld [vmem:[#allocation12_spill] sm:$0xff]  ;;  %v13531_v24 = vld [vmem:[#allocation26_spill] sm:$0xff]  ;;  %v13534_v16 = vld [vmem:[#allocation13_spill] sm:$0xff]  ;;  %vm7027_vm15 = vcmask 73728   ;;  %s8139_s22 = smov [#allocation5]  }
 0xb8f   :  { %6738 = vmatprep.mubr.bf16.mxu1 %v6688_v31  ;;  %6804 = vmatprep.mubr.bf16.mxu0 %v6768_v50  ;;  %v13532_v49 = vld [vmem:[#allocation20_spill] sm:$0xff]  ;;  %v13533_v1 = vld [vmem:[#allocation34_spill] sm:$0xff]  ;;  %v13535_v41 = vld [vmem:[#allocation27_spill] sm:$0xff]  ;;  %v6765_v51 = vshrl.u32 %v6687_v58, 16  ;;  %v6895_v59 = vrot.slane %v6768_v50, 1  ;;  %v6832_v40 = vrot.slane %v6687_v58, 1 }
 0xb90   :  { %v13536_v57 = vld [vmem:[#allocation21_spill] sm:$0xff]  ;;  %v13537_v45 = vld [vmem:[#allocation35_spill] sm:$0xff]  ;;  %v13538_v56 = vld [vmem:[#allocation14_spill] sm:$0xff]  ;;  %s7046_s23 = sshll.u32 %s8139_s22, 4  ;;  %s7047_s23 = int_to_ptr.vmem [resolvable:$true] %s7046_s23 }
 0xb91   :  { %7387 = vmatpush3.bf16.msra.mxu1 %v13530_v25  ;;  %7409 = vmatpush3.bf16.msra.mxu0 %v13531_v24  ;;  %v13539_v8 = vld [vmem:[#allocation28_spill] sm:$0xff]  ;;  %v13540_v35 = vld [vmem:[#allocation22_spill] sm:$0xff]  ;;  %v13542_v17 = vld [vmem:[#allocation15_spill] sm:$0xff]  ;;  %v6894_v31 = vrot.slane %v6765_v51, 1  ;;  %v13588_v25 = vmov 0.0   ;;  %s8104_s1 = scalar_lea.vmem %s7047_s23, 32  ;;  %p8105_p1 = scmp.lt.s32.totalorder %s7047_s23, %s7047_s23 }
 0xb92   :  { %7388 = vmatprep.subr.bf16.mxu1 %v13532_v49  ;;  %7410 = vmatprep.subr.bf16.mxu0 %v13533_v1  ;;  %v13541_v7 = vld [vmem:[#allocation36_spill] sm:$0xff]  ;;  %v13543_v38 = vld [vmem:[#allocation29_spill] sm:$0xff]  ;;  %v13544_v0 = vld [vmem:[#allocation23_spill] sm:$0xff] }
 0xb93   :  { %v13545_v63 = vld [vmem:[#allocation37_spill] sm:$0xff]  ;;  %v13546_v48 = vld [vmem:[#allocation16_spill] sm:$0xff]  ;;  %v13547_v10 = vld [vmem:[#allocation30_spill] sm:$0xff] }
 0xb94   :  { %v13548_v5 = vld [vmem:[#allocation24_spill] sm:$0xff]  ;;  %v13549_v9 = vld [vmem:[#allocation38_spill] sm:$0xff]  ;;  %v13550_v55 = vld [vmem:[#allocation17_spill] sm:$0xff] }
 0xb95   :  { %7389 = vmatpush3.bf16.msra.mxu1 %v13534_v16  ;;  %7411 = vmatpush3.bf16.msra.mxu0 %v13535_v41  ;;  %v13551_v54 = vld [vmem:[#allocation31_spill] sm:$0xff]  ;;  %v13552_v6 = vld [vmem:[#allocation25_spill] sm:$0xff]  ;;  %v13554_v27 = vld [vmem:[#allocation18_spill] sm:$0xff]  ;;  %v8138_v16 = vmov 0.0|0.0  }
 0xb96   :  { %7390 = vmatprep.subr.bf16.mxu1 %v13536_v57  ;;  %7412 = vmatprep.subr.bf16.mxu0 %v13537_v45  ;;  %v13553_v46 = vld [vmem:[#allocation39_spill] sm:$0xff]  ;;  %v13555_v28 = vld [vmem:[#allocation32_spill] sm:$0xff]  ;;  %v13560_v44 = vld [vmem:[#allocation49_spill] sm:$0xff] }
 0xb97   :  { %v13556_v11 = vld [vmem:[#allocation48_spill] sm:$0xff]  ;;  %v13561_v20 = vld [vmem:[#allocation65_spill] sm:$0xff]  ;;  %v13564_v3 = vld [vmem:[#allocation50_spill] sm:$0xff] }
 0xb98   :  { %v13557_v60 = vld [vmem:[#allocation64_spill] sm:$0xff]  ;;  %v13562_v29 = vld [vmem:[#allocation41_spill] sm:$0xff]  ;;  %v13565_v22 = vld [vmem:[#allocation66_spill] sm:$0xff] }
 0xb99   :  { %7391 = vmatpush3.bf16.msra.mxu1 %v13538_v56  ;;  %7413 = vmatpush3.bf16.msra.mxu0 %v13539_v8  ;;  %v13558_v39 = vld [vmem:[#allocation40_spill] sm:$0xff]  ;;  %v13563_v18 = vld [vmem:[#allocation57_spill] sm:$0xff]  ;;  %v13566_v21 = vld [vmem:[#allocation42_spill] sm:$0xff] }
 0xb9a   :  { %7392 = vmatprep.subr.bf16.mxu1 %v13540_v35  ;;  %7414 = vmatprep.subr.bf16.mxu0 %v13541_v7  ;;  %v13559_v26 = vld [vmem:[#allocation56_spill] sm:$0xff]  ;;  %v13567_v23 = vld [vmem:[#allocation58_spill] sm:$0xff]  ;;  %v13568_v43 = vld [vmem:[#allocation51_spill] sm:$0xff] }
 0xb9b   :  { %v13569_v30 = vld [vmem:[#allocation67_spill] sm:$0xff]  ;;  %v13572_v15 = vld [vmem:[#allocation52_spill] sm:$0xff]  ;;  %v13576_v42 = vld [vmem:[#allocation53_spill] sm:$0xff] }
 0xb9c   :  { %v13570_v61 = vld [vmem:[#allocation43_spill] sm:$0xff]  ;;  %v13573_v47 = vld [vmem:[#allocation68_spill] sm:$0xff]  ;;  %v13577_v13 = vld [vmem:[#allocation69_spill] sm:$0xff] }
 0xb9d   :  { %7393 = vmatpush3.bf16.msra.mxu1 %v13542_v17  ;;  %7415 = vmatpush3.bf16.msra.mxu0 %v13543_v38  ;;  %v13571_v62 = vld [vmem:[#allocation59_spill] sm:$0xff]  ;;  %v13574_v37 = vld [vmem:[#allocation44_spill] sm:$0xff]  ;;  %v13578_v33 = vld [vmem:[#allocation45_spill] sm:$0xff] }
 0xb9e   :  { %7394 = vmatprep.subr.bf16.mxu1 %v13544_v0  ;;  %7416 = vmatprep.subr.bf16.mxu0 %v13545_v63  ;;  %v13575_v36 = vld [vmem:[#allocation60_spill] sm:$0xff]  ;;  %v13579_v2 = vld [vmem:[#allocation61_spill] sm:$0xff]  ;;  %v13580_v52 = vld [vmem:[#allocation54_spill] sm:$0xff] }
 0xb9f   :  { %v13581_v12 = vld [vmem:[#allocation70_spill] sm:$0xff]  ;;  %v13584_v19 = vld [vmem:[#allocation55_spill] sm:$0xff]  ;;  %v6941_v49 = vld [vmem:[%s13453_s10 + $0x8] sm:$0xff] }
 0xba0   :  { %v13582_v32 = vld [vmem:[#allocation46_spill] sm:$0xff]  ;;  %v13585_v53 = vld [vmem:[#allocation71_spill] sm:$0xff]  ;;  %v6945_v8 = vld [vmem:[%s13453_s10 + $0x28] sm:$0xff] }
 0xba1   :  { %7395 = vmatpush3.bf16.msra.mxu1 %v13546_v48  ;;  %7417 = vmatpush3.bf16.msra.mxu0 %v13547_v10  ;;  %v13583_v34 = vld [vmem:[#allocation62_spill] sm:$0xff]  ;;  %v13586_v14 = vld [vmem:[#allocation47_spill] sm:$0xff]  ;;  %v6949_v63 = vld [vmem:[%s13453_s10 + $0x48] sm:$0xff] }
 0xba2   :  { %7396 = vmatprep.subr.bf16.mxu1 %v13548_v5  ;;  %7418 = vmatprep.subr.bf16.mxu0 %v13549_v9  ;;  %v13587_v50 = vld [vmem:[#allocation63_spill] sm:$0xff]  ;;  %v6942_v1 = vld [vmem:[%s13453_s10 + $0x10] sm:$0xff] }
 0xba3   :  { %v6940_v24 = vld [vmem:[%s13453_s10] sm:$0xff]  ;;  %v6943_v57 = vld [vmem:[%s13453_s10 + $0x18] sm:$0xff]  ;;  %v6946_v7 = vld [vmem:[%s13453_s10 + $0x30] sm:$0xff] }
 0xba4   :  { %v7555_v41 = vpack.c.bf16 %v6941_v49, %v6940_v24  ;;  %v7558_v45 = vpack.c.bf16 %v6943_v57, %v6942_v1  ;;  %v6944_v56 = vld [vmem:[%s13453_s10 + $0x20] sm:$0xff]  ;;  %v6947_v17 = vld [vmem:[%s13453_s10 + $0x38] sm:$0xff]  ;;  %v6950_v10 = vld [vmem:[%s13453_s10 + $0x50] sm:$0xff] }
 0xba5   :  { %7397 = vmatpush3.bf16.msra.mxu1 %v13550_v55  ;;  %7419 = vmatpush3.bf16.msra.mxu0 %v13551_v54  ;;  %v7561_v35 = vpack.c.bf16 %v6945_v8, %v6944_v56  ;;  %v7564_v38 = vpack.c.bf16 %v6947_v17, %v6946_v7  ;;  %v6948_v0 = vld [vmem:[%s13453_s10 + $0x40] sm:$0xff]  ;;  %v6951_v5 = vld [vmem:[%s13453_s10 + $0x58] sm:$0xff]  ;;  %v6953_v55 = vld [vmem:[%s13453_s10 + $0x68] sm:$0xff] }
 0xba6   :  { %7398 = vmatprep.subr.bf16.mxu1 %v13552_v6  ;;  %7420 = vmatprep.subr.bf16.mxu0 %v13553_v46  ;;  %v7567_v48 = vpack.c.bf16 %v6949_v63, %v6948_v0  ;;  %v7570_v9 = vpack.c.bf16 %v6951_v5, %v6950_v10  ;;  %v6954_v6 = vld [vmem:[%s13453_s10 + $0x70] sm:$0xff]  ;;  %v6955_v46 = vld [vmem:[%s13453_s10 + $0x78] sm:$0xff] }
 0xba9   :  { %7399 = vmatpush3.bf16.msra.mxu1 %v13554_v27  ;;  %7421 = vmatpush3.bf16.msra.mxu0 %v13555_v28 }
 0xbaa   :  { %7428 = vmatprep.subr.bf16.mxu1 %v13556_v11  ;;  %7450 = vmatprep.subr.bf16.mxu0 %v13557_v60  ;;  %v6689_v11 = vld [vmem:[%s13452_s9] sm:$0x1] }
 0xbac   :  { %6739 = vmatmul.mubr.bf16.vlgmr.msra.gmra.mrb[72].mxu1 %v6687_v58  ;;  %6805 = vmatmul.mubr.bf16.vlgmr.msra.gmra.mrb[80].mxu0 %v6765_v51  ;;  %v6952_v58 = vld [vmem:[%s13453_s10 + $0x60] sm:$0xff]  ;;  %v7576_v51 = vpack.c.bf16 %v6955_v46, %v6954_v6 }
 0xbad   :  { %7429 = vmatpush3.bf16.msra.mxu1 %v13558_v39  ;;  %7451 = vmatpush3.bf16.msra.mxu0 %v13559_v26  ;;  %v7573_v54 = vpack.c.bf16 %v6953_v55, %v6952_v58 }
 0xbae   :  { %7430 = vmatprep.subr.bf16.mxu1 %v13560_v44  ;;  %7452 = vmatprep.subr.bf16.mxu0 %v13561_v20 }
 0xbaf   :  { %6868 = vmatprep.mubr.bf16.mxu1 %v6833_v4  ;;  %6930 = vmatprep.mubr.bf16.mxu0 %v6895_v59 }
 0xbb1   :  { %7431 = vmatpush3.bf16.msra.mxu1 %v13562_v29  ;;  %7453 = vmatpush3.bf16.msra.mxu0 %v13563_v18 }
 0xbb2   :  { %7432 = vmatprep.subr.bf16.mxu1 %v13564_v3  ;;  %7454 = vmatprep.subr.bf16.mxu0 %v13565_v22 }
 0xbb5   :  { %7433 = vmatpush3.bf16.msra.mxu1 %v13566_v21  ;;  %7455 = vmatpush3.bf16.msra.mxu0 %v13567_v23 }
 0xbb6   :  { %7434 = vmatprep.subr.bf16.mxu1 %v13568_v43  ;;  %7456 = vmatprep.subr.bf16.mxu0 %v13569_v30 }
 0xbb9   :  { %7435 = vmatpush3.bf16.msra.mxu1 %v13570_v61  ;;  %7457 = vmatpush3.bf16.msra.mxu0 %v13571_v62 }
 0xbba   :  { %7436 = vmatprep.subr.bf16.mxu1 %v13572_v15  ;;  %7458 = vmatprep.subr.bf16.mxu0 %v13573_v47 }
 0xbbd   :  { %7437 = vmatpush3.bf16.msra.mxu1 %v13574_v37  ;;  %7459 = vmatpush3.bf16.msra.mxu0 %v13575_v36 }
 0xbbe   :  { %7438 = vmatprep.subr.bf16.mxu1 %v13576_v42  ;;  %7460 = vmatprep.subr.bf16.mxu0 %v13577_v13 }
 0xbc1   :  { %7439 = vmatpush3.bf16.msra.mxu1 %v13578_v33  ;;  %7461 = vmatpush3.bf16.msra.mxu0 %v13579_v2  ;;  %v6956_v33 = vld [vmem:[%s13454_s11] sm:$0x1]  ;;  %s8100_s11 = scalar_lea.vmem %s7047_s23, 16 }
 0xbc2   :  { %7440 = vmatprep.subr.bf16.mxu1 %v13580_v52  ;;  %7462 = vmatprep.subr.bf16.mxu0 %v13581_v12  ;;  %p8101_p0 = scmp.ne.s32.totalorder %s7047_s23, %s8100_s11  ;;  %p8106_p2 = scmp.lt.s32.totalorder %s8104_s1, %s8100_s11 }
 0xbc4   :  { %p8107_p3 = por %p8106_p2, %p8105_p1 }
 0xbc5   :  { %7441 = vmatpush3.bf16.msra.mxu1 %v13582_v32  ;;  %7463 = vmatpush3.bf16.msra.mxu0 %v13583_v34 }
 0xbc6   :  { %7442 = vmatprep.subr.bf16.mxu1 %v13584_v19  ;;  %7464 = vmatprep.subr.bf16.mxu0 %v13585_v53  ;;  %p8108_p4 = pnand %p8107_p3, %p8101_p0 }
 0xbc9   :  { %7443 = vmatpush3.bf16.msra.mxu1 %v13586_v14  ;;  %7465 = vmatpush3.bf16.msra.mxu0 %v13587_v50 }
 0xbca   :  { %7554 = vmatprep.subr.bf16.mxu1 %v8138_v16 }
 0xbcc   :  { %6869 = vmatmul.mubr.bf16.vlgmr.msra.gmra.mrb[76].mxu1 %v6832_v40  ;;  %6931 = vmatmul.mubr.bf16.vlgmr.msra.gmra.mrb[84].mxu0 %v6894_v31 }
 0xbcd   :  { %7551 = vmatprep.mubr.msk.f32.mxu1 %vm8136_vm14, %v13588_v25  ;;  %7556 = vmatpush3.bf16.msra.mxu1 %v7555_v41 }
 0xbce   :  { %7557 = vmatprep.subr.bf16.mxu1 %v8138_v16 }
 0xbd1   :  { %7559 = vmatpush3.bf16.msra.mxu1 %v7558_v45 }
 0xbd2   :  { %7560 = vmatprep.subr.bf16.mxu1 %v8138_v16 }
 0xbd5   :  { %7562 = vmatpush3.bf16.msra.mxu1 %v7561_v35 }
 0xbd6   :  { %7563 = vmatprep.subr.bf16.mxu1 %v8138_v16 }
 0xbd9   :  { %7565 = vmatpush3.bf16.msra.mxu1 %v7564_v38 }
 0xbda   :  { %7566 = vmatprep.subr.bf16.mxu1 %v8138_v16 }
 0xbdd   :  { %7568 = vmatpush3.bf16.msra.mxu1 %v7567_v48 }
 0xbde   :  { %7569 = vmatprep.subr.bf16.mxu1 %v8138_v16 }
 0xbe1   :  { %7571 = vmatpush3.bf16.msra.mxu1 %v7570_v9 }
 0xbe2   :  { %7572 = vmatprep.subr.bf16.mxu1 %v8138_v16 }
 0xbe5   :  { %7574 = vmatpush3.bf16.msra.mxu1 %v7573_v54 }
 0xbe6   :  { %7575 = vmatprep.subr.bf16.mxu1 %v8138_v16 }
 0xbe9   :  { %7577 = vmatpush3.bf16.msra.mxu1 %v7576_v51 }
 0xc7f   :  { %v7400_v27 = vpop.f32.mrb[72].mxu1  ;;  %v7422_v28 = vpop.f32.mrb[80].mxu0 }
 0xc80   :  { %v7401_v60 = vpop.f32.mrb[73].mxu1  ;;  %v7423_v59 = vpop.f32.mrb[81].mxu0 }
 0xc81   :  { %v7402_v4 = vadd.f32 %v7401_v60, %v7400_v27  ;;  %v7424_v39 = vadd.f32 %v7423_v59, %v7422_v28  ;;  %v7403_v26 = vpop.f32.mrb[74].mxu1  ;;  %v7425_v44 = vpop.f32.mrb[82].mxu0 }
 0xc82   :  { %v7404_v20 = vpop.f32.mrb[75].mxu1  ;;  %v7426_v29 = vpop.f32.mrb[83].mxu0 }
 0xc83   :  { %v6746_v18 = vadd.f32 %v7402_v4, %v6689_v11 }
 0xc85   :  { %v6812_v3 = vadd.f32 %v7424_v39, %v6746_v18 }
 0xc9f   :  { %v7444_v22 = vpop.f32.mrb[76].mxu1  ;;  %v7466_v21 = vpop.f32.mrb[84].mxu0 }
 0xca0   :  { %v7445_v23 = vpop.f32.mrb[77].mxu1  ;;  %v7467_v43 = vpop.f32.mrb[85].mxu0 }
 0xca1   :  { %v7446_v30 = vadd.f32 %v7445_v23, %v7444_v22  ;;  %v7468_v61 = vadd.f32 %v7467_v43, %v7466_v21  ;;  %v7447_v62 = vpop.f32.mrb[78].mxu1  ;;  %v7469_v15 = vpop.f32.mrb[86].mxu0 }
 0xca2   :  { %v7448_v47 = vpop.f32.mrb[79].mxu1  ;;  %v7470_v37 = vpop.f32.mrb[87].mxu0 }
 0xca3   :  { %v6876_v36 = vadd.f32 %v7446_v30, %v6812_v3 }
 0xca5   :  { %v6938_v42 = vadd.f32 %v7468_v61, %v6876_v36 }
 0xca7   :  { %v6939_v13 = vmax.f32 %v6938_v42, 0.0 }
 0xca9   :  { %7552 = vmatmul.mubr.f32.vlgmr.msra.gmra.mrb[80].mxu1 %v6939_v13 }
 0xd7c   :  { %v7023_v2 = vpop.f32.mrb[80].mxu1 }
 0xd7d   :  { %v7024_v52 = vadd.f32 %v7023_v2, %v6956_v33  ;;  %v7553_v12 = vpop.f32.mrb[81].mxu1 }
 0xd7f   :  { %v7028_v32 = vsel %vm7027_vm15, %v7024_v52, -inf }
 0xd80   :  { %7029 = vmax.xlane.f32.xlu0 %v7028_v32 }
 0xe0d   :  { %v7030_v34 = vpop.xlane.xlu0 %7029 }
 0xe0e   :  { %v7031_v19 = vsub.f32 %v7024_v52, %v7030_v34 }
 0xe10   :  { %v7032_v53 = vmul.f32 1.442695, %v7031_v19 }
 0xe12   :  { %8096 = vpow2.f32 %v7032_v53 }
 0xe1c   :  { %v8097_v31 = vpop.eup %8096 }
 0xe1d   :  { %v7034_v40 = vsel %vm7027_vm15, %v8097_v31, 0.0 }
 0xe1e   :  { %7035 = vadd.xlane.f32.xlu0 %v7034_v40 }
 0xeab   :  { %v7036_v14 = vpop.xlane.xlu0 %7035 }
 0xeac   :  { %8098 = vrcp.f32 %v7036_v14 }
 0xeb6   :  { %v8099_v50 = vpop.eup %8098 }
 0xeb7   :  { %v7038_v25 = vmul.f32 %v8099_v50, %v8097_v31 }
 0xeb9   :  { %7039 = vst.msk [vmem:[#allocation5] sm:$0x1] %vm7027_vm15, %v7038_v25 }
 0xeba   :  { %8111 = shalt.err (!%p8108_p4)
}
 0xebb   :  { %s8112_s8 = scalar_lea.hbm %s13455_s12, 16 }
 0xebc   :  { %p8113_p5 = scmp.ne.s32.totalorder %s13455_s12, %s8112_s8  ;;  %p8116_p6 = scmp.lt.u32.totalorder %s8112_s8, %s13455_s12 }
 0xebe   :  { %p8118_p7 = pnand %p8116_p6, %p8113_p5 }
 0xec0   :  { %8121 = shalt.err (!%p8118_p7)
}
 0xec1   :  { %7049 = dma.vmem_to_hbm [thread:$0]  %s7047_s23, 16, %s13455_s12, [#allocation6]  }
 0xec2   :  { %8126 = dma.done.wait [#allocation6], 16  }
 0xec3   :  { %8127 = vsyncadd [#allocation6], 4294967280 }
 0xec4   :  { %7053 = vsyncpa [#allocation6], 1 }
 0xec5   :  { %7054 = vsyncmov [#allocation4] }
 0xec8   :  { %s7055_s6 = vpop.sfrf %7054 }
 0xec9   :  { %p7228_p8 = scmp.ne.s32.totalorder %s7055_s6, 0 }
 0xecb   :  { %7059 = shalt.err (%p7228_p8)  }
 0xecc   :  { %7061 = vsyncmov [#allocation4 + $0x1] }
 0xecf   :  { %s7062_s30 = vpop.sfrf %7061 }
 0xed0   :  { %p7229_p9 = scmp.ne.s32.totalorder %s7062_s30, 0 }
 0xed2   :  { %7066 = shalt.err (%p7229_p9)  }

</bundles_post_ra>
